<compile_context>
chip_gen: v6e
topology: v6e:2x2x1
jax: 0.10.0
libtpu: 0.0.40
codegen_flags: <defaults>
</compile_context>

<pallas_src>
import jax
import jax.numpy as jnp
from jax.experimental import pallas as pl
from jax.experimental.pallas import tpu as pltpu

LANE = 128                                    # one vreg of lanes per gate
_VMEM = pl.BlockSpec(memory_space=pltpu.MemorySpace.VMEM)


# ----------------------------- parameter packing ---------------------------

def _lane_pad(a, width):
    return jnp.pad(a, ((0, 0), (0, width - a.shape[-1])))


def _gate_pad(parts, width=LANE):
    """Concat gate blocks [r | z | n], each zero-padded to `width` lanes."""
    return jnp.concatenate([_lane_pad(p, width) for p in parts], axis=-1)


def _prep_full_layer(p):
    """Non-folded GRU layer -> gate-padded (wih, whh, bx, bhn_row)."""
    wih, whh, bih, bhh = p
    wih_p = _gate_pad([wih[0], wih[1], wih[2]])                      # (D, 384)
    whh_p = _gate_pad([whh[0], whh[1], whh[2]])                      # (H, 384)
    bx = _gate_pad([bih[0] + bhh[0], bih[1] + bhh[1], bih[2]])       # (1, 384)
    bhn = _lane_pad(bhh[2], 3 * LANE)                                # (1, 384)
    return wih_p, whh_p, bx, bhn


def _prep_folded_layer(p, fcw, fcb, T, H):
    """GRU layer whose input projection absorbs the preceding Linear.

    xproj[:, t*3H + g*H : +H] = relu_flat @ Wf + bf   (gates unpadded, 3H per t)
    """
    wih, whh, bih, bhh = p
    wih_cat = jnp.concatenate([wih[0], wih[1], wih[2]], axis=-1)     # (H, 3H)
    bx_cat = jnp.concatenate([bih[0] + bhh[0], bih[1] + bhh[1], bih[2]], axis=-1)
    hi = jax.lax.Precision.HIGHEST                                   # offline fold: exact
    wf = jnp.einsum("kth,hg->ktg", fcw.reshape(T * H, T, H), wih_cat,
                    precision=hi).reshape(T * H, T * 3 * H)          # (TH, T*3H)
    bf = (jnp.einsum("th,hg->tg", fcb.reshape(T, H), wih_cat, precision=hi)
          + bx_cat).reshape(1, T * 3 * H)                            # (1, T*3H)
    whh_p = _gate_pad([whh[0], whh[1], whh[2]])                      # (H, 384)
    bhn = _lane_pad(bhh[2], 3 * LANE)                                # (1, 384)
    return wf, bf, whh_p, bhn


def _pack_rows(named, width):
    """Row-stack tensors (rows padded to x8, lanes to `width`) -> (slab, offsets)."""
    off, rows, cur = {}, [], 0
    for name, a in named:
        a = jnp.pad(a, ((0, (-a.shape[0]) % 8), (0, width - a.shape[-1])))
        off[name] = cur
        rows.append(a.astype(jnp.float32))
        cur += a.shape[0]
    return jnp.concatenate(rows, axis=0), off


def prepare_params(params, T):
    """Pack all weights into two contiguous slabs + static row-offset tables."""
    H = params["hidden_dim"]
    a_list, b_list = [], []
    for blk in range(3):
        l0, l1 = params[f"gru{blk}"]
        if blk == 0:
            wih0, whh0, bx0, bhn0 = _prep_full_layer(l0)
            a_list += [("wih_0_0", wih0), ("whh_0_0", whh0),
                       ("bx_0_0", bx0), ("bhn_0_0", bhn0)]
        else:
            wf, bf, whh0, bhn0 = _prep_folded_layer(
                l0, params[f"fc{blk - 1}_w"], params[f"fc{blk - 1}_b"], T, H)
            b_list += [(f"wf_{blk}", wf), (f"bf_{blk}", bf)]
            a_list += [(f"whh_{blk}_0", whh0), (f"bhn_{blk}_0", bhn0)]
        wih1, whh1, bx1, bhn1 = _prep_full_layer(l1)
        a_list += [(f"wih_{blk}_1", wih1), (f"whh_{blk}_1", whh1),
                   (f"bx_{blk}_1", bx1), (f"bhn_{blk}_1", bhn1)]
    a_list += [("fc2_w", _lane_pad(params["fc2_w"], 3 * LANE)),
               ("fc2_b", _lane_pad(params["fc2_b"], 3 * LANE))]
    slab_a, off_a = _pack_rows(a_list, 3 * LANE)        # (~424, 384) ~0.65 MiB
    slab_b, off_b = _pack_rows(b_list, 3 * T * H)       # (~528, 768) ~1.6 MiB
    return slab_a, slab_b, off_a, off_b


# ------------------------------ fused kernel -------------------------------

def make_grunet_forward(din, H, T, dout, off_a, off_b):
    G = LANE
    W3 = 3 * G          # gate-padded row width (384)
    GH = 3 * H          # unpadded gate width per timestep in folded xproj (96)

    def fwd(x, h0, slab_a, slab_b):
        B = x.shape[0]
        Bp = max(8, -(-B // 8) * 8)          # pad batch to a sublane tile

        def kernel(x_ref, h0_ref, a_ref, b_ref, out_ref, hn_ref):
            def load_row(ref, off, width):   # (1,width) bias row, hoisted broadcast
                return jnp.broadcast_to(ref[off:off + 1, :width], (Bp, width))

            def gru_step(h, gx_r, gx_z, gx_n, whh, bhn):
                # gh gate slices land at 0/128/256 -> whole-vreg selects.
                gh = jnp.dot(h, whh, preferred_element_type=jnp.float32)   # (Bp, 384)
                r = jax.nn.sigmoid(gx_r + gh[:, 0:H])
                z = jax.nn.sigmoid(gx_z + gh[:, G:G + H])
                n = jnp.tanh(gx_n + r * (gh[:, 2 * G:2 * G + H] + bhn))
                return (1.0 - z) * n + z * h

            h_l0 = h0_ref[0]                 # (Bp, H)
            h_l1 = h0_ref[1]
            xp = None                        # folded layer-0 input proj of current block
            last = None

            for blk in range(3):
                whh0 = a_ref[off_a[f"whh_{blk}_0"]:off_a[f"whh_{blk}_0"] + H, :]
                whh1 = a_ref[off_a[f"whh_{blk}_1"]:off_a[f"whh_{blk}_1"] + H, :]
                wih1 = a_ref[off_a[f"wih_{blk}_1"]:off_a[f"wih_{blk}_1"] + H, :]
                bhn0 = load_row(a_ref, off_a[f"bhn_{blk}_0"], H)
                bhn1 = load_row(a_ref, off_a[f"bhn_{blk}_1"], H)
                bx1 = load_row(a_ref, off_a[f"bx_{blk}_1"], W3)
                if blk == 0:
                    wih0 = a_ref[off_a["wih_0_0"]:off_a["wih_0_0"] + din, :]
                    bx0 = load_row(a_ref, off_a["bx_0_0"], W3)
                if blk < 2:
                    nb = blk + 1
                    wf_off = off_b[f"wf_{nb}"]
                    xp_next = jnp.broadcast_to(
                        b_ref[off_b[f"bf_{nb}"]:off_b[f"bf_{nb}"] + 1, :], (Bp, T * GH))

                for t in range(T):           # static unroll; wavefront over 2 layers
                    # ---- layer 0: input-side gates
                    if blk == 0:
                        xt = x_ref[t * Bp:(t + 1) * Bp, :]
                        g0 = jnp.dot(xt, wih0,
                                     preferred_element_type=jnp.float32) + bx0
                        gx = (g0[:, 0:H], g0[:, G:G + H], g0[:, 2 * G:2 * G + H])
                    else:
                        base = t * GH        # folded ReLU+Linear+W_ih projection
                        gx = (xp[:, base:base + H],
                              xp[:, base + H:base + 2 * H],
                              xp[:, base + 2 * H:base + 3 * H])
                    h_l0 = gru_step(h_l0, *gx, whh0, bhn0)

                    # ---- layer 1 (only needs layer-0 step t -> wavefront DAG)
                    # TODO(synk): nn.GRU inter-layer dropout (p=0.2) is training-only;
                    # omitted (eval mode).
                    g1 = jnp.dot(h_l0, wih1,
                                 preferred_element_type=jnp.float32) + bx1
                    h_l1 = gru_step(h_l1, g1[:, 0:H], g1[:, G:G + H],
                                    g1[:, 2 * G:2 * G + H], whh1, bhn1)

                    # ---- consume layer-1 output as it becomes available
                    if blk < 2:
                        wf_t = b_ref[wf_off + t * H: wf_off + (t + 1) * H, :]
                        xp_next = xp_next + jnp.dot(
                            jnp.maximum(h_l1, 0.0), wf_t,
                            preferred_element_type=jnp.float32)
                    elif t == T - 1:
                        last = jnp.maximum(h_l1, 0.0)      # ReLU(out[:, -1, :])

                if blk < 2:
                    xp = xp_next

            fc2_w = a_ref[off_a["fc2_w"]:off_a["fc2_w"] + H, :]
            fc2_b = a_ref[off_a["fc2_b"]:off_a["fc2_b"] + 1, :]
            res = jnp.dot(last, fc2_w, preferred_element_type=jnp.float32) + fc2_b
            out_ref[...] = res[:, :dout]
            hn_ref[0] = h_l0
            hn_ref[1] = h_l1

        # Wrapper-side layout plumbing: contiguous (T*Bp, DIN) input, padded batch.
        xt = jnp.transpose(x, (1, 0, 2))                              # (T, B, DIN)
        xt = jnp.pad(xt, ((0, 0), (0, Bp - B), (0, 0))).reshape(T * Bp, din)
        h0p = jnp.pad(h0, ((0, 0), (0, Bp - B), (0, 0)))

        out, hn = pl.pallas_call(
            kernel,
            out_shape=(jax.ShapeDtypeStruct((Bp, dout), jnp.float32),
                       jax.ShapeDtypeStruct((2, Bp, H), jnp.float32)),
            in_specs=[_VMEM, _VMEM, _VMEM, _VMEM],
            out_specs=(_VMEM, _VMEM),
            input_output_aliases={1: 1},      # h0 buffer reused for hn
        )(xt, h0p, slab_a, slab_b)
        return out[:B], hn[:, :B]

    return jax.jit(fwd)


# ------------------------ params & pure-JAX reference ----------------------

def init_gru_layer(key, din, H):
    ks = jax.random.split(key, 4)
    s = 1.0 / float(H) ** 0.5
    wih = jax.random.uniform(ks[0], (3, din, H), jnp.float32, -s, s)
    whh = jax.random.uniform(ks[1], (3, H, H), jnp.float32, -s, s)
    bih = jax.random.uniform(ks[2], (3, 1, H), jnp.float32, -s, s)
    bhh = jax.random.uniform(ks[3], (3, 1, H), jnp.float32, -s, s)
    return (wih, whh, bih, bhh)


def init_linear(key, din, dout):
    k1, k2 = jax.random.split(key)
    s = 1.0 / float(din) ** 0.5
    w = jax.random.uniform(k1, (din, dout), jnp.float32, -s, s)
    b = jax.random.uniform(k2, (1, dout), jnp.float32, -s, s)
    return w, b


def _gru_layer_ref(x_btd, h0, p):
    wih, whh, bih, bhh = p

    def step(h, x_t):
        r = jax.nn.sigmoid(x_t @ wih[0] + bih[0] + h @ whh[0] + bhh[0])
        z = jax.nn.sigmoid(x_t @ wih[1] + bih[1] + h @ whh[1] + bhh[1])
        n = jnp.tanh(x_t @ wih[2] + bih[2] + r * (h @ whh[2] + bhh[2]))
        h_new = (1.0 - z) * n + z * h
        return h_new, h_new

    hT, outs = jax.lax.scan(step, h0, jnp.transpose(x_btd, (1, 0, 2)))
    return jnp.transpose(outs, (1, 0, 2)), hT


def _gru2_ref(x, h0, l0, l1):
    o0, hf0 = _gru_layer_ref(x, h0[0], l0)
    o1, hf1 = _gru_layer_ref(o0, h0[1], l1)
    return o1, jnp.stack([hf0, hf1])


def grunet_ref(x, h, params):
    B, T, _ = x.shape
    H = params["hidden_dim"]
    out, h = _gru2_ref(x, h, *params["gru0"])
    out = jnp.maximum(out.reshape(B, T * H), 0.0) @ params["fc0_w"] + params["fc0_b"]
    out = out.reshape(B, T, H)
    out, h = _gru2_ref(out, h, *params["gru1"])
    out = jnp.maximum(out.reshape(B, T * H), 0.0) @ params["fc1_w"] + params["fc1_b"]
    out = out.reshape(B, T, H)
    out, h = _gru2_ref(out, h, *params["gru2"])
    out = jnp.maximum(out[:, -1, :], 0.0) @ params["fc2_w"] + params["fc2_b"]
    return out, h


# --------------------------------- main ------------------------------------

if __name__ == "__main__":
    # Small shapes consistent with the module: batch=4, seq(backwards)=8,
    # input_dim=16, hidden_dim=32 (2**5), n_layers=2, output_dim=168.
    B, T, DIN, H, DOUT = 4, 8, 16, 32, 168

    key = jax.random.PRNGKey(0)
    kx, _, *kps = jax.random.split(key, 12)

    x = jax.random.normal(kx, (B, T, DIN), jnp.float32)
    h0 = jnp.zeros((2, B, H), jnp.float32)   # GRUNet.init_hidden

    params = {
        "hidden_dim": H,
        "gru0": (init_gru_layer(kps[0], DIN, H), init_gru_layer(kps[1], H, H)),
        "gru1": (init_gru_layer(kps[2], H, H), init_gru_layer(kps[3], H, H)),
        "gru2": (init_gru_layer(kps[4], H, H), init_gru_layer(kps[5], H, H)),
    }
    params["fc0_w"], params["fc0_b"] = init_linear(kps[6], T * H, T * H)
    params["fc1_w"], params["fc1_b"] = init_linear(kps[7], T * H, T * H)
    params["fc2_w"], params["fc2_b"] = init_linear(kps[8], H, DOUT)

    slab_a, slab_b, off_a, off_b = prepare_params(params, T)
    grunet_forward = make_grunet_forward(DIN, H, T, DOUT, off_a, off_b)

    out, hn = jax.block_until_ready(grunet_forward(x, h0, slab_a, slab_b))

    out_r, hn_r = grunet_ref(x, h0, params)
    assert out.shape == (B, DOUT) and hn.shape == (2, B, H)
    # Tolerance accounts for MXU default (bf16-pass) precision + the offline
    # fc->W_ih fold reassociation; real bugs produce O(0.1-1) errors.
    assert jnp.allclose(out, out_r, atol=2e-3, rtol=2e-3), "output mismatch vs reference"
    assert jnp.allclose(hn, hn_r, atol=2e-3, rtol=2e-3), "hidden mismatch vs reference"

    print("KERNEL_OK")
</pallas_src>

<mosaic_0001>
module attributes {stable_mosaic.version = 11 : i64} {
  func.func @kernel(%arg0: memref<64x16xf32, #tpu.memory_space<vmem>>, %arg1: memref<2x8x32xf32, #tpu.memory_space<vmem>>, %arg2: memref<424x384xf32, #tpu.memory_space<vmem>>, %arg3: memref<528x768xf32, #tpu.memory_space<vmem>>, %arg4: memref<8x168xf32, #tpu.memory_space<vmem>>, %arg5: memref<2x8x32xf32, #tpu.memory_space<vmem>>) attributes {dimension_semantics = [], scalar_prefetch = 0 : i64, scratch_operands = 0 : i64, tpu.core_type = #tpu.core_type<tc>} {
    %c0 = arith.constant 0 : index
    %c0_0 = arith.constant 0 : index
    %c0_1 = arith.constant 0 : index
    %0 = vector.load %arg1[%c0, %c0_0, %c0_1] : memref<2x8x32xf32, #tpu.memory_space<vmem>>, vector<1x8x32xf32>
    %1 = vector.shape_cast %0 : vector<1x8x32xf32> to vector<8x32xf32>
    %c1 = arith.constant 1 : index
    %c0_2 = arith.constant 0 : index
    %c0_3 = arith.constant 0 : index
    %2 = vector.load %arg1[%c1, %c0_2, %c0_3] : memref<2x8x32xf32, #tpu.memory_space<vmem>>, vector<1x8x32xf32>
    %3 = vector.shape_cast %2 : vector<1x8x32xf32> to vector<8x32xf32>
    %c16 = arith.constant 16 : index
    %c0_4 = arith.constant 0 : index
    %4 = vector.load %arg2[%c16, %c0_4] : memref<424x384xf32, #tpu.memory_space<vmem>>, vector<32x384xf32>
    %c96 = arith.constant 96 : index
    %c0_5 = arith.constant 0 : index
    %5 = vector.load %arg2[%c96, %c0_5] : memref<424x384xf32, #tpu.memory_space<vmem>>, vector<32x384xf32>
    %c64 = arith.constant 64 : index
    %c0_6 = arith.constant 0 : index
    %6 = vector.load %arg2[%c64, %c0_6] : memref<424x384xf32, #tpu.memory_space<vmem>>, vector<32x384xf32>
    %c56 = arith.constant 56 : index
    %c0_7 = arith.constant 0 : index
    %7 = vector.load %arg2[%c56, %c0_7] : memref<424x384xf32, #tpu.memory_space<vmem>>, vector<1x32xf32>
    %8 = vector.shape_cast %7 : vector<1x32xf32> to vector<1x32xf32>
    %9 = vector.broadcast %8 : vector<1x32xf32> to vector<8x32xf32>
    %c136 = arith.constant 136 : index
    %c0_8 = arith.constant 0 : index
    %10 = vector.load %arg2[%c136, %c0_8] : memref<424x384xf32, #tpu.memory_space<vmem>>, vector<1x32xf32>
    %11 = vector.shape_cast %10 : vector<1x32xf32> to vector<1x32xf32>
    %12 = vector.broadcast %11 : vector<1x32xf32> to vector<8x32xf32>
    %c128 = arith.constant 128 : index
    %c0_9 = arith.constant 0 : index
    %13 = vector.load %arg2[%c128, %c0_9] : memref<424x384xf32, #tpu.memory_space<vmem>>, vector<1x384xf32>
    %14 = vector.shape_cast %13 : vector<1x384xf32> to vector<1x384xf32>
    %15 = vector.broadcast %14 : vector<1x384xf32> to vector<8x384xf32>
    %c0_10 = arith.constant 0 : index
    %c0_11 = arith.constant 0 : index
    %16 = vector.load %arg2[%c0_10, %c0_11] : memref<424x384xf32, #tpu.memory_space<vmem>>, vector<16x384xf32>
    %c48 = arith.constant 48 : index
    %c0_12 = arith.constant 0 : index
    %17 = vector.load %arg2[%c48, %c0_12] : memref<424x384xf32, #tpu.memory_space<vmem>>, vector<1x384xf32>
    %18 = vector.shape_cast %17 : vector<1x384xf32> to vector<1x384xf32>
    %19 = vector.broadcast %18 : vector<1x384xf32> to vector<8x384xf32>
    %c256 = arith.constant 256 : index
    %c0_13 = arith.constant 0 : index
    %20 = vector.load %arg3[%c256, %c0_13] : memref<528x768xf32, #tpu.memory_space<vmem>>, vector<1x768xf32>
    %21 = vector.shape_cast %20 : vector<1x768xf32> to vector<1x768xf32>
    %22 = vector.broadcast %21 : vector<1x768xf32> to vector<8x768xf32>
    %c0_14 = arith.constant 0 : index
    %c0_15 = arith.constant 0 : index
    %23 = vector.load %arg0[%c0_14, %c0_15] : memref<64x16xf32, #tpu.memory_space<vmem>>, vector<8x16xf32>
    %cst = arith.constant dense<0.000000e+00> : vector<8x384xf32>
    %24 = tpu.matmul %23, %16, %cst {dimension_numbers = #tpu.dot_dimension_numbers<[1], [0], [0], [1], [0, 0, 1, 1], [], []>} : vector<8x16xf32>, vector<16x384xf32>, vector<8x384xf32> -> vector<8x384xf32>
    %25 = arith.addf %24, %19 : vector<8x384xf32>
    %26 = vector.extract_strided_slice %25 {offsets = [0, 0], sizes = [8, 32], strides = [1, 1]} : vector<8x384xf32> to vector<8x32xf32>
    %27 = vector.extract_strided_slice %25 {offsets = [0, 128], sizes = [8, 32], strides = [1, 1]} : vector<8x384xf32> to vector<8x32xf32>
    %28 = vector.extract_strided_slice %25 {offsets = [0, 256], sizes = [8, 32], strides = [1, 1]} : vector<8x384xf32> to vector<8x32xf32>
    %cst_16 = arith.constant dense<0.000000e+00> : vector<8x384xf32>
    %29 = tpu.matmul %1, %4, %cst_16 {dimension_numbers = #tpu.dot_dimension_numbers<[1], [0], [0], [1], [0, 0, 1, 1], [], []>} : vector<8x32xf32>, vector<32x384xf32>, vector<8x384xf32> -> vector<8x384xf32>
    %30 = vector.extract_strided_slice %29 {offsets = [0, 0], sizes = [8, 32], strides = [1, 1]} : vector<8x384xf32> to vector<8x32xf32>
    %31 = arith.addf %26, %30 : vector<8x32xf32>
    %32 = arith.negf %31 : vector<8x32xf32>
    %33 = math.exp %32 : vector<8x32xf32>
    %cst_17 = arith.constant 1.000000e+00 : f32
    %34 = vector.broadcast %cst_17 : f32 to vector<8x32xf32>
    %35 = arith.addf %34, %33 : vector<8x32xf32>
    %36 = arith.divf %34, %35 : vector<8x32xf32>
    %37 = vector.extract_strided_slice %29 {offsets = [0, 128], sizes = [8, 32], strides = [1, 1]} : vector<8x384xf32> to vector<8x32xf32>
    %38 = arith.addf %27, %37 : vector<8x32xf32>
    %39 = arith.negf %38 : vector<8x32xf32>
    %40 = math.exp %39 : vector<8x32xf32>
    %cst_18 = arith.constant 1.000000e+00 : f32
    %41 = vector.broadcast %cst_18 : f32 to vector<8x32xf32>
    %42 = arith.addf %41, %40 : vector<8x32xf32>
    %43 = arith.divf %41, %42 : vector<8x32xf32>
    %44 = vector.extract_strided_slice %29 {offsets = [0, 256], sizes = [8, 32], strides = [1, 1]} : vector<8x384xf32> to vector<8x32xf32>
    %45 = arith.addf %44, %9 : vector<8x32xf32>
    %46 = arith.mulf %36, %45 : vector<8x32xf32>
    %47 = arith.addf %28, %46 : vector<8x32xf32>
    %48 = math.tanh %47 : vector<8x32xf32>
    %cst_19 = arith.constant 1.000000e+00 : f32
    %49 = vector.broadcast %cst_19 : f32 to vector<8x32xf32>
    %50 = arith.subf %49, %43 : vector<8x32xf32>
    %51 = arith.mulf %50, %48 : vector<8x32xf32>
    %52 = arith.mulf %43, %1 : vector<8x32xf32>
    %53 = arith.addf %51, %52 : vector<8x32xf32>
    %cst_20 = arith.constant dense<0.000000e+00> : vector<8x384xf32>
    %54 = tpu.matmul %53, %6, %cst_20 {dimension_numbers = #tpu.dot_dimension_numbers<[1], [0], [0], [1], [0, 0, 1, 1], [], []>} : vector<8x32xf32>, vector<32x384xf32>, vector<8x384xf32> -> vector<8x384xf32>
    %55 = arith.addf %54, %15 : vector<8x384xf32>
    %56 = vector.extract_strided_slice %55 {offsets = [0, 0], sizes = [8, 32], strides = [1, 1]} : vector<8x384xf32> to vector<8x32xf32>
    %57 = vector.extract_strided_slice %55 {offsets = [0, 128], sizes = [8, 32], strides = [1, 1]} : vector<8x384xf32> to vector<8x32xf32>
    %58 = vector.extract_strided_slice %55 {offsets = [0, 256], sizes = [8, 32], strides = [1, 1]} : vector<8x384xf32> to vector<8x32xf32>
    %cst_21 = arith.constant dense<0.000000e+00> : vector<8x384xf32>
    %59 = tpu.matmul %3, %5, %cst_21 {dimension_numbers = #tpu.dot_dimension_numbers<[1], [0], [0], [1], [0, 0, 1, 1], [], []>} : vector<8x32xf32>, vector<32x384xf32>, vector<8x384xf32> -> vector<8x384xf32>
    %60 = vector.extract_strided_slice %59 {offsets = [0, 0], sizes = [8, 32], strides = [1, 1]} : vector<8x384xf32> to vector<8x32xf32>
    %61 = arith.addf %56, %60 : vector<8x32xf32>
    %62 = arith.negf %61 : vector<8x32xf32>
    %63 = math.exp %62 : vector<8x32xf32>
    %cst_22 = arith.constant 1.000000e+00 : f32
    %64 = vector.broadcast %cst_22 : f32 to vector<8x32xf32>
    %65 = arith.addf %64, %63 : vector<8x32xf32>
    %66 = arith.divf %64, %65 : vector<8x32xf32>
    %67 = vector.extract_strided_slice %59 {offsets = [0, 128], sizes = [8, 32], strides = [1, 1]} : vector<8x384xf32> to vector<8x32xf32>
    %68 = arith.addf %57, %67 : vector<8x32xf32>
    %69 = arith.negf %68 : vector<8x32xf32>
    %70 = math.exp %69 : vector<8x32xf32>
    %cst_23 = arith.constant 1.000000e+00 : f32
    %71 = vector.broadcast %cst_23 : f32 to vector<8x32xf32>
    %72 = arith.addf %71, %70 : vector<8x32xf32>
    %73 = arith.divf %71, %72 : vector<8x32xf32>
    %74 = vector.extract_strided_slice %59 {offsets = [0, 256], sizes = [8, 32], strides = [1, 1]} : vector<8x384xf32> to vector<8x32xf32>
    %75 = arith.addf %74, %12 : vector<8x32xf32>
    %76 = arith.mulf %66, %75 : vector<8x32xf32>
    %77 = arith.addf %58, %76 : vector<8x32xf32>
    %78 = math.tanh %77 : vector<8x32xf32>
    %cst_24 = arith.constant 1.000000e+00 : f32
    %79 = vector.broadcast %cst_24 : f32 to vector<8x32xf32>
    %80 = arith.subf %79, %73 : vector<8x32xf32>
    %81 = arith.mulf %80, %78 : vector<8x32xf32>
    %82 = arith.mulf %73, %3 : vector<8x32xf32>
    %83 = arith.addf %81, %82 : vector<8x32xf32>
    %c0_25 = arith.constant 0 : index
    %c0_26 = arith.constant 0 : index
    %84 = vector.load %arg3[%c0_25, %c0_26] : memref<528x768xf32, #tpu.memory_space<vmem>>, vector<32x768xf32>
    %cst_27 = arith.constant 0.000000e+00 : f32
    %85 = vector.broadcast %cst_27 : f32 to vector<8x32xf32>
    %86 = arith.maximumf %83, %85 : vector<8x32xf32>
    %cst_28 = arith.constant dense<0.000000e+00> : vector<8x768xf32>
    %87 = tpu.matmul %86, %84, %cst_28 {dimension_numbers = #tpu.dot_dimension_numbers<[1], [0], [0], [1], [0, 0, 1, 1], [], []>} : vector<8x32xf32>, vector<32x768xf32>, vector<8x768xf32> -> vector<8x768xf32>
    %88 = arith.addf %22, %87 : vector<8x768xf32>
    %c8 = arith.constant 8 : index
    %c0_29 = arith.constant 0 : index
    %89 = vector.load %arg0[%c8, %c0_29] : memref<64x16xf32, #tpu.memory_space<vmem>>, vector<8x16xf32>
    %cst_30 = arith.constant dense<0.000000e+00> : vector<8x384xf32>
    %90 = tpu.matmul %89, %16, %cst_30 {dimension_numbers = #tpu.dot_dimension_numbers<[1], [0], [0], [1], [0, 0, 1, 1], [], []>} : vector<8x16xf32>, vector<16x384xf32>, vector<8x384xf32> -> vector<8x384xf32>
    %91 = arith.addf %90, %19 : vector<8x384xf32>
    %92 = vector.extract_strided_slice %91 {offsets = [0, 0], sizes = [8, 32], strides = [1, 1]} : vector<8x384xf32> to vector<8x32xf32>
    %93 = vector.extract_strided_slice %91 {offsets = [0, 128], sizes = [8, 32], strides = [1, 1]} : vector<8x384xf32> to vector<8x32xf32>
    %94 = vector.extract_strided_slice %91 {offsets = [0, 256], sizes = [8, 32], strides = [1, 1]} : vector<8x384xf32> to vector<8x32xf32>
    %cst_31 = arith.constant dense<0.000000e+00> : vector<8x384xf32>
    %95 = tpu.matmul %53, %4, %cst_31 {dimension_numbers = #tpu.dot_dimension_numbers<[1], [0], [0], [1], [0, 0, 1, 1], [], []>} : vector<8x32xf32>, vector<32x384xf32>, vector<8x384xf32> -> vector<8x384xf32>
    %96 = vector.extract_strided_slice %95 {offsets = [0, 0], sizes = [8, 32], strides = [1, 1]} : vector<8x384xf32> to vector<8x32xf32>
    %97 = arith.addf %92, %96 : vector<8x32xf32>
    %98 = arith.negf %97 : vector<8x32xf32>
    %99 = math.exp %98 : vector<8x32xf32>
    %cst_32 = arith.constant 1.000000e+00 : f32
    %100 = vector.broadcast %cst_32 : f32 to vector<8x32xf32>
    %101 = arith.addf %100, %99 : vector<8x32xf32>
    %102 = arith.divf %100, %101 : vector<8x32xf32>
    %103 = vector.extract_strided_slice %95 {offsets = [0, 128], sizes = [8, 32], strides = [1, 1]} : vector<8x384xf32> to vector<8x32xf32>
    %104 = arith.addf %93, %103 : vector<8x32xf32>
    %105 = arith.negf %104 : vector<8x32xf32>
    %106 = math.exp %105 : vector<8x32xf32>
    %cst_33 = arith.constant 1.000000e+00 : f32
    %107 = vector.broadcast %cst_33 : f32 to vector<8x32xf32>
    %108 = arith.addf %107, %106 : vector<8x32xf32>
    %109 = arith.divf %107, %108 : vector<8x32xf32>
    %110 = vector.extract_strided_slice %95 {offsets = [0, 256], sizes = [8, 32], strides = [1, 1]} : vector<8x384xf32> to vector<8x32xf32>
    %111 = arith.addf %110, %9 : vector<8x32xf32>
    %112 = arith.mulf %102, %111 : vector<8x32xf32>
    %113 = arith.addf %94, %112 : vector<8x32xf32>
    %114 = math.tanh %113 : vector<8x32xf32>
    %cst_34 = arith.constant 1.000000e+00 : f32
    %115 = vector.broadcast %cst_34 : f32 to vector<8x32xf32>
    %116 = arith.subf %115, %109 : vector<8x32xf32>
    %117 = arith.mulf %116, %114 : vector<8x32xf32>
    %118 = arith.mulf %109, %53 : vector<8x32xf32>
    %119 = arith.addf %117, %118 : vector<8x32xf32>
    %cst_35 = arith.constant dense<0.000000e+00> : vector<8x384xf32>
    %120 = tpu.matmul %119, %6, %cst_35 {dimension_numbers = #tpu.dot_dimension_numbers<[1], [0], [0], [1], [0, 0, 1, 1], [], []>} : vector<8x32xf32>, vector<32x384xf32>, vector<8x384xf32> -> vector<8x384xf32>
    %121 = arith.addf %120, %15 : vector<8x384xf32>
    %122 = vector.extract_strided_slice %121 {offsets = [0, 0], sizes = [8, 32], strides = [1, 1]} : vector<8x384xf32> to vector<8x32xf32>
    %123 = vector.extract_strided_slice %121 {offsets = [0, 128], sizes = [8, 32], strides = [1, 1]} : vector<8x384xf32> to vector<8x32xf32>
    %124 = vector.extract_strided_slice %121 {offsets = [0, 256], sizes = [8, 32], strides = [1, 1]} : vector<8x384xf32> to vector<8x32xf32>
    %cst_36 = arith.constant dense<0.000000e+00> : vector<8x384xf32>
    %125 = tpu.matmul %83, %5, %cst_36 {dimension_numbers = #tpu.dot_dimension_numbers<[1], [0], [0], [1], [0, 0, 1, 1], [], []>} : vector<8x32xf32>, vector<32x384xf32>, vector<8x384xf32> -> vector<8x384xf32>
    %126 = vector.extract_strided_slice %125 {offsets = [0, 0], sizes = [8, 32], strides = [1, 1]} : vector<8x384xf32> to vector<8x32xf32>
    %127 = arith.addf %122, %126 : vector<8x32xf32>
    %128 = arith.negf %127 : vector<8x32xf32>
    %129 = math.exp %128 : vector<8x32xf32>
    %cst_37 = arith.constant 1.000000e+00 : f32
    %130 = vector.broadcast %cst_37 : f32 to vector<8x32xf32>
    %131 = arith.addf %130, %129 : vector<8x32xf32>
    %132 = arith.divf %130, %131 : vector<8x32xf32>
    %133 = vector.extract_strided_slice %125 {offsets = [0, 128], sizes = [8, 32], strides = [1, 1]} : vector<8x384xf32> to vector<8x32xf32>
    %134 = arith.addf %123, %133 : vector<8x32xf32>
    %135 = arith.negf %134 : vector<8x32xf32>
    %136 = math.exp %135 : vector<8x32xf32>
    %cst_38 = arith.constant 1.000000e+00 : f32
    %137 = vector.broadcast %cst_38 : f32 to vector<8x32xf32>
    %138 = arith.addf %137, %136 : vector<8x32xf32>
    %139 = arith.divf %137, %138 : vector<8x32xf32>
    %140 = vector.extract_strided_slice %125 {offsets = [0, 256], sizes = [8, 32], strides = [1, 1]} : vector<8x384xf32> to vector<8x32xf32>
    %141 = arith.addf %140, %12 : vector<8x32xf32>
    %142 = arith.mulf %132, %141 : vector<8x32xf32>
    %143 = arith.addf %124, %142 : vector<8x32xf32>
    %144 = math.tanh %143 : vector<8x32xf32>
    %cst_39 = arith.constant 1.000000e+00 : f32
    %145 = vector.broadcast %cst_39 : f32 to vector<8x32xf32>
    %146 = arith.subf %145, %139 : vector<8x32xf32>
    %147 = arith.mulf %146, %144 : vector<8x32xf32>
    %148 = arith.mulf %139, %83 : vector<8x32xf32>
    %149 = arith.addf %147, %148 : vector<8x32xf32>
    %c32 = arith.constant 32 : index
    %c0_40 = arith.constant 0 : index
    %150 = vector.load %arg3[%c32, %c0_40] : memref<528x768xf32, #tpu.memory_space<vmem>>, vector<32x768xf32>
    %cst_41 = arith.constant 0.000000e+00 : f32
    %151 = vector.broadcast %cst_41 : f32 to vector<8x32xf32>
    %152 = arith.maximumf %149, %151 : vector<8x32xf32>
    %cst_42 = arith.constant dense<0.000000e+00> : vector<8x768xf32>
    %153 = tpu.matmul %152, %150, %cst_42 {dimension_numbers = #tpu.dot_dimension_numbers<[1], [0], [0], [1], [0, 0, 1, 1], [], []>} : vector<8x32xf32>, vector<32x768xf32>, vector<8x768xf32> -> vector<8x768xf32>
    %154 = arith.addf %88, %153 : vector<8x768xf32>
    %c16_43 = arith.constant 16 : index
    %c0_44 = arith.constant 0 : index
    %155 = vector.load %arg0[%c16_43, %c0_44] : memref<64x16xf32, #tpu.memory_space<vmem>>, vector<8x16xf32>
    %cst_45 = arith.constant dense<0.000000e+00> : vector<8x384xf32>
    %156 = tpu.matmul %155, %16, %cst_45 {dimension_numbers = #tpu.dot_dimension_numbers<[1], [0], [0], [1], [0, 0, 1, 1], [], []>} : vector<8x16xf32>, vector<16x384xf32>, vector<8x384xf32> -> vector<8x384xf32>
    %157 = arith.addf %156, %19 : vector<8x384xf32>
    %158 = vector.extract_strided_slice %157 {offsets = [0, 0], sizes = [8, 32], strides = [1, 1]} : vector<8x384xf32> to vector<8x32xf32>
    %159 = vector.extract_strided_slice %157 {offsets = [0, 128], sizes = [8, 32], strides = [1, 1]} : vector<8x384xf32> to vector<8x32xf32>
    %160 = vector.extract_strided_slice %157 {offsets = [0, 256], sizes = [8, 32], strides = [1, 1]} : vector<8x384xf32> to vector<8x32xf32>
    %cst_46 = arith.constant dense<0.000000e+00> : vector<8x384xf32>
    %161 = tpu.matmul %119, %4, %cst_46 {dimension_numbers = #tpu.dot_dimension_numbers<[1], [0], [0], [1], [0, 0, 1, 1], [], []>} : vector<8x32xf32>, vector<32x384xf32>, vector<8x384xf32> -> vector<8x384xf32>
    %162 = vector.extract_strided_slice %161 {offsets = [0, 0], sizes = [8, 32], strides = [1, 1]} : vector<8x384xf32> to vector<8x32xf32>
    %163 = arith.addf %158, %162 : vector<8x32xf32>
    %164 = arith.negf %163 : vector<8x32xf32>
    %165 = math.exp %164 : vector<8x32xf32>
    %cst_47 = arith.constant 1.000000e+00 : f32
    %166 = vector.broadcast %cst_47 : f32 to vector<8x32xf32>
    %167 = arith.addf %166, %165 : vector<8x32xf32>
    %168 = arith.divf %166, %167 : vector<8x32xf32>
    %169 = vector.extract_strided_slice %161 {offsets = [0, 128], sizes = [8, 32], strides = [1, 1]} : vector<8x384xf32> to vector<8x32xf32>
    %170 = arith.addf %159, %169 : vector<8x32xf32>
    %171 = arith.negf %170 : vector<8x32xf32>
    %172 = math.exp %171 : vector<8x32xf32>
    %cst_48 = arith.constant 1.000000e+00 : f32
    %173 = vector.broadcast %cst_48 : f32 to vector<8x32xf32>
    %174 = arith.addf %173, %172 : vector<8x32xf32>
    %175 = arith.divf %173, %174 : vector<8x32xf32>
    %176 = vector.extract_strided_slice %161 {offsets = [0, 256], sizes = [8, 32], strides = [1, 1]} : vector<8x384xf32> to vector<8x32xf32>
    %177 = arith.addf %176, %9 : vector<8x32xf32>
    %178 = arith.mulf %168, %177 : vector<8x32xf32>
    %179 = arith.addf %160, %178 : vector<8x32xf32>
    %180 = math.tanh %179 : vector<8x32xf32>
    %cst_49 = arith.constant 1.000000e+00 : f32
    %181 = vector.broadcast %cst_49 : f32 to vector<8x32xf32>
    %182 = arith.subf %181, %175 : vector<8x32xf32>
    %183 = arith.mulf %182, %180 : vector<8x32xf32>
    %184 = arith.mulf %175, %119 : vector<8x32xf32>
    %185 = arith.addf %183, %184 : vector<8x32xf32>
    %cst_50 = arith.constant dense<0.000000e+00> : vector<8x384xf32>
    %186 = tpu.matmul %185, %6, %cst_50 {dimension_numbers = #tpu.dot_dimension_numbers<[1], [0], [0], [1], [0, 0, 1, 1], [], []>} : vector<8x32xf32>, vector<32x384xf32>, vector<8x384xf32> -> vector<8x384xf32>
    %187 = arith.addf %186, %15 : vector<8x384xf32>
    %188 = vector.extract_strided_slice %187 {offsets = [0, 0], sizes = [8, 32], strides = [1, 1]} : vector<8x384xf32> to vector<8x32xf32>
    %189 = vector.extract_strided_slice %187 {offsets = [0, 128], sizes = [8, 32], strides = [1, 1]} : vector<8x384xf32> to vector<8x32xf32>
    %190 = vector.extract_strided_slice %187 {offsets = [0, 256], sizes = [8, 32], strides = [1, 1]} : vector<8x384xf32> to vector<8x32xf32>
    %cst_51 = arith.constant dense<0.000000e+00> : vector<8x384xf32>
    %191 = tpu.matmul %149, %5, %cst_51 {dimension_numbers = #tpu.dot_dimension_numbers<[1], [0], [0], [1], [0, 0, 1, 1], [], []>} : vector<8x32xf32>, vector<32x384xf32>, vector<8x384xf32> -> vector<8x384xf32>
    %192 = vector.extract_strided_slice %191 {offsets = [0, 0], sizes = [8, 32], strides = [1, 1]} : vector<8x384xf32> to vector<8x32xf32>
    %193 = arith.addf %188, %192 : vector<8x32xf32>
    %194 = arith.negf %193 : vector<8x32xf32>
    %195 = math.exp %194 : vector<8x32xf32>
    %cst_52 = arith.constant 1.000000e+00 : f32
    %196 = vector.broadcast %cst_52 : f32 to vector<8x32xf32>
    %197 = arith.addf %196, %195 : vector<8x32xf32>
    %198 = arith.divf %196, %197 : vector<8x32xf32>
    %199 = vector.extract_strided_slice %191 {offsets = [0, 128], sizes = [8, 32], strides = [1, 1]} : vector<8x384xf32> to vector<8x32xf32>
    %200 = arith.addf %189, %199 : vector<8x32xf32>
    %201 = arith.negf %200 : vector<8x32xf32>
    %202 = math.exp %201 : vector<8x32xf32>
    %cst_53 = arith.constant 1.000000e+00 : f32
    %203 = vector.broadcast %cst_53 : f32 to vector<8x32xf32>
    %204 = arith.addf %203, %202 : vector<8x32xf32>
    %205 = arith.divf %203, %204 : vector<8x32xf32>
    %206 = vector.extract_strided_slice %191 {offsets = [0, 256], sizes = [8, 32], strides = [1, 1]} : vector<8x384xf32> to vector<8x32xf32>
    %207 = arith.addf %206, %12 : vector<8x32xf32>
    %208 = arith.mulf %198, %207 : vector<8x32xf32>
    %209 = arith.addf %190, %208 : vector<8x32xf32>
    %210 = math.tanh %209 : vector<8x32xf32>
    %cst_54 = arith.constant 1.000000e+00 : f32
    %211 = vector.broadcast %cst_54 : f32 to vector<8x32xf32>
    %212 = arith.subf %211, %205 : vector<8x32xf32>
    %213 = arith.mulf %212, %210 : vector<8x32xf32>
    %214 = arith.mulf %205, %149 : vector<8x32xf32>
    %215 = arith.addf %213, %214 : vector<8x32xf32>
    %c64_55 = arith.constant 64 : index
    %c0_56 = arith.constant 0 : index
    %216 = vector.load %arg3[%c64_55, %c0_56] : memref<528x768xf32, #tpu.memory_space<vmem>>, vector<32x768xf32>
    %cst_57 = arith.constant 0.000000e+00 : f32
    %217 = vector.broadcast %cst_57 : f32 to vector<8x32xf32>
    %218 = arith.maximumf %215, %217 : vector<8x32xf32>
    %cst_58 = arith.constant dense<0.000000e+00> : vector<8x768xf32>
    %219 = tpu.matmul %218, %216, %cst_58 {dimension_numbers = #tpu.dot_dimension_numbers<[1], [0], [0], [1], [0, 0, 1, 1], [], []>} : vector<8x32xf32>, vector<32x768xf32>, vector<8x768xf32> -> vector<8x768xf32>
    %220 = arith.addf %154, %219 : vector<8x768xf32>
    %c24 = arith.constant 24 : index
    %c0_59 = arith.constant 0 : index
    %221 = vector.load %arg0[%c24, %c0_59] : memref<64x16xf32, #tpu.memory_space<vmem>>, vector<8x16xf32>
    %cst_60 = arith.constant dense<0.000000e+00> : vector<8x384xf32>
    %222 = tpu.matmul %221, %16, %cst_60 {dimension_numbers = #tpu.dot_dimension_numbers<[1], [0], [0], [1], [0, 0, 1, 1], [], []>} : vector<8x16xf32>, vector<16x384xf32>, vector<8x384xf32> -> vector<8x384xf32>
    %223 = arith.addf %222, %19 : vector<8x384xf32>
    %224 = vector.extract_strided_slice %223 {offsets = [0, 0], sizes = [8, 32], strides = [1, 1]} : vector<8x384xf32> to vector<8x32xf32>
    %225 = vector.extract_strided_slice %223 {offsets = [0, 128], sizes = [8, 32], strides = [1, 1]} : vector<8x384xf32> to vector<8x32xf32>
    %226 = vector.extract_strided_slice %223 {offsets = [0, 256], sizes = [8, 32], strides = [1, 1]} : vector<8x384xf32> to vector<8x32xf32>
    %cst_61 = arith.constant dense<0.000000e+00> : vector<8x384xf32>
    %227 = tpu.matmul %185, %4, %cst_61 {dimension_numbers = #tpu.dot_dimension_numbers<[1], [0], [0], [1], [0, 0, 1, 1], [], []>} : vector<8x32xf32>, vector<32x384xf32>, vector<8x384xf32> -> vector<8x384xf32>
    %228 = vector.extract_strided_slice %227 {offsets = [0, 0], sizes = [8, 32], strides = [1, 1]} : vector<8x384xf32> to vector<8x32xf32>
    %229 = arith.addf %224, %228 : vector<8x32xf32>
    %230 = arith.negf %229 : vector<8x32xf32>
    %231 = math.exp %230 : vector<8x32xf32>
    %cst_62 = arith.constant 1.000000e+00 : f32
    %232 = vector.broadcast %cst_62 : f32 to vector<8x32xf32>
    %233 = arith.addf %232, %231 : vector<8x32xf32>
    %234 = arith.divf %232, %233 : vector<8x32xf32>
    %235 = vector.extract_strided_slice %227 {offsets = [0, 128], sizes = [8, 32], strides = [1, 1]} : vector<8x384xf32> to vector<8x32xf32>
    %236 = arith.addf %225, %235 : vector<8x32xf32>
    %237 = arith.negf %236 : vector<8x32xf32>
    %238 = math.exp %237 : vector<8x32xf32>
    %cst_63 = arith.constant 1.000000e+00 : f32
    %239 = vector.broadcast %cst_63 : f32 to vector<8x32xf32>
    %240 = arith.addf %239, %238 : vector<8x32xf32>
    %241 = arith.divf %239, %240 : vector<8x32xf32>
    %242 = vector.extract_strided_slice %227 {offsets = [0, 256], sizes = [8, 32], strides = [1, 1]} : vector<8x384xf32> to vector<8x32xf32>
    %243 = arith.addf %242, %9 : vector<8x32xf32>
    %244 = arith.mulf %234, %243 : vector<8x32xf32>
    %245 = arith.addf %226, %244 : vector<8x32xf32>
    %246 = math.tanh %245 : vector<8x32xf32>
    %cst_64 = arith.constant 1.000000e+00 : f32
    %247 = vector.broadcast %cst_64 : f32 to vector<8x32xf32>
    %248 = arith.subf %247, %241 : vector<8x32xf32>
    %249 = arith.mulf %248, %246 : vector<8x32xf32>
    %250 = arith.mulf %241, %185 : vector<8x32xf32>
    %251 = arith.addf %249, %250 : vector<8x32xf32>
    %cst_65 = arith.constant dense<0.000000e+00> : vector<8x384xf32>
    %252 = tpu.matmul %251, %6, %cst_65 {dimension_numbers = #tpu.dot_dimension_numbers<[1], [0], [0], [1], [0, 0, 1, 1], [], []>} : vector<8x32xf32>, vector<32x384xf32>, vector<8x384xf32> -> vector<8x384xf32>
    %253 = arith.addf %252, %15 : vector<8x384xf32>
    %254 = vector.extract_strided_slice %253 {offsets = [0, 0], sizes = [8, 32], strides = [1, 1]} : vector<8x384xf32> to vector<8x32xf32>
    %255 = vector.extract_strided_slice %253 {offsets = [0, 128], sizes = [8, 32], strides = [1, 1]} : vector<8x384xf32> to vector<8x32xf32>
    %256 = vector.extract_strided_slice %253 {offsets = [0, 256], sizes = [8, 32], strides = [1, 1]} : vector<8x384xf32> to vector<8x32xf32>
    %cst_66 = arith.constant dense<0.000000e+00> : vector<8x384xf32>
    %257 = tpu.matmul %215, %5, %cst_66 {dimension_numbers = #tpu.dot_dimension_numbers<[1], [0], [0], [1], [0, 0, 1, 1], [], []>} : vector<8x32xf32>, vector<32x384xf32>, vector<8x384xf32> -> vector<8x384xf32>
    %258 = vector.extract_strided_slice %257 {offsets = [0, 0], sizes = [8, 32], strides = [1, 1]} : vector<8x384xf32> to vector<8x32xf32>
    %259 = arith.addf %254, %258 : vector<8x32xf32>
    %260 = arith.negf %259 : vector<8x32xf32>
    %261 = math.exp %260 : vector<8x32xf32>
    %cst_67 = arith.constant 1.000000e+00 : f32
    %262 = vector.broadcast %cst_67 : f32 to vector<8x32xf32>
    %263 = arith.addf %262, %261 : vector<8x32xf32>
    %264 = arith.divf %262, %263 : vector<8x32xf32>
    %265 = vector.extract_strided_slice %257 {offsets = [0, 128], sizes = [8, 32], strides = [1, 1]} : vector<8x384xf32> to vector<8x32xf32>
    %266 = arith.addf %255, %265 : vector<8x32xf32>
    %267 = arith.negf %266 : vector<8x32xf32>
    %268 = math.exp %267 : vector<8x32xf32>
    %cst_68 = arith.constant 1.000000e+00 : f32
    %269 = vector.broadcast %cst_68 : f32 to vector<8x32xf32>
    %270 = arith.addf %269, %268 : vector<8x32xf32>
    %271 = arith.divf %269, %270 : vector<8x32xf32>
    %272 = vector.extract_strided_slice %257 {offsets = [0, 256], sizes = [8, 32], strides = [1, 1]} : vector<8x384xf32> to vector<8x32xf32>
    %273 = arith.addf %272, %12 : vector<8x32xf32>
    %274 = arith.mulf %264, %273 : vector<8x32xf32>
    %275 = arith.addf %256, %274 : vector<8x32xf32>
    %276 = math.tanh %275 : vector<8x32xf32>
    %cst_69 = arith.constant 1.000000e+00 : f32
    %277 = vector.broadcast %cst_69 : f32 to vector<8x32xf32>
    %278 = arith.subf %277, %271 : vector<8x32xf32>
    %279 = arith.mulf %278, %276 : vector<8x32xf32>
    %280 = arith.mulf %271, %215 : vector<8x32xf32>
    %281 = arith.addf %279, %280 : vector<8x32xf32>
    %c96_70 = arith.constant 96 : index
    %c0_71 = arith.constant 0 : index
    %282 = vector.load %arg3[%c96_70, %c0_71] : memref<528x768xf32, #tpu.memory_space<vmem>>, vector<32x768xf32>
    %cst_72 = arith.constant 0.000000e+00 : f32
    %283 = vector.broadcast %cst_72 : f32 to vector<8x32xf32>
    %284 = arith.maximumf %281, %283 : vector<8x32xf32>
    %cst_73 = arith.constant dense<0.000000e+00> : vector<8x768xf32>
    %285 = tpu.matmul %284, %282, %cst_73 {dimension_numbers = #tpu.dot_dimension_numbers<[1], [0], [0], [1], [0, 0, 1, 1], [], []>} : vector<8x32xf32>, vector<32x768xf32>, vector<8x768xf32> -> vector<8x768xf32>
    %286 = arith.addf %220, %285 : vector<8x768xf32>
    %c32_74 = arith.constant 32 : index
    %c0_75 = arith.constant 0 : index
    %287 = vector.load %arg0[%c32_74, %c0_75] : memref<64x16xf32, #tpu.memory_space<vmem>>, vector<8x16xf32>
    %cst_76 = arith.constant dense<0.000000e+00> : vector<8x384xf32>
    %288 = tpu.matmul %287, %16, %cst_76 {dimension_numbers = #tpu.dot_dimension_numbers<[1], [0], [0], [1], [0, 0, 1, 1], [], []>} : vector<8x16xf32>, vector<16x384xf32>, vector<8x384xf32> -> vector<8x384xf32>
    %289 = arith.addf %288, %19 : vector<8x384xf32>
    %290 = vector.extract_strided_slice %289 {offsets = [0, 0], sizes = [8, 32], strides = [1, 1]} : vector<8x384xf32> to vector<8x32xf32>
    %291 = vector.extract_strided_slice %289 {offsets = [0, 128], sizes = [8, 32], strides = [1, 1]} : vector<8x384xf32> to vector<8x32xf32>
    %292 = vector.extract_strided_slice %289 {offsets = [0, 256], sizes = [8, 32], strides = [1, 1]} : vector<8x384xf32> to vector<8x32xf32>
    %cst_77 = arith.constant dense<0.000000e+00> : vector<8x384xf32>
    %293 = tpu.matmul %251, %4, %cst_77 {dimension_numbers = #tpu.dot_dimension_numbers<[1], [0], [0], [1], [0, 0, 1, 1], [], []>} : vector<8x32xf32>, vector<32x384xf32>, vector<8x384xf32> -> vector<8x384xf32>
    %294 = vector.extract_strided_slice %293 {offsets = [0, 0], sizes = [8, 32], strides = [1, 1]} : vector<8x384xf32> to vector<8x32xf32>
    %295 = arith.addf %290, %294 : vector<8x32xf32>
    %296 = arith.negf %295 : vector<8x32xf32>
    %297 = math.exp %296 : vector<8x32xf32>
    %cst_78 = arith.constant 1.000000e+00 : f32
    %298 = vector.broadcast %cst_78 : f32 to vector<8x32xf32>
    %299 = arith.addf %298, %297 : vector<8x32xf32>
    %300 = arith.divf %298, %299 : vector<8x32xf32>
    %301 = vector.extract_strided_slice %293 {offsets = [0, 128], sizes = [8, 32], strides = [1, 1]} : vector<8x384xf32> to vector<8x32xf32>
    %302 = arith.addf %291, %301 : vector<8x32xf32>
    %303 = arith.negf %302 : vector<8x32xf32>
    %304 = math.exp %303 : vector<8x32xf32>
    %cst_79 = arith.constant 1.000000e+00 : f32
    %305 = vector.broadcast %cst_79 : f32 to vector<8x32xf32>
    %306 = arith.addf %305, %304 : vector<8x32xf32>
    %307 = arith.divf %305, %306 : vector<8x32xf32>
    %308 = vector.extract_strided_slice %293 {offsets = [0, 256], sizes = [8, 32], strides = [1, 1]} : vector<8x384xf32> to vector<8x32xf32>
    %309 = arith.addf %308, %9 : vector<8x32xf32>
    %310 = arith.mulf %300, %309 : vector<8x32xf32>
    %311 = arith.addf %292, %310 : vector<8x32xf32>
    %312 = math.tanh %311 : vector<8x32xf32>
    %cst_80 = arith.constant 1.000000e+00 : f32
    %313 = vector.broadcast %cst_80 : f32 to vector<8x32xf32>
    %314 = arith.subf %313, %307 : vector<8x32xf32>
    %315 = arith.mulf %314, %312 : vector<8x32xf32>
    %316 = arith.mulf %307, %251 : vector<8x32xf32>
    %317 = arith.addf %315, %316 : vector<8x32xf32>
    %cst_81 = arith.constant dense<0.000000e+00> : vector<8x384xf32>
    %318 = tpu.matmul %317, %6, %cst_81 {dimension_numbers = #tpu.dot_dimension_numbers<[1], [0], [0], [1], [0, 0, 1, 1], [], []>} : vector<8x32xf32>, vector<32x384xf32>, vector<8x384xf32> -> vector<8x384xf32>
    %319 = arith.addf %318, %15 : vector<8x384xf32>
    %320 = vector.extract_strided_slice %319 {offsets = [0, 0], sizes = [8, 32], strides = [1, 1]} : vector<8x384xf32> to vector<8x32xf32>
    %321 = vector.extract_strided_slice %319 {offsets = [0, 128], sizes = [8, 32], strides = [1, 1]} : vector<8x384xf32> to vector<8x32xf32>
    %322 = vector.extract_strided_slice %319 {offsets = [0, 256], sizes = [8, 32], strides = [1, 1]} : vector<8x384xf32> to vector<8x32xf32>
    %cst_82 = arith.constant dense<0.000000e+00> : vector<8x384xf32>
    %323 = tpu.matmul %281, %5, %cst_82 {dimension_numbers = #tpu.dot_dimension_numbers<[1], [0], [0], [1], [0, 0, 1, 1], [], []>} : vector<8x32xf32>, vector<32x384xf32>, vector<8x384xf32> -> vector<8x384xf32>
    %324 = vector.extract_strided_slice %323 {offsets = [0, 0], sizes = [8, 32], strides = [1, 1]} : vector<8x384xf32> to vector<8x32xf32>
    %325 = arith.addf %320, %324 : vector<8x32xf32>
    %326 = arith.negf %325 : vector<8x32xf32>
    %327 = math.exp %326 : vector<8x32xf32>
    %cst_83 = arith.constant 1.000000e+00 : f32
    %328 = vector.broadcast %cst_83 : f32 to vector<8x32xf32>
    %329 = arith.addf %328, %327 : vector<8x32xf32>
    %330 = arith.divf %328, %329 : vector<8x32xf32>
    %331 = vector.extract_strided_slice %323 {offsets = [0, 128], sizes = [8, 32], strides = [1, 1]} : vector<8x384xf32> to vector<8x32xf32>
    %332 = arith.addf %321, %331 : vector<8x32xf32>
    %333 = arith.negf %332 : vector<8x32xf32>
    %334 = math.exp %333 : vector<8x32xf32>
    %cst_84 = arith.constant 1.000000e+00 : f32
    %335 = vector.broadcast %cst_84 : f32 to vector<8x32xf32>
    %336 = arith.addf %335, %334 : vector<8x32xf32>
    %337 = arith.divf %335, %336 : vector<8x32xf32>
    %338 = vector.extract_strided_slice %323 {offsets = [0, 256], sizes = [8, 32], strides = [1, 1]} : vector<8x384xf32> to vector<8x32xf32>
    %339 = arith.addf %338, %12 : vector<8x32xf32>
    %340 = arith.mulf %330, %339 : vector<8x32xf32>
    %341 = arith.addf %322, %340 : vector<8x32xf32>
    %342 = math.tanh %341 : vector<8x32xf32>
    %cst_85 = arith.constant 1.000000e+00 : f32
    %343 = vector.broadcast %cst_85 : f32 to vector<8x32xf32>
    %344 = arith.subf %343, %337 : vector<8x32xf32>
    %345 = arith.mulf %344, %342 : vector<8x32xf32>
    %346 = arith.mulf %337, %281 : vector<8x32xf32>
    %347 = arith.addf %345, %346 : vector<8x32xf32>
    %c128_86 = arith.constant 128 : index
    %c0_87 = arith.constant 0 : index
    %348 = vector.load %arg3[%c128_86, %c0_87] : memref<528x768xf32, #tpu.memory_space<vmem>>, vector<32x768xf32>
    %cst_88 = arith.constant 0.000000e+00 : f32
    %349 = vector.broadcast %cst_88 : f32 to vector<8x32xf32>
    %350 = arith.maximumf %347, %349 : vector<8x32xf32>
    %cst_89 = arith.constant dense<0.000000e+00> : vector<8x768xf32>
    %351 = tpu.matmul %350, %348, %cst_89 {dimension_numbers = #tpu.dot_dimension_numbers<[1], [0], [0], [1], [0, 0, 1, 1], [], []>} : vector<8x32xf32>, vector<32x768xf32>, vector<8x768xf32> -> vector<8x768xf32>
    %352 = arith.addf %286, %351 : vector<8x768xf32>
    %c40 = arith.constant 40 : index
    %c0_90 = arith.constant 0 : index
    %353 = vector.load %arg0[%c40, %c0_90] : memref<64x16xf32, #tpu.memory_space<vmem>>, vector<8x16xf32>
    %cst_91 = arith.constant dense<0.000000e+00> : vector<8x384xf32>
    %354 = tpu.matmul %353, %16, %cst_91 {dimension_numbers = #tpu.dot_dimension_numbers<[1], [0], [0], [1], [0, 0, 1, 1], [], []>} : vector<8x16xf32>, vector<16x384xf32>, vector<8x384xf32> -> vector<8x384xf32>
    %355 = arith.addf %354, %19 : vector<8x384xf32>
    %356 = vector.extract_strided_slice %355 {offsets = [0, 0], sizes = [8, 32], strides = [1, 1]} : vector<8x384xf32> to vector<8x32xf32>
    %357 = vector.extract_strided_slice %355 {offsets = [0, 128], sizes = [8, 32], strides = [1, 1]} : vector<8x384xf32> to vector<8x32xf32>
    %358 = vector.extract_strided_slice %355 {offsets = [0, 256], sizes = [8, 32], strides = [1, 1]} : vector<8x384xf32> to vector<8x32xf32>
    %cst_92 = arith.constant dense<0.000000e+00> : vector<8x384xf32>
    %359 = tpu.matmul %317, %4, %cst_92 {dimension_numbers = #tpu.dot_dimension_numbers<[1], [0], [0], [1], [0, 0, 1, 1], [], []>} : vector<8x32xf32>, vector<32x384xf32>, vector<8x384xf32> -> vector<8x384xf32>
    %360 = vector.extract_strided_slice %359 {offsets = [0, 0], sizes = [8, 32], strides = [1, 1]} : vector<8x384xf32> to vector<8x32xf32>
    %361 = arith.addf %356, %360 : vector<8x32xf32>
    %362 = arith.negf %361 : vector<8x32xf32>
    %363 = math.exp %362 : vector<8x32xf32>
    %cst_93 = arith.constant 1.000000e+00 : f32
    %364 = vector.broadcast %cst_93 : f32 to vector<8x32xf32>
    %365 = arith.addf %364, %363 : vector<8x32xf32>
    %366 = arith.divf %364, %365 : vector<8x32xf32>
    %367 = vector.extract_strided_slice %359 {offsets = [0, 128], sizes = [8, 32], strides = [1, 1]} : vector<8x384xf32> to vector<8x32xf32>
    %368 = arith.addf %357, %367 : vector<8x32xf32>
    %369 = arith.negf %368 : vector<8x32xf32>
    %370 = math.exp %369 : vector<8x32xf32>
    %cst_94 = arith.constant 1.000000e+00 : f32
    %371 = vector.broadcast %cst_94 : f32 to vector<8x32xf32>
    %372 = arith.addf %371, %370 : vector<8x32xf32>
    %373 = arith.divf %371, %372 : vector<8x32xf32>
    %374 = vector.extract_strided_slice %359 {offsets = [0, 256], sizes = [8, 32], strides = [1, 1]} : vector<8x384xf32> to vector<8x32xf32>
    %375 = arith.addf %374, %9 : vector<8x32xf32>
    %376 = arith.mulf %366, %375 : vector<8x32xf32>
    %377 = arith.addf %358, %376 : vector<8x32xf32>
    %378 = math.tanh %377 : vector<8x32xf32>
    %cst_95 = arith.constant 1.000000e+00 : f32
    %379 = vector.broadcast %cst_95 : f32 to vector<8x32xf32>
    %380 = arith.subf %379, %373 : vector<8x32xf32>
    %381 = arith.mulf %380, %378 : vector<8x32xf32>
    %382 = arith.mulf %373, %317 : vector<8x32xf32>
    %383 = arith.addf %381, %382 : vector<8x32xf32>
    %cst_96 = arith.constant dense<0.000000e+00> : vector<8x384xf32>
    %384 = tpu.matmul %383, %6, %cst_96 {dimension_numbers = #tpu.dot_dimension_numbers<[1], [0], [0], [1], [0, 0, 1, 1], [], []>} : vector<8x32xf32>, vector<32x384xf32>, vector<8x384xf32> -> vector<8x384xf32>
    %385 = arith.addf %384, %15 : vector<8x384xf32>
    %386 = vector.extract_strided_slice %385 {offsets = [0, 0], sizes = [8, 32], strides = [1, 1]} : vector<8x384xf32> to vector<8x32xf32>
    %387 = vector.extract_strided_slice %385 {offsets = [0, 128], sizes = [8, 32], strides = [1, 1]} : vector<8x384xf32> to vector<8x32xf32>
    %388 = vector.extract_strided_slice %385 {offsets = [0, 256], sizes = [8, 32], strides = [1, 1]} : vector<8x384xf32> to vector<8x32xf32>
    %cst_97 = arith.constant dense<0.000000e+00> : vector<8x384xf32>
    %389 = tpu.matmul %347, %5, %cst_97 {dimension_numbers = #tpu.dot_dimension_numbers<[1], [0], [0], [1], [0, 0, 1, 1], [], []>} : vector<8x32xf32>, vector<32x384xf32>, vector<8x384xf32> -> vector<8x384xf32>
    %390 = vector.extract_strided_slice %389 {offsets = [0, 0], sizes = [8, 32], strides = [1, 1]} : vector<8x384xf32> to vector<8x32xf32>
    %391 = arith.addf %386, %390 : vector<8x32xf32>
    %392 = arith.negf %391 : vector<8x32xf32>
    %393 = math.exp %392 : vector<8x32xf32>
    %cst_98 = arith.constant 1.000000e+00 : f32
    %394 = vector.broadcast %cst_98 : f32 to vector<8x32xf32>
    %395 = arith.addf %394, %393 : vector<8x32xf32>
    %396 = arith.divf %394, %395 : vector<8x32xf32>
    %397 = vector.extract_strided_slice %389 {offsets = [0, 128], sizes = [8, 32], strides = [1, 1]} : vector<8x384xf32> to vector<8x32xf32>
    %398 = arith.addf %387, %397 : vector<8x32xf32>
    %399 = arith.negf %398 : vector<8x32xf32>
    %400 = math.exp %399 : vector<8x32xf32>
    %cst_99 = arith.constant 1.000000e+00 : f32
    %401 = vector.broadcast %cst_99 : f32 to vector<8x32xf32>
    %402 = arith.addf %401, %400 : vector<8x32xf32>
    %403 = arith.divf %401, %402 : vector<8x32xf32>
    %404 = vector.extract_strided_slice %389 {offsets = [0, 256], sizes = [8, 32], strides = [1, 1]} : vector<8x384xf32> to vector<8x32xf32>
    %405 = arith.addf %404, %12 : vector<8x32xf32>
    %406 = arith.mulf %396, %405 : vector<8x32xf32>
    %407 = arith.addf %388, %406 : vector<8x32xf32>
    %408 = math.tanh %407 : vector<8x32xf32>
    %cst_100 = arith.constant 1.000000e+00 : f32
    %409 = vector.broadcast %cst_100 : f32 to vector<8x32xf32>
    %410 = arith.subf %409, %403 : vector<8x32xf32>
    %411 = arith.mulf %410, %408 : vector<8x32xf32>
    %412 = arith.mulf %403, %347 : vector<8x32xf32>
    %413 = arith.addf %411, %412 : vector<8x32xf32>
    %c160 = arith.constant 160 : index
    %c0_101 = arith.constant 0 : index
    %414 = vector.load %arg3[%c160, %c0_101] : memref<528x768xf32, #tpu.memory_space<vmem>>, vector<32x768xf32>
    %cst_102 = arith.constant 0.000000e+00 : f32
    %415 = vector.broadcast %cst_102 : f32 to vector<8x32xf32>
    %416 = arith.maximumf %413, %415 : vector<8x32xf32>
    %cst_103 = arith.constant dense<0.000000e+00> : vector<8x768xf32>
    %417 = tpu.matmul %416, %414, %cst_103 {dimension_numbers = #tpu.dot_dimension_numbers<[1], [0], [0], [1], [0, 0, 1, 1], [], []>} : vector<8x32xf32>, vector<32x768xf32>, vector<8x768xf32> -> vector<8x768xf32>
    %418 = arith.addf %352, %417 : vector<8x768xf32>
    %c48_104 = arith.constant 48 : index
    %c0_105 = arith.constant 0 : index
    %419 = vector.load %arg0[%c48_104, %c0_105] : memref<64x16xf32, #tpu.memory_space<vmem>>, vector<8x16xf32>
    %cst_106 = arith.constant dense<0.000000e+00> : vector<8x384xf32>
    %420 = tpu.matmul %419, %16, %cst_106 {dimension_numbers = #tpu.dot_dimension_numbers<[1], [0], [0], [1], [0, 0, 1, 1], [], []>} : vector<8x16xf32>, vector<16x384xf32>, vector<8x384xf32> -> vector<8x384xf32>
    %421 = arith.addf %420, %19 : vector<8x384xf32>
    %422 = vector.extract_strided_slice %421 {offsets = [0, 0], sizes = [8, 32], strides = [1, 1]} : vector<8x384xf32> to vector<8x32xf32>
    %423 = vector.extract_strided_slice %421 {offsets = [0, 128], sizes = [8, 32], strides = [1, 1]} : vector<8x384xf32> to vector<8x32xf32>
    %424 = vector.extract_strided_slice %421 {offsets = [0, 256], sizes = [8, 32], strides = [1, 1]} : vector<8x384xf32> to vector<8x32xf32>
    %cst_107 = arith.constant dense<0.000000e+00> : vector<8x384xf32>
    %425 = tpu.matmul %383, %4, %cst_107 {dimension_numbers = #tpu.dot_dimension_numbers<[1], [0], [0], [1], [0, 0, 1, 1], [], []>} : vector<8x32xf32>, vector<32x384xf32>, vector<8x384xf32> -> vector<8x384xf32>
    %426 = vector.extract_strided_slice %425 {offsets = [0, 0], sizes = [8, 32], strides = [1, 1]} : vector<8x384xf32> to vector<8x32xf32>
    %427 = arith.addf %422, %426 : vector<8x32xf32>
    %428 = arith.negf %427 : vector<8x32xf32>
    %429 = math.exp %428 : vector<8x32xf32>
    %cst_108 = arith.constant 1.000000e+00 : f32
    %430 = vector.broadcast %cst_108 : f32 to vector<8x32xf32>
    %431 = arith.addf %430, %429 : vector<8x32xf32>
    %432 = arith.divf %430, %431 : vector<8x32xf32>
    %433 = vector.extract_strided_slice %425 {offsets = [0, 128], sizes = [8, 32], strides = [1, 1]} : vector<8x384xf32> to vector<8x32xf32>
    %434 = arith.addf %423, %433 : vector<8x32xf32>
    %435 = arith.negf %434 : vector<8x32xf32>
    %436 = math.exp %435 : vector<8x32xf32>
    %cst_109 = arith.constant 1.000000e+00 : f32
    %437 = vector.broadcast %cst_109 : f32 to vector<8x32xf32>
    %438 = arith.addf %437, %436 : vector<8x32xf32>
    %439 = arith.divf %437, %438 : vector<8x32xf32>
    %440 = vector.extract_strided_slice %425 {offsets = [0, 256], sizes = [8, 32], strides = [1, 1]} : vector<8x384xf32> to vector<8x32xf32>
    %441 = arith.addf %440, %9 : vector<8x32xf32>
    %442 = arith.mulf %432, %441 : vector<8x32xf32>
    %443 = arith.addf %424, %442 : vector<8x32xf32>
    %444 = math.tanh %443 : vector<8x32xf32>
    %cst_110 = arith.constant 1.000000e+00 : f32
    %445 = vector.broadcast %cst_110 : f32 to vector<8x32xf32>
    %446 = arith.subf %445, %439 : vector<8x32xf32>
    %447 = arith.mulf %446, %444 : vector<8x32xf32>
    %448 = arith.mulf %439, %383 : vector<8x32xf32>
    %449 = arith.addf %447, %448 : vector<8x32xf32>
    %cst_111 = arith.constant dense<0.000000e+00> : vector<8x384xf32>
    %450 = tpu.matmul %449, %6, %cst_111 {dimension_numbers = #tpu.dot_dimension_numbers<[1], [0], [0], [1], [0, 0, 1, 1], [], []>} : vector<8x32xf32>, vector<32x384xf32>, vector<8x384xf32> -> vector<8x384xf32>
    %451 = arith.addf %450, %15 : vector<8x384xf32>
    %452 = vector.extract_strided_slice %451 {offsets = [0, 0], sizes = [8, 32], strides = [1, 1]} : vector<8x384xf32> to vector<8x32xf32>
    %453 = vector.extract_strided_slice %451 {offsets = [0, 128], sizes = [8, 32], strides = [1, 1]} : vector<8x384xf32> to vector<8x32xf32>
    %454 = vector.extract_strided_slice %451 {offsets = [0, 256], sizes = [8, 32], strides = [1, 1]} : vector<8x384xf32> to vector<8x32xf32>
    %cst_112 = arith.constant dense<0.000000e+00> : vector<8x384xf32>
    %455 = tpu.matmul %413, %5, %cst_112 {dimension_numbers = #tpu.dot_dimension_numbers<[1], [0], [0], [1], [0, 0, 1, 1], [], []>} : vector<8x32xf32>, vector<32x384xf32>, vector<8x384xf32> -> vector<8x384xf32>
    %456 = vector.extract_strided_slice %455 {offsets = [0, 0], sizes = [8, 32], strides = [1, 1]} : vector<8x384xf32> to vector<8x32xf32>
    %457 = arith.addf %452, %456 : vector<8x32xf32>
    %458 = arith.negf %457 : vector<8x32xf32>
    %459 = math.exp %458 : vector<8x32xf32>
    %cst_113 = arith.constant 1.000000e+00 : f32
    %460 = vector.broadcast %cst_113 : f32 to vector<8x32xf32>
    %461 = arith.addf %460, %459 : vector<8x32xf32>
    %462 = arith.divf %460, %461 : vector<8x32xf32>
    %463 = vector.extract_strided_slice %455 {offsets = [0, 128], sizes = [8, 32], strides = [1, 1]} : vector<8x384xf32> to vector<8x32xf32>
    %464 = arith.addf %453, %463 : vector<8x32xf32>
    %465 = arith.negf %464 : vector<8x32xf32>
    %466 = math.exp %465 : vector<8x32xf32>
    %cst_114 = arith.constant 1.000000e+00 : f32
    %467 = vector.broadcast %cst_114 : f32 to vector<8x32xf32>
    %468 = arith.addf %467, %466 : vector<8x32xf32>
    %469 = arith.divf %467, %468 : vector<8x32xf32>
    %470 = vector.extract_strided_slice %455 {offsets = [0, 256], sizes = [8, 32], strides = [1, 1]} : vector<8x384xf32> to vector<8x32xf32>
    %471 = arith.addf %470, %12 : vector<8x32xf32>
    %472 = arith.mulf %462, %471 : vector<8x32xf32>
    %473 = arith.addf %454, %472 : vector<8x32xf32>
    %474 = math.tanh %473 : vector<8x32xf32>
    %cst_115 = arith.constant 1.000000e+00 : f32
    %475 = vector.broadcast %cst_115 : f32 to vector<8x32xf32>
    %476 = arith.subf %475, %469 : vector<8x32xf32>
    %477 = arith.mulf %476, %474 : vector<8x32xf32>
    %478 = arith.mulf %469, %413 : vector<8x32xf32>
    %479 = arith.addf %477, %478 : vector<8x32xf32>
    %c192 = arith.constant 192 : index
    %c0_116 = arith.constant 0 : index
    %480 = vector.load %arg3[%c192, %c0_116] : memref<528x768xf32, #tpu.memory_space<vmem>>, vector<32x768xf32>
    %cst_117 = arith.constant 0.000000e+00 : f32
    %481 = vector.broadcast %cst_117 : f32 to vector<8x32xf32>
    %482 = arith.maximumf %479, %481 : vector<8x32xf32>
    %cst_118 = arith.constant dense<0.000000e+00> : vector<8x768xf32>
    %483 = tpu.matmul %482, %480, %cst_118 {dimension_numbers = #tpu.dot_dimension_numbers<[1], [0], [0], [1], [0, 0, 1, 1], [], []>} : vector<8x32xf32>, vector<32x768xf32>, vector<8x768xf32> -> vector<8x768xf32>
    %484 = arith.addf %418, %483 : vector<8x768xf32>
    %c56_119 = arith.constant 56 : index
    %c0_120 = arith.constant 0 : index
    %485 = vector.load %arg0[%c56_119, %c0_120] : memref<64x16xf32, #tpu.memory_space<vmem>>, vector<8x16xf32>
    %cst_121 = arith.constant dense<0.000000e+00> : vector<8x384xf32>
    %486 = tpu.matmul %485, %16, %cst_121 {dimension_numbers = #tpu.dot_dimension_numbers<[1], [0], [0], [1], [0, 0, 1, 1], [], []>} : vector<8x16xf32>, vector<16x384xf32>, vector<8x384xf32> -> vector<8x384xf32>
    %487 = arith.addf %486, %19 : vector<8x384xf32>
    %488 = vector.extract_strided_slice %487 {offsets = [0, 0], sizes = [8, 32], strides = [1, 1]} : vector<8x384xf32> to vector<8x32xf32>
    %489 = vector.extract_strided_slice %487 {offsets = [0, 128], sizes = [8, 32], strides = [1, 1]} : vector<8x384xf32> to vector<8x32xf32>
    %490 = vector.extract_strided_slice %487 {offsets = [0, 256], sizes = [8, 32], strides = [1, 1]} : vector<8x384xf32> to vector<8x32xf32>
    %cst_122 = arith.constant dense<0.000000e+00> : vector<8x384xf32>
    %491 = tpu.matmul %449, %4, %cst_122 {dimension_numbers = #tpu.dot_dimension_numbers<[1], [0], [0], [1], [0, 0, 1, 1], [], []>} : vector<8x32xf32>, vector<32x384xf32>, vector<8x384xf32> -> vector<8x384xf32>
    %492 = vector.extract_strided_slice %491 {offsets = [0, 0], sizes = [8, 32], strides = [1, 1]} : vector<8x384xf32> to vector<8x32xf32>
    %493 = arith.addf %488, %492 : vector<8x32xf32>
    %494 = arith.negf %493 : vector<8x32xf32>
    %495 = math.exp %494 : vector<8x32xf32>
    %cst_123 = arith.constant 1.000000e+00 : f32
    %496 = vector.broadcast %cst_123 : f32 to vector<8x32xf32>
    %497 = arith.addf %496, %495 : vector<8x32xf32>
    %498 = arith.divf %496, %497 : vector<8x32xf32>
    %499 = vector.extract_strided_slice %491 {offsets = [0, 128], sizes = [8, 32], strides = [1, 1]} : vector<8x384xf32> to vector<8x32xf32>
    %500 = arith.addf %489, %499 : vector<8x32xf32>
    %501 = arith.negf %500 : vector<8x32xf32>
    %502 = math.exp %501 : vector<8x32xf32>
    %cst_124 = arith.constant 1.000000e+00 : f32
    %503 = vector.broadcast %cst_124 : f32 to vector<8x32xf32>
    %504 = arith.addf %503, %502 : vector<8x32xf32>
    %505 = arith.divf %503, %504 : vector<8x32xf32>
    %506 = vector.extract_strided_slice %491 {offsets = [0, 256], sizes = [8, 32], strides = [1, 1]} : vector<8x384xf32> to vector<8x32xf32>
    %507 = arith.addf %506, %9 : vector<8x32xf32>
    %508 = arith.mulf %498, %507 : vector<8x32xf32>
    %509 = arith.addf %490, %508 : vector<8x32xf32>
    %510 = math.tanh %509 : vector<8x32xf32>
    %cst_125 = arith.constant 1.000000e+00 : f32
    %511 = vector.broadcast %cst_125 : f32 to vector<8x32xf32>
    %512 = arith.subf %511, %505 : vector<8x32xf32>
    %513 = arith.mulf %512, %510 : vector<8x32xf32>
    %514 = arith.mulf %505, %449 : vector<8x32xf32>
    %515 = arith.addf %513, %514 : vector<8x32xf32>
    %cst_126 = arith.constant dense<0.000000e+00> : vector<8x384xf32>
    %516 = tpu.matmul %515, %6, %cst_126 {dimension_numbers = #tpu.dot_dimension_numbers<[1], [0], [0], [1], [0, 0, 1, 1], [], []>} : vector<8x32xf32>, vector<32x384xf32>, vector<8x384xf32> -> vector<8x384xf32>
    %517 = arith.addf %516, %15 : vector<8x384xf32>
    %518 = vector.extract_strided_slice %517 {offsets = [0, 0], sizes = [8, 32], strides = [1, 1]} : vector<8x384xf32> to vector<8x32xf32>
    %519 = vector.extract_strided_slice %517 {offsets = [0, 128], sizes = [8, 32], strides = [1, 1]} : vector<8x384xf32> to vector<8x32xf32>
    %520 = vector.extract_strided_slice %517 {offsets = [0, 256], sizes = [8, 32], strides = [1, 1]} : vector<8x384xf32> to vector<8x32xf32>
    %cst_127 = arith.constant dense<0.000000e+00> : vector<8x384xf32>
    %521 = tpu.matmul %479, %5, %cst_127 {dimension_numbers = #tpu.dot_dimension_numbers<[1], [0], [0], [1], [0, 0, 1, 1], [], []>} : vector<8x32xf32>, vector<32x384xf32>, vector<8x384xf32> -> vector<8x384xf32>
    %522 = vector.extract_strided_slice %521 {offsets = [0, 0], sizes = [8, 32], strides = [1, 1]} : vector<8x384xf32> to vector<8x32xf32>
    %523 = arith.addf %518, %522 : vector<8x32xf32>
    %524 = arith.negf %523 : vector<8x32xf32>
    %525 = math.exp %524 : vector<8x32xf32>
    %cst_128 = arith.constant 1.000000e+00 : f32
    %526 = vector.broadcast %cst_128 : f32 to vector<8x32xf32>
    %527 = arith.addf %526, %525 : vector<8x32xf32>
    %528 = arith.divf %526, %527 : vector<8x32xf32>
    %529 = vector.extract_strided_slice %521 {offsets = [0, 128], sizes = [8, 32], strides = [1, 1]} : vector<8x384xf32> to vector<8x32xf32>
    %530 = arith.addf %519, %529 : vector<8x32xf32>
    %531 = arith.negf %530 : vector<8x32xf32>
    %532 = math.exp %531 : vector<8x32xf32>
    %cst_129 = arith.constant 1.000000e+00 : f32
    %533 = vector.broadcast %cst_129 : f32 to vector<8x32xf32>
    %534 = arith.addf %533, %532 : vector<8x32xf32>
    %535 = arith.divf %533, %534 : vector<8x32xf32>
    %536 = vector.extract_strided_slice %521 {offsets = [0, 256], sizes = [8, 32], strides = [1, 1]} : vector<8x384xf32> to vector<8x32xf32>
    %537 = arith.addf %536, %12 : vector<8x32xf32>
    %538 = arith.mulf %528, %537 : vector<8x32xf32>
    %539 = arith.addf %520, %538 : vector<8x32xf32>
    %540 = math.tanh %539 : vector<8x32xf32>
    %cst_130 = arith.constant 1.000000e+00 : f32
    %541 = vector.broadcast %cst_130 : f32 to vector<8x32xf32>
    %542 = arith.subf %541, %535 : vector<8x32xf32>
    %543 = arith.mulf %542, %540 : vector<8x32xf32>
    %544 = arith.mulf %535, %479 : vector<8x32xf32>
    %545 = arith.addf %543, %544 : vector<8x32xf32>
    %c224 = arith.constant 224 : index
    %c0_131 = arith.constant 0 : index
    %546 = vector.load %arg3[%c224, %c0_131] : memref<528x768xf32, #tpu.memory_space<vmem>>, vector<32x768xf32>
    %cst_132 = arith.constant 0.000000e+00 : f32
    %547 = vector.broadcast %cst_132 : f32 to vector<8x32xf32>
    %548 = arith.maximumf %545, %547 : vector<8x32xf32>
    %cst_133 = arith.constant dense<0.000000e+00> : vector<8x768xf32>
    %549 = tpu.matmul %548, %546, %cst_133 {dimension_numbers = #tpu.dot_dimension_numbers<[1], [0], [0], [1], [0, 0, 1, 1], [], []>} : vector<8x32xf32>, vector<32x768xf32>, vector<8x768xf32> -> vector<8x768xf32>
    %550 = arith.addf %484, %549 : vector<8x768xf32>
    %c144 = arith.constant 144 : index
    %c0_134 = arith.constant 0 : index
    %551 = vector.load %arg2[%c144, %c0_134] : memref<424x384xf32, #tpu.memory_space<vmem>>, vector<32x384xf32>
    %c216 = arith.constant 216 : index
    %c0_135 = arith.constant 0 : index
    %552 = vector.load %arg2[%c216, %c0_135] : memref<424x384xf32, #tpu.memory_space<vmem>>, vector<32x384xf32>
    %c184 = arith.constant 184 : index
    %c0_136 = arith.constant 0 : index
    %553 = vector.load %arg2[%c184, %c0_136] : memref<424x384xf32, #tpu.memory_space<vmem>>, vector<32x384xf32>
    %c176 = arith.constant 176 : index
    %c0_137 = arith.constant 0 : index
    %554 = vector.load %arg2[%c176, %c0_137] : memref<424x384xf32, #tpu.memory_space<vmem>>, vector<1x32xf32>
    %555 = vector.shape_cast %554 : vector<1x32xf32> to vector<1x32xf32>
    %556 = vector.broadcast %555 : vector<1x32xf32> to vector<8x32xf32>
    %c256_138 = arith.constant 256 : index
    %c0_139 = arith.constant 0 : index
    %557 = vector.load %arg2[%c256_138, %c0_139] : memref<424x384xf32, #tpu.memory_space<vmem>>, vector<1x32xf32>
    %558 = vector.shape_cast %557 : vector<1x32xf32> to vector<1x32xf32>
    %559 = vector.broadcast %558 : vector<1x32xf32> to vector<8x32xf32>
    %c248 = arith.constant 248 : index
    %c0_140 = arith.constant 0 : index
    %560 = vector.load %arg2[%c248, %c0_140] : memref<424x384xf32, #tpu.memory_space<vmem>>, vector<1x384xf32>
    %561 = vector.shape_cast %560 : vector<1x384xf32> to vector<1x384xf32>
    %562 = vector.broadcast %561 : vector<1x384xf32> to vector<8x384xf32>
    %c520 = arith.constant 520 : index
    %c0_141 = arith.constant 0 : index
    %563 = vector.load %arg3[%c520, %c0_141] : memref<528x768xf32, #tpu.memory_space<vmem>>, vector<1x768xf32>
    %564 = vector.shape_cast %563 : vector<1x768xf32> to vector<1x768xf32>
    %565 = vector.broadcast %564 : vector<1x768xf32> to vector<8x768xf32>
    %566 = vector.extract_strided_slice %550 {offsets = [0, 0], sizes = [8, 32], strides = [1, 1]} : vector<8x768xf32> to vector<8x32xf32>
    %567 = vector.extract_strided_slice %550 {offsets = [0, 32], sizes = [8, 32], strides = [1, 1]} : vector<8x768xf32> to vector<8x32xf32>
    %568 = vector.extract_strided_slice %550 {offsets = [0, 64], sizes = [8, 32], strides = [1, 1]} : vector<8x768xf32> to vector<8x32xf32>
    %cst_142 = arith.constant dense<0.000000e+00> : vector<8x384xf32>
    %569 = tpu.matmul %515, %551, %cst_142 {dimension_numbers = #tpu.dot_dimension_numbers<[1], [0], [0], [1], [0, 0, 1, 1], [], []>} : vector<8x32xf32>, vector<32x384xf32>, vector<8x384xf32> -> vector<8x384xf32>
    %570 = vector.extract_strided_slice %569 {offsets = [0, 0], sizes = [8, 32], strides = [1, 1]} : vector<8x384xf32> to vector<8x32xf32>
    %571 = arith.addf %566, %570 : vector<8x32xf32>
    %572 = arith.negf %571 : vector<8x32xf32>
    %573 = math.exp %572 : vector<8x32xf32>
    %cst_143 = arith.constant 1.000000e+00 : f32
    %574 = vector.broadcast %cst_143 : f32 to vector<8x32xf32>
    %575 = arith.addf %574, %573 : vector<8x32xf32>
    %576 = arith.divf %574, %575 : vector<8x32xf32>
    %577 = vector.extract_strided_slice %569 {offsets = [0, 128], sizes = [8, 32], strides = [1, 1]} : vector<8x384xf32> to vector<8x32xf32>
    %578 = arith.addf %567, %577 : vector<8x32xf32>
    %579 = arith.negf %578 : vector<8x32xf32>
    %580 = math.exp %579 : vector<8x32xf32>
    %cst_144 = arith.constant 1.000000e+00 : f32
    %581 = vector.broadcast %cst_144 : f32 to vector<8x32xf32>
    %582 = arith.addf %581, %580 : vector<8x32xf32>
    %583 = arith.divf %581, %582 : vector<8x32xf32>
    %584 = vector.extract_strided_slice %569 {offsets = [0, 256], sizes = [8, 32], strides = [1, 1]} : vector<8x384xf32> to vector<8x32xf32>
    %585 = arith.addf %584, %556 : vector<8x32xf32>
    %586 = arith.mulf %576, %585 : vector<8x32xf32>
    %587 = arith.addf %568, %586 : vector<8x32xf32>
    %588 = math.tanh %587 : vector<8x32xf32>
    %cst_145 = arith.constant 1.000000e+00 : f32
    %589 = vector.broadcast %cst_145 : f32 to vector<8x32xf32>
    %590 = arith.subf %589, %583 : vector<8x32xf32>
    %591 = arith.mulf %590, %588 : vector<8x32xf32>
    %592 = arith.mulf %583, %515 : vector<8x32xf32>
    %593 = arith.addf %591, %592 : vector<8x32xf32>
    %cst_146 = arith.constant dense<0.000000e+00> : vector<8x384xf32>
    %594 = tpu.matmul %593, %553, %cst_146 {dimension_numbers = #tpu.dot_dimension_numbers<[1], [0], [0], [1], [0, 0, 1, 1], [], []>} : vector<8x32xf32>, vector<32x384xf32>, vector<8x384xf32> -> vector<8x384xf32>
    %595 = arith.addf %594, %562 : vector<8x384xf32>
    %596 = vector.extract_strided_slice %595 {offsets = [0, 0], sizes = [8, 32], strides = [1, 1]} : vector<8x384xf32> to vector<8x32xf32>
    %597 = vector.extract_strided_slice %595 {offsets = [0, 128], sizes = [8, 32], strides = [1, 1]} : vector<8x384xf32> to vector<8x32xf32>
    %598 = vector.extract_strided_slice %595 {offsets = [0, 256], sizes = [8, 32], strides = [1, 1]} : vector<8x384xf32> to vector<8x32xf32>
    %cst_147 = arith.constant dense<0.000000e+00> : vector<8x384xf32>
    %599 = tpu.matmul %545, %552, %cst_147 {dimension_numbers = #tpu.dot_dimension_numbers<[1], [0], [0], [1], [0, 0, 1, 1], [], []>} : vector<8x32xf32>, vector<32x384xf32>, vector<8x384xf32> -> vector<8x384xf32>
    %600 = vector.extract_strided_slice %599 {offsets = [0, 0], sizes = [8, 32], strides = [1, 1]} : vector<8x384xf32> to vector<8x32xf32>
    %601 = arith.addf %596, %600 : vector<8x32xf32>
    %602 = arith.negf %601 : vector<8x32xf32>
    %603 = math.exp %602 : vector<8x32xf32>
    %cst_148 = arith.constant 1.000000e+00 : f32
    %604 = vector.broadcast %cst_148 : f32 to vector<8x32xf32>
    %605 = arith.addf %604, %603 : vector<8x32xf32>
    %606 = arith.divf %604, %605 : vector<8x32xf32>
    %607 = vector.extract_strided_slice %599 {offsets = [0, 128], sizes = [8, 32], strides = [1, 1]} : vector<8x384xf32> to vector<8x32xf32>
    %608 = arith.addf %597, %607 : vector<8x32xf32>
    %609 = arith.negf %608 : vector<8x32xf32>
    %610 = math.exp %609 : vector<8x32xf32>
    %cst_149 = arith.constant 1.000000e+00 : f32
    %611 = vector.broadcast %cst_149 : f32 to vector<8x32xf32>
    %612 = arith.addf %611, %610 : vector<8x32xf32>
    %613 = arith.divf %611, %612 : vector<8x32xf32>
    %614 = vector.extract_strided_slice %599 {offsets = [0, 256], sizes = [8, 32], strides = [1, 1]} : vector<8x384xf32> to vector<8x32xf32>
    %615 = arith.addf %614, %559 : vector<8x32xf32>
    %616 = arith.mulf %606, %615 : vector<8x32xf32>
    %617 = arith.addf %598, %616 : vector<8x32xf32>
    %618 = math.tanh %617 : vector<8x32xf32>
    %cst_150 = arith.constant 1.000000e+00 : f32
    %619 = vector.broadcast %cst_150 : f32 to vector<8x32xf32>
    %620 = arith.subf %619, %613 : vector<8x32xf32>
    %621 = arith.mulf %620, %618 : vector<8x32xf32>
    %622 = arith.mulf %613, %545 : vector<8x32xf32>
    %623 = arith.addf %621, %622 : vector<8x32xf32>
    %c264 = arith.constant 264 : index
    %c0_151 = arith.constant 0 : index
    %624 = vector.load %arg3[%c264, %c0_151] : memref<528x768xf32, #tpu.memory_space<vmem>>, vector<32x768xf32>
    %cst_152 = arith.constant 0.000000e+00 : f32
    %625 = vector.broadcast %cst_152 : f32 to vector<8x32xf32>
    %626 = arith.maximumf %623, %625 : vector<8x32xf32>
    %cst_153 = arith.constant dense<0.000000e+00> : vector<8x768xf32>
    %627 = tpu.matmul %626, %624, %cst_153 {dimension_numbers = #tpu.dot_dimension_numbers<[1], [0], [0], [1], [0, 0, 1, 1], [], []>} : vector<8x32xf32>, vector<32x768xf32>, vector<8x768xf32> -> vector<8x768xf32>
    %628 = arith.addf %565, %627 : vector<8x768xf32>
    %629 = vector.extract_strided_slice %550 {offsets = [0, 96], sizes = [8, 32], strides = [1, 1]} : vector<8x768xf32> to vector<8x32xf32>
    %630 = vector.extract_strided_slice %550 {offsets = [0, 128], sizes = [8, 32], strides = [1, 1]} : vector<8x768xf32> to vector<8x32xf32>
    %631 = vector.extract_strided_slice %550 {offsets = [0, 160], sizes = [8, 32], strides = [1, 1]} : vector<8x768xf32> to vector<8x32xf32>
    %cst_154 = arith.constant dense<0.000000e+00> : vector<8x384xf32>
    %632 = tpu.matmul %593, %551, %cst_154 {dimension_numbers = #tpu.dot_dimension_numbers<[1], [0], [0], [1], [0, 0, 1, 1], [], []>} : vector<8x32xf32>, vector<32x384xf32>, vector<8x384xf32> -> vector<8x384xf32>
    %633 = vector.extract_strided_slice %632 {offsets = [0, 0], sizes = [8, 32], strides = [1, 1]} : vector<8x384xf32> to vector<8x32xf32>
    %634 = arith.addf %629, %633 : vector<8x32xf32>
    %635 = arith.negf %634 : vector<8x32xf32>
    %636 = math.exp %635 : vector<8x32xf32>
    %cst_155 = arith.constant 1.000000e+00 : f32
    %637 = vector.broadcast %cst_155 : f32 to vector<8x32xf32>
    %638 = arith.addf %637, %636 : vector<8x32xf32>
    %639 = arith.divf %637, %638 : vector<8x32xf32>
    %640 = vector.extract_strided_slice %632 {offsets = [0, 128], sizes = [8, 32], strides = [1, 1]} : vector<8x384xf32> to vector<8x32xf32>
    %641 = arith.addf %630, %640 : vector<8x32xf32>
    %642 = arith.negf %641 : vector<8x32xf32>
    %643 = math.exp %642 : vector<8x32xf32>
    %cst_156 = arith.constant 1.000000e+00 : f32
    %644 = vector.broadcast %cst_156 : f32 to vector<8x32xf32>
    %645 = arith.addf %644, %643 : vector<8x32xf32>
    %646 = arith.divf %644, %645 : vector<8x32xf32>
    %647 = vector.extract_strided_slice %632 {offsets = [0, 256], sizes = [8, 32], strides = [1, 1]} : vector<8x384xf32> to vector<8x32xf32>
    %648 = arith.addf %647, %556 : vector<8x32xf32>
    %649 = arith.mulf %639, %648 : vector<8x32xf32>
    %650 = arith.addf %631, %649 : vector<8x32xf32>
    %651 = math.tanh %650 : vector<8x32xf32>
    %cst_157 = arith.constant 1.000000e+00 : f32
    %652 = vector.broadcast %cst_157 : f32 to vector<8x32xf32>
    %653 = arith.subf %652, %646 : vector<8x32xf32>
    %654 = arith.mulf %653, %651 : vector<8x32xf32>
    %655 = arith.mulf %646, %593 : vector<8x32xf32>
    %656 = arith.addf %654, %655 : vector<8x32xf32>
    %cst_158 = arith.constant dense<0.000000e+00> : vector<8x384xf32>
    %657 = tpu.matmul %656, %553, %cst_158 {dimension_numbers = #tpu.dot_dimension_numbers<[1], [0], [0], [1], [0, 0, 1, 1], [], []>} : vector<8x32xf32>, vector<32x384xf32>, vector<8x384xf32> -> vector<8x384xf32>
    %658 = arith.addf %657, %562 : vector<8x384xf32>
    %659 = vector.extract_strided_slice %658 {offsets = [0, 0], sizes = [8, 32], strides = [1, 1]} : vector<8x384xf32> to vector<8x32xf32>
    %660 = vector.extract_strided_slice %658 {offsets = [0, 128], sizes = [8, 32], strides = [1, 1]} : vector<8x384xf32> to vector<8x32xf32>
    %661 = vector.extract_strided_slice %658 {offsets = [0, 256], sizes = [8, 32], strides = [1, 1]} : vector<8x384xf32> to vector<8x32xf32>
    %cst_159 = arith.constant dense<0.000000e+00> : vector<8x384xf32>
    %662 = tpu.matmul %623, %552, %cst_159 {dimension_numbers = #tpu.dot_dimension_numbers<[1], [0], [0], [1], [0, 0, 1, 1], [], []>} : vector<8x32xf32>, vector<32x384xf32>, vector<8x384xf32> -> vector<8x384xf32>
    %663 = vector.extract_strided_slice %662 {offsets = [0, 0], sizes = [8, 32], strides = [1, 1]} : vector<8x384xf32> to vector<8x32xf32>
    %664 = arith.addf %659, %663 : vector<8x32xf32>
    %665 = arith.negf %664 : vector<8x32xf32>
    %666 = math.exp %665 : vector<8x32xf32>
    %cst_160 = arith.constant 1.000000e+00 : f32
    %667 = vector.broadcast %cst_160 : f32 to vector<8x32xf32>
    %668 = arith.addf %667, %666 : vector<8x32xf32>
    %669 = arith.divf %667, %668 : vector<8x32xf32>
    %670 = vector.extract_strided_slice %662 {offsets = [0, 128], sizes = [8, 32], strides = [1, 1]} : vector<8x384xf32> to vector<8x32xf32>
    %671 = arith.addf %660, %670 : vector<8x32xf32>
    %672 = arith.negf %671 : vector<8x32xf32>
    %673 = math.exp %672 : vector<8x32xf32>
    %cst_161 = arith.constant 1.000000e+00 : f32
    %674 = vector.broadcast %cst_161 : f32 to vector<8x32xf32>
    %675 = arith.addf %674, %673 : vector<8x32xf32>
    %676 = arith.divf %674, %675 : vector<8x32xf32>
    %677 = vector.extract_strided_slice %662 {offsets = [0, 256], sizes = [8, 32], strides = [1, 1]} : vector<8x384xf32> to vector<8x32xf32>
    %678 = arith.addf %677, %559 : vector<8x32xf32>
    %679 = arith.mulf %669, %678 : vector<8x32xf32>
    %680 = arith.addf %661, %679 : vector<8x32xf32>
    %681 = math.tanh %680 : vector<8x32xf32>
    %cst_162 = arith.constant 1.000000e+00 : f32
    %682 = vector.broadcast %cst_162 : f32 to vector<8x32xf32>
    %683 = arith.subf %682, %676 : vector<8x32xf32>
    %684 = arith.mulf %683, %681 : vector<8x32xf32>
    %685 = arith.mulf %676, %623 : vector<8x32xf32>
    %686 = arith.addf %684, %685 : vector<8x32xf32>
    %c296 = arith.constant 296 : index
    %c0_163 = arith.constant 0 : index
    %687 = vector.load %arg3[%c296, %c0_163] : memref<528x768xf32, #tpu.memory_space<vmem>>, vector<32x768xf32>
    %cst_164 = arith.constant 0.000000e+00 : f32
    %688 = vector.broadcast %cst_164 : f32 to vector<8x32xf32>
    %689 = arith.maximumf %686, %688 : vector<8x32xf32>
    %cst_165 = arith.constant dense<0.000000e+00> : vector<8x768xf32>
    %690 = tpu.matmul %689, %687, %cst_165 {dimension_numbers = #tpu.dot_dimension_numbers<[1], [0], [0], [1], [0, 0, 1, 1], [], []>} : vector<8x32xf32>, vector<32x768xf32>, vector<8x768xf32> -> vector<8x768xf32>
    %691 = arith.addf %628, %690 : vector<8x768xf32>
    %692 = vector.extract_strided_slice %550 {offsets = [0, 192], sizes = [8, 32], strides = [1, 1]} : vector<8x768xf32> to vector<8x32xf32>
    %693 = vector.extract_strided_slice %550 {offsets = [0, 224], sizes = [8, 32], strides = [1, 1]} : vector<8x768xf32> to vector<8x32xf32>
    %694 = vector.extract_strided_slice %550 {offsets = [0, 256], sizes = [8, 32], strides = [1, 1]} : vector<8x768xf32> to vector<8x32xf32>
    %cst_166 = arith.constant dense<0.000000e+00> : vector<8x384xf32>
    %695 = tpu.matmul %656, %551, %cst_166 {dimension_numbers = #tpu.dot_dimension_numbers<[1], [0], [0], [1], [0, 0, 1, 1], [], []>} : vector<8x32xf32>, vector<32x384xf32>, vector<8x384xf32> -> vector<8x384xf32>
    %696 = vector.extract_strided_slice %695 {offsets = [0, 0], sizes = [8, 32], strides = [1, 1]} : vector<8x384xf32> to vector<8x32xf32>
    %697 = arith.addf %692, %696 : vector<8x32xf32>
    %698 = arith.negf %697 : vector<8x32xf32>
    %699 = math.exp %698 : vector<8x32xf32>
    %cst_167 = arith.constant 1.000000e+00 : f32
    %700 = vector.broadcast %cst_167 : f32 to vector<8x32xf32>
    %701 = arith.addf %700, %699 : vector<8x32xf32>
    %702 = arith.divf %700, %701 : vector<8x32xf32>
    %703 = vector.extract_strided_slice %695 {offsets = [0, 128], sizes = [8, 32], strides = [1, 1]} : vector<8x384xf32> to vector<8x32xf32>
    %704 = arith.addf %693, %703 : vector<8x32xf32>
    %705 = arith.negf %704 : vector<8x32xf32>
    %706 = math.exp %705 : vector<8x32xf32>
    %cst_168 = arith.constant 1.000000e+00 : f32
    %707 = vector.broadcast %cst_168 : f32 to vector<8x32xf32>
    %708 = arith.addf %707, %706 : vector<8x32xf32>
    %709 = arith.divf %707, %708 : vector<8x32xf32>
    %710 = vector.extract_strided_slice %695 {offsets = [0, 256], sizes = [8, 32], strides = [1, 1]} : vector<8x384xf32> to vector<8x32xf32>
    %711 = arith.addf %710, %556 : vector<8x32xf32>
    %712 = arith.mulf %702, %711 : vector<8x32xf32>
    %713 = arith.addf %694, %712 : vector<8x32xf32>
    %714 = math.tanh %713 : vector<8x32xf32>
    %cst_169 = arith.constant 1.000000e+00 : f32
    %715 = vector.broadcast %cst_169 : f32 to vector<8x32xf32>
    %716 = arith.subf %715, %709 : vector<8x32xf32>
    %717 = arith.mulf %716, %714 : vector<8x32xf32>
    %718 = arith.mulf %709, %656 : vector<8x32xf32>
    %719 = arith.addf %717, %718 : vector<8x32xf32>
    %cst_170 = arith.constant dense<0.000000e+00> : vector<8x384xf32>
    %720 = tpu.matmul %719, %553, %cst_170 {dimension_numbers = #tpu.dot_dimension_numbers<[1], [0], [0], [1], [0, 0, 1, 1], [], []>} : vector<8x32xf32>, vector<32x384xf32>, vector<8x384xf32> -> vector<8x384xf32>
    %721 = arith.addf %720, %562 : vector<8x384xf32>
    %722 = vector.extract_strided_slice %721 {offsets = [0, 0], sizes = [8, 32], strides = [1, 1]} : vector<8x384xf32> to vector<8x32xf32>
    %723 = vector.extract_strided_slice %721 {offsets = [0, 128], sizes = [8, 32], strides = [1, 1]} : vector<8x384xf32> to vector<8x32xf32>
    %724 = vector.extract_strided_slice %721 {offsets = [0, 256], sizes = [8, 32], strides = [1, 1]} : vector<8x384xf32> to vector<8x32xf32>
    %cst_171 = arith.constant dense<0.000000e+00> : vector<8x384xf32>
    %725 = tpu.matmul %686, %552, %cst_171 {dimension_numbers = #tpu.dot_dimension_numbers<[1], [0], [0], [1], [0, 0, 1, 1], [], []>} : vector<8x32xf32>, vector<32x384xf32>, vector<8x384xf32> -> vector<8x384xf32>
    %726 = vector.extract_strided_slice %725 {offsets = [0, 0], sizes = [8, 32], strides = [1, 1]} : vector<8x384xf32> to vector<8x32xf32>
    %727 = arith.addf %722, %726 : vector<8x32xf32>
    %728 = arith.negf %727 : vector<8x32xf32>
    %729 = math.exp %728 : vector<8x32xf32>
    %cst_172 = arith.constant 1.000000e+00 : f32
    %730 = vector.broadcast %cst_172 : f32 to vector<8x32xf32>
    %731 = arith.addf %730, %729 : vector<8x32xf32>
    %732 = arith.divf %730, %731 : vector<8x32xf32>
    %733 = vector.extract_strided_slice %725 {offsets = [0, 128], sizes = [8, 32], strides = [1, 1]} : vector<8x384xf32> to vector<8x32xf32>
    %734 = arith.addf %723, %733 : vector<8x32xf32>
    %735 = arith.negf %734 : vector<8x32xf32>
    %736 = math.exp %735 : vector<8x32xf32>
    %cst_173 = arith.constant 1.000000e+00 : f32
    %737 = vector.broadcast %cst_173 : f32 to vector<8x32xf32>
    %738 = arith.addf %737, %736 : vector<8x32xf32>
    %739 = arith.divf %737, %738 : vector<8x32xf32>
    %740 = vector.extract_strided_slice %725 {offsets = [0, 256], sizes = [8, 32], strides = [1, 1]} : vector<8x384xf32> to vector<8x32xf32>
    %741 = arith.addf %740, %559 : vector<8x32xf32>
    %742 = arith.mulf %732, %741 : vector<8x32xf32>
    %743 = arith.addf %724, %742 : vector<8x32xf32>
    %744 = math.tanh %743 : vector<8x32xf32>
    %cst_174 = arith.constant 1.000000e+00 : f32
    %745 = vector.broadcast %cst_174 : f32 to vector<8x32xf32>
    %746 = arith.subf %745, %739 : vector<8x32xf32>
    %747 = arith.mulf %746, %744 : vector<8x32xf32>
    %748 = arith.mulf %739, %686 : vector<8x32xf32>
    %749 = arith.addf %747, %748 : vector<8x32xf32>
    %c328 = arith.constant 328 : index
    %c0_175 = arith.constant 0 : index
    %750 = vector.load %arg3[%c328, %c0_175] : memref<528x768xf32, #tpu.memory_space<vmem>>, vector<32x768xf32>
    %cst_176 = arith.constant 0.000000e+00 : f32
    %751 = vector.broadcast %cst_176 : f32 to vector<8x32xf32>
    %752 = arith.maximumf %749, %751 : vector<8x32xf32>
    %cst_177 = arith.constant dense<0.000000e+00> : vector<8x768xf32>
    %753 = tpu.matmul %752, %750, %cst_177 {dimension_numbers = #tpu.dot_dimension_numbers<[1], [0], [0], [1], [0, 0, 1, 1], [], []>} : vector<8x32xf32>, vector<32x768xf32>, vector<8x768xf32> -> vector<8x768xf32>
    %754 = arith.addf %691, %753 : vector<8x768xf32>
    %755 = vector.extract_strided_slice %550 {offsets = [0, 288], sizes = [8, 32], strides = [1, 1]} : vector<8x768xf32> to vector<8x32xf32>
    %756 = vector.extract_strided_slice %550 {offsets = [0, 320], sizes = [8, 32], strides = [1, 1]} : vector<8x768xf32> to vector<8x32xf32>
    %757 = vector.extract_strided_slice %550 {offsets = [0, 352], sizes = [8, 32], strides = [1, 1]} : vector<8x768xf32> to vector<8x32xf32>
    %cst_178 = arith.constant dense<0.000000e+00> : vector<8x384xf32>
    %758 = tpu.matmul %719, %551, %cst_178 {dimension_numbers = #tpu.dot_dimension_numbers<[1], [0], [0], [1], [0, 0, 1, 1], [], []>} : vector<8x32xf32>, vector<32x384xf32>, vector<8x384xf32> -> vector<8x384xf32>
    %759 = vector.extract_strided_slice %758 {offsets = [0, 0], sizes = [8, 32], strides = [1, 1]} : vector<8x384xf32> to vector<8x32xf32>
    %760 = arith.addf %755, %759 : vector<8x32xf32>
    %761 = arith.negf %760 : vector<8x32xf32>
    %762 = math.exp %761 : vector<8x32xf32>
    %cst_179 = arith.constant 1.000000e+00 : f32
    %763 = vector.broadcast %cst_179 : f32 to vector<8x32xf32>
    %764 = arith.addf %763, %762 : vector<8x32xf32>
    %765 = arith.divf %763, %764 : vector<8x32xf32>
    %766 = vector.extract_strided_slice %758 {offsets = [0, 128], sizes = [8, 32], strides = [1, 1]} : vector<8x384xf32> to vector<8x32xf32>
    %767 = arith.addf %756, %766 : vector<8x32xf32>
    %768 = arith.negf %767 : vector<8x32xf32>
    %769 = math.exp %768 : vector<8x32xf32>
    %cst_180 = arith.constant 1.000000e+00 : f32
    %770 = vector.broadcast %cst_180 : f32 to vector<8x32xf32>
    %771 = arith.addf %770, %769 : vector<8x32xf32>
    %772 = arith.divf %770, %771 : vector<8x32xf32>
    %773 = vector.extract_strided_slice %758 {offsets = [0, 256], sizes = [8, 32], strides = [1, 1]} : vector<8x384xf32> to vector<8x32xf32>
    %774 = arith.addf %773, %556 : vector<8x32xf32>
    %775 = arith.mulf %765, %774 : vector<8x32xf32>
    %776 = arith.addf %757, %775 : vector<8x32xf32>
    %777 = math.tanh %776 : vector<8x32xf32>
    %cst_181 = arith.constant 1.000000e+00 : f32
    %778 = vector.broadcast %cst_181 : f32 to vector<8x32xf32>
    %779 = arith.subf %778, %772 : vector<8x32xf32>
    %780 = arith.mulf %779, %777 : vector<8x32xf32>
    %781 = arith.mulf %772, %719 : vector<8x32xf32>
    %782 = arith.addf %780, %781 : vector<8x32xf32>
    %cst_182 = arith.constant dense<0.000000e+00> : vector<8x384xf32>
    %783 = tpu.matmul %782, %553, %cst_182 {dimension_numbers = #tpu.dot_dimension_numbers<[1], [0], [0], [1], [0, 0, 1, 1], [], []>} : vector<8x32xf32>, vector<32x384xf32>, vector<8x384xf32> -> vector<8x384xf32>
    %784 = arith.addf %783, %562 : vector<8x384xf32>
    %785 = vector.extract_strided_slice %784 {offsets = [0, 0], sizes = [8, 32], strides = [1, 1]} : vector<8x384xf32> to vector<8x32xf32>
    %786 = vector.extract_strided_slice %784 {offsets = [0, 128], sizes = [8, 32], strides = [1, 1]} : vector<8x384xf32> to vector<8x32xf32>
    %787 = vector.extract_strided_slice %784 {offsets = [0, 256], sizes = [8, 32], strides = [1, 1]} : vector<8x384xf32> to vector<8x32xf32>
    %cst_183 = arith.constant dense<0.000000e+00> : vector<8x384xf32>
    %788 = tpu.matmul %749, %552, %cst_183 {dimension_numbers = #tpu.dot_dimension_numbers<[1], [0], [0], [1], [0, 0, 1, 1], [], []>} : vector<8x32xf32>, vector<32x384xf32>, vector<8x384xf32> -> vector<8x384xf32>
    %789 = vector.extract_strided_slice %788 {offsets = [0, 0], sizes = [8, 32], strides = [1, 1]} : vector<8x384xf32> to vector<8x32xf32>
    %790 = arith.addf %785, %789 : vector<8x32xf32>
    %791 = arith.negf %790 : vector<8x32xf32>
    %792 = math.exp %791 : vector<8x32xf32>
    %cst_184 = arith.constant 1.000000e+00 : f32
    %793 = vector.broadcast %cst_184 : f32 to vector<8x32xf32>
    %794 = arith.addf %793, %792 : vector<8x32xf32>
    %795 = arith.divf %793, %794 : vector<8x32xf32>
    %796 = vector.extract_strided_slice %788 {offsets = [0, 128], sizes = [8, 32], strides = [1, 1]} : vector<8x384xf32> to vector<8x32xf32>
    %797 = arith.addf %786, %796 : vector<8x32xf32>
    %798 = arith.negf %797 : vector<8x32xf32>
    %799 = math.exp %798 : vector<8x32xf32>
    %cst_185 = arith.constant 1.000000e+00 : f32
    %800 = vector.broadcast %cst_185 : f32 to vector<8x32xf32>
    %801 = arith.addf %800, %799 : vector<8x32xf32>
    %802 = arith.divf %800, %801 : vector<8x32xf32>
    %803 = vector.extract_strided_slice %788 {offsets = [0, 256], sizes = [8, 32], strides = [1, 1]} : vector<8x384xf32> to vector<8x32xf32>
    %804 = arith.addf %803, %559 : vector<8x32xf32>
    %805 = arith.mulf %795, %804 : vector<8x32xf32>
    %806 = arith.addf %787, %805 : vector<8x32xf32>
    %807 = math.tanh %806 : vector<8x32xf32>
    %cst_186 = arith.constant 1.000000e+00 : f32
    %808 = vector.broadcast %cst_186 : f32 to vector<8x32xf32>
    %809 = arith.subf %808, %802 : vector<8x32xf32>
    %810 = arith.mulf %809, %807 : vector<8x32xf32>
    %811 = arith.mulf %802, %749 : vector<8x32xf32>
    %812 = arith.addf %810, %811 : vector<8x32xf32>
    %c360 = arith.constant 360 : index
    %c0_187 = arith.constant 0 : index
    %813 = vector.load %arg3[%c360, %c0_187] : memref<528x768xf32, #tpu.memory_space<vmem>>, vector<32x768xf32>
    %cst_188 = arith.constant 0.000000e+00 : f32
    %814 = vector.broadcast %cst_188 : f32 to vector<8x32xf32>
    %815 = arith.maximumf %812, %814 : vector<8x32xf32>
    %cst_189 = arith.constant dense<0.000000e+00> : vector<8x768xf32>
    %816 = tpu.matmul %815, %813, %cst_189 {dimension_numbers = #tpu.dot_dimension_numbers<[1], [0], [0], [1], [0, 0, 1, 1], [], []>} : vector<8x32xf32>, vector<32x768xf32>, vector<8x768xf32> -> vector<8x768xf32>
    %817 = arith.addf %754, %816 : vector<8x768xf32>
    %818 = vector.extract_strided_slice %550 {offsets = [0, 384], sizes = [8, 32], strides = [1, 1]} : vector<8x768xf32> to vector<8x32xf32>
    %819 = vector.extract_strided_slice %550 {offsets = [0, 416], sizes = [8, 32], strides = [1, 1]} : vector<8x768xf32> to vector<8x32xf32>
    %820 = vector.extract_strided_slice %550 {offsets = [0, 448], sizes = [8, 32], strides = [1, 1]} : vector<8x768xf32> to vector<8x32xf32>
    %cst_190 = arith.constant dense<0.000000e+00> : vector<8x384xf32>
    %821 = tpu.matmul %782, %551, %cst_190 {dimension_numbers = #tpu.dot_dimension_numbers<[1], [0], [0], [1], [0, 0, 1, 1], [], []>} : vector<8x32xf32>, vector<32x384xf32>, vector<8x384xf32> -> vector<8x384xf32>
    %822 = vector.extract_strided_slice %821 {offsets = [0, 0], sizes = [8, 32], strides = [1, 1]} : vector<8x384xf32> to vector<8x32xf32>
    %823 = arith.addf %818, %822 : vector<8x32xf32>
    %824 = arith.negf %823 : vector<8x32xf32>
    %825 = math.exp %824 : vector<8x32xf32>
    %cst_191 = arith.constant 1.000000e+00 : f32
    %826 = vector.broadcast %cst_191 : f32 to vector<8x32xf32>
    %827 = arith.addf %826, %825 : vector<8x32xf32>
    %828 = arith.divf %826, %827 : vector<8x32xf32>
    %829 = vector.extract_strided_slice %821 {offsets = [0, 128], sizes = [8, 32], strides = [1, 1]} : vector<8x384xf32> to vector<8x32xf32>
    %830 = arith.addf %819, %829 : vector<8x32xf32>
    %831 = arith.negf %830 : vector<8x32xf32>
    %832 = math.exp %831 : vector<8x32xf32>
    %cst_192 = arith.constant 1.000000e+00 : f32
    %833 = vector.broadcast %cst_192 : f32 to vector<8x32xf32>
    %834 = arith.addf %833, %832 : vector<8x32xf32>
    %835 = arith.divf %833, %834 : vector<8x32xf32>
    %836 = vector.extract_strided_slice %821 {offsets = [0, 256], sizes = [8, 32], strides = [1, 1]} : vector<8x384xf32> to vector<8x32xf32>
    %837 = arith.addf %836, %556 : vector<8x32xf32>
    %838 = arith.mulf %828, %837 : vector<8x32xf32>
    %839 = arith.addf %820, %838 : vector<8x32xf32>
    %840 = math.tanh %839 : vector<8x32xf32>
    %cst_193 = arith.constant 1.000000e+00 : f32
    %841 = vector.broadcast %cst_193 : f32 to vector<8x32xf32>
    %842 = arith.subf %841, %835 : vector<8x32xf32>
    %843 = arith.mulf %842, %840 : vector<8x32xf32>
    %844 = arith.mulf %835, %782 : vector<8x32xf32>
    %845 = arith.addf %843, %844 : vector<8x32xf32>
    %cst_194 = arith.constant dense<0.000000e+00> : vector<8x384xf32>
    %846 = tpu.matmul %845, %553, %cst_194 {dimension_numbers = #tpu.dot_dimension_numbers<[1], [0], [0], [1], [0, 0, 1, 1], [], []>} : vector<8x32xf32>, vector<32x384xf32>, vector<8x384xf32> -> vector<8x384xf32>
    %847 = arith.addf %846, %562 : vector<8x384xf32>
    %848 = vector.extract_strided_slice %847 {offsets = [0, 0], sizes = [8, 32], strides = [1, 1]} : vector<8x384xf32> to vector<8x32xf32>
    %849 = vector.extract_strided_slice %847 {offsets = [0, 128], sizes = [8, 32], strides = [1, 1]} : vector<8x384xf32> to vector<8x32xf32>
    %850 = vector.extract_strided_slice %847 {offsets = [0, 256], sizes = [8, 32], strides = [1, 1]} : vector<8x384xf32> to vector<8x32xf32>
    %cst_195 = arith.constant dense<0.000000e+00> : vector<8x384xf32>
    %851 = tpu.matmul %812, %552, %cst_195 {dimension_numbers = #tpu.dot_dimension_numbers<[1], [0], [0], [1], [0, 0, 1, 1], [], []>} : vector<8x32xf32>, vector<32x384xf32>, vector<8x384xf32> -> vector<8x384xf32>
    %852 = vector.extract_strided_slice %851 {offsets = [0, 0], sizes = [8, 32], strides = [1, 1]} : vector<8x384xf32> to vector<8x32xf32>
    %853 = arith.addf %848, %852 : vector<8x32xf32>
    %854 = arith.negf %853 : vector<8x32xf32>
    %855 = math.exp %854 : vector<8x32xf32>
    %cst_196 = arith.constant 1.000000e+00 : f32
    %856 = vector.broadcast %cst_196 : f32 to vector<8x32xf32>
    %857 = arith.addf %856, %855 : vector<8x32xf32>
    %858 = arith.divf %856, %857 : vector<8x32xf32>
    %859 = vector.extract_strided_slice %851 {offsets = [0, 128], sizes = [8, 32], strides = [1, 1]} : vector<8x384xf32> to vector<8x32xf32>
    %860 = arith.addf %849, %859 : vector<8x32xf32>
    %861 = arith.negf %860 : vector<8x32xf32>
    %862 = math.exp %861 : vector<8x32xf32>
    %cst_197 = arith.constant 1.000000e+00 : f32
    %863 = vector.broadcast %cst_197 : f32 to vector<8x32xf32>
    %864 = arith.addf %863, %862 : vector<8x32xf32>
    %865 = arith.divf %863, %864 : vector<8x32xf32>
    %866 = vector.extract_strided_slice %851 {offsets = [0, 256], sizes = [8, 32], strides = [1, 1]} : vector<8x384xf32> to vector<8x32xf32>
    %867 = arith.addf %866, %559 : vector<8x32xf32>
    %868 = arith.mulf %858, %867 : vector<8x32xf32>
    %869 = arith.addf %850, %868 : vector<8x32xf32>
    %870 = math.tanh %869 : vector<8x32xf32>
    %cst_198 = arith.constant 1.000000e+00 : f32
    %871 = vector.broadcast %cst_198 : f32 to vector<8x32xf32>
    %872 = arith.subf %871, %865 : vector<8x32xf32>
    %873 = arith.mulf %872, %870 : vector<8x32xf32>
    %874 = arith.mulf %865, %812 : vector<8x32xf32>
    %875 = arith.addf %873, %874 : vector<8x32xf32>
    %c392 = arith.constant 392 : index
    %c0_199 = arith.constant 0 : index
    %876 = vector.load %arg3[%c392, %c0_199] : memref<528x768xf32, #tpu.memory_space<vmem>>, vector<32x768xf32>
    %cst_200 = arith.constant 0.000000e+00 : f32
    %877 = vector.broadcast %cst_200 : f32 to vector<8x32xf32>
    %878 = arith.maximumf %875, %877 : vector<8x32xf32>
    %cst_201 = arith.constant dense<0.000000e+00> : vector<8x768xf32>
    %879 = tpu.matmul %878, %876, %cst_201 {dimension_numbers = #tpu.dot_dimension_numbers<[1], [0], [0], [1], [0, 0, 1, 1], [], []>} : vector<8x32xf32>, vector<32x768xf32>, vector<8x768xf32> -> vector<8x768xf32>
    %880 = arith.addf %817, %879 : vector<8x768xf32>
    %881 = vector.extract_strided_slice %550 {offsets = [0, 480], sizes = [8, 32], strides = [1, 1]} : vector<8x768xf32> to vector<8x32xf32>
    %882 = vector.extract_strided_slice %550 {offsets = [0, 512], sizes = [8, 32], strides = [1, 1]} : vector<8x768xf32> to vector<8x32xf32>
    %883 = vector.extract_strided_slice %550 {offsets = [0, 544], sizes = [8, 32], strides = [1, 1]} : vector<8x768xf32> to vector<8x32xf32>
    %cst_202 = arith.constant dense<0.000000e+00> : vector<8x384xf32>
    %884 = tpu.matmul %845, %551, %cst_202 {dimension_numbers = #tpu.dot_dimension_numbers<[1], [0], [0], [1], [0, 0, 1, 1], [], []>} : vector<8x32xf32>, vector<32x384xf32>, vector<8x384xf32> -> vector<8x384xf32>
    %885 = vector.extract_strided_slice %884 {offsets = [0, 0], sizes = [8, 32], strides = [1, 1]} : vector<8x384xf32> to vector<8x32xf32>
    %886 = arith.addf %881, %885 : vector<8x32xf32>
    %887 = arith.negf %886 : vector<8x32xf32>
    %888 = math.exp %887 : vector<8x32xf32>
    %cst_203 = arith.constant 1.000000e+00 : f32
    %889 = vector.broadcast %cst_203 : f32 to vector<8x32xf32>
    %890 = arith.addf %889, %888 : vector<8x32xf32>
    %891 = arith.divf %889, %890 : vector<8x32xf32>
    %892 = vector.extract_strided_slice %884 {offsets = [0, 128], sizes = [8, 32], strides = [1, 1]} : vector<8x384xf32> to vector<8x32xf32>
    %893 = arith.addf %882, %892 : vector<8x32xf32>
    %894 = arith.negf %893 : vector<8x32xf32>
    %895 = math.exp %894 : vector<8x32xf32>
    %cst_204 = arith.constant 1.000000e+00 : f32
    %896 = vector.broadcast %cst_204 : f32 to vector<8x32xf32>
    %897 = arith.addf %896, %895 : vector<8x32xf32>
    %898 = arith.divf %896, %897 : vector<8x32xf32>
    %899 = vector.extract_strided_slice %884 {offsets = [0, 256], sizes = [8, 32], strides = [1, 1]} : vector<8x384xf32> to vector<8x32xf32>
    %900 = arith.addf %899, %556 : vector<8x32xf32>
    %901 = arith.mulf %891, %900 : vector<8x32xf32>
    %902 = arith.addf %883, %901 : vector<8x32xf32>
    %903 = math.tanh %902 : vector<8x32xf32>
    %cst_205 = arith.constant 1.000000e+00 : f32
    %904 = vector.broadcast %cst_205 : f32 to vector<8x32xf32>
    %905 = arith.subf %904, %898 : vector<8x32xf32>
    %906 = arith.mulf %905, %903 : vector<8x32xf32>
    %907 = arith.mulf %898, %845 : vector<8x32xf32>
    %908 = arith.addf %906, %907 : vector<8x32xf32>
    %cst_206 = arith.constant dense<0.000000e+00> : vector<8x384xf32>
    %909 = tpu.matmul %908, %553, %cst_206 {dimension_numbers = #tpu.dot_dimension_numbers<[1], [0], [0], [1], [0, 0, 1, 1], [], []>} : vector<8x32xf32>, vector<32x384xf32>, vector<8x384xf32> -> vector<8x384xf32>
    %910 = arith.addf %909, %562 : vector<8x384xf32>
    %911 = vector.extract_strided_slice %910 {offsets = [0, 0], sizes = [8, 32], strides = [1, 1]} : vector<8x384xf32> to vector<8x32xf32>
    %912 = vector.extract_strided_slice %910 {offsets = [0, 128], sizes = [8, 32], strides = [1, 1]} : vector<8x384xf32> to vector<8x32xf32>
    %913 = vector.extract_strided_slice %910 {offsets = [0, 256], sizes = [8, 32], strides = [1, 1]} : vector<8x384xf32> to vector<8x32xf32>
    %cst_207 = arith.constant dense<0.000000e+00> : vector<8x384xf32>
    %914 = tpu.matmul %875, %552, %cst_207 {dimension_numbers = #tpu.dot_dimension_numbers<[1], [0], [0], [1], [0, 0, 1, 1], [], []>} : vector<8x32xf32>, vector<32x384xf32>, vector<8x384xf32> -> vector<8x384xf32>
    %915 = vector.extract_strided_slice %914 {offsets = [0, 0], sizes = [8, 32], strides = [1, 1]} : vector<8x384xf32> to vector<8x32xf32>
    %916 = arith.addf %911, %915 : vector<8x32xf32>
    %917 = arith.negf %916 : vector<8x32xf32>
    %918 = math.exp %917 : vector<8x32xf32>
    %cst_208 = arith.constant 1.000000e+00 : f32
    %919 = vector.broadcast %cst_208 : f32 to vector<8x32xf32>
    %920 = arith.addf %919, %918 : vector<8x32xf32>
    %921 = arith.divf %919, %920 : vector<8x32xf32>
    %922 = vector.extract_strided_slice %914 {offsets = [0, 128], sizes = [8, 32], strides = [1, 1]} : vector<8x384xf32> to vector<8x32xf32>
    %923 = arith.addf %912, %922 : vector<8x32xf32>
    %924 = arith.negf %923 : vector<8x32xf32>
    %925 = math.exp %924 : vector<8x32xf32>
    %cst_209 = arith.constant 1.000000e+00 : f32
    %926 = vector.broadcast %cst_209 : f32 to vector<8x32xf32>
    %927 = arith.addf %926, %925 : vector<8x32xf32>
    %928 = arith.divf %926, %927 : vector<8x32xf32>
    %929 = vector.extract_strided_slice %914 {offsets = [0, 256], sizes = [8, 32], strides = [1, 1]} : vector<8x384xf32> to vector<8x32xf32>
    %930 = arith.addf %929, %559 : vector<8x32xf32>
    %931 = arith.mulf %921, %930 : vector<8x32xf32>
    %932 = arith.addf %913, %931 : vector<8x32xf32>
    %933 = math.tanh %932 : vector<8x32xf32>
    %cst_210 = arith.constant 1.000000e+00 : f32
    %934 = vector.broadcast %cst_210 : f32 to vector<8x32xf32>
    %935 = arith.subf %934, %928 : vector<8x32xf32>
    %936 = arith.mulf %935, %933 : vector<8x32xf32>
    %937 = arith.mulf %928, %875 : vector<8x32xf32>
    %938 = arith.addf %936, %937 : vector<8x32xf32>
    %c424 = arith.constant 424 : index
    %c0_211 = arith.constant 0 : index
    %939 = vector.load %arg3[%c424, %c0_211] : memref<528x768xf32, #tpu.memory_space<vmem>>, vector<32x768xf32>
    %cst_212 = arith.constant 0.000000e+00 : f32
    %940 = vector.broadcast %cst_212 : f32 to vector<8x32xf32>
    %941 = arith.maximumf %938, %940 : vector<8x32xf32>
    %cst_213 = arith.constant dense<0.000000e+00> : vector<8x768xf32>
    %942 = tpu.matmul %941, %939, %cst_213 {dimension_numbers = #tpu.dot_dimension_numbers<[1], [0], [0], [1], [0, 0, 1, 1], [], []>} : vector<8x32xf32>, vector<32x768xf32>, vector<8x768xf32> -> vector<8x768xf32>
    %943 = arith.addf %880, %942 : vector<8x768xf32>
    %944 = vector.extract_strided_slice %550 {offsets = [0, 576], sizes = [8, 32], strides = [1, 1]} : vector<8x768xf32> to vector<8x32xf32>
    %945 = vector.extract_strided_slice %550 {offsets = [0, 608], sizes = [8, 32], strides = [1, 1]} : vector<8x768xf32> to vector<8x32xf32>
    %946 = vector.extract_strided_slice %550 {offsets = [0, 640], sizes = [8, 32], strides = [1, 1]} : vector<8x768xf32> to vector<8x32xf32>
    %cst_214 = arith.constant dense<0.000000e+00> : vector<8x384xf32>
    %947 = tpu.matmul %908, %551, %cst_214 {dimension_numbers = #tpu.dot_dimension_numbers<[1], [0], [0], [1], [0, 0, 1, 1], [], []>} : vector<8x32xf32>, vector<32x384xf32>, vector<8x384xf32> -> vector<8x384xf32>
    %948 = vector.extract_strided_slice %947 {offsets = [0, 0], sizes = [8, 32], strides = [1, 1]} : vector<8x384xf32> to vector<8x32xf32>
    %949 = arith.addf %944, %948 : vector<8x32xf32>
    %950 = arith.negf %949 : vector<8x32xf32>
    %951 = math.exp %950 : vector<8x32xf32>
    %cst_215 = arith.constant 1.000000e+00 : f32
    %952 = vector.broadcast %cst_215 : f32 to vector<8x32xf32>
    %953 = arith.addf %952, %951 : vector<8x32xf32>
    %954 = arith.divf %952, %953 : vector<8x32xf32>
    %955 = vector.extract_strided_slice %947 {offsets = [0, 128], sizes = [8, 32], strides = [1, 1]} : vector<8x384xf32> to vector<8x32xf32>
    %956 = arith.addf %945, %955 : vector<8x32xf32>
    %957 = arith.negf %956 : vector<8x32xf32>
    %958 = math.exp %957 : vector<8x32xf32>
    %cst_216 = arith.constant 1.000000e+00 : f32
    %959 = vector.broadcast %cst_216 : f32 to vector<8x32xf32>
    %960 = arith.addf %959, %958 : vector<8x32xf32>
    %961 = arith.divf %959, %960 : vector<8x32xf32>
    %962 = vector.extract_strided_slice %947 {offsets = [0, 256], sizes = [8, 32], strides = [1, 1]} : vector<8x384xf32> to vector<8x32xf32>
    %963 = arith.addf %962, %556 : vector<8x32xf32>
    %964 = arith.mulf %954, %963 : vector<8x32xf32>
    %965 = arith.addf %946, %964 : vector<8x32xf32>
    %966 = math.tanh %965 : vector<8x32xf32>
    %cst_217 = arith.constant 1.000000e+00 : f32
    %967 = vector.broadcast %cst_217 : f32 to vector<8x32xf32>
    %968 = arith.subf %967, %961 : vector<8x32xf32>
    %969 = arith.mulf %968, %966 : vector<8x32xf32>
    %970 = arith.mulf %961, %908 : vector<8x32xf32>
    %971 = arith.addf %969, %970 : vector<8x32xf32>
    %cst_218 = arith.constant dense<0.000000e+00> : vector<8x384xf32>
    %972 = tpu.matmul %971, %553, %cst_218 {dimension_numbers = #tpu.dot_dimension_numbers<[1], [0], [0], [1], [0, 0, 1, 1], [], []>} : vector<8x32xf32>, vector<32x384xf32>, vector<8x384xf32> -> vector<8x384xf32>
    %973 = arith.addf %972, %562 : vector<8x384xf32>
    %974 = vector.extract_strided_slice %973 {offsets = [0, 0], sizes = [8, 32], strides = [1, 1]} : vector<8x384xf32> to vector<8x32xf32>
    %975 = vector.extract_strided_slice %973 {offsets = [0, 128], sizes = [8, 32], strides = [1, 1]} : vector<8x384xf32> to vector<8x32xf32>
    %976 = vector.extract_strided_slice %973 {offsets = [0, 256], sizes = [8, 32], strides = [1, 1]} : vector<8x384xf32> to vector<8x32xf32>
    %cst_219 = arith.constant dense<0.000000e+00> : vector<8x384xf32>
    %977 = tpu.matmul %938, %552, %cst_219 {dimension_numbers = #tpu.dot_dimension_numbers<[1], [0], [0], [1], [0, 0, 1, 1], [], []>} : vector<8x32xf32>, vector<32x384xf32>, vector<8x384xf32> -> vector<8x384xf32>
    %978 = vector.extract_strided_slice %977 {offsets = [0, 0], sizes = [8, 32], strides = [1, 1]} : vector<8x384xf32> to vector<8x32xf32>
    %979 = arith.addf %974, %978 : vector<8x32xf32>
    %980 = arith.negf %979 : vector<8x32xf32>
    %981 = math.exp %980 : vector<8x32xf32>
    %cst_220 = arith.constant 1.000000e+00 : f32
    %982 = vector.broadcast %cst_220 : f32 to vector<8x32xf32>
    %983 = arith.addf %982, %981 : vector<8x32xf32>
    %984 = arith.divf %982, %983 : vector<8x32xf32>
    %985 = vector.extract_strided_slice %977 {offsets = [0, 128], sizes = [8, 32], strides = [1, 1]} : vector<8x384xf32> to vector<8x32xf32>
    %986 = arith.addf %975, %985 : vector<8x32xf32>
    %987 = arith.negf %986 : vector<8x32xf32>
    %988 = math.exp %987 : vector<8x32xf32>
    %cst_221 = arith.constant 1.000000e+00 : f32
    %989 = vector.broadcast %cst_221 : f32 to vector<8x32xf32>
    %990 = arith.addf %989, %988 : vector<8x32xf32>
    %991 = arith.divf %989, %990 : vector<8x32xf32>
    %992 = vector.extract_strided_slice %977 {offsets = [0, 256], sizes = [8, 32], strides = [1, 1]} : vector<8x384xf32> to vector<8x32xf32>
    %993 = arith.addf %992, %559 : vector<8x32xf32>
    %994 = arith.mulf %984, %993 : vector<8x32xf32>
    %995 = arith.addf %976, %994 : vector<8x32xf32>
    %996 = math.tanh %995 : vector<8x32xf32>
    %cst_222 = arith.constant 1.000000e+00 : f32
    %997 = vector.broadcast %cst_222 : f32 to vector<8x32xf32>
    %998 = arith.subf %997, %991 : vector<8x32xf32>
    %999 = arith.mulf %998, %996 : vector<8x32xf32>
    %1000 = arith.mulf %991, %938 : vector<8x32xf32>
    %1001 = arith.addf %999, %1000 : vector<8x32xf32>
    %c456 = arith.constant 456 : index
    %c0_223 = arith.constant 0 : index
    %1002 = vector.load %arg3[%c456, %c0_223] : memref<528x768xf32, #tpu.memory_space<vmem>>, vector<32x768xf32>
    %cst_224 = arith.constant 0.000000e+00 : f32
    %1003 = vector.broadcast %cst_224 : f32 to vector<8x32xf32>
    %1004 = arith.maximumf %1001, %1003 : vector<8x32xf32>
    %cst_225 = arith.constant dense<0.000000e+00> : vector<8x768xf32>
    %1005 = tpu.matmul %1004, %1002, %cst_225 {dimension_numbers = #tpu.dot_dimension_numbers<[1], [0], [0], [1], [0, 0, 1, 1], [], []>} : vector<8x32xf32>, vector<32x768xf32>, vector<8x768xf32> -> vector<8x768xf32>
    %1006 = arith.addf %943, %1005 : vector<8x768xf32>
    %1007 = vector.extract_strided_slice %550 {offsets = [0, 672], sizes = [8, 32], strides = [1, 1]} : vector<8x768xf32> to vector<8x32xf32>
    %1008 = vector.extract_strided_slice %550 {offsets = [0, 704], sizes = [8, 32], strides = [1, 1]} : vector<8x768xf32> to vector<8x32xf32>
    %1009 = vector.extract_strided_slice %550 {offsets = [0, 736], sizes = [8, 32], strides = [1, 1]} : vector<8x768xf32> to vector<8x32xf32>
    %cst_226 = arith.constant dense<0.000000e+00> : vector<8x384xf32>
    %1010 = tpu.matmul %971, %551, %cst_226 {dimension_numbers = #tpu.dot_dimension_numbers<[1], [0], [0], [1], [0, 0, 1, 1], [], []>} : vector<8x32xf32>, vector<32x384xf32>, vector<8x384xf32> -> vector<8x384xf32>
    %1011 = vector.extract_strided_slice %1010 {offsets = [0, 0], sizes = [8, 32], strides = [1, 1]} : vector<8x384xf32> to vector<8x32xf32>
    %1012 = arith.addf %1007, %1011 : vector<8x32xf32>
    %1013 = arith.negf %1012 : vector<8x32xf32>
    %1014 = math.exp %1013 : vector<8x32xf32>
    %cst_227 = arith.constant 1.000000e+00 : f32
    %1015 = vector.broadcast %cst_227 : f32 to vector<8x32xf32>
    %1016 = arith.addf %1015, %1014 : vector<8x32xf32>
    %1017 = arith.divf %1015, %1016 : vector<8x32xf32>
    %1018 = vector.extract_strided_slice %1010 {offsets = [0, 128], sizes = [8, 32], strides = [1, 1]} : vector<8x384xf32> to vector<8x32xf32>
    %1019 = arith.addf %1008, %1018 : vector<8x32xf32>
    %1020 = arith.negf %1019 : vector<8x32xf32>
    %1021 = math.exp %1020 : vector<8x32xf32>
    %cst_228 = arith.constant 1.000000e+00 : f32
    %1022 = vector.broadcast %cst_228 : f32 to vector<8x32xf32>
    %1023 = arith.addf %1022, %1021 : vector<8x32xf32>
    %1024 = arith.divf %1022, %1023 : vector<8x32xf32>
    %1025 = vector.extract_strided_slice %1010 {offsets = [0, 256], sizes = [8, 32], strides = [1, 1]} : vector<8x384xf32> to vector<8x32xf32>
    %1026 = arith.addf %1025, %556 : vector<8x32xf32>
    %1027 = arith.mulf %1017, %1026 : vector<8x32xf32>
    %1028 = arith.addf %1009, %1027 : vector<8x32xf32>
    %1029 = math.tanh %1028 : vector<8x32xf32>
    %cst_229 = arith.constant 1.000000e+00 : f32
    %1030 = vector.broadcast %cst_229 : f32 to vector<8x32xf32>
    %1031 = arith.subf %1030, %1024 : vector<8x32xf32>
    %1032 = arith.mulf %1031, %1029 : vector<8x32xf32>
    %1033 = arith.mulf %1024, %971 : vector<8x32xf32>
    %1034 = arith.addf %1032, %1033 : vector<8x32xf32>
    %cst_230 = arith.constant dense<0.000000e+00> : vector<8x384xf32>
    %1035 = tpu.matmul %1034, %553, %cst_230 {dimension_numbers = #tpu.dot_dimension_numbers<[1], [0], [0], [1], [0, 0, 1, 1], [], []>} : vector<8x32xf32>, vector<32x384xf32>, vector<8x384xf32> -> vector<8x384xf32>
    %1036 = arith.addf %1035, %562 : vector<8x384xf32>
    %1037 = vector.extract_strided_slice %1036 {offsets = [0, 0], sizes = [8, 32], strides = [1, 1]} : vector<8x384xf32> to vector<8x32xf32>
    %1038 = vector.extract_strided_slice %1036 {offsets = [0, 128], sizes = [8, 32], strides = [1, 1]} : vector<8x384xf32> to vector<8x32xf32>
    %1039 = vector.extract_strided_slice %1036 {offsets = [0, 256], sizes = [8, 32], strides = [1, 1]} : vector<8x384xf32> to vector<8x32xf32>
    %cst_231 = arith.constant dense<0.000000e+00> : vector<8x384xf32>
    %1040 = tpu.matmul %1001, %552, %cst_231 {dimension_numbers = #tpu.dot_dimension_numbers<[1], [0], [0], [1], [0, 0, 1, 1], [], []>} : vector<8x32xf32>, vector<32x384xf32>, vector<8x384xf32> -> vector<8x384xf32>
    %1041 = vector.extract_strided_slice %1040 {offsets = [0, 0], sizes = [8, 32], strides = [1, 1]} : vector<8x384xf32> to vector<8x32xf32>
    %1042 = arith.addf %1037, %1041 : vector<8x32xf32>
    %1043 = arith.negf %1042 : vector<8x32xf32>
    %1044 = math.exp %1043 : vector<8x32xf32>
    %cst_232 = arith.constant 1.000000e+00 : f32
    %1045 = vector.broadcast %cst_232 : f32 to vector<8x32xf32>
    %1046 = arith.addf %1045, %1044 : vector<8x32xf32>
    %1047 = arith.divf %1045, %1046 : vector<8x32xf32>
    %1048 = vector.extract_strided_slice %1040 {offsets = [0, 128], sizes = [8, 32], strides = [1, 1]} : vector<8x384xf32> to vector<8x32xf32>
    %1049 = arith.addf %1038, %1048 : vector<8x32xf32>
    %1050 = arith.negf %1049 : vector<8x32xf32>
    %1051 = math.exp %1050 : vector<8x32xf32>
    %cst_233 = arith.constant 1.000000e+00 : f32
    %1052 = vector.broadcast %cst_233 : f32 to vector<8x32xf32>
    %1053 = arith.addf %1052, %1051 : vector<8x32xf32>
    %1054 = arith.divf %1052, %1053 : vector<8x32xf32>
    %1055 = vector.extract_strided_slice %1040 {offsets = [0, 256], sizes = [8, 32], strides = [1, 1]} : vector<8x384xf32> to vector<8x32xf32>
    %1056 = arith.addf %1055, %559 : vector<8x32xf32>
    %1057 = arith.mulf %1047, %1056 : vector<8x32xf32>
    %1058 = arith.addf %1039, %1057 : vector<8x32xf32>
    %1059 = math.tanh %1058 : vector<8x32xf32>
    %cst_234 = arith.constant 1.000000e+00 : f32
    %1060 = vector.broadcast %cst_234 : f32 to vector<8x32xf32>
    %1061 = arith.subf %1060, %1054 : vector<8x32xf32>
    %1062 = arith.mulf %1061, %1059 : vector<8x32xf32>
    %1063 = arith.mulf %1054, %1001 : vector<8x32xf32>
    %1064 = arith.addf %1062, %1063 : vector<8x32xf32>
    %c488 = arith.constant 488 : index
    %c0_235 = arith.constant 0 : index
    %1065 = vector.load %arg3[%c488, %c0_235] : memref<528x768xf32, #tpu.memory_space<vmem>>, vector<32x768xf32>
    %cst_236 = arith.constant 0.000000e+00 : f32
    %1066 = vector.broadcast %cst_236 : f32 to vector<8x32xf32>
    %1067 = arith.maximumf %1064, %1066 : vector<8x32xf32>
    %cst_237 = arith.constant dense<0.000000e+00> : vector<8x768xf32>
    %1068 = tpu.matmul %1067, %1065, %cst_237 {dimension_numbers = #tpu.dot_dimension_numbers<[1], [0], [0], [1], [0, 0, 1, 1], [], []>} : vector<8x32xf32>, vector<32x768xf32>, vector<8x768xf32> -> vector<8x768xf32>
    %1069 = arith.addf %1006, %1068 : vector<8x768xf32>
    %c264_238 = arith.constant 264 : index
    %c0_239 = arith.constant 0 : index
    %1070 = vector.load %arg2[%c264_238, %c0_239] : memref<424x384xf32, #tpu.memory_space<vmem>>, vector<32x384xf32>
    %c336 = arith.constant 336 : index
    %c0_240 = arith.constant 0 : index
    %1071 = vector.load %arg2[%c336, %c0_240] : memref<424x384xf32, #tpu.memory_space<vmem>>, vector<32x384xf32>
    %c304 = arith.constant 304 : index
    %c0_241 = arith.constant 0 : index
    %1072 = vector.load %arg2[%c304, %c0_241] : memref<424x384xf32, #tpu.memory_space<vmem>>, vector<32x384xf32>
    %c296_242 = arith.constant 296 : index
    %c0_243 = arith.constant 0 : index
    %1073 = vector.load %arg2[%c296_242, %c0_243] : memref<424x384xf32, #tpu.memory_space<vmem>>, vector<1x32xf32>
    %1074 = vector.shape_cast %1073 : vector<1x32xf32> to vector<1x32xf32>
    %1075 = vector.broadcast %1074 : vector<1x32xf32> to vector<8x32xf32>
    %c376 = arith.constant 376 : index
    %c0_244 = arith.constant 0 : index
    %1076 = vector.load %arg2[%c376, %c0_244] : memref<424x384xf32, #tpu.memory_space<vmem>>, vector<1x32xf32>
    %1077 = vector.shape_cast %1076 : vector<1x32xf32> to vector<1x32xf32>
    %1078 = vector.broadcast %1077 : vector<1x32xf32> to vector<8x32xf32>
    %c368 = arith.constant 368 : index
    %c0_245 = arith.constant 0 : index
    %1079 = vector.load %arg2[%c368, %c0_245] : memref<424x384xf32, #tpu.memory_space<vmem>>, vector<1x384xf32>
    %1080 = vector.shape_cast %1079 : vector<1x384xf32> to vector<1x384xf32>
    %1081 = vector.broadcast %1080 : vector<1x384xf32> to vector<8x384xf32>
    %1082 = vector.extract_strided_slice %1069 {offsets = [0, 0], sizes = [8, 32], strides = [1, 1]} : vector<8x768xf32> to vector<8x32xf32>
    %1083 = vector.extract_strided_slice %1069 {offsets = [0, 32], sizes = [8, 32], strides = [1, 1]} : vector<8x768xf32> to vector<8x32xf32>
    %1084 = vector.extract_strided_slice %1069 {offsets = [0, 64], sizes = [8, 32], strides = [1, 1]} : vector<8x768xf32> to vector<8x32xf32>
    %cst_246 = arith.constant dense<0.000000e+00> : vector<8x384xf32>
    %1085 = tpu.matmul %1034, %1070, %cst_246 {dimension_numbers = #tpu.dot_dimension_numbers<[1], [0], [0], [1], [0, 0, 1, 1], [], []>} : vector<8x32xf32>, vector<32x384xf32>, vector<8x384xf32> -> vector<8x384xf32>
    %1086 = vector.extract_strided_slice %1085 {offsets = [0, 0], sizes = [8, 32], strides = [1, 1]} : vector<8x384xf32> to vector<8x32xf32>
    %1087 = arith.addf %1082, %1086 : vector<8x32xf32>
    %1088 = arith.negf %1087 : vector<8x32xf32>
    %1089 = math.exp %1088 : vector<8x32xf32>
    %cst_247 = arith.constant 1.000000e+00 : f32
    %1090 = vector.broadcast %cst_247 : f32 to vector<8x32xf32>
    %1091 = arith.addf %1090, %1089 : vector<8x32xf32>
    %1092 = arith.divf %1090, %1091 : vector<8x32xf32>
    %1093 = vector.extract_strided_slice %1085 {offsets = [0, 128], sizes = [8, 32], strides = [1, 1]} : vector<8x384xf32> to vector<8x32xf32>
    %1094 = arith.addf %1083, %1093 : vector<8x32xf32>
    %1095 = arith.negf %1094 : vector<8x32xf32>
    %1096 = math.exp %1095 : vector<8x32xf32>
    %cst_248 = arith.constant 1.000000e+00 : f32
    %1097 = vector.broadcast %cst_248 : f32 to vector<8x32xf32>
    %1098 = arith.addf %1097, %1096 : vector<8x32xf32>
    %1099 = arith.divf %1097, %1098 : vector<8x32xf32>
    %1100 = vector.extract_strided_slice %1085 {offsets = [0, 256], sizes = [8, 32], strides = [1, 1]} : vector<8x384xf32> to vector<8x32xf32>
    %1101 = arith.addf %1100, %1075 : vector<8x32xf32>
    %1102 = arith.mulf %1092, %1101 : vector<8x32xf32>
    %1103 = arith.addf %1084, %1102 : vector<8x32xf32>
    %1104 = math.tanh %1103 : vector<8x32xf32>
    %cst_249 = arith.constant 1.000000e+00 : f32
    %1105 = vector.broadcast %cst_249 : f32 to vector<8x32xf32>
    %1106 = arith.subf %1105, %1099 : vector<8x32xf32>
    %1107 = arith.mulf %1106, %1104 : vector<8x32xf32>
    %1108 = arith.mulf %1099, %1034 : vector<8x32xf32>
    %1109 = arith.addf %1107, %1108 : vector<8x32xf32>
    %cst_250 = arith.constant dense<0.000000e+00> : vector<8x384xf32>
    %1110 = tpu.matmul %1109, %1072, %cst_250 {dimension_numbers = #tpu.dot_dimension_numbers<[1], [0], [0], [1], [0, 0, 1, 1], [], []>} : vector<8x32xf32>, vector<32x384xf32>, vector<8x384xf32> -> vector<8x384xf32>
    %1111 = arith.addf %1110, %1081 : vector<8x384xf32>
    %1112 = vector.extract_strided_slice %1111 {offsets = [0, 0], sizes = [8, 32], strides = [1, 1]} : vector<8x384xf32> to vector<8x32xf32>
    %1113 = vector.extract_strided_slice %1111 {offsets = [0, 128], sizes = [8, 32], strides = [1, 1]} : vector<8x384xf32> to vector<8x32xf32>
    %1114 = vector.extract_strided_slice %1111 {offsets = [0, 256], sizes = [8, 32], strides = [1, 1]} : vector<8x384xf32> to vector<8x32xf32>
    %cst_251 = arith.constant dense<0.000000e+00> : vector<8x384xf32>
    %1115 = tpu.matmul %1064, %1071, %cst_251 {dimension_numbers = #tpu.dot_dimension_numbers<[1], [0], [0], [1], [0, 0, 1, 1], [], []>} : vector<8x32xf32>, vector<32x384xf32>, vector<8x384xf32> -> vector<8x384xf32>
    %1116 = vector.extract_strided_slice %1115 {offsets = [0, 0], sizes = [8, 32], strides = [1, 1]} : vector<8x384xf32> to vector<8x32xf32>
    %1117 = arith.addf %1112, %1116 : vector<8x32xf32>
    %1118 = arith.negf %1117 : vector<8x32xf32>
    %1119 = math.exp %1118 : vector<8x32xf32>
    %cst_252 = arith.constant 1.000000e+00 : f32
    %1120 = vector.broadcast %cst_252 : f32 to vector<8x32xf32>
    %1121 = arith.addf %1120, %1119 : vector<8x32xf32>
    %1122 = arith.divf %1120, %1121 : vector<8x32xf32>
    %1123 = vector.extract_strided_slice %1115 {offsets = [0, 128], sizes = [8, 32], strides = [1, 1]} : vector<8x384xf32> to vector<8x32xf32>
    %1124 = arith.addf %1113, %1123 : vector<8x32xf32>
    %1125 = arith.negf %1124 : vector<8x32xf32>
    %1126 = math.exp %1125 : vector<8x32xf32>
    %cst_253 = arith.constant 1.000000e+00 : f32
    %1127 = vector.broadcast %cst_253 : f32 to vector<8x32xf32>
    %1128 = arith.addf %1127, %1126 : vector<8x32xf32>
    %1129 = arith.divf %1127, %1128 : vector<8x32xf32>
    %1130 = vector.extract_strided_slice %1115 {offsets = [0, 256], sizes = [8, 32], strides = [1, 1]} : vector<8x384xf32> to vector<8x32xf32>
    %1131 = arith.addf %1130, %1078 : vector<8x32xf32>
    %1132 = arith.mulf %1122, %1131 : vector<8x32xf32>
    %1133 = arith.addf %1114, %1132 : vector<8x32xf32>
    %1134 = math.tanh %1133 : vector<8x32xf32>
    %cst_254 = arith.constant 1.000000e+00 : f32
    %1135 = vector.broadcast %cst_254 : f32 to vector<8x32xf32>
    %1136 = arith.subf %1135, %1129 : vector<8x32xf32>
    %1137 = arith.mulf %1136, %1134 : vector<8x32xf32>
    %1138 = arith.mulf %1129, %1064 : vector<8x32xf32>
    %1139 = arith.addf %1137, %1138 : vector<8x32xf32>
    %1140 = vector.extract_strided_slice %1069 {offsets = [0, 96], sizes = [8, 32], strides = [1, 1]} : vector<8x768xf32> to vector<8x32xf32>
    %1141 = vector.extract_strided_slice %1069 {offsets = [0, 128], sizes = [8, 32], strides = [1, 1]} : vector<8x768xf32> to vector<8x32xf32>
    %1142 = vector.extract_strided_slice %1069 {offsets = [0, 160], sizes = [8, 32], strides = [1, 1]} : vector<8x768xf32> to vector<8x32xf32>
    %cst_255 = arith.constant dense<0.000000e+00> : vector<8x384xf32>
    %1143 = tpu.matmul %1109, %1070, %cst_255 {dimension_numbers = #tpu.dot_dimension_numbers<[1], [0], [0], [1], [0, 0, 1, 1], [], []>} : vector<8x32xf32>, vector<32x384xf32>, vector<8x384xf32> -> vector<8x384xf32>
    %1144 = vector.extract_strided_slice %1143 {offsets = [0, 0], sizes = [8, 32], strides = [1, 1]} : vector<8x384xf32> to vector<8x32xf32>
    %1145 = arith.addf %1140, %1144 : vector<8x32xf32>
    %1146 = arith.negf %1145 : vector<8x32xf32>
    %1147 = math.exp %1146 : vector<8x32xf32>
    %cst_256 = arith.constant 1.000000e+00 : f32
    %1148 = vector.broadcast %cst_256 : f32 to vector<8x32xf32>
    %1149 = arith.addf %1148, %1147 : vector<8x32xf32>
    %1150 = arith.divf %1148, %1149 : vector<8x32xf32>
    %1151 = vector.extract_strided_slice %1143 {offsets = [0, 128], sizes = [8, 32], strides = [1, 1]} : vector<8x384xf32> to vector<8x32xf32>
    %1152 = arith.addf %1141, %1151 : vector<8x32xf32>
    %1153 = arith.negf %1152 : vector<8x32xf32>
    %1154 = math.exp %1153 : vector<8x32xf32>
    %cst_257 = arith.constant 1.000000e+00 : f32
    %1155 = vector.broadcast %cst_257 : f32 to vector<8x32xf32>
    %1156 = arith.addf %1155, %1154 : vector<8x32xf32>
    %1157 = arith.divf %1155, %1156 : vector<8x32xf32>
    %1158 = vector.extract_strided_slice %1143 {offsets = [0, 256], sizes = [8, 32], strides = [1, 1]} : vector<8x384xf32> to vector<8x32xf32>
    %1159 = arith.addf %1158, %1075 : vector<8x32xf32>
    %1160 = arith.mulf %1150, %1159 : vector<8x32xf32>
    %1161 = arith.addf %1142, %1160 : vector<8x32xf32>
    %1162 = math.tanh %1161 : vector<8x32xf32>
    %cst_258 = arith.constant 1.000000e+00 : f32
    %1163 = vector.broadcast %cst_258 : f32 to vector<8x32xf32>
    %1164 = arith.subf %1163, %1157 : vector<8x32xf32>
    %1165 = arith.mulf %1164, %1162 : vector<8x32xf32>
    %1166 = arith.mulf %1157, %1109 : vector<8x32xf32>
    %1167 = arith.addf %1165, %1166 : vector<8x32xf32>
    %cst_259 = arith.constant dense<0.000000e+00> : vector<8x384xf32>
    %1168 = tpu.matmul %1167, %1072, %cst_259 {dimension_numbers = #tpu.dot_dimension_numbers<[1], [0], [0], [1], [0, 0, 1, 1], [], []>} : vector<8x32xf32>, vector<32x384xf32>, vector<8x384xf32> -> vector<8x384xf32>
    %1169 = arith.addf %1168, %1081 : vector<8x384xf32>
    %1170 = vector.extract_strided_slice %1169 {offsets = [0, 0], sizes = [8, 32], strides = [1, 1]} : vector<8x384xf32> to vector<8x32xf32>
    %1171 = vector.extract_strided_slice %1169 {offsets = [0, 128], sizes = [8, 32], strides = [1, 1]} : vector<8x384xf32> to vector<8x32xf32>
    %1172 = vector.extract_strided_slice %1169 {offsets = [0, 256], sizes = [8, 32], strides = [1, 1]} : vector<8x384xf32> to vector<8x32xf32>
    %cst_260 = arith.constant dense<0.000000e+00> : vector<8x384xf32>
    %1173 = tpu.matmul %1139, %1071, %cst_260 {dimension_numbers = #tpu.dot_dimension_numbers<[1], [0], [0], [1], [0, 0, 1, 1], [], []>} : vector<8x32xf32>, vector<32x384xf32>, vector<8x384xf32> -> vector<8x384xf32>
    %1174 = vector.extract_strided_slice %1173 {offsets = [0, 0], sizes = [8, 32], strides = [1, 1]} : vector<8x384xf32> to vector<8x32xf32>
    %1175 = arith.addf %1170, %1174 : vector<8x32xf32>
    %1176 = arith.negf %1175 : vector<8x32xf32>
    %1177 = math.exp %1176 : vector<8x32xf32>
    %cst_261 = arith.constant 1.000000e+00 : f32
    %1178 = vector.broadcast %cst_261 : f32 to vector<8x32xf32>
    %1179 = arith.addf %1178, %1177 : vector<8x32xf32>
    %1180 = arith.divf %1178, %1179 : vector<8x32xf32>
    %1181 = vector.extract_strided_slice %1173 {offsets = [0, 128], sizes = [8, 32], strides = [1, 1]} : vector<8x384xf32> to vector<8x32xf32>
    %1182 = arith.addf %1171, %1181 : vector<8x32xf32>
    %1183 = arith.negf %1182 : vector<8x32xf32>
    %1184 = math.exp %1183 : vector<8x32xf32>
    %cst_262 = arith.constant 1.000000e+00 : f32
    %1185 = vector.broadcast %cst_262 : f32 to vector<8x32xf32>
    %1186 = arith.addf %1185, %1184 : vector<8x32xf32>
    %1187 = arith.divf %1185, %1186 : vector<8x32xf32>
    %1188 = vector.extract_strided_slice %1173 {offsets = [0, 256], sizes = [8, 32], strides = [1, 1]} : vector<8x384xf32> to vector<8x32xf32>
    %1189 = arith.addf %1188, %1078 : vector<8x32xf32>
    %1190 = arith.mulf %1180, %1189 : vector<8x32xf32>
    %1191 = arith.addf %1172, %1190 : vector<8x32xf32>
    %1192 = math.tanh %1191 : vector<8x32xf32>
    %cst_263 = arith.constant 1.000000e+00 : f32
    %1193 = vector.broadcast %cst_263 : f32 to vector<8x32xf32>
    %1194 = arith.subf %1193, %1187 : vector<8x32xf32>
    %1195 = arith.mulf %1194, %1192 : vector<8x32xf32>
    %1196 = arith.mulf %1187, %1139 : vector<8x32xf32>
    %1197 = arith.addf %1195, %1196 : vector<8x32xf32>
    %1198 = vector.extract_strided_slice %1069 {offsets = [0, 192], sizes = [8, 32], strides = [1, 1]} : vector<8x768xf32> to vector<8x32xf32>
    %1199 = vector.extract_strided_slice %1069 {offsets = [0, 224], sizes = [8, 32], strides = [1, 1]} : vector<8x768xf32> to vector<8x32xf32>
    %1200 = vector.extract_strided_slice %1069 {offsets = [0, 256], sizes = [8, 32], strides = [1, 1]} : vector<8x768xf32> to vector<8x32xf32>
    %cst_264 = arith.constant dense<0.000000e+00> : vector<8x384xf32>
    %1201 = tpu.matmul %1167, %1070, %cst_264 {dimension_numbers = #tpu.dot_dimension_numbers<[1], [0], [0], [1], [0, 0, 1, 1], [], []>} : vector<8x32xf32>, vector<32x384xf32>, vector<8x384xf32> -> vector<8x384xf32>
    %1202 = vector.extract_strided_slice %1201 {offsets = [0, 0], sizes = [8, 32], strides = [1, 1]} : vector<8x384xf32> to vector<8x32xf32>
    %1203 = arith.addf %1198, %1202 : vector<8x32xf32>
    %1204 = arith.negf %1203 : vector<8x32xf32>
    %1205 = math.exp %1204 : vector<8x32xf32>
    %cst_265 = arith.constant 1.000000e+00 : f32
    %1206 = vector.broadcast %cst_265 : f32 to vector<8x32xf32>
    %1207 = arith.addf %1206, %1205 : vector<8x32xf32>
    %1208 = arith.divf %1206, %1207 : vector<8x32xf32>
    %1209 = vector.extract_strided_slice %1201 {offsets = [0, 128], sizes = [8, 32], strides = [1, 1]} : vector<8x384xf32> to vector<8x32xf32>
    %1210 = arith.addf %1199, %1209 : vector<8x32xf32>
    %1211 = arith.negf %1210 : vector<8x32xf32>
    %1212 = math.exp %1211 : vector<8x32xf32>
    %cst_266 = arith.constant 1.000000e+00 : f32
    %1213 = vector.broadcast %cst_266 : f32 to vector<8x32xf32>
    %1214 = arith.addf %1213, %1212 : vector<8x32xf32>
    %1215 = arith.divf %1213, %1214 : vector<8x32xf32>
    %1216 = vector.extract_strided_slice %1201 {offsets = [0, 256], sizes = [8, 32], strides = [1, 1]} : vector<8x384xf32> to vector<8x32xf32>
    %1217 = arith.addf %1216, %1075 : vector<8x32xf32>
    %1218 = arith.mulf %1208, %1217 : vector<8x32xf32>
    %1219 = arith.addf %1200, %1218 : vector<8x32xf32>
    %1220 = math.tanh %1219 : vector<8x32xf32>
    %cst_267 = arith.constant 1.000000e+00 : f32
    %1221 = vector.broadcast %cst_267 : f32 to vector<8x32xf32>
    %1222 = arith.subf %1221, %1215 : vector<8x32xf32>
    %1223 = arith.mulf %1222, %1220 : vector<8x32xf32>
    %1224 = arith.mulf %1215, %1167 : vector<8x32xf32>
    %1225 = arith.addf %1223, %1224 : vector<8x32xf32>
    %cst_268 = arith.constant dense<0.000000e+00> : vector<8x384xf32>
    %1226 = tpu.matmul %1225, %1072, %cst_268 {dimension_numbers = #tpu.dot_dimension_numbers<[1], [0], [0], [1], [0, 0, 1, 1], [], []>} : vector<8x32xf32>, vector<32x384xf32>, vector<8x384xf32> -> vector<8x384xf32>
    %1227 = arith.addf %1226, %1081 : vector<8x384xf32>
    %1228 = vector.extract_strided_slice %1227 {offsets = [0, 0], sizes = [8, 32], strides = [1, 1]} : vector<8x384xf32> to vector<8x32xf32>
    %1229 = vector.extract_strided_slice %1227 {offsets = [0, 128], sizes = [8, 32], strides = [1, 1]} : vector<8x384xf32> to vector<8x32xf32>
    %1230 = vector.extract_strided_slice %1227 {offsets = [0, 256], sizes = [8, 32], strides = [1, 1]} : vector<8x384xf32> to vector<8x32xf32>
    %cst_269 = arith.constant dense<0.000000e+00> : vector<8x384xf32>
    %1231 = tpu.matmul %1197, %1071, %cst_269 {dimension_numbers = #tpu.dot_dimension_numbers<[1], [0], [0], [1], [0, 0, 1, 1], [], []>} : vector<8x32xf32>, vector<32x384xf32>, vector<8x384xf32> -> vector<8x384xf32>
    %1232 = vector.extract_strided_slice %1231 {offsets = [0, 0], sizes = [8, 32], strides = [1, 1]} : vector<8x384xf32> to vector<8x32xf32>
    %1233 = arith.addf %1228, %1232 : vector<8x32xf32>
    %1234 = arith.negf %1233 : vector<8x32xf32>
    %1235 = math.exp %1234 : vector<8x32xf32>
    %cst_270 = arith.constant 1.000000e+00 : f32
    %1236 = vector.broadcast %cst_270 : f32 to vector<8x32xf32>
    %1237 = arith.addf %1236, %1235 : vector<8x32xf32>
    %1238 = arith.divf %1236, %1237 : vector<8x32xf32>
    %1239 = vector.extract_strided_slice %1231 {offsets = [0, 128], sizes = [8, 32], strides = [1, 1]} : vector<8x384xf32> to vector<8x32xf32>
    %1240 = arith.addf %1229, %1239 : vector<8x32xf32>
    %1241 = arith.negf %1240 : vector<8x32xf32>
    %1242 = math.exp %1241 : vector<8x32xf32>
    %cst_271 = arith.constant 1.000000e+00 : f32
    %1243 = vector.broadcast %cst_271 : f32 to vector<8x32xf32>
    %1244 = arith.addf %1243, %1242 : vector<8x32xf32>
    %1245 = arith.divf %1243, %1244 : vector<8x32xf32>
    %1246 = vector.extract_strided_slice %1231 {offsets = [0, 256], sizes = [8, 32], strides = [1, 1]} : vector<8x384xf32> to vector<8x32xf32>
    %1247 = arith.addf %1246, %1078 : vector<8x32xf32>
    %1248 = arith.mulf %1238, %1247 : vector<8x32xf32>
    %1249 = arith.addf %1230, %1248 : vector<8x32xf32>
    %1250 = math.tanh %1249 : vector<8x32xf32>
    %cst_272 = arith.constant 1.000000e+00 : f32
    %1251 = vector.broadcast %cst_272 : f32 to vector<8x32xf32>
    %1252 = arith.subf %1251, %1245 : vector<8x32xf32>
    %1253 = arith.mulf %1252, %1250 : vector<8x32xf32>
    %1254 = arith.mulf %1245, %1197 : vector<8x32xf32>
    %1255 = arith.addf %1253, %1254 : vector<8x32xf32>
    %1256 = vector.extract_strided_slice %1069 {offsets = [0, 288], sizes = [8, 32], strides = [1, 1]} : vector<8x768xf32> to vector<8x32xf32>
    %1257 = vector.extract_strided_slice %1069 {offsets = [0, 320], sizes = [8, 32], strides = [1, 1]} : vector<8x768xf32> to vector<8x32xf32>
    %1258 = vector.extract_strided_slice %1069 {offsets = [0, 352], sizes = [8, 32], strides = [1, 1]} : vector<8x768xf32> to vector<8x32xf32>
    %cst_273 = arith.constant dense<0.000000e+00> : vector<8x384xf32>
    %1259 = tpu.matmul %1225, %1070, %cst_273 {dimension_numbers = #tpu.dot_dimension_numbers<[1], [0], [0], [1], [0, 0, 1, 1], [], []>} : vector<8x32xf32>, vector<32x384xf32>, vector<8x384xf32> -> vector<8x384xf32>
    %1260 = vector.extract_strided_slice %1259 {offsets = [0, 0], sizes = [8, 32], strides = [1, 1]} : vector<8x384xf32> to vector<8x32xf32>
    %1261 = arith.addf %1256, %1260 : vector<8x32xf32>
    %1262 = arith.negf %1261 : vector<8x32xf32>
    %1263 = math.exp %1262 : vector<8x32xf32>
    %cst_274 = arith.constant 1.000000e+00 : f32
    %1264 = vector.broadcast %cst_274 : f32 to vector<8x32xf32>
    %1265 = arith.addf %1264, %1263 : vector<8x32xf32>
    %1266 = arith.divf %1264, %1265 : vector<8x32xf32>
    %1267 = vector.extract_strided_slice %1259 {offsets = [0, 128], sizes = [8, 32], strides = [1, 1]} : vector<8x384xf32> to vector<8x32xf32>
    %1268 = arith.addf %1257, %1267 : vector<8x32xf32>
    %1269 = arith.negf %1268 : vector<8x32xf32>
    %1270 = math.exp %1269 : vector<8x32xf32>
    %cst_275 = arith.constant 1.000000e+00 : f32
    %1271 = vector.broadcast %cst_275 : f32 to vector<8x32xf32>
    %1272 = arith.addf %1271, %1270 : vector<8x32xf32>
    %1273 = arith.divf %1271, %1272 : vector<8x32xf32>
    %1274 = vector.extract_strided_slice %1259 {offsets = [0, 256], sizes = [8, 32], strides = [1, 1]} : vector<8x384xf32> to vector<8x32xf32>
    %1275 = arith.addf %1274, %1075 : vector<8x32xf32>
    %1276 = arith.mulf %1266, %1275 : vector<8x32xf32>
    %1277 = arith.addf %1258, %1276 : vector<8x32xf32>
    %1278 = math.tanh %1277 : vector<8x32xf32>
    %cst_276 = arith.constant 1.000000e+00 : f32
    %1279 = vector.broadcast %cst_276 : f32 to vector<8x32xf32>
    %1280 = arith.subf %1279, %1273 : vector<8x32xf32>
    %1281 = arith.mulf %1280, %1278 : vector<8x32xf32>
    %1282 = arith.mulf %1273, %1225 : vector<8x32xf32>
    %1283 = arith.addf %1281, %1282 : vector<8x32xf32>
    %cst_277 = arith.constant dense<0.000000e+00> : vector<8x384xf32>
    %1284 = tpu.matmul %1283, %1072, %cst_277 {dimension_numbers = #tpu.dot_dimension_numbers<[1], [0], [0], [1], [0, 0, 1, 1], [], []>} : vector<8x32xf32>, vector<32x384xf32>, vector<8x384xf32> -> vector<8x384xf32>
    %1285 = arith.addf %1284, %1081 : vector<8x384xf32>
    %1286 = vector.extract_strided_slice %1285 {offsets = [0, 0], sizes = [8, 32], strides = [1, 1]} : vector<8x384xf32> to vector<8x32xf32>
    %1287 = vector.extract_strided_slice %1285 {offsets = [0, 128], sizes = [8, 32], strides = [1, 1]} : vector<8x384xf32> to vector<8x32xf32>
    %1288 = vector.extract_strided_slice %1285 {offsets = [0, 256], sizes = [8, 32], strides = [1, 1]} : vector<8x384xf32> to vector<8x32xf32>
    %cst_278 = arith.constant dense<0.000000e+00> : vector<8x384xf32>
    %1289 = tpu.matmul %1255, %1071, %cst_278 {dimension_numbers = #tpu.dot_dimension_numbers<[1], [0], [0], [1], [0, 0, 1, 1], [], []>} : vector<8x32xf32>, vector<32x384xf32>, vector<8x384xf32> -> vector<8x384xf32>
    %1290 = vector.extract_strided_slice %1289 {offsets = [0, 0], sizes = [8, 32], strides = [1, 1]} : vector<8x384xf32> to vector<8x32xf32>
    %1291 = arith.addf %1286, %1290 : vector<8x32xf32>
    %1292 = arith.negf %1291 : vector<8x32xf32>
    %1293 = math.exp %1292 : vector<8x32xf32>
    %cst_279 = arith.constant 1.000000e+00 : f32
    %1294 = vector.broadcast %cst_279 : f32 to vector<8x32xf32>
    %1295 = arith.addf %1294, %1293 : vector<8x32xf32>
    %1296 = arith.divf %1294, %1295 : vector<8x32xf32>
    %1297 = vector.extract_strided_slice %1289 {offsets = [0, 128], sizes = [8, 32], strides = [1, 1]} : vector<8x384xf32> to vector<8x32xf32>
    %1298 = arith.addf %1287, %1297 : vector<8x32xf32>
    %1299 = arith.negf %1298 : vector<8x32xf32>
    %1300 = math.exp %1299 : vector<8x32xf32>
    %cst_280 = arith.constant 1.000000e+00 : f32
    %1301 = vector.broadcast %cst_280 : f32 to vector<8x32xf32>
    %1302 = arith.addf %1301, %1300 : vector<8x32xf32>
    %1303 = arith.divf %1301, %1302 : vector<8x32xf32>
    %1304 = vector.extract_strided_slice %1289 {offsets = [0, 256], sizes = [8, 32], strides = [1, 1]} : vector<8x384xf32> to vector<8x32xf32>
    %1305 = arith.addf %1304, %1078 : vector<8x32xf32>
    %1306 = arith.mulf %1296, %1305 : vector<8x32xf32>
    %1307 = arith.addf %1288, %1306 : vector<8x32xf32>
    %1308 = math.tanh %1307 : vector<8x32xf32>
    %cst_281 = arith.constant 1.000000e+00 : f32
    %1309 = vector.broadcast %cst_281 : f32 to vector<8x32xf32>
    %1310 = arith.subf %1309, %1303 : vector<8x32xf32>
    %1311 = arith.mulf %1310, %1308 : vector<8x32xf32>
    %1312 = arith.mulf %1303, %1255 : vector<8x32xf32>
    %1313 = arith.addf %1311, %1312 : vector<8x32xf32>
    %1314 = vector.extract_strided_slice %1069 {offsets = [0, 384], sizes = [8, 32], strides = [1, 1]} : vector<8x768xf32> to vector<8x32xf32>
    %1315 = vector.extract_strided_slice %1069 {offsets = [0, 416], sizes = [8, 32], strides = [1, 1]} : vector<8x768xf32> to vector<8x32xf32>
    %1316 = vector.extract_strided_slice %1069 {offsets = [0, 448], sizes = [8, 32], strides = [1, 1]} : vector<8x768xf32> to vector<8x32xf32>
    %cst_282 = arith.constant dense<0.000000e+00> : vector<8x384xf32>
    %1317 = tpu.matmul %1283, %1070, %cst_282 {dimension_numbers = #tpu.dot_dimension_numbers<[1], [0], [0], [1], [0, 0, 1, 1], [], []>} : vector<8x32xf32>, vector<32x384xf32>, vector<8x384xf32> -> vector<8x384xf32>
    %1318 = vector.extract_strided_slice %1317 {offsets = [0, 0], sizes = [8, 32], strides = [1, 1]} : vector<8x384xf32> to vector<8x32xf32>
    %1319 = arith.addf %1314, %1318 : vector<8x32xf32>
    %1320 = arith.negf %1319 : vector<8x32xf32>
    %1321 = math.exp %1320 : vector<8x32xf32>
    %cst_283 = arith.constant 1.000000e+00 : f32
    %1322 = vector.broadcast %cst_283 : f32 to vector<8x32xf32>
    %1323 = arith.addf %1322, %1321 : vector<8x32xf32>
    %1324 = arith.divf %1322, %1323 : vector<8x32xf32>
    %1325 = vector.extract_strided_slice %1317 {offsets = [0, 128], sizes = [8, 32], strides = [1, 1]} : vector<8x384xf32> to vector<8x32xf32>
    %1326 = arith.addf %1315, %1325 : vector<8x32xf32>
    %1327 = arith.negf %1326 : vector<8x32xf32>
    %1328 = math.exp %1327 : vector<8x32xf32>
    %cst_284 = arith.constant 1.000000e+00 : f32
    %1329 = vector.broadcast %cst_284 : f32 to vector<8x32xf32>
    %1330 = arith.addf %1329, %1328 : vector<8x32xf32>
    %1331 = arith.divf %1329, %1330 : vector<8x32xf32>
    %1332 = vector.extract_strided_slice %1317 {offsets = [0, 256], sizes = [8, 32], strides = [1, 1]} : vector<8x384xf32> to vector<8x32xf32>
    %1333 = arith.addf %1332, %1075 : vector<8x32xf32>
    %1334 = arith.mulf %1324, %1333 : vector<8x32xf32>
    %1335 = arith.addf %1316, %1334 : vector<8x32xf32>
    %1336 = math.tanh %1335 : vector<8x32xf32>
    %cst_285 = arith.constant 1.000000e+00 : f32
    %1337 = vector.broadcast %cst_285 : f32 to vector<8x32xf32>
    %1338 = arith.subf %1337, %1331 : vector<8x32xf32>
    %1339 = arith.mulf %1338, %1336 : vector<8x32xf32>
    %1340 = arith.mulf %1331, %1283 : vector<8x32xf32>
    %1341 = arith.addf %1339, %1340 : vector<8x32xf32>
    %cst_286 = arith.constant dense<0.000000e+00> : vector<8x384xf32>
    %1342 = tpu.matmul %1341, %1072, %cst_286 {dimension_numbers = #tpu.dot_dimension_numbers<[1], [0], [0], [1], [0, 0, 1, 1], [], []>} : vector<8x32xf32>, vector<32x384xf32>, vector<8x384xf32> -> vector<8x384xf32>
    %1343 = arith.addf %1342, %1081 : vector<8x384xf32>
    %1344 = vector.extract_strided_slice %1343 {offsets = [0, 0], sizes = [8, 32], strides = [1, 1]} : vector<8x384xf32> to vector<8x32xf32>
    %1345 = vector.extract_strided_slice %1343 {offsets = [0, 128], sizes = [8, 32], strides = [1, 1]} : vector<8x384xf32> to vector<8x32xf32>
    %1346 = vector.extract_strided_slice %1343 {offsets = [0, 256], sizes = [8, 32], strides = [1, 1]} : vector<8x384xf32> to vector<8x32xf32>
    %cst_287 = arith.constant dense<0.000000e+00> : vector<8x384xf32>
    %1347 = tpu.matmul %1313, %1071, %cst_287 {dimension_numbers = #tpu.dot_dimension_numbers<[1], [0], [0], [1], [0, 0, 1, 1], [], []>} : vector<8x32xf32>, vector<32x384xf32>, vector<8x384xf32> -> vector<8x384xf32>
    %1348 = vector.extract_strided_slice %1347 {offsets = [0, 0], sizes = [8, 32], strides = [1, 1]} : vector<8x384xf32> to vector<8x32xf32>
    %1349 = arith.addf %1344, %1348 : vector<8x32xf32>
    %1350 = arith.negf %1349 : vector<8x32xf32>
    %1351 = math.exp %1350 : vector<8x32xf32>
    %cst_288 = arith.constant 1.000000e+00 : f32
    %1352 = vector.broadcast %cst_288 : f32 to vector<8x32xf32>
    %1353 = arith.addf %1352, %1351 : vector<8x32xf32>
    %1354 = arith.divf %1352, %1353 : vector<8x32xf32>
    %1355 = vector.extract_strided_slice %1347 {offsets = [0, 128], sizes = [8, 32], strides = [1, 1]} : vector<8x384xf32> to vector<8x32xf32>
    %1356 = arith.addf %1345, %1355 : vector<8x32xf32>
    %1357 = arith.negf %1356 : vector<8x32xf32>
    %1358 = math.exp %1357 : vector<8x32xf32>
    %cst_289 = arith.constant 1.000000e+00 : f32
    %1359 = vector.broadcast %cst_289 : f32 to vector<8x32xf32>
    %1360 = arith.addf %1359, %1358 : vector<8x32xf32>
    %1361 = arith.divf %1359, %1360 : vector<8x32xf32>
    %1362 = vector.extract_strided_slice %1347 {offsets = [0, 256], sizes = [8, 32], strides = [1, 1]} : vector<8x384xf32> to vector<8x32xf32>
    %1363 = arith.addf %1362, %1078 : vector<8x32xf32>
    %1364 = arith.mulf %1354, %1363 : vector<8x32xf32>
    %1365 = arith.addf %1346, %1364 : vector<8x32xf32>
    %1366 = math.tanh %1365 : vector<8x32xf32>
    %cst_290 = arith.constant 1.000000e+00 : f32
    %1367 = vector.broadcast %cst_290 : f32 to vector<8x32xf32>
    %1368 = arith.subf %1367, %1361 : vector<8x32xf32>
    %1369 = arith.mulf %1368, %1366 : vector<8x32xf32>
    %1370 = arith.mulf %1361, %1313 : vector<8x32xf32>
    %1371 = arith.addf %1369, %1370 : vector<8x32xf32>
    %1372 = vector.extract_strided_slice %1069 {offsets = [0, 480], sizes = [8, 32], strides = [1, 1]} : vector<8x768xf32> to vector<8x32xf32>
    %1373 = vector.extract_strided_slice %1069 {offsets = [0, 512], sizes = [8, 32], strides = [1, 1]} : vector<8x768xf32> to vector<8x32xf32>
    %1374 = vector.extract_strided_slice %1069 {offsets = [0, 544], sizes = [8, 32], strides = [1, 1]} : vector<8x768xf32> to vector<8x32xf32>
    %cst_291 = arith.constant dense<0.000000e+00> : vector<8x384xf32>
    %1375 = tpu.matmul %1341, %1070, %cst_291 {dimension_numbers = #tpu.dot_dimension_numbers<[1], [0], [0], [1], [0, 0, 1, 1], [], []>} : vector<8x32xf32>, vector<32x384xf32>, vector<8x384xf32> -> vector<8x384xf32>
    %1376 = vector.extract_strided_slice %1375 {offsets = [0, 0], sizes = [8, 32], strides = [1, 1]} : vector<8x384xf32> to vector<8x32xf32>
    %1377 = arith.addf %1372, %1376 : vector<8x32xf32>
    %1378 = arith.negf %1377 : vector<8x32xf32>
    %1379 = math.exp %1378 : vector<8x32xf32>
    %cst_292 = arith.constant 1.000000e+00 : f32
    %1380 = vector.broadcast %cst_292 : f32 to vector<8x32xf32>
    %1381 = arith.addf %1380, %1379 : vector<8x32xf32>
    %1382 = arith.divf %1380, %1381 : vector<8x32xf32>
    %1383 = vector.extract_strided_slice %1375 {offsets = [0, 128], sizes = [8, 32], strides = [1, 1]} : vector<8x384xf32> to vector<8x32xf32>
    %1384 = arith.addf %1373, %1383 : vector<8x32xf32>
    %1385 = arith.negf %1384 : vector<8x32xf32>
    %1386 = math.exp %1385 : vector<8x32xf32>
    %cst_293 = arith.constant 1.000000e+00 : f32
    %1387 = vector.broadcast %cst_293 : f32 to vector<8x32xf32>
    %1388 = arith.addf %1387, %1386 : vector<8x32xf32>
    %1389 = arith.divf %1387, %1388 : vector<8x32xf32>
    %1390 = vector.extract_strided_slice %1375 {offsets = [0, 256], sizes = [8, 32], strides = [1, 1]} : vector<8x384xf32> to vector<8x32xf32>
    %1391 = arith.addf %1390, %1075 : vector<8x32xf32>
    %1392 = arith.mulf %1382, %1391 : vector<8x32xf32>
    %1393 = arith.addf %1374, %1392 : vector<8x32xf32>
    %1394 = math.tanh %1393 : vector<8x32xf32>
    %cst_294 = arith.constant 1.000000e+00 : f32
    %1395 = vector.broadcast %cst_294 : f32 to vector<8x32xf32>
    %1396 = arith.subf %1395, %1389 : vector<8x32xf32>
    %1397 = arith.mulf %1396, %1394 : vector<8x32xf32>
    %1398 = arith.mulf %1389, %1341 : vector<8x32xf32>
    %1399 = arith.addf %1397, %1398 : vector<8x32xf32>
    %cst_295 = arith.constant dense<0.000000e+00> : vector<8x384xf32>
    %1400 = tpu.matmul %1399, %1072, %cst_295 {dimension_numbers = #tpu.dot_dimension_numbers<[1], [0], [0], [1], [0, 0, 1, 1], [], []>} : vector<8x32xf32>, vector<32x384xf32>, vector<8x384xf32> -> vector<8x384xf32>
    %1401 = arith.addf %1400, %1081 : vector<8x384xf32>
    %1402 = vector.extract_strided_slice %1401 {offsets = [0, 0], sizes = [8, 32], strides = [1, 1]} : vector<8x384xf32> to vector<8x32xf32>
    %1403 = vector.extract_strided_slice %1401 {offsets = [0, 128], sizes = [8, 32], strides = [1, 1]} : vector<8x384xf32> to vector<8x32xf32>
    %1404 = vector.extract_strided_slice %1401 {offsets = [0, 256], sizes = [8, 32], strides = [1, 1]} : vector<8x384xf32> to vector<8x32xf32>
    %cst_296 = arith.constant dense<0.000000e+00> : vector<8x384xf32>
    %1405 = tpu.matmul %1371, %1071, %cst_296 {dimension_numbers = #tpu.dot_dimension_numbers<[1], [0], [0], [1], [0, 0, 1, 1], [], []>} : vector<8x32xf32>, vector<32x384xf32>, vector<8x384xf32> -> vector<8x384xf32>
    %1406 = vector.extract_strided_slice %1405 {offsets = [0, 0], sizes = [8, 32], strides = [1, 1]} : vector<8x384xf32> to vector<8x32xf32>
    %1407 = arith.addf %1402, %1406 : vector<8x32xf32>
    %1408 = arith.negf %1407 : vector<8x32xf32>
    %1409 = math.exp %1408 : vector<8x32xf32>
    %cst_297 = arith.constant 1.000000e+00 : f32
    %1410 = vector.broadcast %cst_297 : f32 to vector<8x32xf32>
    %1411 = arith.addf %1410, %1409 : vector<8x32xf32>
    %1412 = arith.divf %1410, %1411 : vector<8x32xf32>
    %1413 = vector.extract_strided_slice %1405 {offsets = [0, 128], sizes = [8, 32], strides = [1, 1]} : vector<8x384xf32> to vector<8x32xf32>
    %1414 = arith.addf %1403, %1413 : vector<8x32xf32>
    %1415 = arith.negf %1414 : vector<8x32xf32>
    %1416 = math.exp %1415 : vector<8x32xf32>
    %cst_298 = arith.constant 1.000000e+00 : f32
    %1417 = vector.broadcast %cst_298 : f32 to vector<8x32xf32>
    %1418 = arith.addf %1417, %1416 : vector<8x32xf32>
    %1419 = arith.divf %1417, %1418 : vector<8x32xf32>
    %1420 = vector.extract_strided_slice %1405 {offsets = [0, 256], sizes = [8, 32], strides = [1, 1]} : vector<8x384xf32> to vector<8x32xf32>
    %1421 = arith.addf %1420, %1078 : vector<8x32xf32>
    %1422 = arith.mulf %1412, %1421 : vector<8x32xf32>
    %1423 = arith.addf %1404, %1422 : vector<8x32xf32>
    %1424 = math.tanh %1423 : vector<8x32xf32>
    %cst_299 = arith.constant 1.000000e+00 : f32
    %1425 = vector.broadcast %cst_299 : f32 to vector<8x32xf32>
    %1426 = arith.subf %1425, %1419 : vector<8x32xf32>
    %1427 = arith.mulf %1426, %1424 : vector<8x32xf32>
    %1428 = arith.mulf %1419, %1371 : vector<8x32xf32>
    %1429 = arith.addf %1427, %1428 : vector<8x32xf32>
    %1430 = vector.extract_strided_slice %1069 {offsets = [0, 576], sizes = [8, 32], strides = [1, 1]} : vector<8x768xf32> to vector<8x32xf32>
    %1431 = vector.extract_strided_slice %1069 {offsets = [0, 608], sizes = [8, 32], strides = [1, 1]} : vector<8x768xf32> to vector<8x32xf32>
    %1432 = vector.extract_strided_slice %1069 {offsets = [0, 640], sizes = [8, 32], strides = [1, 1]} : vector<8x768xf32> to vector<8x32xf32>
    %cst_300 = arith.constant dense<0.000000e+00> : vector<8x384xf32>
    %1433 = tpu.matmul %1399, %1070, %cst_300 {dimension_numbers = #tpu.dot_dimension_numbers<[1], [0], [0], [1], [0, 0, 1, 1], [], []>} : vector<8x32xf32>, vector<32x384xf32>, vector<8x384xf32> -> vector<8x384xf32>
    %1434 = vector.extract_strided_slice %1433 {offsets = [0, 0], sizes = [8, 32], strides = [1, 1]} : vector<8x384xf32> to vector<8x32xf32>
    %1435 = arith.addf %1430, %1434 : vector<8x32xf32>
    %1436 = arith.negf %1435 : vector<8x32xf32>
    %1437 = math.exp %1436 : vector<8x32xf32>
    %cst_301 = arith.constant 1.000000e+00 : f32
    %1438 = vector.broadcast %cst_301 : f32 to vector<8x32xf32>
    %1439 = arith.addf %1438, %1437 : vector<8x32xf32>
    %1440 = arith.divf %1438, %1439 : vector<8x32xf32>
    %1441 = vector.extract_strided_slice %1433 {offsets = [0, 128], sizes = [8, 32], strides = [1, 1]} : vector<8x384xf32> to vector<8x32xf32>
    %1442 = arith.addf %1431, %1441 : vector<8x32xf32>
    %1443 = arith.negf %1442 : vector<8x32xf32>
    %1444 = math.exp %1443 : vector<8x32xf32>
    %cst_302 = arith.constant 1.000000e+00 : f32
    %1445 = vector.broadcast %cst_302 : f32 to vector<8x32xf32>
    %1446 = arith.addf %1445, %1444 : vector<8x32xf32>
    %1447 = arith.divf %1445, %1446 : vector<8x32xf32>
    %1448 = vector.extract_strided_slice %1433 {offsets = [0, 256], sizes = [8, 32], strides = [1, 1]} : vector<8x384xf32> to vector<8x32xf32>
    %1449 = arith.addf %1448, %1075 : vector<8x32xf32>
    %1450 = arith.mulf %1440, %1449 : vector<8x32xf32>
    %1451 = arith.addf %1432, %1450 : vector<8x32xf32>
    %1452 = math.tanh %1451 : vector<8x32xf32>
    %cst_303 = arith.constant 1.000000e+00 : f32
    %1453 = vector.broadcast %cst_303 : f32 to vector<8x32xf32>
    %1454 = arith.subf %1453, %1447 : vector<8x32xf32>
    %1455 = arith.mulf %1454, %1452 : vector<8x32xf32>
    %1456 = arith.mulf %1447, %1399 : vector<8x32xf32>
    %1457 = arith.addf %1455, %1456 : vector<8x32xf32>
    %cst_304 = arith.constant dense<0.000000e+00> : vector<8x384xf32>
    %1458 = tpu.matmul %1457, %1072, %cst_304 {dimension_numbers = #tpu.dot_dimension_numbers<[1], [0], [0], [1], [0, 0, 1, 1], [], []>} : vector<8x32xf32>, vector<32x384xf32>, vector<8x384xf32> -> vector<8x384xf32>
    %1459 = arith.addf %1458, %1081 : vector<8x384xf32>
    %1460 = vector.extract_strided_slice %1459 {offsets = [0, 0], sizes = [8, 32], strides = [1, 1]} : vector<8x384xf32> to vector<8x32xf32>
    %1461 = vector.extract_strided_slice %1459 {offsets = [0, 128], sizes = [8, 32], strides = [1, 1]} : vector<8x384xf32> to vector<8x32xf32>
    %1462 = vector.extract_strided_slice %1459 {offsets = [0, 256], sizes = [8, 32], strides = [1, 1]} : vector<8x384xf32> to vector<8x32xf32>
    %cst_305 = arith.constant dense<0.000000e+00> : vector<8x384xf32>
    %1463 = tpu.matmul %1429, %1071, %cst_305 {dimension_numbers = #tpu.dot_dimension_numbers<[1], [0], [0], [1], [0, 0, 1, 1], [], []>} : vector<8x32xf32>, vector<32x384xf32>, vector<8x384xf32> -> vector<8x384xf32>
    %1464 = vector.extract_strided_slice %1463 {offsets = [0, 0], sizes = [8, 32], strides = [1, 1]} : vector<8x384xf32> to vector<8x32xf32>
    %1465 = arith.addf %1460, %1464 : vector<8x32xf32>
    %1466 = arith.negf %1465 : vector<8x32xf32>
    %1467 = math.exp %1466 : vector<8x32xf32>
    %cst_306 = arith.constant 1.000000e+00 : f32
    %1468 = vector.broadcast %cst_306 : f32 to vector<8x32xf32>
    %1469 = arith.addf %1468, %1467 : vector<8x32xf32>
    %1470 = arith.divf %1468, %1469 : vector<8x32xf32>
    %1471 = vector.extract_strided_slice %1463 {offsets = [0, 128], sizes = [8, 32], strides = [1, 1]} : vector<8x384xf32> to vector<8x32xf32>
    %1472 = arith.addf %1461, %1471 : vector<8x32xf32>
    %1473 = arith.negf %1472 : vector<8x32xf32>
    %1474 = math.exp %1473 : vector<8x32xf32>
    %cst_307 = arith.constant 1.000000e+00 : f32
    %1475 = vector.broadcast %cst_307 : f32 to vector<8x32xf32>
    %1476 = arith.addf %1475, %1474 : vector<8x32xf32>
    %1477 = arith.divf %1475, %1476 : vector<8x32xf32>
    %1478 = vector.extract_strided_slice %1463 {offsets = [0, 256], sizes = [8, 32], strides = [1, 1]} : vector<8x384xf32> to vector<8x32xf32>
    %1479 = arith.addf %1478, %1078 : vector<8x32xf32>
    %1480 = arith.mulf %1470, %1479 : vector<8x32xf32>
    %1481 = arith.addf %1462, %1480 : vector<8x32xf32>
    %1482 = math.tanh %1481 : vector<8x32xf32>
    %cst_308 = arith.constant 1.000000e+00 : f32
    %1483 = vector.broadcast %cst_308 : f32 to vector<8x32xf32>
    %1484 = arith.subf %1483, %1477 : vector<8x32xf32>
    %1485 = arith.mulf %1484, %1482 : vector<8x32xf32>
    %1486 = arith.mulf %1477, %1429 : vector<8x32xf32>
    %1487 = arith.addf %1485, %1486 : vector<8x32xf32>
    %1488 = vector.extract_strided_slice %1069 {offsets = [0, 672], sizes = [8, 32], strides = [1, 1]} : vector<8x768xf32> to vector<8x32xf32>
    %1489 = vector.extract_strided_slice %1069 {offsets = [0, 704], sizes = [8, 32], strides = [1, 1]} : vector<8x768xf32> to vector<8x32xf32>
    %1490 = vector.extract_strided_slice %1069 {offsets = [0, 736], sizes = [8, 32], strides = [1, 1]} : vector<8x768xf32> to vector<8x32xf32>
    %cst_309 = arith.constant dense<0.000000e+00> : vector<8x384xf32>
    %1491 = tpu.matmul %1457, %1070, %cst_309 {dimension_numbers = #tpu.dot_dimension_numbers<[1], [0], [0], [1], [0, 0, 1, 1], [], []>} : vector<8x32xf32>, vector<32x384xf32>, vector<8x384xf32> -> vector<8x384xf32>
    %1492 = vector.extract_strided_slice %1491 {offsets = [0, 0], sizes = [8, 32], strides = [1, 1]} : vector<8x384xf32> to vector<8x32xf32>
    %1493 = arith.addf %1488, %1492 : vector<8x32xf32>
    %1494 = arith.negf %1493 : vector<8x32xf32>
    %1495 = math.exp %1494 : vector<8x32xf32>
    %cst_310 = arith.constant 1.000000e+00 : f32
    %1496 = vector.broadcast %cst_310 : f32 to vector<8x32xf32>
    %1497 = arith.addf %1496, %1495 : vector<8x32xf32>
    %1498 = arith.divf %1496, %1497 : vector<8x32xf32>
    %1499 = vector.extract_strided_slice %1491 {offsets = [0, 128], sizes = [8, 32], strides = [1, 1]} : vector<8x384xf32> to vector<8x32xf32>
    %1500 = arith.addf %1489, %1499 : vector<8x32xf32>
    %1501 = arith.negf %1500 : vector<8x32xf32>
    %1502 = math.exp %1501 : vector<8x32xf32>
    %cst_311 = arith.constant 1.000000e+00 : f32
    %1503 = vector.broadcast %cst_311 : f32 to vector<8x32xf32>
    %1504 = arith.addf %1503, %1502 : vector<8x32xf32>
    %1505 = arith.divf %1503, %1504 : vector<8x32xf32>
    %1506 = vector.extract_strided_slice %1491 {offsets = [0, 256], sizes = [8, 32], strides = [1, 1]} : vector<8x384xf32> to vector<8x32xf32>
    %1507 = arith.addf %1506, %1075 : vector<8x32xf32>
    %1508 = arith.mulf %1498, %1507 : vector<8x32xf32>
    %1509 = arith.addf %1490, %1508 : vector<8x32xf32>
    %1510 = math.tanh %1509 : vector<8x32xf32>
    %cst_312 = arith.constant 1.000000e+00 : f32
    %1511 = vector.broadcast %cst_312 : f32 to vector<8x32xf32>
    %1512 = arith.subf %1511, %1505 : vector<8x32xf32>
    %1513 = arith.mulf %1512, %1510 : vector<8x32xf32>
    %1514 = arith.mulf %1505, %1457 : vector<8x32xf32>
    %1515 = arith.addf %1513, %1514 : vector<8x32xf32>
    %cst_313 = arith.constant dense<0.000000e+00> : vector<8x384xf32>
    %1516 = tpu.matmul %1515, %1072, %cst_313 {dimension_numbers = #tpu.dot_dimension_numbers<[1], [0], [0], [1], [0, 0, 1, 1], [], []>} : vector<8x32xf32>, vector<32x384xf32>, vector<8x384xf32> -> vector<8x384xf32>
    %1517 = arith.addf %1516, %1081 : vector<8x384xf32>
    %1518 = vector.extract_strided_slice %1517 {offsets = [0, 0], sizes = [8, 32], strides = [1, 1]} : vector<8x384xf32> to vector<8x32xf32>
    %1519 = vector.extract_strided_slice %1517 {offsets = [0, 128], sizes = [8, 32], strides = [1, 1]} : vector<8x384xf32> to vector<8x32xf32>
    %1520 = vector.extract_strided_slice %1517 {offsets = [0, 256], sizes = [8, 32], strides = [1, 1]} : vector<8x384xf32> to vector<8x32xf32>
    %cst_314 = arith.constant dense<0.000000e+00> : vector<8x384xf32>
    %1521 = tpu.matmul %1487, %1071, %cst_314 {dimension_numbers = #tpu.dot_dimension_numbers<[1], [0], [0], [1], [0, 0, 1, 1], [], []>} : vector<8x32xf32>, vector<32x384xf32>, vector<8x384xf32> -> vector<8x384xf32>
    %1522 = vector.extract_strided_slice %1521 {offsets = [0, 0], sizes = [8, 32], strides = [1, 1]} : vector<8x384xf32> to vector<8x32xf32>
    %1523 = arith.addf %1518, %1522 : vector<8x32xf32>
    %1524 = arith.negf %1523 : vector<8x32xf32>
    %1525 = math.exp %1524 : vector<8x32xf32>
    %cst_315 = arith.constant 1.000000e+00 : f32
    %1526 = vector.broadcast %cst_315 : f32 to vector<8x32xf32>
    %1527 = arith.addf %1526, %1525 : vector<8x32xf32>
    %1528 = arith.divf %1526, %1527 : vector<8x32xf32>
    %1529 = vector.extract_strided_slice %1521 {offsets = [0, 128], sizes = [8, 32], strides = [1, 1]} : vector<8x384xf32> to vector<8x32xf32>
    %1530 = arith.addf %1519, %1529 : vector<8x32xf32>
    %1531 = arith.negf %1530 : vector<8x32xf32>
    %1532 = math.exp %1531 : vector<8x32xf32>
    %cst_316 = arith.constant 1.000000e+00 : f32
    %1533 = vector.broadcast %cst_316 : f32 to vector<8x32xf32>
    %1534 = arith.addf %1533, %1532 : vector<8x32xf32>
    %1535 = arith.divf %1533, %1534 : vector<8x32xf32>
    %1536 = vector.extract_strided_slice %1521 {offsets = [0, 256], sizes = [8, 32], strides = [1, 1]} : vector<8x384xf32> to vector<8x32xf32>
    %1537 = arith.addf %1536, %1078 : vector<8x32xf32>
    %1538 = arith.mulf %1528, %1537 : vector<8x32xf32>
    %1539 = arith.addf %1520, %1538 : vector<8x32xf32>
    %1540 = math.tanh %1539 : vector<8x32xf32>
    %cst_317 = arith.constant 1.000000e+00 : f32
    %1541 = vector.broadcast %cst_317 : f32 to vector<8x32xf32>
    %1542 = arith.subf %1541, %1535 : vector<8x32xf32>
    %1543 = arith.mulf %1542, %1540 : vector<8x32xf32>
    %1544 = arith.mulf %1535, %1487 : vector<8x32xf32>
    %1545 = arith.addf %1543, %1544 : vector<8x32xf32>
    %cst_318 = arith.constant 0.000000e+00 : f32
    %1546 = vector.broadcast %cst_318 : f32 to vector<8x32xf32>
    %1547 = arith.maximumf %1545, %1546 : vector<8x32xf32>
    %c384 = arith.constant 384 : index
    %c0_319 = arith.constant 0 : index
    %1548 = vector.load %arg2[%c384, %c0_319] : memref<424x384xf32, #tpu.memory_space<vmem>>, vector<32x384xf32>
    %c416 = arith.constant 416 : index
    %c0_320 = arith.constant 0 : index
    %1549 = vector.load %arg2[%c416, %c0_320] : memref<424x384xf32, #tpu.memory_space<vmem>>, vector<1x384xf32>
    %cst_321 = arith.constant dense<0.000000e+00> : vector<8x384xf32>
    %1550 = tpu.matmul %1547, %1548, %cst_321 {dimension_numbers = #tpu.dot_dimension_numbers<[1], [0], [0], [1], [0, 0, 1, 1], [], []>} : vector<8x32xf32>, vector<32x384xf32>, vector<8x384xf32> -> vector<8x384xf32>
    %1551 = vector.broadcast %1549 : vector<1x384xf32> to vector<8x384xf32>
    %1552 = arith.addf %1550, %1551 : vector<8x384xf32>
    %1553 = vector.extract_strided_slice %1552 {offsets = [0, 0], sizes = [8, 168], strides = [1, 1]} : vector<8x384xf32> to vector<8x168xf32>
    %c0_322 = arith.constant 0 : index
    %c0_323 = arith.constant 0 : index
    %1554 = vector.load %arg4[%c0_322, %c0_323] : memref<8x168xf32, #tpu.memory_space<vmem>>, vector<8x168xf32>
    tpu.vector_store %arg4[%c0_322, %c0_323], %1553 {strides = array<i32>} : memref<8x168xf32, #tpu.memory_space<vmem>>, vector<8x168xf32>,
    %c0_324 = arith.constant 0 : index
    %c0_325 = arith.constant 0 : index
    %c0_326 = arith.constant 0 : index
    %1555 = vector.load %arg5[%c0_324, %c0_325, %c0_326] : memref<2x8x32xf32, #tpu.memory_space<vmem>>, vector<1x8x32xf32>
    %1556 = vector.shape_cast %1555 : vector<1x8x32xf32> to vector<8x32xf32>
    %1557 = vector.shape_cast %1515 : vector<8x32xf32> to vector<1x8x32xf32>
    tpu.vector_store %arg5[%c0_324, %c0_325, %c0_326], %1557 {strides = array<i32>} : memref<2x8x32xf32, #tpu.memory_space<vmem>>, vector<1x8x32xf32>,
    %c1_327 = arith.constant 1 : index
    %c0_328 = arith.constant 0 : index
    %c0_329 = arith.constant 0 : index
    %1558 = vector.load %arg5[%c1_327, %c0_328, %c0_329] : memref<2x8x32xf32, #tpu.memory_space<vmem>>, vector<1x8x32xf32>
    %1559 = vector.shape_cast %1558 : vector<1x8x32xf32> to vector<8x32xf32>
    %1560 = vector.shape_cast %1545 : vector<8x32xf32> to vector<1x8x32xf32>
    tpu.vector_store %arg5[%c1_327, %c0_328, %c0_329], %1560 {strides = array<i32>} : memref<2x8x32xf32, #tpu.memory_space<vmem>>, vector<1x8x32xf32>,
    return
  }
}

</mosaic_0001>

<bundles_post_ra>
// kernel: fwd.1
= control target key start
LH: loop header
LB: loop body
LE: loop exit
PB: predicated region body
PF: predicated region fallthrough
CT: control target
= control target key end

     0   :  { %11 = vsyncpa [#allocation3], 0  ;;  %s22915_s0 = inlined_call_operand.vmem [shape: f32[64,16], index: 0, kind: input, shape index: {}]   ;;  %s22916_s1 = inlined_call_operand.vmem [shape: f32[2,8,32], index: 1, kind: input, shape index: {}, may-alias: {1,5}]   ;;  %s22917_s2 = inlined_call_operand.hbm [shape: f32[424,384], index: 2, kind: input, shape index: {}]   ;;  %s22918_s3 = inlined_call_operand.hbm [shape: f32[528,768], index: 3, kind: input, shape index: {}]   ;;  %s22919_s4 = inlined_call_operand.vmem [shape: f32[8,168], index: 4, kind: output, shape index: {0}]   ;;  %s22920_s5 = inlined_call_operand.vmem [shape: f32[2,8,32], index: 5, kind: output, shape index: {1}, may-alias: {1,5}]  }
   0x1   :  { %12 = vsyncpa [#allocation5], 0  ;;  %s19506_s18 = smov [#allocation2]  }
   0x2   :  { %s22_s19 = sshll.u32 %s19506_s18, 4  ;;  %s23_s19 = int_to_ptr.vmem [resolvable:$true] %s22_s19 }
   0x3   :  { %s19470_s20 = scalar_lea.vmem %s23_s19, 20352  ;;  %p19475_p1 = scmp.lt.s32.totalorder %s23_s19, %s23_s19 }
   0x4   :  { %p19471_p0 = scmp.ne.s32.totalorder %s23_s19, %s19470_s20  ;;  %p19476_p2 = scmp.lt.s32.totalorder %s19470_s20, %s19470_s20 }
   0x6   :  { %p19477_p3 = por %p19476_p2, %p19475_p1 }
   0x8   :  { %p19478_p4 = pnand %p19477_p3, %p19471_p0 }
   0xa   :  { %19481 = shalt.err (!%p19478_p4)
}
   0xb   :  { %s19507_s21 = smov 384   ;;  %s19508_s22 = smov 24  }
   0xc   :  { %28 = dma.hbm_to_vmem [thread:$0]  %s22917_s2, 20352, %s23_s19, [#allocation3], %s19507_s21, %s19507_s21, %s19508_s22  }
   0xd   :  { %s19509_s25 = smov [#allocation4]  }
   0xe   :  { %s34_s26 = sshll.u32 %s19509_s25, 4  ;;  %s35_s26 = int_to_ptr.vmem [resolvable:$true] %s34_s26 }
   0xf   :  { %s19490_s27 = scalar_lea.vmem %s35_s26, 50688  ;;  %p19495_p6 = scmp.lt.s32.totalorder %s35_s26, %s35_s26 }
  0x10   :  { %p19491_p5 = scmp.ne.s32.totalorder %s35_s26, %s19490_s27  ;;  %p19496_p7 = scmp.lt.s32.totalorder %s19490_s27, %s19490_s27 }
  0x12   :  { %p19497_p8 = por %p19496_p7, %p19495_p6 }
  0x14   :  { %p19498_p9 = pnand %p19497_p8, %p19491_p5 }
  0x16   :  { %19501 = shalt.err (!%p19498_p9)
}
  0x17   :  { %s19510_s28 = smov 768   ;;  %s19511_s29 = smov 48  }
  0x18   :  { %40 = dma.hbm_to_vmem [thread:$0]  %s22918_s3, 50688, %s35_s26, [#allocation5], %s19510_s28, %s19510_s28, %s19511_s29  }
  0x19   :  { %19502 = dma.done.wait [#allocation3], 20352  }
  0x1a   :  { %19503 = vsyncadd [#allocation3], 4294946944 }
  0x1b   :  { %19504 = dma.done.wait [#allocation5], 50688  }
  0x1c   :  { %19505 = vsyncadd [#allocation5], 4294916608  ;;  %v22921_v0 = vmov 0.0   ;;  %vm19513_vm0 = vmmov 0   ;;  %v19557_v1 = vld [vmem:[#allocation2 + $0x20] sm:$0xff]  ;;  %v19559_v2 = vld [vmem:[#allocation2 + $0x18] sm:$0xff]  ;;  %v91_v34 = vlaneseq }
  0x1d   :  { %234 = vmatprep.mubr.f32.mxu0 %v22921_v0  ;;  %17921 = vmatprep.subr.mxu1 %v22921_v0  ;;  %23008 = vst [vmem:[#allocation8_spill] sm:$0xff] %v19557_v1  ;;  %v19561_v3 = vld [vmem:[#allocation2 + $0x8] sm:$0xff]  ;;  %v19564_v4 = vld [vmem:[#allocation2] sm:$0xff]  ;;  %vm166_vm1 = vcmask 130048   ;;  %v19573_v7 = vld [vmem:[#allocation2 + $0x78] sm:$0xff]  ;;  %vm311_vm2 = vcmask 261120  }
  0x1e   :  { %17925 = vmatprep.mubr.msk.f32.mxu1 %vm19513_vm0, %v22921_v0  ;;  %198 = vmatprep.subr.mxu0 %v19557_v1  ;;  %v165_v5 = vld [vmem:[%s22915_s0] sm:$0xff]  ;;  %v19576_v8 = vld [vmem:[#allocation2 + $0x68] sm:$0xff]  ;;  %v19585_v11 = vld [vmem:[#allocation2 + $0x50] sm:$0xff]  ;;  %v19680_v35 = vshrl.u32 %v91_v34, 7  ;;  %s19515_s24 = smov 32   ;;  %s19516_s25 = smov 96  }
  0x1f   :  { %199 = vmatpush1.msra.mxu0 %v19559_v2  ;;  %v19570_v6 = vld [vmem:[#allocation2 + $0x80] sm:$0xff]  ;;  %v19578_v9 = vld [vmem:[#allocation2 + $0x28] sm:$0xff]  ;;  %v19588_v12 = vld [vmem:[#allocation2 + $0x10] sm:$0xff]  ;;  %vm17214_vm3 = vcmask 326656  }
  0x20   :  { %200 = vmatprep.subr.mxu0 %v19561_v3  ;;  %v19582_v10 = vld [vmem:[#allocation2 + $0x60] sm:$0xff]  ;;  %v19591_v13 = vld [vmem:[#allocation2 + $0x48] sm:$0xff]  ;;  %17922 = vmatpush3.msra.mxu1 %v19578_v9  ;;  %v19595_v14 = vld [vmem:[#allocation2 + $0x38] sm:$0xff]  ;;  %23011 = vst [vmem:[#allocation11_spill] sm:$0xff] %v19680_v35  ;;  %v19683_v36 = vsub.s32 0, %v19680_v35  ;;  %v19689_v40 = vsub.s32 1, %v19680_v35 }
  0x21   :  { %201 = vmatpush1.msra.mxu0 %v19564_v4  ;;  %17923 = vmatprep.subr.mxu1 %v22921_v0  ;;  %v19599_v15 = vld [vmem:[#allocation2 + $0x30] sm:$0xff]  ;;  %v19602_v16 = vld [vmem:[#allocation2 + $0x88] sm:$0xff]  ;;  %v19608_v17 = vld [vmem:[%s22916_s1] sm:$0xff]  ;;  %v19697_v57 = vsub.s32 2, %v19680_v35 }
  0x22   :  { %17231 = vmatmul.mubr.msk.f32.vlgmr.msra.gmra.mxu0 %vm166_vm1, %v165_v5  ;;  %339 = vmatprep.subr.mxu0 %v19570_v6  ;;  %v19613_v18 = vld [vmem:[#allocation2 + $0x70] sm:$0xff]  ;;  %v19620_v19 = vld [vmem:[#allocation2 + $0x58] sm:$0xff]  ;;  %v19626_v20 = vld [vmem:[#allocation2 + $0x40] sm:$0xff]  ;;  %23012 = vst [vmem:[#allocation12_spill] sm:$0xff] %v19683_v36 }
  0x23   :  { %340 = vmatpush1.msra.mxu0 %v19573_v7  ;;  %379 = vmatprep.mubr.f32.mxu0 %v22921_v0  ;;  %v19637_v21 = vld [vmem:[#allocation2 + $0x110] sm:$0xff]  ;;  %v19639_v22 = vld [vmem:[#allocation2 + $0x108] sm:$0xff]  ;;  %v19641_v23 = vld [vmem:[#allocation2 + $0xf8] sm:$0xff]  ;;  %23014 = vst [vmem:[#allocation14_spill] sm:$0xff] %v19689_v40 }
  0x24   :  { %341 = vmatprep.subr.mxu0 %v19576_v8  ;;  %17924 = vmatpush3.msra.mxu1 %v19588_v12  ;;  %v19644_v24 = vld [vmem:[#allocation2 + $0x118] sm:$0xff]  ;;  %v19646_v25 = vld [vmem:[#allocation2 + $0xf0] sm:$0xff]  ;;  %v19650_v26 = vld [vmem:[#allocation2 + $0xe0] sm:$0xff]  ;;  %23015 = vst [vmem:[#allocation15_spill] sm:$0xff] %v19697_v57 }
  0x25   :  { %342 = vmatpush1.msra.mxu0 %v19582_v10  ;;  %17928 = vmatprep.subr.mxu1 %v22921_v0  ;;  %v19652_v27 = vld [vmem:[#allocation2 + $0x100] sm:$0xff]  ;;  %v19656_v28 = vld [vmem:[#allocation2 + $0xd8] sm:$0xff]  ;;  %v19658_v29 = vld [vmem:[#allocation2 + $0xe8] sm:$0xff] }
  0x26   :  { %343 = vmatprep.subr.mxu0 %v19585_v11  ;;  %17926 = vmatmul.mubr.msk.f32.vlgmr.msra.gmra.mxu1 %vm166_vm1, %v165_v5  ;;  %v19662_v30 = vld [vmem:[#allocation2 + $0xc8] sm:$0xff]  ;;  %v19666_v31 = vld [vmem:[#allocation2 + $0xc0] sm:$0xff]  ;;  %v19668_v32 = vld [vmem:[#allocation2 + $0xd0] sm:$0xff] }
  0x27   :  { %344 = vmatpush1.msra.mxu0 %v19591_v13  ;;  %17929 = vmatpush3.msra.mxu1 %v19602_v16  ;;  %23009 = vst [vmem:[#allocation9_spill] sm:$0xff] %v19668_v32  ;;  %v19672_v33 = vld [vmem:[#allocation2 + $0x170] sm:$0xff]  ;;  %v19699_v59 = vld [vmem:[#allocation2 + $0xa8] ss:$0 sm:$0xff] }
  0x28   :  { %345 = vmatprep.subr.mxu0 %v19595_v14  ;;  %17930 = vmatprep.subr.mxu1 %v22921_v0  ;;  %23010 = vst [vmem:[#allocation10_spill] sm:$0xff] %v19672_v33  ;;  %v113_v37 = vld [vmem:[#allocation2 + $0x90] ss:$8 sm:$0x7] }
  0x29   :  { %346 = vmatpush1.msra.mxu0 %v19599_v15  ;;  %17931 = vmatpush3.msra.mxu1 %v19613_v18  ;;  %v19686_v39 = vrot.slane %v113_v37, %v19683_v36  ;;  %v19693_v46 = vrot.slane %v113_v37, %v19689_v40  ;;  %v19702_v61 = vrot.slane %v113_v37, %v19697_v57  ;;  %v19711_v37 = vld [vmem:[#allocation2 + $0x158] sm:$0xff]  ;;  %v811_v35 = vld [vmem:[#allocation4 + $0xb8] sm:$0xff] }
  0x2a   :  { %17233 = vmatmul.mubr.msk.f32.vlgmr.msra.gmra.mxu0 %vm311_vm2, %v19608_v17  ;;  %17936 = vmatprep.mubr.msk.f32.mxu1 %vm19513_vm0, %v22921_v0 }
  0x2b   :  { %17932 = vmatprep.subr.mxu1 %v22921_v0  ;;  %545 = vmatprep.mubr.f32.mxu0 %v22921_v0  ;;  %23013 = vst [vmem:[#allocation13_spill] sm:$0xff] %v19686_v39 }
  0x2c   :  { %17933 = vmatpush3.msra.mxu1 %v19620_v19  ;;  %505 = vmatprep.subr.mxu0 %v19637_v21 }
  0x2d   :  { %17934 = vmatprep.subr.mxu1 %v22921_v0  ;;  %506 = vmatpush1.msra.mxu0 %v19639_v22 }
  0x2e   :  { %17935 = vmatpush3.msra.mxu1 %v19626_v20  ;;  %507 = vmatprep.subr.mxu0 %v19641_v23 }
  0x2f   :  { %17937 = vmatmul.mubr.msk.f32.vlgmr.msra.gmra.mxu1 %vm311_vm2, %v19608_v17  ;;  %17939 = vmatprep.subr.mxu1 %v22921_v0 }
  0x30   :  { %17947 = vmatprep.mubr.msk.f32.mxu1 %vm19513_vm0, %v22921_v0  ;;  %17940 = vmatpush3.msra.mxu1 %v19644_v24 }
  0x31   :  { %17941 = vmatprep.subr.mxu1 %v22921_v0  ;;  %508 = vmatpush1.msra.mxu0 %v19646_v25 }
  0x32   :  { %17942 = vmatpush3.msra.mxu1 %v19652_v27  ;;  %509 = vmatprep.subr.mxu0 %v19650_v26 }
  0x33   :  { %17943 = vmatprep.subr.mxu1 %v22921_v0  ;;  %510 = vmatpush1.msra.mxu0 %v19656_v28 }
  0x34   :  { %17944 = vmatpush3.msra.mxu1 %v19658_v29  ;;  %511 = vmatprep.subr.mxu0 %v19662_v30 }
  0x35   :  { %17945 = vmatprep.subr.mxu1 %v22921_v0  ;;  %512 = vmatpush1.msra.mxu0 %v19666_v31 }
  0x36   :  { %17946 = vmatpush3.msra.mxu1 %v19668_v32  ;;  %649 = vmatprep.subr.mxu0 %v19672_v33 }
  0x37   :  { %17950 = vmatprep.subr.mxu1 %v22921_v0 }
  0xe2   :  { %v236_v38 = vpop.f32.mrf.mxu0 }
  0xe3   :  { %v237_v43 = vadd.f32 %v236_v38, %v19686_v39 }
  0xe4   :  { %v238_v41 = vpop.f32.mrf.mxu0 }
  0xe5   :  { %v239_v50 = vadd.f32 %v238_v41, %v19693_v46 }
  0xe6   :  { %v307_v42 = vpop.f32.mrf.mxu1 }
  0xe7   :  { %v308_v5 = vadd.f32 %v307_v42, %v19702_v61  ;;  %v19719_v42 = vld [vmem:[#allocation2 + $0x150] sm:$0xff] }
  0xe8   :  { %v17927_v45 = vpop.f32.mrf.mxu1 }
  0xea   :  { %v381_v44 = vpop.f32.mrf.mxu0 }
  0xeb   :  { %v456_v47 = vadd.f32 %v381_v44, %v237_v43 }
  0xec   :  { %v383_v49 = vpop.f32.mrf.mxu0 }
  0xed   :  { %v17235_v48 = vmul.f32 -1.442695, %v456_v47  ;;  %v463_v52 = vadd.f32 %v383_v49, %v239_v50  ;;  %v19709_v49 = vld [vmem:[#allocation2 + $0x168] sm:$0xff]  ;;  %v19713_v50 = vld [vmem:[#allocation2 + $0x178] sm:$0xff] }
  0xef   :  { %18780 = vpow2.f32 %v17235_v48  ;;  %v452_v51 = vpop.f32.mrf.mxu1  ;;  %v17236_v54 = vmul.f32 -1.442695, %v463_v52  ;;  %v19728_v52 = vld [vmem:[#allocation2 + $0x138] sm:$0xff] }
  0xf0   :  { %v470_v62 = vadd.f32 %v452_v51, %v19699_v59  ;;  %v19722_v51 = vld [vmem:[#allocation2 + $0x140] sm:$0xff] }
  0xf1   :  { %v17938_v53 = vpop.f32.mrf.mxu1  ;;  %18782 = vpow2.f32 %v17236_v54  ;;  %v19735_v54 = vld [vmem:[#allocation2 + $0x148] sm:$0xff] }
  0xf2   :  { %v19732_v53 = vld [vmem:[#allocation2 + $0x128] sm:$0xff]  ;;  %23017 = vst [vmem:[#allocation17_spill] sm:$0xff] %v19735_v54 }
  0xf3   :  { %23016 = vst [vmem:[#allocation16_spill] sm:$0xff] %v19732_v53 }
  0xfc   :  { %v18781_v55 = vpop.eup %18780 }
  0xfd   :  { %v460_v56 = vadd.f32 1.0, %v18781_v55  ;;  %v19738_v55 = vld [vmem:[#allocation2 + $0x120] sm:$0xff] }
  0xfe   :  { %v18783_v58 = vpop.eup %18782  ;;  %23018 = vst [vmem:[#allocation18_spill] sm:$0xff] %v19738_v55 }
  0xff   :  { %18784 = vrcp.f32 %v460_v56  ;;  %v467_v60 = vadd.f32 1.0, %v18783_v58  ;;  %v19745_v56 = vld [vmem:[%s22916_s1 + $0x8] sm:$0xff]  ;;  %v19748_v58 = vld [vmem:[#allocation2 + $0x130] sm:$0xff] }
 0x100   :  { %23019 = vst [vmem:[#allocation19_spill] sm:$0xff] %v19748_v58 }
 0x101   :  { %18786 = vrcp.f32 %v467_v60  ;;  %v807_v60 = vld [vmem:[#allocation4 + $0x98] sm:$0xff] }
 0x10c   :  { %v18785_v63 = vpop.eup %18784 }
 0x10d   :  { %v471_v34 = vmul.f32 %v18785_v63, %v470_v62  ;;  %v809_v62 = vld [vmem:[#allocation4 + $0xa8] sm:$0xff]  ;;  %v806_v63 = vld [vmem:[#allocation4 + $0x90] sm:$0xff] }
 0x10e   :  { %v18787_v41 = vpop.eup %18786 }
 0x10f   :  { %v472_v38 = vadd.f32 %v471_v34, %v308_v5  ;;  %v474_v43 = vsub.f32 1.0, %v18787_v41  ;;  %v476_v47 = vmul.f32 %v18787_v41, %v19608_v17  ;;  %v19725_v17 = vld [vmem:[#allocation2 + $0x160] sm:$0xff]  ;;  %v808_v5 = vld [vmem:[#allocation4 + $0xa0] sm:$0xff] }
 0x110   :  { %v801_v34 = vld [vmem:[#allocation4 + $0x68] sm:$0xff]  ;;  %v800_v41 = vld [vmem:[#allocation4 + $0x60] sm:$0xff] }
 0x111   :  { %18788 = vtanh.f32 %v472_v38  ;;  %v803_v38 = vld [vmem:[#allocation4 + $0x78] sm:$0xff] }
 0x11e   :  { %v18789_v44 = vpop.eup %18788 }
 0x11f   :  { %v475_v45 = vmul.f32 %v18789_v44, %v474_v43  ;;  %v802_v43 = vld [vmem:[#allocation4 + $0x70] sm:$0xff]  ;;  %v795_v44 = vld [vmem:[#allocation4 + $0x38] sm:$0xff] }
 0x121   :  { %v19707_v48 = vadd.f32 %v476_v47, %v475_v45  ;;  %v797_v45 = vld [vmem:[#allocation4 + $0x48] sm:$0xff]  ;;  %v794_v47 = vld [vmem:[#allocation4 + $0x30] sm:$0xff] }
 0x123   :  { %17237 = vmatmul.mubr.msk.f32.vlgmr.msra.gmra.mxu0 %vm311_vm2, %v19707_v48  ;;  %17948 = vmatmul.mubr.msk.f32.vlgmr.msra.gmra.mxu1 %vm311_vm2, %v19707_v48 }
 0x124   :  { %650 = vmatpush1.msra.mxu0 %v19709_v49  ;;  %689 = vmatprep.mubr.f32.mxu0 %v22921_v0 }
 0x125   :  { %651 = vmatprep.subr.mxu0 %v19711_v37  ;;  %17951 = vmatpush3.msra.mxu1 %v19713_v50 }
 0x126   :  { %652 = vmatpush1.msra.mxu0 %v19719_v42  ;;  %17952 = vmatprep.subr.mxu1 %v22921_v0 }
 0x127   :  { %653 = vmatprep.subr.mxu0 %v19722_v51  ;;  %17953 = vmatpush3.msra.mxu1 %v19725_v17 }
 0x128   :  { %654 = vmatpush1.msra.mxu0 %v19728_v52  ;;  %17954 = vmatprep.subr.mxu1 %v22921_v0 }
 0x129   :  { %655 = vmatprep.subr.mxu0 %v19732_v53  ;;  %17955 = vmatpush3.msra.mxu1 %v19735_v54 }
 0x12a   :  { %656 = vmatpush1.msra.mxu0 %v19738_v55  ;;  %17956 = vmatprep.subr.mxu1 %v22921_v0 }
 0x12b   :  { %17239 = vmatmul.mubr.msk.f32.vlgmr.msra.gmra.mxu0 %vm311_vm2, %v19745_v56  ;;  %17957 = vmatpush3.msra.mxu1 %v19748_v58 }
 0x12c   :  { %17958 = vmatprep.mubr.msk.f32.mxu1 %vm19513_vm0, %v22921_v0  ;;  %880 = vmatprep.mubr.f32.mxu0 %v22921_v0 }
 0x12d   :  { %17959 = vmatmul.mubr.msk.f32.vlgmr.msra.gmra.mxu1 %vm311_vm2, %v19745_v56  ;;  %840 = vmatprep.subr.mxu0 %v807_v60  ;;  %v789_v60 = vld [vmem:[#allocation4 + $0x8] sm:$0xff] }
 0x12e   :  { %951 = vmatprep.mubr.f32.mxu1 %v22921_v0  ;;  %911 = vmatprep.subr.mxu1 %v809_v62  ;;  %v796_v0 = vld [vmem:[#allocation4 + $0x40] sm:$0xff]  ;;  %v791_v62 = vld [vmem:[#allocation4 + $0x18] sm:$0xff] }
 0x12f   :  { %841 = vmatpush1.msra.mxu0 %v806_v63  ;;  %912 = vmatpush1.msra.mxu1 %v808_v5  ;;  %v788_v63 = vld [vmem:[#allocation4] sm:$0xff]  ;;  %v790_v5 = vld [vmem:[#allocation4 + $0x10] sm:$0xff] }
 0x130   :  { %842 = vmatprep.subr.mxu0 %v801_v34  ;;  %913 = vmatprep.subr.mxu1 %v803_v38  ;;  %v89_v34 = vld [vmem:[#allocation2 + $0x180] ss:$8 sm:$0x7] }
 0x131   :  { %843 = vmatpush1.msra.mxu0 %v800_v41  ;;  %914 = vmatpush1.msra.mxu1 %v802_v43  ;;  %v19769_v58 = vrot.slane %v89_v34, %v19689_v40  ;;  %v19775_v40 = vrot.slane %v89_v34, %v19697_v57  ;;  %v805_v57 = vld [vmem:[#allocation4 + $0x88] sm:$0xff] }
 0x132   :  { %844 = vmatprep.subr.mxu0 %v795_v44  ;;  %915 = vmatprep.subr.mxu1 %v797_v45  ;;  %v19765_v44 = vrot.slane %v89_v34, %v19683_v36 }
 0x133   :  { %845 = vmatpush1.msra.mxu0 %v794_v47  ;;  %916 = vmatpush1.msra.mxu1 %v796_v0 }
 0x134   :  { %846 = vmatprep.subr.mxu0 %v789_v60  ;;  %917 = vmatprep.subr.mxu1 %v791_v62  ;;  %23020 = vst [vmem:[#allocation20_spill] sm:$0xff] %v19765_v44 }
 0x135   :  { %847 = vmatpush1.msra.mxu0 %v788_v63  ;;  %918 = vmatpush1.msra.mxu1 %v790_v5 }
 0x136   :  { %982 = vmatprep.subr.mxu0 %v811_v35  ;;  %1067 = vmatprep.subr.mxu1 %v19557_v1 }
 0x1e3   :  { %v618_v38 = vpop.f32.mrf.mxu1  ;;  %v547_v41 = vpop.f32.mrf.mxu0 }
 0x1e4   :  { %v548_v0 = vadd.f32 %v547_v41, %v19765_v44  ;;  %v19772_v41 = vld [vmem:[#allocation2 + $0x198] ss:$0 sm:$0xff] }
 0x1e5   :  { %v17949_v43 = vpop.f32.mrf.mxu1  ;;  %v549_v45 = vpop.f32.mrf.mxu0 }
 0x1e6   :  { %v550_v1 = vadd.f32 %v549_v45, %v19769_v58 }
 0x1eb   :  { %v691_v47 = vpop.f32.mrf.mxu0 }
 0x1ec   :  { %v766_v60 = vadd.f32 %v691_v47, %v548_v0 }
 0x1ed   :  { %v762_v62 = vpop.f32.mrf.mxu1  ;;  %v693_v35 = vpop.f32.mrf.mxu0 }
 0x1ee   :  { %v17241_v63 = vmul.f32 -1.442695, %v766_v60  ;;  %v773_v55 = vadd.f32 %v693_v35, %v550_v1  ;;  %v780_v47 = vadd.f32 %v762_v62, %v19772_v41  ;;  %v799_v62 = vld [vmem:[#allocation4 + $0x58] sm:$0xff] }
 0x1ef   :  { %v17960_v5 = vpop.f32.mrf.mxu1 }
 0x1f0   :  { %18790 = vpow2.f32 %v17241_v63  ;;  %v17242_v43 = vmul.f32 -1.442695, %v773_v55  ;;  %v619_v5 = vadd.f32 %v618_v38, %v19775_v40  ;;  %v804_v38 = vld [vmem:[#allocation4 + $0x80] sm:$0xff] }
 0x1f2   :  { %18792 = vpow2.f32 %v17242_v43 }
 0x1fd   :  { %v18791_v36 = vpop.eup %18790 }
 0x1fe   :  { %v770_v53 = vadd.f32 1.0, %v18791_v36 }
 0x1ff   :  { %v18793_v54 = vpop.eup %18792 }
 0x200   :  { %18794 = vrcp.f32 %v770_v53  ;;  %v777_v0 = vadd.f32 1.0, %v18793_v54  ;;  %v810_v54 = vld [vmem:[#allocation4 + $0xb0] sm:$0xff] }
 0x202   :  { %18796 = vrcp.f32 %v777_v0  ;;  %v1035_v0 = vld [vmem:[%s22915_s0 + $0x8] sm:$0xff] }
 0x20d   :  { %v18795_v60 = vpop.eup %18794 }
 0x20e   :  { %v781_v45 = vmul.f32 %v18795_v60, %v780_v47  ;;  %v793_v47 = vld [vmem:[#allocation4 + $0x28] sm:$0xff]  ;;  %v23021_v60 = vmov 0.0  }
 0x20f   :  { %v18797_v55 = vpop.eup %18796 }
 0x210   :  { %v782_v1 = vadd.f32 %v781_v45, %v619_v5  ;;  %v784_v63 = vsub.f32 1.0, %v18797_v55  ;;  %v786_v53 = vmul.f32 %v18797_v55, %v19745_v56  ;;  %v798_v56 = vld [vmem:[#allocation4 + $0x50] sm:$0xff]  ;;  %v792_v5 = vld [vmem:[#allocation4 + $0x20] sm:$0xff] }
 0x212   :  { %18798 = vtanh.f32 %v782_v1 }
 0x21f   :  { %v18799_v36 = vpop.eup %18798 }
 0x220   :  { %v785_v35 = vmul.f32 %v18799_v36, %v784_v63 }
 0x222   :  { %v19780_v43 = vadd.f32 %v786_v53, %v785_v35 }
 0x224   :  { %v812_v34 = vmax.f32 %v19780_v43, 0.0 }
 0x226   :  { %17243 = vmatmul.mubr.msk.f32.vlgmr.msra.gmra.mxu0 %vm311_vm2, %v812_v34  ;;  %17244 = vmatmul.mubr.msk.f32.vlgmr.msra.gmra.mxu1 %vm311_vm2, %v812_v34 }
 0x227   :  { %983 = vmatpush1.msra.mxu0 %v810_v54  ;;  %1068 = vmatpush1.msra.mxu1 %v19559_v2 }
 0x228   :  { %984 = vmatprep.subr.mxu0 %v805_v57  ;;  %1069 = vmatprep.subr.mxu1 %v19561_v3 }
 0x229   :  { %985 = vmatpush1.msra.mxu0 %v804_v38  ;;  %1070 = vmatpush1.msra.mxu1 %v19564_v4 }
 0x22a   :  { %986 = vmatprep.subr.mxu0 %v799_v62  ;;  %1103 = vmatprep.mubr.f32.mxu1 %v23021_v60 }
 0x22b   :  { %17961 = vmatprep.subr.mxu1 %v23021_v60  ;;  %987 = vmatpush1.msra.mxu0 %v798_v56 }
 0x22c   :  { %17246 = vmatmul.mubr.msk.f32.vlgmr.msra.gmra.mxu1 %vm166_vm1, %v1035_v0  ;;  %988 = vmatprep.subr.mxu0 %v793_v47 }
 0x22d   :  { %17962 = vmatpush3.msra.mxu1 %v19578_v9  ;;  %989 = vmatpush1.msra.mxu0 %v792_v5 }
 0x22e   :  { %17963 = vmatprep.subr.mxu1 %v23021_v60  ;;  %1022 = vmatprep.mubr.f32.mxu0 %v23021_v60 }
 0x22f   :  { %17964 = vmatpush3.msra.mxu1 %v19588_v12  ;;  %17245 = vmatmul.mubr.msk.f32.vlgmr.msra.gmra.mxu0 %vm311_vm2, %v812_v34 }
 0x230   :  { %17965 = vmatprep.mubr.msk.f32.mxu1 %vm19513_vm0, %v23021_v60  ;;  %1204 = vmatprep.subr.mxu0 %v19570_v6 }
 0x231   :  { %17968 = vmatprep.subr.mxu1 %v23021_v60  ;;  %17966 = vmatmul.mubr.msk.f32.vlgmr.msra.gmra.mxu1 %vm166_vm1, %v1035_v0 }
 0x232   :  { %1205 = vmatpush1.msra.mxu0 %v19573_v7  ;;  %17969 = vmatpush3.msra.mxu1 %v19602_v16 }
 0x233   :  { %1206 = vmatprep.subr.mxu0 %v19576_v8  ;;  %17970 = vmatprep.subr.mxu1 %v23021_v60 }
 0x234   :  { %1207 = vmatpush1.msra.mxu0 %v19582_v10  ;;  %17971 = vmatpush3.msra.mxu1 %v19613_v18 }
 0x235   :  { %1208 = vmatprep.subr.mxu0 %v19585_v11  ;;  %17972 = vmatprep.subr.mxu1 %v23021_v60 }
 0x236   :  { %1209 = vmatpush1.msra.mxu0 %v19591_v13  ;;  %17973 = vmatpush3.msra.mxu1 %v19620_v19 }
 0x237   :  { %1210 = vmatprep.subr.mxu0 %v19595_v14  ;;  %17974 = vmatprep.subr.mxu1 %v23021_v60 }
 0x238   :  { %1211 = vmatpush1.msra.mxu0 %v19599_v15  ;;  %1244 = vmatprep.mubr.f32.mxu0 %v23021_v60 }
 0x239   :  { %17975 = vmatpush3.msra.mxu1 %v19626_v20  ;;  %17976 = vmatprep.mubr.msk.f32.mxu1 %vm19513_vm0, %v23021_v60 }
 0x23a   :  { %17248 = vmatmul.mubr.msk.f32.vlgmr.msra.gmra.mxu0 %vm311_vm2, %v19707_v48  ;;  %17977 = vmatmul.mubr.msk.f32.vlgmr.msra.gmra.mxu1 %vm311_vm2, %v19707_v48 }
 0x23b   :  { %1370 = vmatprep.subr.mxu0 %v19637_v21  ;;  %17979 = vmatprep.subr.mxu1 %v23021_v60 }
 0x23c   :  { %1371 = vmatpush1.msra.mxu0 %v19639_v22  ;;  %17980 = vmatpush3.msra.mxu1 %v19644_v24 }
 0x23d   :  { %1372 = vmatprep.subr.mxu0 %v19641_v23  ;;  %17981 = vmatprep.subr.mxu1 %v23021_v60 }
 0x23e   :  { %1373 = vmatpush1.msra.mxu0 %v19646_v25  ;;  %17982 = vmatpush3.msra.mxu1 %v19652_v27 }
 0x23f   :  { %1374 = vmatprep.subr.mxu0 %v19650_v26  ;;  %17983 = vmatprep.subr.mxu1 %v23021_v60 }
 0x240   :  { %1375 = vmatpush1.msra.mxu0 %v19656_v28  ;;  %17984 = vmatpush3.msra.mxu1 %v19658_v29 }
 0x241   :  { %1376 = vmatprep.subr.mxu0 %v19662_v30  ;;  %17985 = vmatprep.subr.mxu1 %v23021_v60 }
 0x242   :  { %1377 = vmatpush1.msra.mxu0 %v19666_v31  ;;  %17986 = vmatpush3.msra.mxu1 %v19668_v32 }
 0x243   :  { %1410 = vmatprep.mubr.f32.mxu0 %v23021_v60  ;;  %17987 = vmatprep.mubr.msk.f32.mxu1 %vm19513_vm0, %v23021_v60 }
 0x244   :  { %1514 = vmatprep.subr.mxu0 %v19672_v33  ;;  %17990 = vmatprep.subr.mxu1 %v23021_v60 }
 0x2e6   :  { %v19846_v57 = vpop.f32.mrf.mxu1  ;;  %v19850_v55 = vpop.f32.mrf.mxu0 }
 0x2e7   :  { %23022 = vst [vmem:[#allocation21_spill] sm:$0xff] %v19846_v57  ;;  %23024 = vst [vmem:[#allocation23_spill] sm:$0xff] %v19850_v55 }
 0x2e8   :  { %v19848_v45 = vpop.f32.mrf.mxu1  ;;  %v19852_v53 = vpop.f32.mrf.mxu0 }
 0x2e9   :  { %23023 = vst [vmem:[#allocation22_spill] sm:$0xff] %v19848_v45  ;;  %23025 = vst [vmem:[#allocation24_spill] sm:$0xff] %v19852_v53 }
 0x2ec   :  { %v1105_v1 = vpop.f32.mrf.mxu1 }
 0x2ed   :  { %v1106_v54 = vadd.f32 %v1105_v1, %v19686_v39 }
 0x2ee   :  { %v1107_v63 = vpop.f32.mrf.mxu1 }
 0x2ef   :  { %v19854_v34 = vpop.f32.mrf.mxu0  ;;  %v1108_v57 = vadd.f32 %v1107_v63, %v19693_v46 }
 0x2f0   :  { %23026 = vst [vmem:[#allocation25_spill] sm:$0xff] %v19854_v34 }
 0x2f1   :  { %v1176_v36 = vpop.f32.mrf.mxu1  ;;  %v19857_v38 = vpop.f32.mrf.mxu0 }
 0x2f2   :  { %23027 = vst [vmem:[#allocation26_spill] sm:$0xff] %v19857_v38  ;;  %v1177_v39 = vadd.f32 %v1176_v36, %v19702_v61  ;;  %v1672_v36 = vld [vmem:[#allocation4 + $0x158] sm:$0xff] }
 0x2f3   :  { %v17967_v35 = vpop.f32.mrf.mxu1 }
 0x2fa   :  { %v1246_v62 = vpop.f32.mrf.mxu0  ;;  %v1317_v56 = vpop.f32.mrf.mxu1 }
 0x2fb   :  { %v1321_v0 = vadd.f32 %v1246_v62, %v1106_v54  ;;  %v1335_v1 = vadd.f32 %v1317_v56, %v19699_v59  ;;  %v1666_v56 = vld [vmem:[#allocation4 + $0x128] sm:$0xff] }
 0x2fc   :  { %v17978_v47 = vpop.f32.mrf.mxu1  ;;  %v1248_v45 = vpop.f32.mrf.mxu0 }
 0x2fd   :  { %v17250_v5 = vmul.f32 -1.442695, %v1321_v0  ;;  %v1328_v55 = vadd.f32 %v1248_v45, %v1108_v57 }
 0x2ff   :  { %18800 = vpow2.f32 %v17250_v5  ;;  %v17251_v33 = vmul.f32 -1.442695, %v1328_v55  ;;  %v23031_v55 = vld [vmem:[#allocation19_spill] sm:$0xff] }
 0x300   :  { %v1668_v5 = vld [vmem:[#allocation4 + $0x138] sm:$0xff] }
 0x301   :  { %18802 = vpow2.f32 %v17251_v33 }
 0x30c   :  { %v18801_v53 = vpop.eup %18800 }
 0x30d   :  { %v1325_v35 = vadd.f32 1.0, %v18801_v53  ;;  %v1674_v53 = vld [vmem:[#allocation4 + $0x168] sm:$0xff] }
 0x30e   :  { %v18803_v34 = vpop.eup %18802 }
 0x30f   :  { %18804 = vrcp.f32 %v1325_v35  ;;  %v1332_v32 = vadd.f32 1.0, %v18803_v34  ;;  %v1671_v34 = vld [vmem:[#allocation4 + $0x150] sm:$0xff]  ;;  %v1665_v35 = vld [vmem:[#allocation4 + $0x120] sm:$0xff] }
 0x311   :  { %18806 = vrcp.f32 %v1332_v32  ;;  %v23028_v32 = vld [vmem:[#allocation17_spill] sm:$0xff] }
 0x31c   :  { %v18805_v38 = vpop.eup %18804 }
 0x31d   :  { %v1336_v54 = vmul.f32 %v18805_v38, %v1335_v1  ;;  %v1673_v38 = vld [vmem:[#allocation4 + $0x160] sm:$0xff]  ;;  %v1667_v1 = vld [vmem:[#allocation4 + $0x130] sm:$0xff] }
 0x31e   :  { %v18807_v0 = vpop.eup %18806 }
 0x31f   :  { %v1337_v62 = vadd.f32 %v1336_v54, %v1177_v39  ;;  %v1339_v63 = vsub.f32 1.0, %v18807_v0  ;;  %v1341_v33 = vmul.f32 %v18807_v0, %v19707_v48  ;;  %v23029_v39 = vld [vmem:[#allocation16_spill] sm:$0xff]  ;;  %v23030_v48 = vld [vmem:[#allocation18_spill] sm:$0xff]  ;;  %v1660_v54 = vld [vmem:[#allocation4 + $0xf8] sm:$0xff] }
 0x320   :  { %v1659_v0 = vld [vmem:[#allocation4 + $0xf0] sm:$0xff] }
 0x321   :  { %18808 = vtanh.f32 %v1337_v62  ;;  %v1662_v62 = vld [vmem:[#allocation4 + $0x108] sm:$0xff] }
 0x32e   :  { %v18809_v47 = vpop.eup %18808 }
 0x32f   :  { %v1340_v57 = vmul.f32 %v18809_v47, %v1339_v63  ;;  %v1661_v63 = vld [vmem:[#allocation4 + $0x100] sm:$0xff]  ;;  %v1654_v47 = vld [vmem:[#allocation4 + $0xc8] sm:$0xff] }
 0x331   :  { %v19863_v45 = vadd.f32 %v1341_v33, %v1340_v57  ;;  %v1656_v57 = vld [vmem:[#allocation4 + $0xd8] sm:$0xff]  ;;  %v1653_v33 = vld [vmem:[#allocation4 + $0xc0] sm:$0xff] }
 0x333   :  { %17252 = vmatmul.mubr.msk.f32.vlgmr.msra.gmra.mxu0 %vm311_vm2, %v19863_v45  ;;  %17988 = vmatmul.mubr.msk.f32.vlgmr.msra.gmra.mxu1 %vm311_vm2, %v19863_v45 }
 0x334   :  { %1515 = vmatpush1.msra.mxu0 %v19709_v49  ;;  %17991 = vmatpush3.msra.mxu1 %v19713_v50 }
 0x335   :  { %1516 = vmatprep.subr.mxu0 %v19711_v37  ;;  %17992 = vmatprep.subr.mxu1 %v23021_v60 }
 0x336   :  { %1517 = vmatpush1.msra.mxu0 %v19719_v42  ;;  %17993 = vmatpush3.msra.mxu1 %v19725_v17 }
 0x337   :  { %1518 = vmatprep.subr.mxu0 %v19722_v51  ;;  %17994 = vmatprep.subr.mxu1 %v23021_v60 }
 0x338   :  { %1519 = vmatpush1.msra.mxu0 %v19728_v52  ;;  %17995 = vmatpush3.msra.mxu1 %v23028_v32 }
 0x339   :  { %1520 = vmatprep.subr.mxu0 %v23029_v39  ;;  %17996 = vmatprep.subr.mxu1 %v23021_v60 }
 0x33a   :  { %1521 = vmatpush1.msra.mxu0 %v23030_v48  ;;  %1554 = vmatprep.mubr.f32.mxu0 %v23021_v60 }
 0x33b   :  { %17997 = vmatpush3.msra.mxu1 %v23031_v55  ;;  %17998 = vmatprep.mubr.msk.f32.mxu1 %vm19513_vm0, %v23021_v60 }
 0x33c   :  { %17254 = vmatmul.mubr.msk.f32.vlgmr.msra.gmra.mxu0 %vm311_vm2, %v19780_v43  ;;  %17999 = vmatmul.mubr.msk.f32.vlgmr.msra.gmra.mxu1 %vm311_vm2, %v19780_v43 }
 0x33d   :  { %1745 = vmatprep.mubr.f32.mxu0 %v23021_v60  ;;  %1816 = vmatprep.mubr.f32.mxu1 %v23021_v60 }
 0x33e   :  { %1705 = vmatprep.subr.mxu0 %v1672_v36  ;;  %1776 = vmatprep.subr.mxu1 %v1674_v53  ;;  %v1655_v36 = vld [vmem:[#allocation4 + $0xd0] sm:$0xff]  ;;  %v1676_v53 = vld [vmem:[#allocation4 + $0x178] sm:$0xff] }
 0x33f   :  { %1706 = vmatpush1.msra.mxu0 %v1671_v34  ;;  %1777 = vmatpush1.msra.mxu1 %v1673_v38  ;;  %v23032_v34 = vld [vmem:[#allocation8_spill] sm:$0xff] }
 0x340   :  { %1707 = vmatprep.subr.mxu0 %v1666_v56  ;;  %1778 = vmatprep.subr.mxu1 %v1668_v5 }
 0x341   :  { %1708 = vmatpush1.msra.mxu0 %v1665_v35  ;;  %1779 = vmatpush1.msra.mxu1 %v1667_v1 }
 0x342   :  { %1709 = vmatprep.subr.mxu0 %v1660_v54  ;;  %1780 = vmatprep.subr.mxu1 %v1662_v62 }
 0x343   :  { %1710 = vmatpush1.msra.mxu0 %v1659_v0  ;;  %1781 = vmatpush1.msra.mxu1 %v1661_v63 }
 0x344   :  { %1711 = vmatprep.subr.mxu0 %v1654_v47  ;;  %1782 = vmatprep.subr.mxu1 %v1656_v57 }
 0x345   :  { %1712 = vmatpush1.msra.mxu0 %v1653_v33  ;;  %1783 = vmatpush1.msra.mxu1 %v1655_v36 }
 0x346   :  { %1847 = vmatprep.subr.mxu0 %v1676_v53  ;;  %1932 = vmatprep.subr.mxu1 %v23032_v34 }
 0x3f3   :  { %v1483_v38 = vpop.f32.mrf.mxu1  ;;  %v1412_v5 = vpop.f32.mrf.mxu0 }
 0x3f4   :  { %v1413_v1 = vadd.f32 %v1412_v5, %v19765_v44  ;;  %v1484_v44 = vadd.f32 %v1483_v38, %v19775_v40  ;;  %v1900_v38 = vld [vmem:[%s22915_s0 + $0x10] sm:$0xff] }
 0x3f5   :  { %v17989_v56 = vpop.f32.mrf.mxu1  ;;  %v1414_v35 = vpop.f32.mrf.mxu0 }
 0x3f6   :  { %v1415_v47 = vadd.f32 %v1414_v35, %v19769_v58 }
 0x3fc   :  { %v1556_v54 = vpop.f32.mrf.mxu0  ;;  %v1627_v62 = vpop.f32.mrf.mxu1 }
 0x3fd   :  { %v1631_v55 = vadd.f32 %v1556_v54, %v1413_v1  ;;  %v1645_v39 = vadd.f32 %v1627_v62, %v19772_v41  ;;  %v1658_v62 = vld [vmem:[#allocation4 + $0xe8] sm:$0xff] }
 0x3fe   :  { %v18000_v48 = vpop.f32.mrf.mxu1  ;;  %v1558_v63 = vpop.f32.mrf.mxu0 }
 0x3ff   :  { %v17256_v0 = vmul.f32 -1.442695, %v1631_v55  ;;  %v1638_v57 = vadd.f32 %v1558_v63, %v1415_v47 }
 0x401   :  { %18810 = vpow2.f32 %v17256_v0  ;;  %v17257_v33 = vmul.f32 -1.442695, %v1638_v57 }
 0x403   :  { %18812 = vpow2.f32 %v17257_v33  ;;  %v1675_v33 = vld [vmem:[#allocation4 + $0x170] sm:$0xff] }
 0x40e   :  { %v18811_v36 = vpop.eup %18810 }
 0x40f   :  { %v1635_v53 = vadd.f32 1.0, %v18811_v36  ;;  %v1670_v36 = vld [vmem:[#allocation4 + $0x148] sm:$0xff] }
 0x410   :  { %v18813_v34 = vpop.eup %18812 }
 0x411   :  { %18814 = vrcp.f32 %v1635_v53  ;;  %v1642_v56 = vadd.f32 1.0, %v18813_v34  ;;  %v1657_v53 = vld [vmem:[#allocation4 + $0xe0] sm:$0xff] }
 0x413   :  { %18816 = vrcp.f32 %v1642_v56 }
 0x41e   :  { %v18815_v5 = vpop.eup %18814 }
 0x41f   :  { %v1646_v1 = vmul.f32 %v18815_v5, %v1645_v39  ;;  %v1669_v39 = vld [vmem:[#allocation4 + $0x140] sm:$0xff]  ;;  %v23044_v5 = vld [vmem:[#allocation13_spill] sm:$0xff] }
 0x420   :  { %v18817_v55 = vpop.eup %18816 }
 0x421   :  { %v1647_v48 = vadd.f32 %v1646_v1, %v1484_v44  ;;  %v1649_v35 = vsub.f32 1.0, %v18817_v55  ;;  %v1651_v0 = vmul.f32 %v18817_v55, %v19780_v43  ;;  %v1664_v44 = vld [vmem:[#allocation4 + $0x118] sm:$0xff]  ;;  %v1663_v43 = vld [vmem:[#allocation4 + $0x110] sm:$0xff] }
 0x423   :  { %18818 = vtanh.f32 %v1647_v48 }
 0x430   :  { %v18819_v54 = vpop.eup %18818 }
 0x431   :  { %v1650_v63 = vmul.f32 %v18819_v54, %v1649_v35 }
 0x433   :  { %v19898_v47 = vadd.f32 %v1651_v0, %v1650_v63 }
 0x435   :  { %v1677_v57 = vmax.f32 %v19898_v47, 0.0 }
 0x437   :  { %17258 = vmatmul.mubr.msk.f32.vlgmr.msra.gmra.mxu0 %vm311_vm2, %v1677_v57  ;;  %17259 = vmatmul.mubr.msk.f32.vlgmr.msra.gmra.mxu1 %vm311_vm2, %v1677_v57 }
 0x438   :  { %1848 = vmatpush1.msra.mxu0 %v1675_v33  ;;  %1933 = vmatpush1.msra.mxu1 %v19559_v2  ;;  %v23033_v2 = vld [vmem:[#allocation9_spill] sm:$0xff] }
 0x439   :  { %1849 = vmatprep.subr.mxu0 %v1670_v36  ;;  %1934 = vmatprep.subr.mxu1 %v19561_v3  ;;  %v23034_v3 = vld [vmem:[#allocation10_spill] sm:$0xff] }
 0x43a   :  { %1850 = vmatpush1.msra.mxu0 %v1669_v39  ;;  %1935 = vmatpush1.msra.mxu1 %v19564_v4  ;;  %v131_v4 = vld [vmem:[#allocation4 + $0x600] ss:$8 sm:$0xf] }
 0x43b   :  { %1851 = vmatprep.subr.mxu0 %v1664_v44  ;;  %1968 = vmatprep.mubr.f32.mxu1 %v23021_v60 }
 0x43c   :  { %18001 = vmatprep.subr.mxu1 %v23021_v60  ;;  %1852 = vmatpush1.msra.mxu0 %v1663_v43 }
 0x43d   :  { %17261 = vmatmul.mubr.msk.f32.vlgmr.msra.gmra.mxu1 %vm166_vm1, %v1900_v38  ;;  %1853 = vmatprep.subr.mxu0 %v1658_v62 }
 0x43e   :  { %18002 = vmatpush3.msra.mxu1 %v19578_v9  ;;  %1854 = vmatpush1.msra.mxu0 %v1657_v53 }
 0x43f   :  { %18003 = vmatprep.subr.mxu1 %v23021_v60  ;;  %1887 = vmatprep.mubr.f32.mxu0 %v23021_v60 }
 0x440   :  { %18004 = vmatpush3.msra.mxu1 %v19588_v12  ;;  %17260 = vmatmul.mubr.msk.f32.vlgmr.msra.gmra.mxu0 %vm311_vm2, %v1677_v57  ;;  %v23038_v12 = vld [vmem:[#allocation23_spill] sm:$0xff] }
 0x441   :  { %18005 = vmatprep.mubr.msk.f32.mxu1 %vm19513_vm0, %v23021_v60  ;;  %2069 = vmatprep.subr.mxu0 %v19570_v6  ;;  %v132_v6 = vld [vmem:[#allocation4 + $0x600] ss:$8 sm:$0x30] }
 0x442   :  { %18008 = vmatprep.subr.mxu1 %v23021_v60  ;;  %18006 = vmatmul.mubr.msk.f32.vlgmr.msra.gmra.mxu1 %vm166_vm1, %v1900_v38 }
 0x443   :  { %2070 = vmatpush1.msra.mxu0 %v19573_v7  ;;  %18009 = vmatpush3.msra.mxu1 %v19602_v16  ;;  %v19964_v7 = vor.u32 %v132_v6, %v131_v4  ;;  %v23040_v16 = vld [vmem:[#allocation11_spill] sm:$0xff] }
 0x444   :  { %2071 = vmatprep.subr.mxu0 %v19576_v8  ;;  %18010 = vmatprep.subr.mxu1 %v23021_v60  ;;  %v23036_v8 = vld [vmem:[#allocation12_spill] sm:$0xff] }
 0x445   :  { %2072 = vmatpush1.msra.mxu0 %v19582_v10  ;;  %18011 = vmatpush3.msra.mxu1 %v19613_v18  ;;  %23035 = vst [vmem:[#allocation17_spill] sm:$0xff] %v19964_v7  ;;  %v138_v9 = vrot.slane %v19964_v7, %v23036_v8  ;;  %v23037_v10 = vld [vmem:[#allocation15_spill] sm:$0xff]  ;;  %v22946_v18 = vsub.s32 4, %v23040_v16 }
 0x446   :  { %2073 = vmatprep.subr.mxu0 %v19585_v11  ;;  %18012 = vmatprep.subr.mxu1 %v23021_v60  ;;  %v146_v11 = vrot.slane %v19964_v7, %v23037_v10  ;;  %v3397_v10 = vld [vmem:[#allocation4 + $0x2b0] sm:$0xff]  ;;  %v3390_v8 = vld [vmem:[#allocation4 + $0x278] sm:$0xff] }
 0x447   :  { %2074 = vmatpush1.msra.mxu0 %v19591_v13  ;;  %18013 = vmatpush3.msra.mxu1 %v19620_v19  ;;  %v1029_v13 = vadd.f32 %v23038_v12, %v138_v9 }
 0x448   :  { %2075 = vmatprep.subr.mxu0 %v19595_v14  ;;  %18014 = vmatprep.subr.mxu1 %v23021_v60  ;;  %v23039_v14 = vld [vmem:[#allocation21_spill] sm:$0xff] }
 0x449   :  { %2076 = vmatpush1.msra.mxu0 %v19599_v15  ;;  %2109 = vmatprep.mubr.f32.mxu0 %v23021_v60  ;;  %v1031_v15 = vadd.f32 %v23039_v14, %v146_v11 }
 0x44a   :  { %18015 = vmatpush3.msra.mxu1 %v19626_v20  ;;  %18016 = vmatprep.mubr.msk.f32.mxu1 %vm19513_vm0, %v23021_v60 }
 0x44b   :  { %17263 = vmatmul.mubr.msk.f32.vlgmr.msra.gmra.mxu0 %vm311_vm2, %v19863_v45  ;;  %18017 = vmatmul.mubr.msk.f32.vlgmr.msra.gmra.mxu1 %vm311_vm2, %v19863_v45 }
 0x44c   :  { %2235 = vmatprep.subr.mxu0 %v19637_v21  ;;  %18019 = vmatprep.subr.mxu1 %v23021_v60 }
 0x44d   :  { %2236 = vmatpush1.msra.mxu0 %v19639_v22  ;;  %18020 = vmatpush3.msra.mxu1 %v19644_v24 }
 0x44e   :  { %2237 = vmatprep.subr.mxu0 %v19641_v23  ;;  %18021 = vmatprep.subr.mxu1 %v23021_v60  ;;  %v154_v23 = vrot.slane %v19964_v7, %v22946_v18 }
 0x44f   :  { %2238 = vmatpush1.msra.mxu0 %v19646_v25  ;;  %18022 = vmatpush3.msra.mxu1 %v19652_v27  ;;  %v23043_v27 = vld [vmem:[#allocation25_spill] sm:$0xff] }
 0x450   :  { %2239 = vmatprep.subr.mxu0 %v19650_v26  ;;  %18023 = vmatprep.subr.mxu1 %v23021_v60 }
 0x451   :  { %2240 = vmatpush1.msra.mxu0 %v19656_v28  ;;  %18024 = vmatpush3.msra.mxu1 %v19658_v29  ;;  %v1033_v28 = vadd.f32 %v23043_v27, %v154_v23  ;;  %v2527_v23 = vld [vmem:[#allocation4 + $0x1c8] sm:$0xff]  ;;  %v2526_v27 = vld [vmem:[#allocation4 + $0x1c0] sm:$0xff] }
 0x452   :  { %2241 = vmatprep.subr.mxu0 %v19662_v30  ;;  %18025 = vmatprep.subr.mxu1 %v23021_v60 }
 0x453   :  { %2242 = vmatpush1.msra.mxu0 %v19666_v31  ;;  %18026 = vmatpush3.msra.mxu1 %v23033_v2 }
 0x454   :  { %2275 = vmatprep.mubr.f32.mxu0 %v23021_v60  ;;  %18027 = vmatprep.mubr.msk.f32.mxu1 %vm19513_vm0, %v23021_v60 }
 0x455   :  { %2379 = vmatprep.subr.mxu0 %v23034_v3  ;;  %18030 = vmatprep.subr.mxu1 %v23021_v60 }
 0x4f7   :  { %v1747_v19 = vpop.f32.mrf.mxu0  ;;  %v1818_v20 = vpop.f32.mrf.mxu1 }
 0x4f8   :  { %v19973_v21 = vadd.f32 %v1747_v19, %v1029_v13  ;;  %v19975_v22 = vadd.f32 %v1818_v20, %v1031_v15  ;;  %v2532_v19 = vld [vmem:[#allocation4 + $0x1f0] sm:$0xff]  ;;  %v2525_v20 = vld [vmem:[#allocation4 + $0x1b8] sm:$0xff] }
 0x4f9   :  { %v19980_v24 = vpop.f32.mrf.mxu1  ;;  %v19982_v26 = vpop.f32.mrf.mxu0 }
 0x4fa   :  { %23041 = vst [vmem:[#allocation8_spill] sm:$0xff] %v19980_v24  ;;  %23042 = vst [vmem:[#allocation9_spill] sm:$0xff] %v19982_v26 }
 0x4fd   :  { %v1970_v25 = vpop.f32.mrf.mxu1 }
 0x4fe   :  { %v1971_v1 = vadd.f32 %v1970_v25, %v23044_v5  ;;  %v2524_v25 = vld [vmem:[#allocation4 + $0x1b0] sm:$0xff] }
 0x4ff   :  { %v1972_v29 = vpop.f32.mrf.mxu1 }
 0x500   :  { %v1889_v30 = vpop.f32.mrf.mxu0  ;;  %v1973_v33 = vadd.f32 %v1972_v29, %v19693_v46  ;;  %v2521_v29 = vld [vmem:[#allocation4 + $0x198] sm:$0xff] }
 0x501   :  { %v19985_v31 = vadd.f32 %v1889_v30, %v1033_v28  ;;  %v2519_v28 = vld [vmem:[#allocation4 + $0x188] sm:$0xff]  ;;  %v2518_v30 = vld [vmem:[#allocation4 + $0x180] sm:$0xff] }
 0x502   :  { %v2041_v34 = vpop.f32.mrf.mxu1  ;;  %v19988_v48 = vpop.f32.mrf.mxu0 }
 0x503   :  { %23045 = vst [vmem:[#allocation10_spill] sm:$0xff] %v19988_v48  ;;  %v2042_v3 = vadd.f32 %v2041_v34, %v19702_v61  ;;  %v2520_v34 = vld [vmem:[#allocation4 + $0x190] sm:$0xff] }
 0x504   :  { %v18007_v56 = vpop.f32.mrf.mxu1 }
 0x505   :  { %v2541_v56 = vld [vmem:[#allocation4 + $0x238] sm:$0xff] }
 0x50b   :  { %v2111_v55 = vpop.f32.mrf.mxu0  ;;  %v2182_v35 = vpop.f32.mrf.mxu1 }
 0x50c   :  { %v2186_v54 = vadd.f32 %v2111_v55, %v1971_v1  ;;  %v2200_v53 = vadd.f32 %v2182_v35, %v19699_v59  ;;  %v23046_v59 = vld [vmem:[#allocation16_spill] sm:$0xff]  ;;  %v20023_v1 = vld [vmem:[#allocation2 + $0x20] sm:$0xff] }
 0x50d   :  { %v18018_v0 = vpop.f32.mrf.mxu1  ;;  %v2113_v57 = vpop.f32.mrf.mxu0  ;;  %23049 = vst [vmem:[#allocation23_spill] sm:$0xff] %v20023_v1 }
 0x50e   :  { %v17265_v63 = vmul.f32 -1.442695, %v2186_v54  ;;  %v2193_v36 = vadd.f32 %v2113_v57, %v1973_v33 }
 0x510   :  { %18820 = vpow2.f32 %v17265_v63  ;;  %v17266_v39 = vmul.f32 -1.442695, %v2193_v36  ;;  %v23050_v63 = vld [vmem:[#allocation20_spill] sm:$0xff] }
 0x512   :  { %18822 = vpow2.f32 %v17266_v39 }
 0x51d   :  { %v18821_v44 = vpop.eup %18820 }
 0x51e   :  { %v2190_v43 = vadd.f32 1.0, %v18821_v44 }
 0x51f   :  { %v18823_v38 = vpop.eup %18822 }
 0x520   :  { %18824 = vrcp.f32 %v2190_v43  ;;  %v2197_v62 = vadd.f32 1.0, %v18823_v38 }
 0x522   :  { %18826 = vrcp.f32 %v2197_v62 }
 0x52d   :  { %v18825_v2 = vpop.eup %18824 }
 0x52e   :  { %v2201_v4 = vmul.f32 %v18825_v2, %v2200_v53 }
 0x52f   :  { %v18827_v9 = vpop.eup %18826 }
 0x530   :  { %v2202_v6 = vadd.f32 %v2201_v4, %v2042_v3  ;;  %v2204_v11 = vsub.f32 1.0, %v18827_v9  ;;  %v2206_v14 = vmul.f32 %v18827_v9, %v19863_v45  ;;  %v2533_v45 = vld [vmem:[#allocation4 + $0x1f8] sm:$0xff] }
 0x532   :  { %18828 = vtanh.f32 %v2202_v6 }
 0x53f   :  { %v18829_v12 = vpop.eup %18828 }
 0x540   :  { %v2205_v13 = vmul.f32 %v18829_v12, %v2204_v11 }
 0x542   :  { %v19994_v15 = vadd.f32 %v2206_v14, %v2205_v13 }
 0x544   :  { %17267 = vmatmul.mubr.msk.f32.vlgmr.msra.gmra.mxu0 %vm311_vm2, %v19994_v15  ;;  %18028 = vmatmul.mubr.msk.f32.vlgmr.msra.gmra.mxu1 %vm311_vm2, %v19994_v15 }
 0x545   :  { %2380 = vmatpush1.msra.mxu0 %v19709_v49  ;;  %18031 = vmatpush3.msra.mxu1 %v19713_v50  ;;  %v23047_v49 = vld [vmem:[#allocation18_spill] sm:$0xff]  ;;  %v2537_v50 = vld [vmem:[#allocation4 + $0x218] sm:$0xff] }
 0x546   :  { %2381 = vmatprep.subr.mxu0 %v19711_v37  ;;  %18032 = vmatprep.subr.mxu1 %v23021_v60  ;;  %v23048_v37 = vld [vmem:[#allocation19_spill] sm:$0xff] }
 0x547   :  { %2382 = vmatpush1.msra.mxu0 %v19719_v42  ;;  %18033 = vmatpush3.msra.mxu1 %v19725_v17  ;;  %v2539_v42 = vld [vmem:[#allocation4 + $0x228] sm:$0xff]  ;;  %v2538_v17 = vld [vmem:[#allocation4 + $0x220] sm:$0xff] }
 0x548   :  { %2383 = vmatprep.subr.mxu0 %v19722_v51  ;;  %18034 = vmatprep.subr.mxu1 %v23021_v60  ;;  %v2536_v51 = vld [vmem:[#allocation4 + $0x210] sm:$0xff] }
 0x549   :  { %2384 = vmatpush1.msra.mxu0 %v19728_v52  ;;  %18035 = vmatpush3.msra.mxu1 %v23028_v32  ;;  %v2531_v52 = vld [vmem:[#allocation4 + $0x1e8] sm:$0xff]  ;;  %v2530_v32 = vld [vmem:[#allocation4 + $0x1e0] sm:$0xff] }
 0x54a   :  { %2385 = vmatprep.subr.mxu0 %v23046_v59  ;;  %18036 = vmatprep.subr.mxu1 %v23021_v60 }
 0x54b   :  { %2386 = vmatpush1.msra.mxu0 %v23047_v49  ;;  %2419 = vmatprep.mubr.f32.mxu0 %v23021_v60 }
 0x54c   :  { %18037 = vmatpush3.msra.mxu1 %v23048_v37  ;;  %18038 = vmatprep.mubr.msk.f32.mxu1 %vm19513_vm0, %v23021_v60 }
 0x54d   :  { %17269 = vmatmul.mubr.msk.f32.vlgmr.msra.gmra.mxu0 %vm311_vm2, %v19898_v47  ;;  %18039 = vmatmul.mubr.msk.f32.vlgmr.msra.gmra.mxu1 %vm311_vm2, %v19898_v47 }
 0x54e   :  { %2610 = vmatprep.mubr.f32.mxu0 %v23021_v60  ;;  %2681 = vmatprep.mubr.f32.mxu1 %v23021_v60 }
 0x54f   :  { %2570 = vmatprep.subr.mxu0 %v2537_v50  ;;  %2641 = vmatprep.subr.mxu1 %v2539_v42 }
 0x550   :  { %2571 = vmatpush1.msra.mxu0 %v2536_v51  ;;  %2642 = vmatpush1.msra.mxu1 %v2538_v17 }
 0x551   :  { %2572 = vmatprep.subr.mxu0 %v2531_v52  ;;  %2643 = vmatprep.subr.mxu1 %v2533_v45  ;;  %v2540_v45 = vld [vmem:[#allocation4 + $0x230] sm:$0xff] }
 0x552   :  { %2573 = vmatpush1.msra.mxu0 %v2530_v32  ;;  %2644 = vmatpush1.msra.mxu1 %v2532_v19  ;;  %v2535_v32 = vld [vmem:[#allocation4 + $0x208] sm:$0xff]  ;;  %v20036_v19 = vld [vmem:[#allocation2 + $0x18] sm:$0xff] }
 0x553   :  { %2574 = vmatprep.subr.mxu0 %v2525_v20  ;;  %2645 = vmatprep.subr.mxu1 %v2527_v23  ;;  %v2529_v20 = vld [vmem:[#allocation4 + $0x1d8] sm:$0xff]  ;;  %v2528_v23 = vld [vmem:[#allocation4 + $0x1d0] sm:$0xff] }
 0x554   :  { %2575 = vmatpush1.msra.mxu0 %v2524_v25  ;;  %2646 = vmatpush1.msra.mxu1 %v2526_v27  ;;  %v20042_v25 = vld [vmem:[#allocation2] sm:$0xff]  ;;  %v2765_v27 = vld [vmem:[%s22915_s0 + $0x18] sm:$0xff] }
 0x555   :  { %2576 = vmatprep.subr.mxu0 %v2519_v28  ;;  %2647 = vmatprep.subr.mxu1 %v2521_v29  ;;  %v2523_v28 = vld [vmem:[#allocation4 + $0x1a8] sm:$0xff]  ;;  %v2522_v29 = vld [vmem:[#allocation4 + $0x1a0] sm:$0xff] }
 0x556   :  { %2577 = vmatpush1.msra.mxu0 %v2518_v30  ;;  %2648 = vmatpush1.msra.mxu1 %v2520_v34  ;;  %v20051_v30 = vld [vmem:[#allocation2 + $0x28] sm:$0xff]  ;;  %v20056_v34 = vld [vmem:[#allocation2 + $0x10] sm:$0xff] }
 0x557   :  { %2712 = vmatprep.subr.mxu0 %v2541_v56  ;;  %2797 = vmatprep.subr.mxu1 %v20023_v1  ;;  %v20062_v56 = vld [vmem:[#allocation2 + $0x80] sm:$0xff] }
 0x604   :  { %v2348_v55 = vpop.f32.mrf.mxu1  ;;  %v2277_v54 = vpop.f32.mrf.mxu0 }
 0x605   :  { %v2278_v57 = vadd.f32 %v2277_v54, %v23050_v63  ;;  %v2349_v13 = vadd.f32 %v2348_v55, %v19775_v40  ;;  %v20067_v55 = vld [vmem:[#allocation2 + $0x78] sm:$0xff]  ;;  %v20073_v54 = vld [vmem:[#allocation2 + $0x68] sm:$0xff] }
 0x606   :  { %v18029_v35 = vpop.f32.mrf.mxu1  ;;  %v2279_v0 = vpop.f32.mrf.mxu0 }
 0x607   :  { %v2280_v62 = vadd.f32 %v2279_v0, %v19769_v58  ;;  %v20070_v35 = vld [vmem:[#allocation2 + $0x88] sm:$0xff]  ;;  %v20077_v0 = vld [vmem:[#allocation2 + $0x60] sm:$0xff] }
 0x60d   :  { %v2421_v33 = vpop.f32.mrf.mxu0  ;;  %v2492_v36 = vpop.f32.mrf.mxu1 }
 0x60e   :  { %v2496_v39 = vadd.f32 %v2421_v33, %v2278_v57  ;;  %v2510_v11 = vadd.f32 %v2492_v36, %v19772_v41  ;;  %v2534_v41 = vld [vmem:[#allocation4 + $0x200] sm:$0xff]  ;;  %v20080_v57 = vld [vmem:[#allocation2 + $0x70] sm:$0xff]  ;;  %v20087_v36 = vld [vmem:[#allocation2 + $0x48] sm:$0xff] }
 0x60f   :  { %v18040_v44 = vpop.f32.mrf.mxu1  ;;  %v2423_v38 = vpop.f32.mrf.mxu0  ;;  %v20083_v33 = vld [vmem:[#allocation2 + $0x50] sm:$0xff] }
 0x610   :  { %v17271_v43 = vmul.f32 -1.442695, %v2496_v39  ;;  %v2503_v53 = vadd.f32 %v2423_v38, %v2280_v62  ;;  %v20090_v39 = vld [vmem:[#allocation2 + $0x58] sm:$0xff]  ;;  %v20101_v38 = vld [vmem:[#allocation2 + $0x40] sm:$0xff]  ;;  %v20110_v62 = vld [vmem:[#allocation2 + $0x110] sm:$0xff] }
 0x611   :  { %v20093_v44 = vld [vmem:[#allocation2 + $0x38] sm:$0xff] }
 0x612   :  { %18830 = vpow2.f32 %v17271_v43  ;;  %v17272_v2 = vmul.f32 -1.442695, %v2503_v53  ;;  %v20097_v43 = vld [vmem:[#allocation2 + $0x30] sm:$0xff]  ;;  %v20114_v53 = vld [vmem:[#allocation2 + $0x108] sm:$0xff] }
 0x614   :  { %18832 = vpow2.f32 %v17272_v2  ;;  %v20117_v2 = vld [vmem:[#allocation2 + $0x118] sm:$0xff] }
 0x61f   :  { %v18831_v3 = vpop.eup %18830 }
 0x620   :  { %v2500_v4 = vadd.f32 1.0, %v18831_v3  ;;  %v20120_v3 = vld [vmem:[#allocation2 + $0xf8] sm:$0xff] }
 0x621   :  { %v18833_v6 = vpop.eup %18832 }
 0x622   :  { %18834 = vrcp.f32 %v2500_v4  ;;  %v2507_v9 = vadd.f32 1.0, %v18833_v6  ;;  %v20124_v4 = vld [vmem:[#allocation2 + $0xf0] sm:$0xff]  ;;  %v20127_v6 = vld [vmem:[#allocation2 + $0x100] sm:$0xff] }
 0x624   :  { %18836 = vrcp.f32 %v2507_v9  ;;  %v20130_v9 = vld [vmem:[#allocation2 + $0xe0] sm:$0xff] }
 0x62f   :  { %v18835_v12 = vpop.eup %18834 }
 0x630   :  { %v2511_v14 = vmul.f32 %v18835_v12, %v2510_v11  ;;  %v20134_v11 = vld [vmem:[#allocation2 + $0xd8] sm:$0xff]  ;;  %v20137_v12 = vld [vmem:[#allocation2 + $0xe8] sm:$0xff] }
 0x631   :  { %v18837_v49 = vpop.eup %18836 }
 0x632   :  { %v2512_v59 = vadd.f32 %v2511_v14, %v2349_v13  ;;  %v2514_v37 = vsub.f32 1.0, %v18837_v49  ;;  %v2516_v42 = vmul.f32 %v18837_v49, %v19898_v47  ;;  %v20039_v47 = vld [vmem:[#allocation2 + $0x8] sm:$0xff]  ;;  %v20144_v14 = vld [vmem:[#allocation2 + $0xc0] sm:$0xff]  ;;  %v20153_v49 = vld [vmem:[#allocation2 + $0x170] sm:$0xff] }
 0x633   :  { %v20140_v13 = vld [vmem:[#allocation2 + $0xc8] sm:$0xff] }
 0x634   :  { %18838 = vtanh.f32 %v2512_v59  ;;  %v20147_v59 = vld [vmem:[#allocation2 + $0xd0] sm:$0xff] }
 0x641   :  { %v18839_v50 = vpop.eup %18838 }
 0x642   :  { %v2515_v51 = vmul.f32 %v18839_v50, %v2514_v37 }
 0x644   :  { %v20031_v17 = vadd.f32 %v2516_v42, %v2515_v51 }
 0x646   :  { %v2542_v52 = vmax.f32 %v20031_v17, 0.0 }
 0x648   :  { %17273 = vmatmul.mubr.msk.f32.vlgmr.msra.gmra.mxu0 %vm311_vm2, %v2542_v52  ;;  %17274 = vmatmul.mubr.msk.f32.vlgmr.msra.gmra.mxu1 %vm311_vm2, %v2542_v52 }
 0x649   :  { %2713 = vmatpush1.msra.mxu0 %v2540_v45  ;;  %2798 = vmatpush1.msra.mxu1 %v20036_v19 }
 0x64a   :  { %2714 = vmatprep.subr.mxu0 %v2535_v32  ;;  %2799 = vmatprep.subr.mxu1 %v20039_v47 }
 0x64b   :  { %2715 = vmatpush1.msra.mxu0 %v2534_v41  ;;  %2800 = vmatpush1.msra.mxu1 %v20042_v25 }
 0x64c   :  { %2716 = vmatprep.subr.mxu0 %v2529_v20  ;;  %2833 = vmatprep.mubr.f32.mxu1 %v23021_v60 }
 0x64d   :  { %18041 = vmatprep.subr.mxu1 %v23021_v60  ;;  %2717 = vmatpush1.msra.mxu0 %v2528_v23 }
 0x64e   :  { %17276 = vmatmul.mubr.msk.f32.vlgmr.msra.gmra.mxu1 %vm166_vm1, %v2765_v27  ;;  %2718 = vmatprep.subr.mxu0 %v2523_v28 }
 0x64f   :  { %18042 = vmatpush3.msra.mxu1 %v20051_v30  ;;  %2719 = vmatpush1.msra.mxu0 %v2522_v29 }
 0x650   :  { %18043 = vmatprep.subr.mxu1 %v23021_v60  ;;  %2752 = vmatprep.mubr.f32.mxu0 %v23021_v60 }
 0x651   :  { %18044 = vmatpush3.msra.mxu1 %v20056_v34  ;;  %17275 = vmatmul.mubr.msk.f32.vlgmr.msra.gmra.mxu0 %vm311_vm2, %v2542_v52 }
 0x652   :  { %18045 = vmatprep.mubr.msk.f32.mxu1 %vm19513_vm0, %v23021_v60  ;;  %2934 = vmatprep.subr.mxu0 %v20062_v56 }
 0x653   :  { %18048 = vmatprep.subr.mxu1 %v23021_v60  ;;  %18046 = vmatmul.mubr.msk.f32.vlgmr.msra.gmra.mxu1 %vm166_vm1, %v2765_v27 }
 0x654   :  { %2935 = vmatpush1.msra.mxu0 %v20067_v55  ;;  %18049 = vmatpush3.msra.mxu1 %v20070_v35 }
 0x655   :  { %2936 = vmatprep.subr.mxu0 %v20073_v54  ;;  %18050 = vmatprep.subr.mxu1 %v23021_v60 }
 0x656   :  { %2937 = vmatpush1.msra.mxu0 %v20077_v0  ;;  %18051 = vmatpush3.msra.mxu1 %v20080_v57 }
 0x657   :  { %2938 = vmatprep.subr.mxu0 %v20083_v33  ;;  %18052 = vmatprep.subr.mxu1 %v23021_v60 }
 0x658   :  { %2939 = vmatpush1.msra.mxu0 %v20087_v36  ;;  %18053 = vmatpush3.msra.mxu1 %v20090_v39 }
 0x659   :  { %2940 = vmatprep.subr.mxu0 %v20093_v44  ;;  %18054 = vmatprep.subr.mxu1 %v23021_v60 }
 0x65a   :  { %2941 = vmatpush1.msra.mxu0 %v20097_v43  ;;  %2974 = vmatprep.mubr.f32.mxu0 %v23021_v60 }
 0x65b   :  { %18055 = vmatpush3.msra.mxu1 %v20101_v38  ;;  %18056 = vmatprep.mubr.msk.f32.mxu1 %vm19513_vm0, %v23021_v60 }
 0x65c   :  { %17278 = vmatmul.mubr.msk.f32.vlgmr.msra.gmra.mxu0 %vm311_vm2, %v19994_v15  ;;  %18057 = vmatmul.mubr.msk.f32.vlgmr.msra.gmra.mxu1 %vm311_vm2, %v19994_v15 }
 0x65d   :  { %3100 = vmatprep.subr.mxu0 %v20110_v62  ;;  %18059 = vmatprep.subr.mxu1 %v23021_v60 }
 0x65e   :  { %3101 = vmatpush1.msra.mxu0 %v20114_v53  ;;  %18060 = vmatpush3.msra.mxu1 %v20117_v2 }
 0x65f   :  { %3102 = vmatprep.subr.mxu0 %v20120_v3  ;;  %18061 = vmatprep.subr.mxu1 %v23021_v60 }
 0x660   :  { %3103 = vmatpush1.msra.mxu0 %v20124_v4  ;;  %18062 = vmatpush3.msra.mxu1 %v20127_v6 }
 0x661   :  { %3104 = vmatprep.subr.mxu0 %v20130_v9  ;;  %18063 = vmatprep.subr.mxu1 %v23021_v60 }
 0x662   :  { %3105 = vmatpush1.msra.mxu0 %v20134_v11  ;;  %18064 = vmatpush3.msra.mxu1 %v20137_v12 }
 0x663   :  { %3106 = vmatprep.subr.mxu0 %v20140_v13  ;;  %18065 = vmatprep.subr.mxu1 %v23021_v60 }
 0x664   :  { %3107 = vmatpush1.msra.mxu0 %v20144_v14  ;;  %18066 = vmatpush3.msra.mxu1 %v20147_v59 }
 0x665   :  { %3140 = vmatprep.mubr.f32.mxu0 %v23021_v60  ;;  %18067 = vmatprep.mubr.msk.f32.mxu1 %vm19513_vm0, %v23021_v60 }
 0x666   :  { %3244 = vmatprep.subr.mxu0 %v20153_v49  ;;  %18070 = vmatprep.subr.mxu1 %v23021_v60 }
 0x708   :  { %v2612_v37 = vpop.f32.mrf.mxu0  ;;  %v2683_v50 = vpop.f32.mrf.mxu1 }
 0x709   :  { %v20158_v42 = vadd.f32 %v2612_v37, %v19973_v21  ;;  %v20161_v51 = vadd.f32 %v2683_v50, %v19975_v22 }
 0x70a   :  { %v20163_v52 = vpop.f32.mrf.mxu1  ;;  %v20165_v32 = vpop.f32.mrf.mxu0 }
 0x70b   :  { %23051 = vst [vmem:[#allocation21_spill] sm:$0xff] %v20163_v52  ;;  %23052 = vst [vmem:[#allocation25_spill] sm:$0xff] %v20165_v32 }
 0x70e   :  { %v2835_v45 = vpop.f32.mrf.mxu1 }
 0x70f   :  { %v2836_v29 = vadd.f32 %v2835_v45, %v23044_v5  ;;  %v20174_v45 = vld [vmem:[#allocation2 + $0xa8] ss:$0 sm:$0xff] }
 0x710   :  { %v2837_v41 = vpop.f32.mrf.mxu1 }
 0x711   :  { %v2754_v20 = vpop.f32.mrf.mxu0  ;;  %v2838_v24 = vadd.f32 %v2837_v41, %v19693_v46 }
 0x712   :  { %v20168_v23 = vadd.f32 %v2754_v20, %v19985_v31 }
 0x713   :  { %v2906_v27 = vpop.f32.mrf.mxu1  ;;  %v20171_v18 = vpop.f32.mrf.mxu0 }
 0x714   :  { %23053 = vst [vmem:[#allocation16_spill] sm:$0xff] %v20171_v18 }
 0x715   :  { %v18047_v28 = vpop.f32.mrf.mxu1 }
 0x71c   :  { %v2976_v21 = vpop.f32.mrf.mxu0  ;;  %v3047_v37 = vpop.f32.mrf.mxu1 }
 0x71d   :  { %v3051_v22 = vadd.f32 %v2976_v21, %v2836_v29  ;;  %v3065_v18 = vadd.f32 %v20174_v45, %v3047_v37  ;;  %v2907_v29 = vadd.f32 %v2906_v27, %v19702_v61  ;;  %v20185_v37 = vld [vmem:[#allocation2 + $0x168] sm:$0xff]  ;;  %v20201_v27 = vld [vmem:[#allocation2 + $0x140] sm:$0xff] }
 0x71e   :  { %v18058_v50 = vpop.f32.mrf.mxu1  ;;  %v2978_v52 = vpop.f32.mrf.mxu0  ;;  %23056 = vst [vmem:[#allocation27_spill] sm:$0xff] %v20201_v27 }
 0x71f   :  { %v17280_v48 = vmul.f32 -1.442695, %v3051_v22  ;;  %v3058_v16 = vadd.f32 %v2978_v52, %v2838_v24  ;;  %v20205_v50 = vld [vmem:[#allocation2 + $0x138] sm:$0xff] }
 0x720   :  { %23057 = vst [vmem:[#allocation28_spill] sm:$0xff] %v20205_v50 }
 0x721   :  { %18840 = vpow2.f32 %v17280_v48  ;;  %v17281_v32 = vmul.f32 -1.442695, %v3058_v16 }
 0x723   :  { %18842 = vpow2.f32 %v17281_v32 }
 0x72e   :  { %v18841_v31 = vpop.eup %18840 }
 0x72f   :  { %v3055_v20 = vadd.f32 1.0, %v18841_v31  ;;  %v20208_v31 = vld [vmem:[#allocation2 + $0x148] sm:$0xff] }
 0x730   :  { %v18843_v28 = vpop.eup %18842  ;;  %23058 = vst [vmem:[#allocation29_spill] sm:$0xff] %v20208_v31 }
 0x731   :  { %18844 = vrcp.f32 %v3055_v20  ;;  %v3062_v26 = vadd.f32 1.0, %v18843_v28  ;;  %v20211_v20 = vld [vmem:[#allocation2 + $0x128] sm:$0xff]  ;;  %v20215_v28 = vld [vmem:[#allocation2 + $0x120] sm:$0xff] }
 0x732   :  { %23059 = vst [vmem:[#allocation30_spill] sm:$0xff] %v20211_v20  ;;  %23060 = vst [vmem:[#allocation31_spill] sm:$0xff] %v20215_v28 }
 0x733   :  { %18846 = vrcp.f32 %v3062_v26  ;;  %v20195_v26 = vld [vmem:[#allocation2 + $0x150] sm:$0xff] }
 0x734   :  { %23054 = vst [vmem:[#allocation18_spill] sm:$0xff] %v20195_v26 }
 0x73e   :  { %v18845_v7 = vpop.eup %18844 }
 0x73f   :  { %v3066_v21 = vmul.f32 %v18845_v7, %v3065_v18  ;;  %v20188_v7 = vld [vmem:[#allocation2 + $0x178] sm:$0xff] }
 0x740   :  { %v18847_v48 = vpop.eup %18846  ;;  %v20191_v18 = vld [vmem:[#allocation2 + $0x158] sm:$0xff] }
 0x741   :  { %v3067_v22 = vadd.f32 %v3066_v21, %v2907_v29  ;;  %v3069_v24 = vsub.f32 1.0, %v18847_v48  ;;  %v3071_v32 = vmul.f32 %v18847_v48, %v19994_v15  ;;  %v20198_v15 = vld [vmem:[#allocation2 + $0x160] sm:$0xff]  ;;  %v20219_v29 = vld [vmem:[#allocation2 + $0x130] sm:$0xff]  ;;  %v3401_v48 = vld [vmem:[#allocation4 + $0x2d0] sm:$0xff] }
 0x742   :  { %23055 = vst [vmem:[#allocation19_spill] sm:$0xff] %v20198_v15  ;;  %23061 = vst [vmem:[#allocation32_spill] sm:$0xff] %v20219_v29  ;;  %v3402_v21 = vld [vmem:[#allocation4 + $0x2d8] sm:$0xff] }
 0x743   :  { %18848 = vtanh.f32 %v3067_v22  ;;  %v3404_v22 = vld [vmem:[#allocation4 + $0x2e8] sm:$0xff] }
 0x750   :  { %v18849_v16 = vpop.eup %18848 }
 0x751   :  { %v3070_v52 = vmul.f32 %v18849_v16, %v3069_v24  ;;  %v3403_v24 = vld [vmem:[#allocation4 + $0x2e0] sm:$0xff]  ;;  %v3396_v16 = vld [vmem:[#allocation4 + $0x2a8] sm:$0xff] }
 0x753   :  { %v20179_v41 = vadd.f32 %v3071_v32, %v3070_v52  ;;  %v3398_v52 = vld [vmem:[#allocation4 + $0x2b8] sm:$0xff]  ;;  %v3395_v32 = vld [vmem:[#allocation4 + $0x2a0] sm:$0xff] }
 0x755   :  { %17282 = vmatmul.mubr.msk.f32.vlgmr.msra.gmra.mxu0 %vm311_vm2, %v20179_v41  ;;  %18068 = vmatmul.mubr.msk.f32.vlgmr.msra.gmra.mxu1 %vm311_vm2, %v20179_v41 }
 0x756   :  { %3245 = vmatpush1.msra.mxu0 %v20185_v37  ;;  %18071 = vmatpush3.msra.mxu1 %v20188_v7 }
 0x757   :  { %3246 = vmatprep.subr.mxu0 %v20191_v18  ;;  %18072 = vmatprep.subr.mxu1 %v23021_v60 }
 0x758   :  { %3247 = vmatpush1.msra.mxu0 %v20195_v26  ;;  %18073 = vmatpush3.msra.mxu1 %v20198_v15  ;;  %v20233_v26 = vld [vmem:[#allocation2 + $0x198] ss:$0 sm:$0xff] }
 0x759   :  { %3248 = vmatprep.subr.mxu0 %v20201_v27  ;;  %18074 = vmatprep.subr.mxu1 %v23021_v60 }
 0x75a   :  { %3249 = vmatpush1.msra.mxu0 %v20205_v50  ;;  %18075 = vmatpush3.msra.mxu1 %v20208_v31  ;;  %v3384_v31 = vld [vmem:[#allocation4 + $0x248] sm:$0xff]  ;;  %v3386_v50 = vld [vmem:[#allocation4 + $0x258] sm:$0xff] }
 0x75b   :  { %3250 = vmatprep.subr.mxu0 %v20211_v20  ;;  %18076 = vmatprep.subr.mxu1 %v23021_v60  ;;  %v3391_v20 = vld [vmem:[#allocation4 + $0x280] sm:$0xff] }
 0x75c   :  { %3251 = vmatpush1.msra.mxu0 %v20215_v28  ;;  %3284 = vmatprep.mubr.f32.mxu0 %v23021_v60  ;;  %v3389_v28 = vld [vmem:[#allocation4 + $0x270] sm:$0xff] }
 0x75d   :  { %18077 = vmatpush3.msra.mxu1 %v20219_v29  ;;  %18078 = vmatprep.mubr.msk.f32.mxu1 %vm19513_vm0, %v23021_v60  ;;  %v3392_v29 = vld [vmem:[#allocation4 + $0x288] sm:$0xff] }
 0x75e   :  { %17284 = vmatmul.mubr.msk.f32.vlgmr.msra.gmra.mxu0 %vm311_vm2, %v20031_v17  ;;  %18079 = vmatmul.mubr.msk.f32.vlgmr.msra.gmra.mxu1 %vm311_vm2, %v20031_v17 }
 0x75f   :  { %3475 = vmatprep.mubr.f32.mxu0 %v23021_v60  ;;  %3546 = vmatprep.mubr.f32.mxu1 %v23021_v60 }
 0x760   :  { %3435 = vmatprep.subr.mxu0 %v3402_v21  ;;  %3506 = vmatprep.subr.mxu1 %v3404_v22  ;;  %v3383_v21 = vld [vmem:[#allocation4 + $0x240] sm:$0xff]  ;;  %v3385_v22 = vld [vmem:[#allocation4 + $0x250] sm:$0xff] }
 0x761   :  { %3436 = vmatpush1.msra.mxu0 %v3401_v48  ;;  %3507 = vmatpush1.msra.mxu1 %v3403_v24  ;;  %v3406_v48 = vld [vmem:[#allocation4 + $0x2f8] sm:$0xff] }
 0x762   :  { %3437 = vmatprep.subr.mxu0 %v3396_v16  ;;  %3508 = vmatprep.subr.mxu1 %v3398_v52 }
 0x763   :  { %3438 = vmatpush1.msra.mxu0 %v3395_v32  ;;  %3509 = vmatpush1.msra.mxu1 %v3397_v10 }
 0x764   :  { %3439 = vmatprep.subr.mxu0 %v3390_v8  ;;  %3510 = vmatprep.subr.mxu1 %v3392_v29 }
 0x765   :  { %3440 = vmatpush1.msra.mxu0 %v3389_v28  ;;  %3511 = vmatpush1.msra.mxu1 %v3391_v20 }
 0x766   :  { %3441 = vmatprep.subr.mxu0 %v3384_v31  ;;  %3512 = vmatprep.subr.mxu1 %v3386_v50 }
 0x767   :  { %3442 = vmatpush1.msra.mxu0 %v3383_v21  ;;  %3513 = vmatpush1.msra.mxu1 %v3385_v22 }
 0x768   :  { %3577 = vmatprep.subr.mxu0 %v3406_v48  ;;  %3662 = vmatprep.subr.mxu1 %v20023_v1 }
 0x815   :  { %v3213_v24 = vpop.f32.mrf.mxu1  ;;  %v3142_v52 = vpop.f32.mrf.mxu0 }
 0x816   :  { %v3143_v32 = vadd.f32 %v3142_v52, %v23050_v63 }
 0x817   :  { %v18069_v16 = vpop.f32.mrf.mxu1  ;;  %v3144_v10 = vpop.f32.mrf.mxu0 }
 0x818   :  { %v3145_v31 = vadd.f32 %v3144_v10, %v19769_v58 }
 0x81e   :  { %v3286_v8 = vpop.f32.mrf.mxu0  ;;  %v3357_v29 = vpop.f32.mrf.mxu1 }
 0x81f   :  { %v3361_v27 = vadd.f32 %v3286_v8, %v3143_v32  ;;  %v3375_v52 = vadd.f32 %v20233_v26, %v3357_v29  ;;  %v3388_v29 = vld [vmem:[#allocation4 + $0x268] sm:$0xff] }
 0x820   :  { %v18080_v15 = vpop.f32.mrf.mxu1  ;;  %v3288_v20 = vpop.f32.mrf.mxu0 }
 0x821   :  { %v17286_v28 = vmul.f32 -1.442695, %v3361_v27  ;;  %v3368_v50 = vadd.f32 %v3288_v20, %v3145_v31  ;;  %v3214_v15 = vadd.f32 %v3213_v24, %v19775_v40  ;;  %v3630_v24 = vld [vmem:[%s22915_s0 + $0x20] sm:$0xff] }
 0x823   :  { %18850 = vpow2.f32 %v17286_v28  ;;  %v17287_v21 = vmul.f32 -1.442695, %v3368_v50 }
 0x825   :  { %18852 = vpow2.f32 %v17287_v21 }
 0x830   :  { %v18851_v22 = vpop.eup %18850 }
 0x831   :  { %v3365_v48 = vadd.f32 1.0, %v18851_v22  ;;  %v3405_v22 = vld [vmem:[#allocation4 + $0x2f0] sm:$0xff] }
 0x832   :  { %v18853_v16 = vpop.eup %18852 }
 0x833   :  { %18854 = vrcp.f32 %v3365_v48  ;;  %v3372_v1 = vadd.f32 1.0, %v18853_v16  ;;  %v3400_v48 = vld [vmem:[#allocation4 + $0x2c8] sm:$0xff]  ;;  %v3387_v16 = vld [vmem:[#allocation4 + $0x260] sm:$0xff] }
 0x835   :  { %18856 = vrcp.f32 %v3372_v1  ;;  %v3394_v1 = vld [vmem:[#allocation4 + $0x298] sm:$0xff] }
 0x840   :  { %v18855_v63 = vpop.eup %18854 }
 0x841   :  { %v3376_v27 = vmul.f32 %v18855_v63, %v3375_v52  ;;  %v3399_v63 = vld [vmem:[#allocation4 + $0x2c0] sm:$0xff] }
 0x842   :  { %v18857_v10 = vpop.eup %18856 }
 0x843   :  { %v3377_v32 = vadd.f32 %v3376_v27, %v3214_v15  ;;  %v3379_v8 = vsub.f32 1.0, %v18857_v10  ;;  %v3381_v20 = vmul.f32 %v18857_v10, %v20031_v17  ;;  %v3393_v17 = vld [vmem:[#allocation4 + $0x290] sm:$0xff] }
 0x845   :  { %18858 = vtanh.f32 %v3377_v32 }
 0x852   :  { %v18859_v28 = vpop.eup %18858 }
 0x853   :  { %v3380_v31 = vmul.f32 %v18859_v28, %v3379_v8 }
 0x855   :  { %v20238_v50 = vadd.f32 %v3381_v20, %v3380_v31 }
 0x857   :  { %v3407_v21 = vmax.f32 %v20238_v50, 0.0 }
 0x859   :  { %17288 = vmatmul.mubr.msk.f32.vlgmr.msra.gmra.mxu0 %vm311_vm2, %v3407_v21  ;;  %17289 = vmatmul.mubr.msk.f32.vlgmr.msra.gmra.mxu1 %vm311_vm2, %v3407_v21 }
 0x85a   :  { %3578 = vmatpush1.msra.mxu0 %v3405_v22  ;;  %3663 = vmatpush1.msra.mxu1 %v20036_v19 }
 0x85b   :  { %3579 = vmatprep.subr.mxu0 %v3400_v48  ;;  %3664 = vmatprep.subr.mxu1 %v20039_v47 }
 0x85c   :  { %3580 = vmatpush1.msra.mxu0 %v3399_v63  ;;  %3665 = vmatpush1.msra.mxu1 %v20042_v25 }
 0x85d   :  { %3581 = vmatprep.subr.mxu0 %v3394_v1  ;;  %3698 = vmatprep.mubr.f32.mxu1 %v23021_v60 }
 0x85e   :  { %18081 = vmatprep.subr.mxu1 %v23021_v60  ;;  %3582 = vmatpush1.msra.mxu0 %v3393_v17 }
 0x85f   :  { %17291 = vmatmul.mubr.msk.f32.vlgmr.msra.gmra.mxu1 %vm166_vm1, %v3630_v24  ;;  %3583 = vmatprep.subr.mxu0 %v3388_v29 }
 0x860   :  { %18082 = vmatpush3.msra.mxu1 %v20051_v30  ;;  %3584 = vmatpush1.msra.mxu0 %v3387_v16 }
 0x861   :  { %18083 = vmatprep.subr.mxu1 %v23021_v60  ;;  %3617 = vmatprep.mubr.f32.mxu0 %v23021_v60 }
 0x862   :  { %18084 = vmatpush3.msra.mxu1 %v20056_v34  ;;  %17290 = vmatmul.mubr.msk.f32.vlgmr.msra.gmra.mxu0 %vm311_vm2, %v3407_v21 }
 0x863   :  { %18085 = vmatprep.mubr.msk.f32.mxu1 %vm19513_vm0, %v23021_v60  ;;  %3799 = vmatprep.subr.mxu0 %v20062_v56 }
 0x864   :  { %18088 = vmatprep.subr.mxu1 %v23021_v60  ;;  %18086 = vmatmul.mubr.msk.f32.vlgmr.msra.gmra.mxu1 %vm166_vm1, %v3630_v24 }
 0x865   :  { %3800 = vmatpush1.msra.mxu0 %v20067_v55  ;;  %18089 = vmatpush3.msra.mxu1 %v20070_v35 }
 0x866   :  { %3801 = vmatprep.subr.mxu0 %v20073_v54  ;;  %18090 = vmatprep.subr.mxu1 %v23021_v60 }
 0x867   :  { %3802 = vmatpush1.msra.mxu0 %v20077_v0  ;;  %18091 = vmatpush3.msra.mxu1 %v20080_v57 }
 0x868   :  { %3803 = vmatprep.subr.mxu0 %v20083_v33  ;;  %18092 = vmatprep.subr.mxu1 %v23021_v60 }
 0x869   :  { %3804 = vmatpush1.msra.mxu0 %v20087_v36  ;;  %18093 = vmatpush3.msra.mxu1 %v20090_v39 }
 0x86a   :  { %3805 = vmatprep.subr.mxu0 %v20093_v44  ;;  %18094 = vmatprep.subr.mxu1 %v23021_v60 }
 0x86b   :  { %3806 = vmatpush1.msra.mxu0 %v20097_v43  ;;  %3839 = vmatprep.mubr.f32.mxu0 %v23021_v60 }
 0x86c   :  { %18095 = vmatpush3.msra.mxu1 %v20101_v38  ;;  %18096 = vmatprep.mubr.msk.f32.mxu1 %vm19513_vm0, %v23021_v60 }
 0x86d   :  { %17293 = vmatmul.mubr.msk.f32.vlgmr.msra.gmra.mxu0 %vm311_vm2, %v20179_v41  ;;  %18097 = vmatmul.mubr.msk.f32.vlgmr.msra.gmra.mxu1 %vm311_vm2, %v20179_v41 }
 0x86e   :  { %3965 = vmatprep.subr.mxu0 %v20110_v62  ;;  %18099 = vmatprep.subr.mxu1 %v23021_v60 }
 0x86f   :  { %3966 = vmatpush1.msra.mxu0 %v20114_v53  ;;  %18100 = vmatpush3.msra.mxu1 %v20117_v2 }
 0x870   :  { %3967 = vmatprep.subr.mxu0 %v20120_v3  ;;  %18101 = vmatprep.subr.mxu1 %v23021_v60 }
 0x871   :  { %3968 = vmatpush1.msra.mxu0 %v20124_v4  ;;  %18102 = vmatpush3.msra.mxu1 %v20127_v6 }
 0x872   :  { %3969 = vmatprep.subr.mxu0 %v20130_v9  ;;  %18103 = vmatprep.subr.mxu1 %v23021_v60 }
 0x873   :  { %3970 = vmatpush1.msra.mxu0 %v20134_v11  ;;  %18104 = vmatpush3.msra.mxu1 %v20137_v12 }
 0x874   :  { %3971 = vmatprep.subr.mxu0 %v20140_v13  ;;  %18105 = vmatprep.subr.mxu1 %v23021_v60 }
 0x875   :  { %3972 = vmatpush1.msra.mxu0 %v20144_v14  ;;  %18106 = vmatpush3.msra.mxu1 %v20147_v59 }
 0x876   :  { %4005 = vmatprep.mubr.f32.mxu0 %v23021_v60  ;;  %18107 = vmatprep.mubr.msk.f32.mxu1 %vm19513_vm0, %v23021_v60 }
 0x877   :  { %4109 = vmatprep.subr.mxu0 %v20153_v49  ;;  %18110 = vmatprep.subr.mxu1 %v23021_v60 }
 0x919   :  { %v3477_v52 = vpop.f32.mrf.mxu0  ;;  %v3548_v15 = vpop.f32.mrf.mxu1 }
 0x91a   :  { %v20305_v27 = vadd.f32 %v3477_v52, %v20158_v42  ;;  %v20308_v32 = vadd.f32 %v3548_v15, %v20161_v51 }
 0x91b   :  { %v20310_v10 = vpop.f32.mrf.mxu1  ;;  %v20312_v28 = vpop.f32.mrf.mxu0 }
 0x91c   :  { %23062 = vst [vmem:[#allocation33_spill] sm:$0xff] %v20310_v10  ;;  %23063 = vst [vmem:[#allocation34_spill] sm:$0xff] %v20312_v28 }
 0x91f   :  { %v3700_v8 = vpop.f32.mrf.mxu1 }
 0x920   :  { %v3701_v63 = vadd.f32 %v3700_v8, %v23044_v5 }
 0x921   :  { %v3702_v20 = vpop.f32.mrf.mxu1 }
 0x922   :  { %v3619_v31 = vpop.f32.mrf.mxu0  ;;  %v3703_v52 = vadd.f32 %v3702_v20, %v19693_v46 }
 0x923   :  { %v20315_v21 = vadd.f32 %v3619_v31, %v20168_v23 }
 0x924   :  { %v3771_v22 = vpop.f32.mrf.mxu1  ;;  %v20318_v1 = vpop.f32.mrf.mxu0 }
 0x925   :  { %23064 = vst [vmem:[#allocation35_spill] sm:$0xff] %v20318_v1  ;;  %v3772_v5 = vadd.f32 %v3771_v22, %v19702_v61  ;;  %v23068_v22 = vld [vmem:[#allocation28_spill] sm:$0xff] }
 0x926   :  { %v18087_v48 = vpop.f32.mrf.mxu1 }
 0x92d   :  { %v3841_v42 = vpop.f32.mrf.mxu0  ;;  %v3912_v17 = vpop.f32.mrf.mxu1 }
 0x92e   :  { %v3916_v51 = vadd.f32 %v3841_v42, %v3701_v63  ;;  %v3930_v8 = vadd.f32 %v20174_v45, %v3912_v17  ;;  %v23070_v17 = vld [vmem:[#allocation30_spill] sm:$0xff] }
 0x92f   :  { %v18098_v24 = vpop.f32.mrf.mxu1  ;;  %v3843_v16 = vpop.f32.mrf.mxu0 }
 0x930   :  { %v17295_v29 = vmul.f32 -1.442695, %v3916_v51  ;;  %v3923_v15 = vadd.f32 %v3843_v16, %v3703_v52  ;;  %v23071_v52 = vld [vmem:[#allocation31_spill] sm:$0xff] }
 0x932   :  { %18860 = vpow2.f32 %v17295_v29  ;;  %v17296_v10 = vmul.f32 -1.442695, %v3923_v15  ;;  %v23072_v15 = vld [vmem:[#allocation32_spill] sm:$0xff] }
 0x934   :  { %18862 = vpow2.f32 %v17296_v10 }
 0x93f   :  { %v18861_v23 = vpop.eup %18860 }
 0x940   :  { %v3920_v31 = vadd.f32 1.0, %v18861_v23  ;;  %v4267_v23 = vld [vmem:[#allocation4 + $0x398] sm:$0xff] }
 0x941   :  { %v18863_v48 = vpop.eup %18862 }
 0x942   :  { %18864 = vrcp.f32 %v3920_v31  ;;  %v3927_v28 = vadd.f32 1.0, %v18863_v48  ;;  %v4269_v31 = vld [vmem:[#allocation4 + $0x3a8] sm:$0xff]  ;;  %v4266_v48 = vld [vmem:[#allocation4 + $0x390] sm:$0xff] }
 0x944   :  { %18866 = vrcp.f32 %v3927_v28  ;;  %v23066_v28 = vld [vmem:[#allocation19_spill] sm:$0xff] }
 0x94f   :  { %v18865_v1 = vpop.eup %18864 }
 0x950   :  { %v3931_v63 = vmul.f32 %v18865_v1, %v3930_v8  ;;  %v23069_v1 = vld [vmem:[#allocation29_spill] sm:$0xff]  ;;  %v4268_v8 = vld [vmem:[#allocation4 + $0x3a0] sm:$0xff] }
 0x951   :  { %v18867_v51 = vpop.eup %18866 }
 0x952   :  { %v3932_v42 = vadd.f32 %v3931_v63, %v3772_v5  ;;  %v3934_v20 = vsub.f32 1.0, %v18867_v51  ;;  %v3936_v10 = vmul.f32 %v18867_v51, %v20179_v41  ;;  %v23065_v5 = vld [vmem:[#allocation18_spill] sm:$0xff]  ;;  %v23067_v41 = vld [vmem:[#allocation27_spill] sm:$0xff]  ;;  %v4261_v63 = vld [vmem:[#allocation4 + $0x368] sm:$0xff] }
 0x953   :  { %v4260_v51 = vld [vmem:[#allocation4 + $0x360] sm:$0xff] }
 0x954   :  { %18868 = vtanh.f32 %v3932_v42  ;;  %v4263_v42 = vld [vmem:[#allocation4 + $0x378] sm:$0xff] }
 0x961   :  { %v18869_v24 = vpop.eup %18868 }
 0x962   :  { %v3935_v29 = vmul.f32 %v18869_v24, %v3934_v20  ;;  %v4262_v20 = vld [vmem:[#allocation4 + $0x370] sm:$0xff]  ;;  %v4255_v24 = vld [vmem:[#allocation4 + $0x338] sm:$0xff] }
 0x964   :  { %v20324_v16 = vadd.f32 %v3936_v10, %v3935_v29  ;;  %v4257_v29 = vld [vmem:[#allocation4 + $0x348] sm:$0xff]  ;;  %v4254_v10 = vld [vmem:[#allocation4 + $0x330] sm:$0xff] }
 0x966   :  { %17297 = vmatmul.mubr.msk.f32.vlgmr.msra.gmra.mxu0 %vm311_vm2, %v20324_v16  ;;  %18108 = vmatmul.mubr.msk.f32.vlgmr.msra.gmra.mxu1 %vm311_vm2, %v20324_v16 }
 0x967   :  { %4110 = vmatpush1.msra.mxu0 %v20185_v37  ;;  %18111 = vmatpush3.msra.mxu1 %v20188_v7 }
 0x968   :  { %4111 = vmatprep.subr.mxu0 %v20191_v18  ;;  %18112 = vmatprep.subr.mxu1 %v23021_v60 }
 0x969   :  { %4112 = vmatpush1.msra.mxu0 %v23065_v5  ;;  %18113 = vmatpush3.msra.mxu1 %v23066_v28 }
 0x96a   :  { %4113 = vmatprep.subr.mxu0 %v23067_v41  ;;  %18114 = vmatprep.subr.mxu1 %v23021_v60 }
 0x96b   :  { %4114 = vmatpush1.msra.mxu0 %v23068_v22  ;;  %18115 = vmatpush3.msra.mxu1 %v23069_v1  ;;  %v23074_v1 = vld [vmem:[#allocation20_spill] sm:$0xff] }
 0x96c   :  { %4115 = vmatprep.subr.mxu0 %v23070_v17  ;;  %18116 = vmatprep.subr.mxu1 %v23021_v60  ;;  %v4251_v17 = vld [vmem:[#allocation4 + $0x318] sm:$0xff] }
 0x96d   :  { %4116 = vmatpush1.msra.mxu0 %v23071_v52  ;;  %4149 = vmatprep.mubr.f32.mxu0 %v23021_v60  ;;  %v4249_v52 = vld [vmem:[#allocation4 + $0x308] sm:$0xff] }
 0x96e   :  { %18117 = vmatpush3.msra.mxu1 %v23072_v15  ;;  %18118 = vmatprep.mubr.msk.f32.mxu1 %vm19513_vm0, %v23021_v60  ;;  %v4256_v15 = vld [vmem:[#allocation4 + $0x340] sm:$0xff] }
 0x96f   :  { %17299 = vmatmul.mubr.msk.f32.vlgmr.msra.gmra.mxu0 %vm311_vm2, %v20238_v50  ;;  %18119 = vmatmul.mubr.msk.f32.vlgmr.msra.gmra.mxu1 %vm311_vm2, %v20238_v50 }
 0x970   :  { %4340 = vmatprep.mubr.f32.mxu0 %v23021_v60  ;;  %4411 = vmatprep.mubr.f32.mxu1 %v23021_v60 }
 0x971   :  { %4300 = vmatprep.subr.mxu0 %v4267_v23  ;;  %4371 = vmatprep.subr.mxu1 %v4269_v31  ;;  %v4248_v23 = vld [vmem:[#allocation4 + $0x300] sm:$0xff]  ;;  %v4250_v31 = vld [vmem:[#allocation4 + $0x310] sm:$0xff] }
 0x972   :  { %4301 = vmatpush1.msra.mxu0 %v4266_v48  ;;  %4372 = vmatpush1.msra.mxu1 %v4268_v8  ;;  %v4271_v48 = vld [vmem:[#allocation4 + $0x3b8] sm:$0xff] }
 0x973   :  { %4302 = vmatprep.subr.mxu0 %v4261_v63  ;;  %4373 = vmatprep.subr.mxu1 %v4263_v42  ;;  %v23073_v8 = vld [vmem:[#allocation23_spill] sm:$0xff] }
 0x974   :  { %4303 = vmatpush1.msra.mxu0 %v4260_v51  ;;  %4374 = vmatpush1.msra.mxu1 %v4262_v20 }
 0x975   :  { %4304 = vmatprep.subr.mxu0 %v4255_v24  ;;  %4375 = vmatprep.subr.mxu1 %v4257_v29 }
 0x976   :  { %4305 = vmatpush1.msra.mxu0 %v4254_v10  ;;  %4376 = vmatpush1.msra.mxu1 %v4256_v15 }
 0x977   :  { %4306 = vmatprep.subr.mxu0 %v4249_v52  ;;  %4377 = vmatprep.subr.mxu1 %v4251_v17 }
 0x978   :  { %4307 = vmatpush1.msra.mxu0 %v4248_v23  ;;  %4378 = vmatpush1.msra.mxu1 %v4250_v31 }
 0x979   :  { %4442 = vmatprep.subr.mxu0 %v4271_v48  ;;  %4527 = vmatprep.subr.mxu1 %v23073_v8 }
 0xa26   :  { %v4078_v63 = vpop.f32.mrf.mxu1  ;;  %v4007_v51 = vpop.f32.mrf.mxu0 }
 0xa27   :  { %v4008_v22 = vadd.f32 %v4007_v51, %v23074_v1  ;;  %v4079_v1 = vadd.f32 %v4078_v63, %v19775_v40  ;;  %v4495_v63 = vld [vmem:[%s22915_s0 + $0x28] sm:$0xff] }
 0xa28   :  { %v18109_v42 = vpop.f32.mrf.mxu1  ;;  %v4009_v20 = vpop.f32.mrf.mxu0 }
 0xa29   :  { %v4010_v52 = vadd.f32 %v4009_v20, %v19769_v58 }
 0xa2f   :  { %v4151_v24 = vpop.f32.mrf.mxu0  ;;  %v4222_v29 = vpop.f32.mrf.mxu1 }
 0xa30   :  { %v4226_v41 = vadd.f32 %v4151_v24, %v4008_v22  ;;  %v4240_v5 = vadd.f32 %v20233_v26, %v4222_v29  ;;  %v4253_v29 = vld [vmem:[#allocation4 + $0x328] sm:$0xff] }
 0xa31   :  { %v18120_v28 = vpop.f32.mrf.mxu1  ;;  %v4153_v15 = vpop.f32.mrf.mxu0 }
 0xa32   :  { %v17301_v10 = vmul.f32 -1.442695, %v4226_v41  ;;  %v4233_v17 = vadd.f32 %v4153_v15, %v4010_v52 }
 0xa34   :  { %18870 = vpow2.f32 %v17301_v10  ;;  %v17302_v23 = vmul.f32 -1.442695, %v4233_v17 }
 0xa36   :  { %18872 = vpow2.f32 %v17302_v23  ;;  %v4270_v23 = vld [vmem:[#allocation4 + $0x3b0] sm:$0xff] }
 0xa41   :  { %v18871_v31 = vpop.eup %18870 }
 0xa42   :  { %v4230_v48 = vadd.f32 1.0, %v18871_v31  ;;  %v4265_v31 = vld [vmem:[#allocation4 + $0x388] sm:$0xff] }
 0xa43   :  { %v18873_v8 = vpop.eup %18872 }
 0xa44   :  { %18874 = vrcp.f32 %v4230_v48  ;;  %v4237_v42 = vadd.f32 1.0, %v18873_v8  ;;  %v4252_v48 = vld [vmem:[#allocation4 + $0x320] sm:$0xff] }
 0xa46   :  { %18876 = vrcp.f32 %v4237_v42 }
 0xa51   :  { %v18875_v51 = vpop.eup %18874 }
 0xa52   :  { %v4241_v22 = vmul.f32 %v18875_v51, %v4240_v5  ;;  %v4264_v5 = vld [vmem:[#allocation4 + $0x380] sm:$0xff] }
 0xa53   :  { %v18877_v41 = vpop.eup %18876 }
 0xa54   :  { %v4242_v28 = vadd.f32 %v4241_v22, %v4079_v1  ;;  %v4244_v20 = vsub.f32 1.0, %v18877_v41  ;;  %v4246_v10 = vmul.f32 %v18877_v41, %v20238_v50  ;;  %v4259_v1 = vld [vmem:[#allocation4 + $0x358] sm:$0xff]  ;;  %v4258_v50 = vld [vmem:[#allocation4 + $0x350] sm:$0xff] }
 0xa56   :  { %18878 = vtanh.f32 %v4242_v28 }
 0xa63   :  { %v18879_v24 = vpop.eup %18878 }
 0xa64   :  { %v4245_v15 = vmul.f32 %v18879_v24, %v4244_v20  ;;  %v23080_v20 = vld [vmem:[#allocation19_spill] sm:$0xff]  ;;  %v23082_v24 = vld [vmem:[#allocation28_spill] sm:$0xff] }
 0xa66   :  { %v20359_v52 = vadd.f32 %v4246_v10, %v4245_v15  ;;  %v23083_v10 = vld [vmem:[#allocation29_spill] sm:$0xff]  ;;  %v23084_v15 = vld [vmem:[#allocation30_spill] sm:$0xff] }
 0xa68   :  { %v4272_v17 = vmax.f32 %v20359_v52, 0.0 }
 0xa6a   :  { %17303 = vmatmul.mubr.msk.f32.vlgmr.msra.gmra.mxu0 %vm311_vm2, %v4272_v17  ;;  %17304 = vmatmul.mubr.msk.f32.vlgmr.msra.gmra.mxu1 %vm311_vm2, %v4272_v17 }
 0xa6b   :  { %4443 = vmatpush1.msra.mxu0 %v4270_v23  ;;  %4528 = vmatpush1.msra.mxu1 %v20036_v19  ;;  %v5131_v23 = vld [vmem:[#allocation4 + $0x450] sm:$0xff] }
 0xa6c   :  { %4444 = vmatprep.subr.mxu0 %v4265_v31  ;;  %4529 = vmatprep.subr.mxu1 %v20039_v47  ;;  %v5133_v31 = vld [vmem:[#allocation4 + $0x460] sm:$0xff] }
 0xa6d   :  { %4445 = vmatpush1.msra.mxu0 %v4264_v5  ;;  %4530 = vmatpush1.msra.mxu1 %v20042_v25  ;;  %v5126_v5 = vld [vmem:[#allocation4 + $0x428] sm:$0xff] }
 0xa6e   :  { %4446 = vmatprep.subr.mxu0 %v4259_v1  ;;  %4563 = vmatprep.mubr.f32.mxu1 %v23021_v60  ;;  %v5128_v1 = vld [vmem:[#allocation4 + $0x438] sm:$0xff] }
 0xa6f   :  { %18121 = vmatprep.subr.mxu1 %v23021_v60  ;;  %4447 = vmatpush1.msra.mxu0 %v4258_v50  ;;  %v5125_v50 = vld [vmem:[#allocation4 + $0x420] sm:$0xff] }
 0xa70   :  { %17306 = vmatmul.mubr.msk.f32.vlgmr.msra.gmra.mxu1 %vm166_vm1, %v4495_v63  ;;  %4448 = vmatprep.subr.mxu0 %v4253_v29  ;;  %v5120_v29 = vld [vmem:[#allocation4 + $0x3f8] sm:$0xff] }
 0xa71   :  { %18122 = vmatpush3.msra.mxu1 %v20051_v30  ;;  %4449 = vmatpush1.msra.mxu0 %v4252_v48  ;;  %v5122_v48 = vld [vmem:[#allocation4 + $0x408] sm:$0xff] }
 0xa72   :  { %18123 = vmatprep.subr.mxu1 %v23021_v60  ;;  %4482 = vmatprep.mubr.f32.mxu0 %v23021_v60 }
 0xa73   :  { %18124 = vmatpush3.msra.mxu1 %v20056_v34  ;;  %17305 = vmatmul.mubr.msk.f32.vlgmr.msra.gmra.mxu0 %vm311_vm2, %v4272_v17  ;;  %v5134_v17 = vld [vmem:[#allocation4 + $0x468] sm:$0xff] }
 0xa74   :  { %18125 = vmatprep.mubr.msk.f32.mxu1 %vm19513_vm0, %v23021_v60  ;;  %4664 = vmatprep.subr.mxu0 %v20062_v56 }
 0xa75   :  { %18128 = vmatprep.subr.mxu1 %v23021_v60  ;;  %18126 = vmatmul.mubr.msk.f32.vlgmr.msra.gmra.mxu1 %vm166_vm1, %v4495_v63  ;;  %v5127_v63 = vld [vmem:[#allocation4 + $0x430] sm:$0xff] }
 0xa76   :  { %4665 = vmatpush1.msra.mxu0 %v20067_v55  ;;  %18129 = vmatpush3.msra.mxu1 %v20070_v35 }
 0xa77   :  { %4666 = vmatprep.subr.mxu0 %v20073_v54  ;;  %18130 = vmatprep.subr.mxu1 %v23021_v60 }
 0xa78   :  { %4667 = vmatpush1.msra.mxu0 %v20077_v0  ;;  %18131 = vmatpush3.msra.mxu1 %v20080_v57 }
 0xa79   :  { %4668 = vmatprep.subr.mxu0 %v20083_v33  ;;  %18132 = vmatprep.subr.mxu1 %v23021_v60 }
 0xa7a   :  { %4669 = vmatpush1.msra.mxu0 %v20087_v36  ;;  %18133 = vmatpush3.msra.mxu1 %v20090_v39  ;;  %v23077_v36 = vld [vmem:[#allocation13_spill] sm:$0xff] }
 0xa7b   :  { %4670 = vmatprep.subr.mxu0 %v20093_v44  ;;  %18134 = vmatprep.subr.mxu1 %v23021_v60 }
 0xa7c   :  { %4671 = vmatpush1.msra.mxu0 %v20097_v43  ;;  %4704 = vmatprep.mubr.f32.mxu0 %v23021_v60 }
 0xa7d   :  { %18135 = vmatpush3.msra.mxu1 %v20101_v38  ;;  %18136 = vmatprep.mubr.msk.f32.mxu1 %vm19513_vm0, %v23021_v60 }
 0xa7e   :  { %17308 = vmatmul.mubr.msk.f32.vlgmr.msra.gmra.mxu0 %vm311_vm2, %v20324_v16  ;;  %18137 = vmatmul.mubr.msk.f32.vlgmr.msra.gmra.mxu1 %vm311_vm2, %v20324_v16 }
 0xa7f   :  { %4830 = vmatprep.subr.mxu0 %v20110_v62  ;;  %18139 = vmatprep.subr.mxu1 %v23021_v60 }
 0xa80   :  { %4831 = vmatpush1.msra.mxu0 %v20114_v53  ;;  %18140 = vmatpush3.msra.mxu1 %v20117_v2 }
 0xa81   :  { %4832 = vmatprep.subr.mxu0 %v20120_v3  ;;  %18141 = vmatprep.subr.mxu1 %v23021_v60 }
 0xa82   :  { %4833 = vmatpush1.msra.mxu0 %v20124_v4  ;;  %18142 = vmatpush3.msra.mxu1 %v20127_v6 }
 0xa83   :  { %4834 = vmatprep.subr.mxu0 %v20130_v9  ;;  %18143 = vmatprep.subr.mxu1 %v23021_v60 }
 0xa84   :  { %4835 = vmatpush1.msra.mxu0 %v20134_v11  ;;  %18144 = vmatpush3.msra.mxu1 %v20137_v12 }
 0xa85   :  { %4836 = vmatprep.subr.mxu0 %v20140_v13  ;;  %18145 = vmatprep.subr.mxu1 %v23021_v60 }
 0xa86   :  { %4837 = vmatpush1.msra.mxu0 %v20144_v14  ;;  %18146 = vmatpush3.msra.mxu1 %v20147_v59 }
 0xa87   :  { %4870 = vmatprep.mubr.f32.mxu0 %v23021_v60  ;;  %18147 = vmatprep.mubr.msk.f32.mxu1 %vm19513_vm0, %v23021_v60 }
 0xa88   :  { %4974 = vmatprep.subr.mxu0 %v20153_v49  ;;  %18150 = vmatprep.subr.mxu1 %v23021_v60 }
 0xb2a   :  { %v4342_v19 = vpop.f32.mrf.mxu0  ;;  %v4413_v47 = vpop.f32.mrf.mxu1 }
 0xb2b   :  { %v20426_v25 = vadd.f32 %v4342_v19, %v20305_v27  ;;  %v20429_v30 = vadd.f32 %v4413_v47, %v20308_v32  ;;  %v5119_v19 = vld [vmem:[#allocation4 + $0x3f0] sm:$0xff]  ;;  %v5121_v47 = vld [vmem:[#allocation4 + $0x400] sm:$0xff] }
 0xb2c   :  { %v20431_v34 = vpop.f32.mrf.mxu1  ;;  %v20433_v55 = vpop.f32.mrf.mxu0 }
 0xb2d   :  { %23075 = vst [vmem:[#allocation23_spill] sm:$0xff] %v20431_v34  ;;  %23076 = vst [vmem:[#allocation36_spill] sm:$0xff] %v20433_v55  ;;  %v5985_v55 = vld [vmem:[#allocation4 + $0x4b8] sm:$0xff] }
 0xb30   :  { %v4565_v56 = vpop.f32.mrf.mxu1 }
 0xb31   :  { %v4566_v39 = vadd.f32 %v4565_v56, %v23077_v36  ;;  %v5114_v56 = vld [vmem:[#allocation4 + $0x3c8] sm:$0xff] }
 0xb32   :  { %v4567_v35 = vpop.f32.mrf.mxu1 }
 0xb33   :  { %v4484_v54 = vpop.f32.mrf.mxu0  ;;  %v4568_v4 = vadd.f32 %v4567_v35, %v19693_v46  ;;  %v5116_v35 = vld [vmem:[#allocation4 + $0x3d8] sm:$0xff] }
 0xb34   :  { %v20436_v0 = vadd.f32 %v4484_v54, %v20315_v21  ;;  %v5113_v54 = vld [vmem:[#allocation4 + $0x3c0] sm:$0xff] }
 0xb35   :  { %v4636_v57 = vpop.f32.mrf.mxu1  ;;  %v20439_v44 = vpop.f32.mrf.mxu0 }
 0xb36   :  { %23078 = vst [vmem:[#allocation13_spill] sm:$0xff] %v20439_v44  ;;  %v4637_v27 = vadd.f32 %v4636_v57, %v19702_v61  ;;  %v5115_v57 = vld [vmem:[#allocation4 + $0x3d0] sm:$0xff] }
 0xb37   :  { %v18127_v33 = vpop.f32.mrf.mxu1 }
 0xb38   :  { %v5136_v33 = vld [vmem:[#allocation4 + $0x478] sm:$0xff] }
 0xb3e   :  { %v4706_v43 = vpop.f32.mrf.mxu0  ;;  %v4777_v38 = vpop.f32.mrf.mxu1 }
 0xb3f   :  { %v4781_v62 = vadd.f32 %v4706_v43, %v4566_v39  ;;  %v4795_v59 = vadd.f32 %v20174_v45, %v4777_v38  ;;  %v23079_v45 = vld [vmem:[#allocation18_spill] sm:$0xff]  ;;  %v20474_v39 = vld [vmem:[#allocation2 + $0x20] sm:$0xff] }
 0xb40   :  { %v18138_v53 = vpop.f32.mrf.mxu1  ;;  %v4708_v3 = vpop.f32.mrf.mxu0 }
 0xb41   :  { %v17310_v2 = vmul.f32 -1.442695, %v4781_v62  ;;  %v4788_v6 = vadd.f32 %v4708_v3, %v4568_v4 }
 0xb43   :  { %18880 = vpow2.f32 %v17310_v2  ;;  %v17311_v9 = vmul.f32 -1.442695, %v4788_v6  ;;  %v23087_v2 = vld [vmem:[#allocation20_spill] sm:$0xff] }
 0xb45   :  { %18882 = vpow2.f32 %v17311_v9 }
 0xb50   :  { %v18881_v11 = vpop.eup %18880 }
 0xb51   :  { %v4785_v12 = vadd.f32 1.0, %v18881_v11 }
 0xb52   :  { %v18883_v13 = vpop.eup %18882 }
 0xb53   :  { %18884 = vrcp.f32 %v4785_v12  ;;  %v4792_v14 = vadd.f32 1.0, %v18883_v13 }
 0xb55   :  { %18886 = vrcp.f32 %v4792_v14 }
 0xb60   :  { %v18885_v49 = vpop.eup %18884 }
 0xb61   :  { %v4796_v32 = vmul.f32 %v18885_v49, %v4795_v59 }
 0xb62   :  { %v18887_v8 = vpop.eup %18886 }
 0xb63   :  { %v4797_v21 = vadd.f32 %v4796_v32, %v4637_v27  ;;  %v4799_v42 = vsub.f32 1.0, %v18887_v8  ;;  %v4801_v28 = vmul.f32 %v18887_v8, %v20324_v16  ;;  %v23081_v16 = vld [vmem:[#allocation27_spill] sm:$0xff] }
 0xb65   :  { %18888 = vtanh.f32 %v4797_v21 }
 0xb72   :  { %v18889_v51 = vpop.eup %18888 }
 0xb73   :  { %v4800_v22 = vmul.f32 %v18889_v51, %v4799_v42 }
 0xb75   :  { %v20445_v41 = vadd.f32 %v4801_v28, %v4800_v22 }
 0xb77   :  { %17312 = vmatmul.mubr.msk.f32.vlgmr.msra.gmra.mxu0 %vm311_vm2, %v20445_v41  ;;  %18148 = vmatmul.mubr.msk.f32.vlgmr.msra.gmra.mxu1 %vm311_vm2, %v20445_v41 }
 0xb78   :  { %4975 = vmatpush1.msra.mxu0 %v20185_v37  ;;  %18151 = vmatpush3.msra.mxu1 %v20188_v7  ;;  %v23085_v37 = vld [vmem:[#allocation31_spill] sm:$0xff]  ;;  %v23086_v7 = vld [vmem:[#allocation32_spill] sm:$0xff] }
 0xb79   :  { %4976 = vmatprep.subr.mxu0 %v20191_v18  ;;  %18152 = vmatprep.subr.mxu1 %v23021_v60  ;;  %v5132_v18 = vld [vmem:[#allocation4 + $0x458] sm:$0xff] }
 0xb7a   :  { %4977 = vmatpush1.msra.mxu0 %v23079_v45  ;;  %18153 = vmatpush3.msra.mxu1 %v23080_v20 }
 0xb7b   :  { %4978 = vmatprep.subr.mxu0 %v23081_v16  ;;  %18154 = vmatprep.subr.mxu1 %v23021_v60 }
 0xb7c   :  { %4979 = vmatpush1.msra.mxu0 %v23082_v24  ;;  %18155 = vmatpush3.msra.mxu1 %v23083_v10 }
 0xb7d   :  { %4980 = vmatprep.subr.mxu0 %v23084_v15  ;;  %18156 = vmatprep.subr.mxu1 %v23021_v60 }
 0xb7e   :  { %4981 = vmatpush1.msra.mxu0 %v23085_v37  ;;  %5014 = vmatprep.mubr.f32.mxu0 %v23021_v60 }
 0xb7f   :  { %18157 = vmatpush3.msra.mxu1 %v23086_v7  ;;  %18158 = vmatprep.mubr.msk.f32.mxu1 %vm19513_vm0, %v23021_v60 }
 0xb80   :  { %17314 = vmatmul.mubr.msk.f32.vlgmr.msra.gmra.mxu0 %vm311_vm2, %v20359_v52  ;;  %18159 = vmatmul.mubr.msk.f32.vlgmr.msra.gmra.mxu1 %vm311_vm2, %v20359_v52 }
 0xb81   :  { %5205 = vmatprep.mubr.f32.mxu0 %v23021_v60  ;;  %5276 = vmatprep.mubr.f32.mxu1 %v23021_v60 }
 0xb82   :  { %5165 = vmatprep.subr.mxu0 %v5132_v18  ;;  %5236 = vmatprep.subr.mxu1 %v5134_v17  ;;  %v5135_v18 = vld [vmem:[#allocation4 + $0x470] sm:$0xff]  ;;  %v5130_v17 = vld [vmem:[#allocation4 + $0x448] sm:$0xff] }
 0xb83   :  { %5166 = vmatpush1.msra.mxu0 %v5131_v23  ;;  %5237 = vmatpush1.msra.mxu1 %v5133_v31  ;;  %v20487_v23 = vld [vmem:[#allocation2 + $0x18] sm:$0xff]  ;;  %v5124_v31 = vld [vmem:[#allocation4 + $0x418] sm:$0xff] }
 0xb84   :  { %5167 = vmatprep.subr.mxu0 %v5126_v5  ;;  %5238 = vmatprep.subr.mxu1 %v5128_v1  ;;  %v5123_v5 = vld [vmem:[#allocation4 + $0x410] sm:$0xff]  ;;  %v20493_v1 = vld [vmem:[#allocation2] sm:$0xff] }
 0xb85   :  { %5168 = vmatpush1.msra.mxu0 %v5125_v50  ;;  %5239 = vmatpush1.msra.mxu1 %v5127_v63  ;;  %v5360_v50 = vld [vmem:[%s22915_s0 + $0x30] sm:$0xff]  ;;  %v5118_v63 = vld [vmem:[#allocation4 + $0x3e8] sm:$0xff] }
 0xb86   :  { %5169 = vmatprep.subr.mxu0 %v5120_v29  ;;  %5240 = vmatprep.subr.mxu1 %v5122_v48  ;;  %v5117_v29 = vld [vmem:[#allocation4 + $0x3e0] sm:$0xff]  ;;  %v20502_v48 = vld [vmem:[#allocation2 + $0x28] sm:$0xff] }
 0xb87   :  { %5170 = vmatpush1.msra.mxu0 %v5119_v19  ;;  %5241 = vmatpush1.msra.mxu1 %v5121_v47  ;;  %v20507_v19 = vld [vmem:[#allocation2 + $0x10] sm:$0xff]  ;;  %v20513_v47 = vld [vmem:[#allocation2 + $0x80] sm:$0xff] }
 0xb88   :  { %5171 = vmatprep.subr.mxu0 %v5114_v56  ;;  %5242 = vmatprep.subr.mxu1 %v5116_v35  ;;  %v20518_v56 = vld [vmem:[#allocation2 + $0x78] sm:$0xff]  ;;  %v20521_v35 = vld [vmem:[#allocation2 + $0x88] sm:$0xff] }
 0xb89   :  { %5172 = vmatpush1.msra.mxu0 %v5113_v54  ;;  %5243 = vmatpush1.msra.mxu1 %v5115_v57  ;;  %v20524_v54 = vld [vmem:[#allocation2 + $0x68] sm:$0xff]  ;;  %v20528_v57 = vld [vmem:[#allocation2 + $0x60] sm:$0xff] }
 0xb8a   :  { %5307 = vmatprep.subr.mxu0 %v5136_v33  ;;  %5392 = vmatprep.subr.mxu1 %v20474_v39  ;;  %v20531_v33 = vld [vmem:[#allocation2 + $0x70] sm:$0xff] }
 0xc37   :  { %v4943_v43 = vpop.f32.mrf.mxu1  ;;  %v4872_v62 = vpop.f32.mrf.mxu0 }
 0xc38   :  { %v4873_v3 = vadd.f32 %v4872_v62, %v23087_v2  ;;  %v4944_v22 = vadd.f32 %v4943_v43, %v19775_v40  ;;  %v20534_v43 = vld [vmem:[#allocation2 + $0x50] sm:$0xff]  ;;  %v20541_v62 = vld [vmem:[#allocation2 + $0x58] sm:$0xff] }
 0xc39   :  { %v18149_v38 = vpop.f32.mrf.mxu1  ;;  %v4874_v53 = vpop.f32.mrf.mxu0 }
 0xc3a   :  { %v4875_v14 = vadd.f32 %v4874_v53, %v19769_v58  ;;  %v20538_v38 = vld [vmem:[#allocation2 + $0x48] sm:$0xff]  ;;  %v20544_v53 = vld [vmem:[#allocation2 + $0x38] sm:$0xff] }
 0xc40   :  { %v5016_v4 = vpop.f32.mrf.mxu0  ;;  %v5087_v6 = vpop.f32.mrf.mxu1 }
 0xc41   :  { %v5091_v9 = vadd.f32 %v5016_v4, %v4873_v3  ;;  %v5105_v42 = vadd.f32 %v20233_v26, %v5087_v6  ;;  %v5129_v26 = vld [vmem:[#allocation4 + $0x440] sm:$0xff]  ;;  %v20548_v3 = vld [vmem:[#allocation2 + $0x30] sm:$0xff]  ;;  %v20552_v4 = vld [vmem:[#allocation2 + $0x40] sm:$0xff] }
 0xc42   :  { %v18160_v11 = vpop.f32.mrf.mxu1  ;;  %v5018_v13 = vpop.f32.mrf.mxu0  ;;  %v20561_v6 = vld [vmem:[#allocation2 + $0x110] sm:$0xff] }
 0xc43   :  { %v17316_v12 = vmul.f32 -1.442695, %v5091_v9  ;;  %v5098_v59 = vadd.f32 %v5018_v13, %v4875_v14  ;;  %v20565_v9 = vld [vmem:[#allocation2 + $0x108] sm:$0xff]  ;;  %v20568_v11 = vld [vmem:[#allocation2 + $0x118] sm:$0xff]  ;;  %v20575_v13 = vld [vmem:[#allocation2 + $0xf0] sm:$0xff] }
 0xc44   :  { %v20578_v14 = vld [vmem:[#allocation2 + $0x100] sm:$0xff] }
 0xc45   :  { %18890 = vpow2.f32 %v17316_v12  ;;  %v17317_v49 = vmul.f32 -1.442695, %v5098_v59  ;;  %v20571_v12 = vld [vmem:[#allocation2 + $0xf8] sm:$0xff]  ;;  %v20581_v59 = vld [vmem:[#allocation2 + $0xe0] sm:$0xff] }
 0xc47   :  { %18892 = vpow2.f32 %v17317_v49  ;;  %v20585_v49 = vld [vmem:[#allocation2 + $0xd8] sm:$0xff] }
 0xc52   :  { %v18891_v27 = vpop.eup %18890 }
 0xc53   :  { %v5095_v32 = vadd.f32 1.0, %v18891_v27  ;;  %v20588_v27 = vld [vmem:[#allocation2 + $0xe8] sm:$0xff] }
 0xc54   :  { %v18893_v21 = vpop.eup %18892 }
 0xc55   :  { %18894 = vrcp.f32 %v5095_v32  ;;  %v5102_v8 = vadd.f32 1.0, %v18893_v21  ;;  %v20591_v32 = vld [vmem:[#allocation2 + $0xc8] sm:$0xff]  ;;  %v20595_v21 = vld [vmem:[#allocation2 + $0xc0] sm:$0xff] }
 0xc57   :  { %18896 = vrcp.f32 %v5102_v8  ;;  %v20598_v8 = vld [vmem:[#allocation2 + $0xd0] sm:$0xff] }
 0xc62   :  { %v18895_v51 = vpop.eup %18894 }
 0xc63   :  { %v5106_v28 = vmul.f32 %v18895_v51, %v5105_v42  ;;  %v20604_v42 = vld [vmem:[#allocation2 + $0x170] sm:$0xff] }
 0xc64   :  { %v18897_v20 = vpop.eup %18896 }
 0xc65   :  { %v5107_v45 = vadd.f32 %v5106_v28, %v4944_v22  ;;  %v5109_v16 = vsub.f32 1.0, %v18897_v20  ;;  %v5111_v10 = vmul.f32 %v18897_v20, %v20359_v52  ;;  %v20490_v52 = vld [vmem:[#allocation2 + $0x8] sm:$0xff] }
 0xc67   :  { %18898 = vtanh.f32 %v5107_v45 }
 0xc74   :  { %v18899_v24 = vpop.eup %18898 }
 0xc75   :  { %v5110_v15 = vmul.f32 %v18899_v24, %v5109_v16 }
 0xc77   :  { %v20482_v37 = vadd.f32 %v5111_v10, %v5110_v15 }
 0xc79   :  { %v5137_v7 = vmax.f32 %v20482_v37, 0.0 }
 0xc7b   :  { %17318 = vmatmul.mubr.msk.f32.vlgmr.msra.gmra.mxu0 %vm311_vm2, %v5137_v7  ;;  %17319 = vmatmul.mubr.msk.f32.vlgmr.msra.gmra.mxu1 %vm311_vm2, %v5137_v7 }
 0xc7c   :  { %5308 = vmatpush1.msra.mxu0 %v5135_v18  ;;  %5393 = vmatpush1.msra.mxu1 %v20487_v23 }
 0xc7d   :  { %5309 = vmatprep.subr.mxu0 %v5130_v17  ;;  %5394 = vmatprep.subr.mxu1 %v20490_v52 }
 0xc7e   :  { %5310 = vmatpush1.msra.mxu0 %v5129_v26  ;;  %5395 = vmatpush1.msra.mxu1 %v20493_v1 }
 0xc7f   :  { %5311 = vmatprep.subr.mxu0 %v5124_v31  ;;  %5428 = vmatprep.mubr.f32.mxu1 %v23021_v60 }
 0xc80   :  { %18161 = vmatprep.subr.mxu1 %v23021_v60  ;;  %5312 = vmatpush1.msra.mxu0 %v5123_v5 }
 0xc81   :  { %17321 = vmatmul.mubr.msk.f32.vlgmr.msra.gmra.mxu1 %vm166_vm1, %v5360_v50  ;;  %5313 = vmatprep.subr.mxu0 %v5118_v63 }
 0xc82   :  { %18162 = vmatpush3.msra.mxu1 %v20502_v48  ;;  %5314 = vmatpush1.msra.mxu0 %v5117_v29 }
 0xc83   :  { %18163 = vmatprep.subr.mxu1 %v23021_v60  ;;  %5347 = vmatprep.mubr.f32.mxu0 %v23021_v60 }
 0xc84   :  { %18164 = vmatpush3.msra.mxu1 %v20507_v19  ;;  %17320 = vmatmul.mubr.msk.f32.vlgmr.msra.gmra.mxu0 %vm311_vm2, %v5137_v7 }
 0xc85   :  { %18165 = vmatprep.mubr.msk.f32.mxu1 %vm19513_vm0, %v23021_v60  ;;  %5529 = vmatprep.subr.mxu0 %v20513_v47 }
 0xc86   :  { %18168 = vmatprep.subr.mxu1 %v23021_v60  ;;  %18166 = vmatmul.mubr.msk.f32.vlgmr.msra.gmra.mxu1 %vm166_vm1, %v5360_v50 }
 0xc87   :  { %5530 = vmatpush1.msra.mxu0 %v20518_v56  ;;  %18169 = vmatpush3.msra.mxu1 %v20521_v35 }
 0xc88   :  { %5531 = vmatprep.subr.mxu0 %v20524_v54  ;;  %18170 = vmatprep.subr.mxu1 %v23021_v60 }
 0xc89   :  { %5532 = vmatpush1.msra.mxu0 %v20528_v57  ;;  %18171 = vmatpush3.msra.mxu1 %v20531_v33 }
 0xc8a   :  { %5533 = vmatprep.subr.mxu0 %v20534_v43  ;;  %18172 = vmatprep.subr.mxu1 %v23021_v60 }
 0xc8b   :  { %5534 = vmatpush1.msra.mxu0 %v20538_v38  ;;  %18173 = vmatpush3.msra.mxu1 %v20541_v62 }
 0xc8c   :  { %5535 = vmatprep.subr.mxu0 %v20544_v53  ;;  %18174 = vmatprep.subr.mxu1 %v23021_v60 }
 0xc8d   :  { %5536 = vmatpush1.msra.mxu0 %v20548_v3  ;;  %5569 = vmatprep.mubr.f32.mxu0 %v23021_v60 }
 0xc8e   :  { %18175 = vmatpush3.msra.mxu1 %v20552_v4  ;;  %18176 = vmatprep.mubr.msk.f32.mxu1 %vm19513_vm0, %v23021_v60 }
 0xc8f   :  { %17323 = vmatmul.mubr.msk.f32.vlgmr.msra.gmra.mxu0 %vm311_vm2, %v20445_v41  ;;  %18177 = vmatmul.mubr.msk.f32.vlgmr.msra.gmra.mxu1 %vm311_vm2, %v20445_v41 }
 0xc90   :  { %5695 = vmatprep.subr.mxu0 %v20561_v6  ;;  %18179 = vmatprep.subr.mxu1 %v23021_v60 }
 0xc91   :  { %5696 = vmatpush1.msra.mxu0 %v20565_v9  ;;  %18180 = vmatpush3.msra.mxu1 %v20568_v11 }
 0xc92   :  { %5697 = vmatprep.subr.mxu0 %v20571_v12  ;;  %18181 = vmatprep.subr.mxu1 %v23021_v60 }
 0xc93   :  { %5698 = vmatpush1.msra.mxu0 %v20575_v13  ;;  %18182 = vmatpush3.msra.mxu1 %v20578_v14 }
 0xc94   :  { %5699 = vmatprep.subr.mxu0 %v20581_v59  ;;  %18183 = vmatprep.subr.mxu1 %v23021_v60 }
 0xc95   :  { %5700 = vmatpush1.msra.mxu0 %v20585_v49  ;;  %18184 = vmatpush3.msra.mxu1 %v20588_v27 }
 0xc96   :  { %5701 = vmatprep.subr.mxu0 %v20591_v32  ;;  %18185 = vmatprep.subr.mxu1 %v23021_v60 }
 0xc97   :  { %5702 = vmatpush1.msra.mxu0 %v20595_v21  ;;  %18186 = vmatpush3.msra.mxu1 %v20598_v8 }
 0xc98   :  { %5735 = vmatprep.mubr.f32.mxu0 %v23021_v60  ;;  %18187 = vmatprep.mubr.msk.f32.mxu1 %vm19513_vm0, %v23021_v60 }
 0xc99   :  { %5839 = vmatprep.subr.mxu0 %v20604_v42  ;;  %18190 = vmatprep.subr.mxu1 %v23021_v60 }
 0xd3b   :  { %v5207_v51 = vpop.f32.mrf.mxu0  ;;  %v5278_v22 = vpop.f32.mrf.mxu1 }
 0xd3c   :  { %v20609_v28 = vadd.f32 %v5207_v51, %v20426_v25  ;;  %v20612_v45 = vadd.f32 %v5278_v22, %v20429_v30 }
 0xd3d   :  { %v20614_v20 = vpop.f32.mrf.mxu1  ;;  %v20616_v24 = vpop.f32.mrf.mxu0 }
 0xd3e   :  { %23088 = vst [vmem:[#allocation18_spill] sm:$0xff] %v20614_v20  ;;  %23089 = vst [vmem:[#allocation19_spill] sm:$0xff] %v20616_v24  ;;  %v5992_v24 = vld [vmem:[#allocation4 + $0x4f0] sm:$0xff] }
 0xd41   :  { %v5430_v16 = vpop.f32.mrf.mxu1 }
 0xd42   :  { %v5431_v26 = vadd.f32 %v5430_v16, %v23077_v36  ;;  %v20625_v16 = vld [vmem:[#allocation2 + $0xa8] ss:$0 sm:$0xff] }
 0xd43   :  { %v5432_v10 = vpop.f32.mrf.mxu1 }
 0xd44   :  { %v5349_v15 = vpop.f32.mrf.mxu0  ;;  %v5433_v51 = vadd.f32 %v5432_v10, %v19693_v46 }
 0xd45   :  { %v20619_v7 = vadd.f32 %v5349_v15, %v20436_v0 }
 0xd46   :  { %v5501_v18 = vpop.f32.mrf.mxu1  ;;  %v20622_v31 = vpop.f32.mrf.mxu0 }
 0xd47   :  { %23090 = vst [vmem:[#allocation27_spill] sm:$0xff] %v20622_v31 }
 0xd48   :  { %v18167_v17 = vpop.f32.mrf.mxu1 }
 0xd4f   :  { %v5571_v25 = vpop.f32.mrf.mxu0  ;;  %v5642_v5 = vpop.f32.mrf.mxu1 }
 0xd50   :  { %v5646_v30 = vadd.f32 %v5571_v25, %v5431_v26  ;;  %v5660_v31 = vadd.f32 %v20625_v16, %v5642_v5  ;;  %v5502_v26 = vadd.f32 %v5501_v18, %v19702_v61  ;;  %v20636_v5 = vld [vmem:[#allocation2 + $0x168] sm:$0xff]  ;;  %v20649_v18 = vld [vmem:[#allocation2 + $0x160] sm:$0xff] }
 0xd51   :  { %v18178_v50 = vpop.f32.mrf.mxu1  ;;  %v5573_v29 = vpop.f32.mrf.mxu0  ;;  %23092 = vst [vmem:[#allocation29_spill] sm:$0xff] %v20649_v18 }
 0xd52   :  { %v17325_v63 = vmul.f32 -1.442695, %v5646_v30  ;;  %v5653_v22 = vadd.f32 %v5573_v29, %v5433_v51 }
 0xd54   :  { %18900 = vpow2.f32 %v17325_v63  ;;  %v17326_v44 = vmul.f32 -1.442695, %v5653_v22  ;;  %v20656_v22 = vld [vmem:[#allocation2 + $0x138] sm:$0xff] }
 0xd55   :  { %23094 = vst [vmem:[#allocation31_spill] sm:$0xff] %v20656_v22 }
 0xd56   :  { %18902 = vpow2.f32 %v17326_v44 }
 0xd61   :  { %v18901_v0 = vpop.eup %18900 }
 0xd62   :  { %v5650_v15 = vadd.f32 1.0, %v18901_v0  ;;  %v20659_v0 = vld [vmem:[#allocation2 + $0x148] sm:$0xff] }
 0xd63   :  { %v18903_v17 = vpop.eup %18902  ;;  %23095 = vst [vmem:[#allocation32_spill] sm:$0xff] %v20659_v0 }
 0xd64   :  { %18904 = vrcp.f32 %v5650_v15  ;;  %v5657_v20 = vadd.f32 1.0, %v18903_v17  ;;  %v20662_v15 = vld [vmem:[#allocation2 + $0x128] sm:$0xff]  ;;  %v20666_v17 = vld [vmem:[#allocation2 + $0x120] sm:$0xff] }
 0xd65   :  { %23096 = vst [vmem:[#allocation37_spill] sm:$0xff] %v20662_v15  ;;  %23097 = vst [vmem:[#allocation38_spill] sm:$0xff] %v20666_v17 }
 0xd66   :  { %18906 = vrcp.f32 %v5657_v20  ;;  %v20642_v20 = vld [vmem:[#allocation2 + $0x158] sm:$0xff] }
 0xd71   :  { %v18905_v34 = vpop.eup %18904 }
 0xd72   :  { %v5661_v25 = vmul.f32 %v18905_v34, %v5660_v31  ;;  %v20639_v34 = vld [vmem:[#allocation2 + $0x178] sm:$0xff]  ;;  %v20652_v31 = vld [vmem:[#allocation2 + $0x140] sm:$0xff] }
 0xd73   :  { %v18907_v10 = vpop.eup %18906  ;;  %23093 = vst [vmem:[#allocation30_spill] sm:$0xff] %v20652_v31 }
 0xd74   :  { %v5662_v30 = vadd.f32 %v5661_v25, %v5502_v26  ;;  %v5664_v50 = vsub.f32 1.0, %v18907_v10  ;;  %v5666_v29 = vmul.f32 %v18907_v10, %v20445_v41  ;;  %v20646_v41 = vld [vmem:[#allocation2 + $0x150] sm:$0xff]  ;;  %v5996_v10 = vld [vmem:[#allocation4 + $0x510] sm:$0xff] }
 0xd75   :  { %23091 = vst [vmem:[#allocation28_spill] sm:$0xff] %v20646_v41  ;;  %v20670_v26 = vld [vmem:[#allocation2 + $0x130] sm:$0xff] }
 0xd76   :  { %18908 = vtanh.f32 %v5662_v30  ;;  %23098 = vst [vmem:[#allocation39_spill] sm:$0xff] %v20670_v26  ;;  %v5997_v25 = vld [vmem:[#allocation4 + $0x518] sm:$0xff]  ;;  %v5999_v30 = vld [vmem:[#allocation4 + $0x528] sm:$0xff] }
 0xd83   :  { %v18909_v63 = vpop.eup %18908 }
 0xd84   :  { %v5665_v44 = vmul.f32 %v18909_v63, %v5664_v50  ;;  %v5998_v50 = vld [vmem:[#allocation4 + $0x520] sm:$0xff]  ;;  %v5991_v63 = vld [vmem:[#allocation4 + $0x4e8] sm:$0xff] }
 0xd86   :  { %v20630_v51 = vadd.f32 %v5666_v29, %v5665_v44  ;;  %v5993_v44 = vld [vmem:[#allocation4 + $0x4f8] sm:$0xff]  ;;  %v5990_v29 = vld [vmem:[#allocation4 + $0x4e0] sm:$0xff] }
 0xd88   :  { %17327 = vmatmul.mubr.msk.f32.vlgmr.msra.gmra.mxu0 %vm311_vm2, %v20630_v51  ;;  %18188 = vmatmul.mubr.msk.f32.vlgmr.msra.gmra.mxu1 %vm311_vm2, %v20630_v51 }
 0xd89   :  { %5840 = vmatpush1.msra.mxu0 %v20636_v5  ;;  %18191 = vmatpush3.msra.mxu1 %v20639_v34 }
 0xd8a   :  { %5841 = vmatprep.subr.mxu0 %v20642_v20  ;;  %18192 = vmatprep.subr.mxu1 %v23021_v60 }
 0xd8b   :  { %5842 = vmatpush1.msra.mxu0 %v20646_v41  ;;  %18193 = vmatpush3.msra.mxu1 %v20649_v18  ;;  %v20684_v41 = vld [vmem:[#allocation2 + $0x198] ss:$0 sm:$0xff] }
 0xd8c   :  { %5843 = vmatprep.subr.mxu0 %v20652_v31  ;;  %18194 = vmatprep.subr.mxu1 %v23021_v60 }
 0xd8d   :  { %5844 = vmatpush1.msra.mxu0 %v20656_v22  ;;  %18195 = vmatpush3.msra.mxu1 %v20659_v0  ;;  %v5979_v0 = vld [vmem:[#allocation4 + $0x488] sm:$0xff]  ;;  %v5981_v22 = vld [vmem:[#allocation4 + $0x498] sm:$0xff] }
 0xd8e   :  { %5845 = vmatprep.subr.mxu0 %v20662_v15  ;;  %18196 = vmatprep.subr.mxu1 %v23021_v60  ;;  %v5986_v15 = vld [vmem:[#allocation4 + $0x4c0] sm:$0xff] }
 0xd8f   :  { %5846 = vmatpush1.msra.mxu0 %v20666_v17  ;;  %5879 = vmatprep.mubr.f32.mxu0 %v23021_v60  ;;  %v5984_v17 = vld [vmem:[#allocation4 + $0x4b0] sm:$0xff] }
 0xd90   :  { %18197 = vmatpush3.msra.mxu1 %v20670_v26  ;;  %18198 = vmatprep.mubr.msk.f32.mxu1 %vm19513_vm0, %v23021_v60  ;;  %v5987_v26 = vld [vmem:[#allocation4 + $0x4c8] sm:$0xff] }
 0xd91   :  { %17329 = vmatmul.mubr.msk.f32.vlgmr.msra.gmra.mxu0 %vm311_vm2, %v20482_v37  ;;  %18199 = vmatmul.mubr.msk.f32.vlgmr.msra.gmra.mxu1 %vm311_vm2, %v20482_v37 }
 0xd92   :  { %6070 = vmatprep.mubr.f32.mxu0 %v23021_v60  ;;  %6141 = vmatprep.mubr.f32.mxu1 %v23021_v60 }
 0xd93   :  { %6030 = vmatprep.subr.mxu0 %v5997_v25  ;;  %6101 = vmatprep.subr.mxu1 %v5999_v30  ;;  %v5978_v25 = vld [vmem:[#allocation4 + $0x480] sm:$0xff]  ;;  %v5980_v30 = vld [vmem:[#allocation4 + $0x490] sm:$0xff] }
 0xd94   :  { %6031 = vmatpush1.msra.mxu0 %v5996_v10  ;;  %6102 = vmatpush1.msra.mxu1 %v5998_v50  ;;  %v6001_v10 = vld [vmem:[#allocation4 + $0x538] sm:$0xff] }
 0xd95   :  { %6032 = vmatprep.subr.mxu0 %v5991_v63  ;;  %6103 = vmatprep.subr.mxu1 %v5993_v44 }
 0xd96   :  { %6033 = vmatpush1.msra.mxu0 %v5990_v29  ;;  %6104 = vmatpush1.msra.mxu1 %v5992_v24 }
 0xd97   :  { %6034 = vmatprep.subr.mxu0 %v5985_v55  ;;  %6105 = vmatprep.subr.mxu1 %v5987_v26 }
 0xd98   :  { %6035 = vmatpush1.msra.mxu0 %v5984_v17  ;;  %6106 = vmatpush1.msra.mxu1 %v5986_v15 }
 0xd99   :  { %6036 = vmatprep.subr.mxu0 %v5979_v0  ;;  %6107 = vmatprep.subr.mxu1 %v5981_v22 }
 0xd9a   :  { %6037 = vmatpush1.msra.mxu0 %v5978_v25  ;;  %6108 = vmatpush1.msra.mxu1 %v5980_v30 }
 0xd9b   :  { %6172 = vmatprep.subr.mxu0 %v6001_v10  ;;  %6257 = vmatprep.subr.mxu1 %v20474_v39 }
 0xe48   :  { %v5808_v50 = vpop.f32.mrf.mxu1  ;;  %v5737_v44 = vpop.f32.mrf.mxu0 }
 0xe49   :  { %v5738_v29 = vadd.f32 %v5737_v44, %v23087_v2 }
 0xe4a   :  { %v18189_v63 = vpop.f32.mrf.mxu1  ;;  %v5739_v24 = vpop.f32.mrf.mxu0 }
 0xe4b   :  { %v5740_v0 = vadd.f32 %v5739_v24, %v19769_v58 }
 0xe51   :  { %v5881_v55 = vpop.f32.mrf.mxu0  ;;  %v5952_v26 = vpop.f32.mrf.mxu1 }
 0xe52   :  { %v5956_v31 = vadd.f32 %v5881_v55, %v5738_v29  ;;  %v5970_v44 = vadd.f32 %v20684_v41, %v5952_v26  ;;  %v6225_v26 = vld [vmem:[%s22915_s0 + $0x38] sm:$0xff]  ;;  %s19514_s0 = smov 64  }
 0xe53   :  { %v18200_v18 = vpop.f32.mrf.mxu1  ;;  %v5883_v15 = vpop.f32.mrf.mxu0 }
 0xe54   :  { %v17331_v17 = vmul.f32 -1.442695, %v5956_v31  ;;  %v5963_v22 = vadd.f32 %v5883_v15, %v5740_v0  ;;  %v5809_v18 = vadd.f32 %v5808_v50, %v19775_v40  ;;  %v5989_v50 = vld [vmem:[#allocation4 + $0x4d8] sm:$0xff] }
 0xe56   :  { %18910 = vpow2.f32 %v17331_v17  ;;  %v17332_v25 = vmul.f32 -1.442695, %v5963_v22 }
 0xe58   :  { %18912 = vpow2.f32 %v17332_v25 }
 0xe63   :  { %v18911_v30 = vpop.eup %18910 }
 0xe64   :  { %v5960_v39 = vadd.f32 1.0, %v18911_v30  ;;  %v6000_v30 = vld [vmem:[#allocation4 + $0x530] sm:$0xff] }
 0xe65   :  { %v18913_v10 = vpop.eup %18912 }
 0xe66   :  { %18914 = vrcp.f32 %v5960_v39  ;;  %v5967_v63 = vadd.f32 1.0, %v18913_v10  ;;  %v5995_v39 = vld [vmem:[#allocation4 + $0x508] sm:$0xff] }
 0xe67   :  { %v5983_v10 = vld [vmem:[#allocation4 + $0x4a8] sm:$0xff] }
 0xe68   :  { %18916 = vrcp.f32 %v5967_v63  ;;  %v5982_v63 = vld [vmem:[#allocation4 + $0x4a0] sm:$0xff] }
 0xe73   :  { %v18915_v2 = vpop.eup %18914 }
 0xe74   :  { %v5971_v31 = vmul.f32 %v18915_v2, %v5970_v44  ;;  %v5994_v2 = vld [vmem:[#allocation4 + $0x500] sm:$0xff] }
 0xe75   :  { %v18917_v24 = vpop.eup %18916 }
 0xe76   :  { %v5972_v29 = vadd.f32 %v5971_v31, %v5809_v18  ;;  %v5974_v55 = vsub.f32 1.0, %v18917_v24  ;;  %v5976_v15 = vmul.f32 %v18917_v24, %v20482_v37  ;;  %v5988_v37 = vld [vmem:[#allocation4 + $0x4d0] sm:$0xff]  ;;  %v23105_v24 = vld [vmem:[#allocation32_spill] sm:$0xff] }
 0xe78   :  { %18918 = vtanh.f32 %v5972_v29  ;;  %v23104_v29 = vld [vmem:[#allocation31_spill] sm:$0xff] }
 0xe85   :  { %v18919_v17 = vpop.eup %18918 }
 0xe86   :  { %v5975_v0 = vmul.f32 %v18919_v17, %v5974_v55  ;;  %v23106_v55 = vld [vmem:[#allocation37_spill] sm:$0xff] }
 0xe87   :  { %v6864_v17 = vld [vmem:[#allocation4 + $0x5e8] sm:$0xff] }
 0xe88   :  { %v20689_v22 = vadd.f32 %v5976_v15, %v5975_v0  ;;  %v6861_v15 = vld [vmem:[#allocation4 + $0x5d0] sm:$0xff]  ;;  %v6863_v0 = vld [vmem:[#allocation4 + $0x5e0] sm:$0xff] }
 0xe8a   :  { %v6002_v25 = vmax.f32 %v20689_v22, 0.0 }
 0xe8c   :  { %17333 = vmatmul.mubr.msk.f32.vlgmr.msra.gmra.mxu0 %vm311_vm2, %v6002_v25  ;;  %17334 = vmatmul.mubr.msk.f32.vlgmr.msra.gmra.mxu1 %vm311_vm2, %v6002_v25 }
 0xe8d   :  { %6173 = vmatpush1.msra.mxu0 %v6000_v30  ;;  %6258 = vmatpush1.msra.mxu1 %v20487_v23  ;;  %v6858_v30 = vld [vmem:[#allocation4 + $0x5b8] sm:$0xff] }
 0xe8e   :  { %6174 = vmatprep.subr.mxu0 %v5995_v39  ;;  %6259 = vmatprep.subr.mxu1 %v20490_v52  ;;  %v6855_v39 = vld [vmem:[#allocation4 + $0x5a0] sm:$0xff] }
 0xe8f   :  { %6175 = vmatpush1.msra.mxu0 %v5994_v2  ;;  %6260 = vmatpush1.msra.mxu1 %v20493_v1  ;;  %v6857_v2 = vld [vmem:[#allocation4 + $0x5b0] sm:$0xff] }
 0xe90   :  { %6176 = vmatprep.subr.mxu0 %v5989_v50  ;;  %6293 = vmatprep.mubr.f32.mxu1 %v23021_v60  ;;  %v6850_v50 = vld [vmem:[#allocation4 + $0x578] sm:$0xff] }
 0xe91   :  { %18201 = vmatprep.subr.mxu1 %v23021_v60  ;;  %6177 = vmatpush1.msra.mxu0 %v5988_v37  ;;  %v6852_v37 = vld [vmem:[#allocation4 + $0x588] sm:$0xff] }
 0xe92   :  { %17336 = vmatmul.mubr.msk.f32.vlgmr.msra.gmra.mxu1 %vm166_vm1, %v6225_v26  ;;  %6178 = vmatprep.subr.mxu0 %v5983_v10  ;;  %v6851_v10 = vld [vmem:[#allocation4 + $0x580] sm:$0xff] }
 0xe93   :  { %18202 = vmatpush3.msra.mxu1 %v20502_v48  ;;  %6179 = vmatpush1.msra.mxu0 %v5982_v63  ;;  %v6844_v63 = vld [vmem:[#allocation4 + $0x548] sm:$0xff] }
 0xe94   :  { %18203 = vmatprep.subr.mxu1 %v23021_v60  ;;  %6212 = vmatprep.mubr.f32.mxu0 %v23021_v60 }
 0xe95   :  { %18204 = vmatpush3.msra.mxu1 %v20507_v19  ;;  %17335 = vmatmul.mubr.msk.f32.vlgmr.msra.gmra.mxu0 %vm311_vm2, %v6002_v25  ;;  %v6856_v25 = vld [vmem:[#allocation4 + $0x5a8] sm:$0xff] }
 0xe96   :  { %18205 = vmatprep.mubr.msk.f32.mxu1 %vm19513_vm0, %v23021_v60  ;;  %6394 = vmatprep.subr.mxu0 %v20513_v47 }
 0xe97   :  { %18208 = vmatprep.subr.mxu1 %v23021_v60  ;;  %18206 = vmatmul.mubr.msk.f32.vlgmr.msra.gmra.mxu1 %vm166_vm1, %v6225_v26  ;;  %v6849_v26 = vld [vmem:[#allocation4 + $0x570] sm:$0xff] }
 0xe98   :  { %6395 = vmatpush1.msra.mxu0 %v20518_v56  ;;  %18209 = vmatpush3.msra.mxu1 %v20521_v35 }
 0xe99   :  { %6396 = vmatprep.subr.mxu0 %v20524_v54  ;;  %18210 = vmatprep.subr.mxu1 %v23021_v60 }
 0xe9a   :  { %6397 = vmatpush1.msra.mxu0 %v20528_v57  ;;  %18211 = vmatpush3.msra.mxu1 %v20531_v33 }
 0xe9b   :  { %6398 = vmatprep.subr.mxu0 %v20534_v43  ;;  %18212 = vmatprep.subr.mxu1 %v23021_v60 }
 0xe9c   :  { %6399 = vmatpush1.msra.mxu0 %v20538_v38  ;;  %18213 = vmatpush3.msra.mxu1 %v20541_v62 }
 0xe9d   :  { %6400 = vmatprep.subr.mxu0 %v20544_v53  ;;  %18214 = vmatprep.subr.mxu1 %v23021_v60 }
 0xe9e   :  { %6401 = vmatpush1.msra.mxu0 %v20548_v3  ;;  %6434 = vmatprep.mubr.f32.mxu0 %v23021_v60 }
 0xe9f   :  { %18215 = vmatpush3.msra.mxu1 %v20552_v4  ;;  %18216 = vmatprep.mubr.msk.f32.mxu1 %vm19513_vm0, %v23021_v60 }
 0xea0   :  { %17338 = vmatmul.mubr.msk.f32.vlgmr.msra.gmra.mxu0 %vm311_vm2, %v20630_v51  ;;  %18217 = vmatmul.mubr.msk.f32.vlgmr.msra.gmra.mxu1 %vm311_vm2, %v20630_v51 }
 0xea1   :  { %6560 = vmatprep.subr.mxu0 %v20561_v6  ;;  %18219 = vmatprep.subr.mxu1 %v23021_v60 }
 0xea2   :  { %6561 = vmatpush1.msra.mxu0 %v20565_v9  ;;  %18220 = vmatpush3.msra.mxu1 %v20568_v11 }
 0xea3   :  { %6562 = vmatprep.subr.mxu0 %v20571_v12  ;;  %18221 = vmatprep.subr.mxu1 %v23021_v60 }
 0xea4   :  { %6563 = vmatpush1.msra.mxu0 %v20575_v13  ;;  %18222 = vmatpush3.msra.mxu1 %v20578_v14 }
 0xea5   :  { %6564 = vmatprep.subr.mxu0 %v20581_v59  ;;  %18223 = vmatprep.subr.mxu1 %v23021_v60 }
 0xea6   :  { %6565 = vmatpush1.msra.mxu0 %v20585_v49  ;;  %18224 = vmatpush3.msra.mxu1 %v20588_v27 }
 0xea7   :  { %6566 = vmatprep.subr.mxu0 %v20591_v32  ;;  %18225 = vmatprep.subr.mxu1 %v23021_v60 }
 0xea8   :  { %6567 = vmatpush1.msra.mxu0 %v20595_v21  ;;  %18226 = vmatpush3.msra.mxu1 %v20598_v8 }
 0xea9   :  { %6600 = vmatprep.mubr.f32.mxu0 %v23021_v60  ;;  %18227 = vmatprep.mubr.msk.f32.mxu1 %vm19513_vm0, %v23021_v60 }
 0xeaa   :  { %6704 = vmatprep.subr.mxu0 %v20604_v42  ;;  %18230 = vmatprep.subr.mxu1 %v23021_v60 }
 0xf4c   :  { %v6072_v23 = vpop.f32.mrf.mxu0  ;;  %v6143_v52 = vpop.f32.mrf.mxu1 }
 0xf4d   :  { %v20756_v1 = vadd.f32 %v6072_v23, %v20609_v28  ;;  %v20759_v48 = vadd.f32 %v6143_v52, %v20612_v45  ;;  %v6846_v23 = vld [vmem:[#allocation4 + $0x558] sm:$0xff]  ;;  %v6843_v52 = vld [vmem:[#allocation4 + $0x540] sm:$0xff] }
 0xf4e   :  { %v20761_v19 = vpop.f32.mrf.mxu1  ;;  %v20763_v56 = vpop.f32.mrf.mxu0 }
 0xf4f   :  { %23099 = vst [vmem:[#allocation40_spill] sm:$0xff] %v20761_v19 }
 0xf52   :  { %v6295_v47 = vpop.f32.mrf.mxu1 }
 0xf53   :  { %v6296_v38 = vadd.f32 %v6295_v47, %v23077_v36  ;;  %v6845_v47 = vld [vmem:[#allocation4 + $0x550] sm:$0xff] }
 0xf54   :  { %v6297_v35 = vpop.f32.mrf.mxu1 }
 0xf55   :  { %v6214_v54 = vpop.f32.mrf.mxu0  ;;  %v6298_v12 = vadd.f32 %v6297_v35, %v19693_v46  ;;  %v6866_v35 = vld [vmem:[#allocation4 + $0x5f8] sm:$0xff] }
 0xf56   :  { %v20766_v57 = vadd.f32 %v6214_v54, %v20619_v7  ;;  %v20804_v54 = vld [vmem:[#allocation2 + $0x200] sm:$0xff] }
 0xf57   :  { %v6366_v33 = vpop.f32.mrf.mxu1  ;;  %v20769_v62 = vpop.f32.mrf.mxu0 }
 0xf58   :  { %23100 = vst [vmem:[#allocation41_spill] sm:$0xff] %v20769_v62  ;;  %v6367_v8 = vadd.f32 %v6366_v33, %v19702_v61  ;;  %v23101_v61 = vld [vmem:[#allocation28_spill] sm:$0xff] }
 0xf59   :  { %v18207_v43 = vpop.f32.mrf.mxu1  ;;  %23109 = vst [vmem:[#allocation28_spill] sm:$0xff] %v20804_v54 }
 0xf60   :  { %v6436_v53 = vpop.f32.mrf.mxu0  ;;  %v6507_v3 = vpop.f32.mrf.mxu1 }
 0xf61   :  { %v6511_v4 = vadd.f32 %v6436_v53, %v6296_v38  ;;  %v6525_v36 = vadd.f32 %v20625_v16, %v6507_v3  ;;  %v23102_v16 = vld [vmem:[#allocation29_spill] sm:$0xff]  ;;  %v23110_v3 = vld [vmem:[#allocation20_spill] sm:$0xff] }
 0xf62   :  { %v18218_v6 = vpop.f32.mrf.mxu1  ;;  %v6438_v11 = vpop.f32.mrf.mxu0 }
 0xf63   :  { %v17340_v9 = vmul.f32 -1.442695, %v6511_v4  ;;  %v6518_v13 = vadd.f32 %v6438_v11, %v6298_v12 }
 0xf65   :  { %18920 = vpow2.f32 %v17340_v9  ;;  %v17341_v14 = vmul.f32 -1.442695, %v6518_v13 }
 0xf67   :  { %18922 = vpow2.f32 %v17341_v14 }
 0xf72   :  { %v18921_v59 = vpop.eup %18920 }
 0xf73   :  { %v6515_v49 = vadd.f32 1.0, %v18921_v59 }
 0xf74   :  { %v18923_v27 = vpop.eup %18922 }
 0xf75   :  { %18924 = vrcp.f32 %v6515_v49  ;;  %v6522_v32 = vadd.f32 1.0, %v18923_v27 }
 0xf77   :  { %18926 = vrcp.f32 %v6522_v32 }
 0xf82   :  { %v18925_v21 = vpop.eup %18924 }
 0xf83   :  { %v6526_v42 = vmul.f32 %v18925_v21, %v6525_v36 }
 0xf84   :  { %v18927_v45 = vpop.eup %18926 }
 0xf85   :  { %v6527_v28 = vadd.f32 %v6526_v42, %v6367_v8  ;;  %v6529_v46 = vsub.f32 1.0, %v18927_v45  ;;  %v6531_v18 = vmul.f32 %v18927_v45, %v20630_v51  ;;  %v23103_v51 = vld [vmem:[#allocation30_spill] sm:$0xff] }
 0xf87   :  { %18928 = vtanh.f32 %v6527_v28 }
 0xf94   :  { %v18929_v7 = vpop.eup %18928 }
 0xf95   :  { %v6530_v44 = vmul.f32 %v18929_v7, %v6529_v46 }
 0xf97   :  { %v20775_v31 = vadd.f32 %v6531_v18, %v6530_v44 }
 0xf99   :  { %17342 = vmatmul.mubr.msk.f32.vlgmr.msra.gmra.mxu0 %vm311_vm2, %v20775_v31  ;;  %18228 = vmatmul.mubr.msk.f32.vlgmr.msra.gmra.mxu1 %vm311_vm2, %v20775_v31 }
 0xf9a   :  { %6705 = vmatpush1.msra.mxu0 %v20636_v5  ;;  %18231 = vmatpush3.msra.mxu1 %v20639_v34  ;;  %v23107_v5 = vld [vmem:[#allocation38_spill] sm:$0xff]  ;;  %v23108_v34 = vld [vmem:[#allocation39_spill] sm:$0xff] }
 0xf9b   :  { %6706 = vmatprep.subr.mxu0 %v20642_v20  ;;  %18232 = vmatprep.subr.mxu1 %v23021_v60  ;;  %v6862_v20 = vld [vmem:[#allocation4 + $0x5d8] sm:$0xff] }
 0xf9c   :  { %6707 = vmatpush1.msra.mxu0 %v23101_v61  ;;  %18233 = vmatpush3.msra.mxu1 %v23102_v16 }
 0xf9d   :  { %6708 = vmatprep.subr.mxu0 %v23103_v51  ;;  %18234 = vmatprep.subr.mxu1 %v23021_v60 }
 0xf9e   :  { %6709 = vmatpush1.msra.mxu0 %v23104_v29  ;;  %18235 = vmatpush3.msra.mxu1 %v23105_v24  ;;  %v6865_v24 = vld [vmem:[#allocation4 + $0x5f0] sm:$0xff] }
 0xf9f   :  { %6710 = vmatprep.subr.mxu0 %v23106_v55  ;;  %18236 = vmatprep.subr.mxu1 %v23021_v60  ;;  %v20815_v55 = vld [vmem:[#allocation2 + $0x1f8] sm:$0xff] }
 0xfa0   :  { %6711 = vmatpush1.msra.mxu0 %v23107_v5  ;;  %6744 = vmatprep.mubr.f32.mxu0 %v23021_v60  ;;  %v20817_v5 = vld [vmem:[#allocation2 + $0x1e8] sm:$0xff] }
 0xfa1   :  { %18237 = vmatpush3.msra.mxu1 %v23108_v34  ;;  %18238 = vmatprep.mubr.msk.f32.mxu1 %vm19513_vm0, %v23021_v60  ;;  %v20821_v34 = vld [vmem:[#allocation2 + $0x1e0] sm:$0xff] }
 0xfa2   :  { %17344 = vmatmul.mubr.msk.f32.vlgmr.msra.gmra.mxu0 %vm311_vm2, %v20689_v22  ;;  %18239 = vmatmul.mubr.msk.f32.vlgmr.msra.gmra.mxu1 %vm311_vm2, %v20689_v22 }
 0xfa3   :  { %6935 = vmatprep.mubr.f32.mxu0 %v23021_v60  ;;  %7006 = vmatprep.mubr.f32.mxu1 %v23021_v60 }
 0xfa4   :  { %6895 = vmatprep.subr.mxu0 %v6862_v20  ;;  %6966 = vmatprep.subr.mxu1 %v6864_v17  ;;  %v20824_v20 = vld [vmem:[#allocation2 + $0x1d0] sm:$0xff]  ;;  %v6853_v17 = vld [vmem:[#allocation4 + $0x590] sm:$0xff] }
 0xfa5   :  { %6896 = vmatpush1.msra.mxu0 %v6861_v15  ;;  %6967 = vmatpush1.msra.mxu1 %v6863_v0  ;;  %v20827_v15 = vld [vmem:[#allocation2 + $0x1c8] sm:$0xff]  ;;  %v6848_v0 = vld [vmem:[#allocation4 + $0x568] sm:$0xff] }
 0xfa6   :  { %6897 = vmatprep.subr.mxu0 %v6856_v25  ;;  %6968 = vmatprep.subr.mxu1 %v6858_v30  ;;  %v20830_v25 = vld [vmem:[#allocation2 + $0x1b8] sm:$0xff] }
 0xfa7   :  { %6898 = vmatpush1.msra.mxu0 %v6855_v39  ;;  %6969 = vmatpush1.msra.mxu1 %v6857_v2  ;;  %v6847_v30 = vld [vmem:[#allocation4 + $0x560] sm:$0xff]  ;;  %v20834_v39 = vld [vmem:[#allocation2 + $0x1b0] sm:$0xff]  ;;  %v20840_v2 = vld [vmem:[#allocation2 + $0x208] sm:$0xff] }
 0xfa8   :  { %6899 = vmatprep.subr.mxu0 %v6850_v50  ;;  %6970 = vmatprep.subr.mxu1 %v6852_v37  ;;  %v20846_v50 = vld [vmem:[#allocation2 + $0x1f0] sm:$0xff]  ;;  %v20853_v37 = vld [vmem:[#allocation2 + $0x1d8] sm:$0xff] }
 0xfa9   :  { %6900 = vmatpush1.msra.mxu0 %v6849_v26  ;;  %6971 = vmatpush1.msra.mxu1 %v6851_v10  ;;  %v20857_v26 = vld [vmem:[#allocation2 + $0x1c0] sm:$0xff] }
 0xfaa   :  { %6901 = vmatprep.subr.mxu0 %v6844_v63  ;;  %6972 = vmatprep.subr.mxu1 %v6846_v23 }
 0xfab   :  { %6902 = vmatpush1.msra.mxu0 %v6843_v52  ;;  %6973 = vmatpush1.msra.mxu1 %v6845_v47 }
 0xfac   :  { %7037 = vmatprep.subr.mxu0 %v6866_v35  ;;  %7205 = vmatprep.subr.mxu1 %v20804_v54 }
0x1059   :  { %v6673_v33 = vpop.f32.mrf.mxu1  ;;  %v6602_v38 = vpop.f32.mrf.mxu0 }
0x105a   :  { %v6603_v4 = vadd.f32 %v6602_v38, %v23110_v3  ;;  %v6674_v45 = vadd.f32 %v6673_v33, %v19775_v40  ;;  %v6859_v40 = vld [vmem:[#allocation4 + $0x5c0] sm:$0xff] }
0x105b   :  { %v18229_v43 = vpop.f32.mrf.mxu1  ;;  %v6604_v53 = vpop.f32.mrf.mxu0 }
0x105c   :  { %v6605_v59 = vadd.f32 %v6604_v53, %v19769_v58 }
0x1062   :  { %v6746_v6 = vpop.f32.mrf.mxu0  ;;  %v6817_v9 = vpop.f32.mrf.mxu1 }
0x1063   :  { %v6821_v11 = vadd.f32 %v6746_v6, %v6603_v4  ;;  %v6835_v42 = vadd.f32 %v20684_v41, %v6817_v9  ;;  %v6860_v41 = vld [vmem:[#allocation4 + $0x5c8] sm:$0xff] }
0x1064   :  { %v18240_v12 = vpop.f32.mrf.mxu1  ;;  %v6748_v14 = vpop.f32.mrf.mxu0 }
0x1065   :  { %v17346_v13 = vmul.f32 -1.442695, %v6821_v11  ;;  %v6828_v49 = vadd.f32 %v6748_v14, %v6605_v59  ;;  %v20883_v12 = vld [vmem:[#allocation2 + $0x210] ss:$0 sm:$0xff] }
0x1066   :  { %23115 = vst [vmem:[#allocation37_spill] sm:$0xff] %v20883_v12 }
0x1067   :  { %18930 = vpow2.f32 %v17346_v13  ;;  %v17347_v27 = vmul.f32 -1.442695, %v6828_v49 }
0x1069   :  { %18932 = vpow2.f32 %v17347_v27  ;;  %v20889_v27 = vld [vmem:[#allocation2 + $0x278] sm:$0xff] }
0x1074   :  { %v18931_v32 = vpop.eup %18930 }
0x1075   :  { %v6825_v36 = vadd.f32 1.0, %v18931_v32  ;;  %v20891_v32 = vld [vmem:[#allocation2 + $0x270] sm:$0xff] }
0x1076   :  { %v18933_v21 = vpop.eup %18932 }
0x1077   :  { %18934 = vrcp.f32 %v6825_v36  ;;  %v6832_v8 = vadd.f32 1.0, %v18933_v21  ;;  %v20893_v36 = vld [vmem:[#allocation2 + $0x280] sm:$0xff] }
0x1078   :  { %v20897_v21 = vld [vmem:[#allocation2 + $0x260] sm:$0xff] }
0x1079   :  { %18936 = vrcp.f32 %v6832_v8  ;;  %v20899_v8 = vld [vmem:[#allocation2 + $0x258] sm:$0xff] }
0x1084   :  { %v18935_v28 = vpop.eup %18934 }
0x1085   :  { %v6836_v46 = vmul.f32 %v18935_v28, %v6835_v42  ;;  %v20901_v42 = vld [vmem:[#allocation2 + $0x268] sm:$0xff] }
0x1086   :  { %v18937_v44 = vpop.eup %18936  ;;  %v20905_v28 = vld [vmem:[#allocation2 + $0x248] sm:$0xff] }
0x1087   :  { %v6837_v7 = vadd.f32 %v6836_v46, %v6674_v45  ;;  %v6839_v58 = vsub.f32 1.0, %v18937_v44  ;;  %v6841_v61 = vmul.f32 %v18937_v44, %v20689_v22  ;;  %v6854_v22 = vld [vmem:[#allocation4 + $0x598] sm:$0xff]  ;;  %v20909_v45 = vld [vmem:[#allocation2 + $0x240] sm:$0xff] }
0x1088   :  { %v20911_v46 = vld [vmem:[#allocation2 + $0x250] sm:$0xff] }
0x1089   :  { %18938 = vtanh.f32 %v6837_v7  ;;  %v20915_v44 = vld [vmem:[#allocation2 + $0x230] sm:$0xff] }
0x1096   :  { %v18939_v18 = vpop.eup %18938 }
0x1097   :  { %v6840_v16 = vmul.f32 %v18939_v18, %v6839_v58  ;;  %v20919_v58 = vld [vmem:[#allocation2 + $0x228] sm:$0xff]  ;;  %v20921_v18 = vld [vmem:[#allocation2 + $0x238] sm:$0xff] }
0x1099   :  { %v20812_v51 = vadd.f32 %v6841_v61, %v6840_v16  ;;  %v20925_v61 = vld [vmem:[#allocation2 + $0x2d8] sm:$0xff] }
0x109b   :  { %v6867_v29 = vmax.f32 %v20812_v51, 0.0 }
0x109d   :  { %17348 = vmatmul.mubr.msk.f32.vlgmr.msra.gmra.mxu0 %vm311_vm2, %v6867_v29  ;;  %17349 = vmatmul.mubr.msk.f32.vlgmr.msra.gmra.mxu1 %vm311_vm2, %v6867_v29 }
0x109e   :  { %7038 = vmatpush1.msra.mxu0 %v6865_v24  ;;  %7206 = vmatpush1.msra.mxu1 %v20815_v55 }
0x109f   :  { %7039 = vmatprep.subr.mxu0 %v6860_v41  ;;  %7207 = vmatprep.subr.mxu1 %v20817_v5 }
0x10a0   :  { %7040 = vmatpush1.msra.mxu0 %v6859_v40  ;;  %7208 = vmatpush1.msra.mxu1 %v20821_v34 }
0x10a1   :  { %7041 = vmatprep.subr.mxu0 %v6854_v22  ;;  %7209 = vmatprep.subr.mxu1 %v20824_v20 }
0x10a2   :  { %7042 = vmatpush1.msra.mxu0 %v6853_v17  ;;  %7210 = vmatpush1.msra.mxu1 %v20827_v15 }
0x10a3   :  { %7043 = vmatprep.subr.mxu0 %v6848_v0  ;;  %7211 = vmatprep.subr.mxu1 %v20830_v25 }
0x10a4   :  { %7044 = vmatpush1.msra.mxu0 %v6847_v30  ;;  %7077 = vmatprep.mubr.f32.mxu0 %v23021_v60 }
0x10a5   :  { %7212 = vmatpush1.msra.mxu1 %v20834_v39  ;;  %7245 = vmatprep.mubr.f32.mxu1 %v23021_v60 }
0x10a6   :  { %17350 = vmatmul.mubr.msk.f32.vlgmr.msra.gmra.mxu0 %vm311_vm2, %v6867_v29  ;;  %17351 = vmatmul.mubr.msk.f32.vlgmr.msra.gmra.mxu1 %vm311_vm2, %v20775_v31 }
0x10a7   :  { %18241 = vmatprep.subr.mxu0 %v23021_v60  ;;  %18249 = vmatprep.mubr.msk.f32.mxu0 %vm19513_vm0, %v23021_v60 }
0x10a8   :  { %18242 = vmatpush3.msra.mxu0 %v20840_v2  ;;  %7428 = vmatprep.mubr.f32.mxu1 %v23021_v60 }
0x10a9   :  { %18243 = vmatprep.subr.mxu0 %v23021_v60  ;;  %7388 = vmatprep.subr.mxu1 %v20889_v27 }
0x10aa   :  { %18244 = vmatpush3.msra.mxu0 %v20846_v50  ;;  %7389 = vmatpush1.msra.mxu1 %v20891_v32 }
0x10ab   :  { %18245 = vmatprep.subr.mxu0 %v23021_v60  ;;  %7390 = vmatprep.subr.mxu1 %v20897_v21 }
0x10ac   :  { %18246 = vmatpush3.msra.mxu0 %v20853_v37  ;;  %7391 = vmatpush1.msra.mxu1 %v20899_v8 }
0x10ad   :  { %18247 = vmatprep.subr.mxu0 %v23021_v60  ;;  %7392 = vmatprep.subr.mxu1 %v20905_v28 }
0x10ae   :  { %18248 = vmatpush3.msra.mxu0 %v20857_v26  ;;  %7393 = vmatpush1.msra.mxu1 %v20909_v45 }
0x10af   :  { %18250 = vmatmul.mubr.msk.f32.vlgmr.msra.gmra.mxu0 %vm311_vm2, %v20775_v31  ;;  %18252 = vmatprep.subr.mxu0 %v23021_v60 }
0x10b0   :  { %18260 = vmatprep.mubr.msk.f32.mxu0 %vm19513_vm0, %v23021_v60  ;;  %18253 = vmatpush3.msra.mxu0 %v20893_v36 }
0x10b1   :  { %18254 = vmatprep.subr.mxu0 %v23021_v60  ;;  %7394 = vmatprep.subr.mxu1 %v20915_v44 }
0x10b2   :  { %18255 = vmatpush3.msra.mxu0 %v20901_v42  ;;  %7395 = vmatpush1.msra.mxu1 %v20919_v58 }
0x10b3   :  { %18256 = vmatprep.subr.mxu0 %v23021_v60  ;;  %7532 = vmatprep.subr.mxu1 %v20925_v61 }
0x10b4   :  { %18257 = vmatpush3.msra.mxu0 %v20911_v46 }
0x10b5   :  { %18258 = vmatprep.subr.mxu0 %v23021_v60 }
0x10b6   :  { %18259 = vmatpush3.msra.mxu0 %v20921_v18 }
0x10b7   :  { %18263 = vmatprep.subr.mxu0 %v23021_v60 }
0x115d   :  { %v7008_v10 = vpop.f32.mrf.mxu1  ;;  %v6937_v23 = vpop.f32.mrf.mxu0 }
0x115e   :  { %v20868_v63 = vadd.f32 %v7008_v10, %v20759_v48  ;;  %v20875_v35 = vadd.f32 %v6937_v23, %v20756_v1 }
0x115f   :  { %v20870_v52 = vpop.f32.mrf.mxu0  ;;  %v20872_v47 = vpop.f32.mrf.mxu1 }
0x1160   :  { %23111 = vst [vmem:[#allocation29_spill] sm:$0xff] %v20868_v63  ;;  %23112 = vst [vmem:[#allocation30_spill] sm:$0xff] %v20872_v47 }
0x1166   :  { %v7079_v33 = vpop.f32.mrf.mxu0  ;;  %v7247_v43 = vpop.f32.mrf.mxu1 }
0x1167   :  { %v20878_v38 = vadd.f32 %v7079_v33, %v20766_v57  ;;  %v7322_v53 = vadd.f32 %v7247_v43, %v20875_v35  ;;  %v20939_v43 = vld [vmem:[#allocation2 + $0x2e0] sm:$0xff] }
0x1168   :  { %v20881_v4 = vpop.f32.mrf.mxu0  ;;  %v7249_v57 = vpop.f32.mrf.mxu1 }
0x1169   :  { %23113 = vst [vmem:[#allocation31_spill] sm:$0xff] %v20878_v38  ;;  %v17353_v3 = vmul.f32 -1.442695, %v7322_v53  ;;  %23114 = vst [vmem:[#allocation32_spill] sm:$0xff] %v20881_v4  ;;  %v23118_v4 = vld [vmem:[#allocation14_spill] sm:$0xff] }
0x116b   :  { %18940 = vpow2.f32 %v17353_v3  ;;  %v20943_v3 = vld [vmem:[#allocation2 + $0x2c0] sm:$0xff] }
0x116f   :  { %v7318_v48 = vpop.f32.mrf.mxu0 }
0x1170   :  { %v7340_v1 = vadd.f32 %v7318_v48, %v20883_v12  ;;  %v20949_v48 = vld [vmem:[#allocation2 + $0x2b8] sm:$0xff] }
0x1171   :  { %v18251_v6 = vpop.f32.mrf.mxu0 }
0x1172   :  { %v20951_v6 = vld [vmem:[#allocation2 + $0x2c8] sm:$0xff] }
0x1178   :  { %v18941_v9 = vpop.eup %18940 }
0x1179   :  { %v7326_v11 = vadd.f32 1.0, %v18941_v9  ;;  %v20955_v9 = vld [vmem:[#allocation2 + $0x2a8] sm:$0xff] }
0x117b   :  { %18942 = vrcp.f32 %v7326_v11  ;;  %v20959_v11 = vld [vmem:[#allocation2 + $0x2a0] sm:$0xff] }
0x1188   :  { %v18943_v13 = vpop.eup %18942 }
0x1189   :  { %v7341_v14 = vmul.f32 %v18943_v13, %v7340_v1  ;;  %v20961_v1 = vld [vmem:[#allocation2 + $0x2b0] sm:$0xff] }
0x118a   :  { %v20965_v13 = vld [vmem:[#allocation2 + $0x290] sm:$0xff] }
0x118b   :  { %7343 = vrot.lane.b32.xlu0 %v7341_v14, %s19514_s0  ;;  %v20969_v14 = vld [vmem:[#allocation2 + $0x288] sm:$0xff] }
0x118f   :  { %7330 = vrot.lane.b32.xlu0 %v7249_v57, %s19515_s24  ;;  %v20973_v57 = vld [vmem:[#allocation2 + $0x298] sm:$0xff] }
0x11fd   :  { %v7344_v59 = vpop.permute.xlu0 %7343 }
0x11fe   :  { %v7346_v49 = vadd.f32 %v7344_v59, %v20875_v35  ;;  %v7690_v59 = vld [vmem:[#allocation4 + $0x6c8] sm:$0xff] }
0x1200   :  { %18944 = vtanh.f32 %v7346_v49  ;;  %v7692_v49 = vld [vmem:[#allocation4 + $0x6d8] sm:$0xff] }
0x1201   :  { %v7331_v16 = vpop.permute.xlu0 %7330 }
0x1202   :  { %v7333_v29 = vadd.f32 %v7331_v16, %v20875_v35  ;;  %v7691_v16 = vld [vmem:[#allocation4 + $0x6d0] sm:$0xff] }
0x1204   :  { %v17354_v24 = vmul.f32 -1.442695, %v7333_v29  ;;  %v7684_v29 = vld [vmem:[#allocation4 + $0x698] sm:$0xff] }
0x1206   :  { %18946 = vpow2.f32 %v17354_v24  ;;  %v7686_v24 = vld [vmem:[#allocation4 + $0x6a8] sm:$0xff] }
0x120d   :  { %v18945_v7 = vpop.eup %18944 }
0x120e   :  { %7350 = vrot.lane.b32.xlu1 %v18945_v7, %s19516_s25  ;;  %v7689_v7 = vld [vmem:[#allocation4 + $0x6c0] sm:$0xff] }
0x1212   :  { %7354 = vrot.lane.b32.xlu1 %v20775_v31, %s19515_s24  ;;  %v20937_v31 = vld [vmem:[#allocation2 + $0x2d0] sm:$0xff] }
0x1213   :  { %v18947_v41 = vpop.eup %18946 }
0x1214   :  { %v7337_v40 = vadd.f32 1.0, %v18947_v41  ;;  %v7683_v41 = vld [vmem:[#allocation4 + $0x690] sm:$0xff] }
0x1216   :  { %18948 = vrcp.f32 %v7337_v40  ;;  %v7685_v40 = vld [vmem:[#allocation4 + $0x6a0] sm:$0xff] }
0x1223   :  { %v18949_v22 = vpop.eup %18948 }
0x1224   :  { %v7348_v0 = vsub.f32 1.0, %v18949_v22 }
0x1280   :  { %v7351_v17 = vpop.permute.xlu1 %7350 }
0x1281   :  { %v7353_v10 = vmul.f32 %v7351_v17, %v7348_v0  ;;  %v7680_v17 = vld [vmem:[#allocation4 + $0x678] sm:$0xff]  ;;  %v7677_v0 = vld [vmem:[#allocation4 + $0x660] sm:$0xff] }
0x1284   :  { %v7355_v30 = vpop.permute.xlu1 %7354 }
0x1285   :  { %v7357_v23 = vmul.f32 %v18949_v22, %v7355_v30  ;;  %v7678_v22 = vld [vmem:[#allocation4 + $0x668] sm:$0xff]  ;;  %v7679_v30 = vld [vmem:[#allocation4 + $0x670] sm:$0xff] }
0x1287   :  { %v7358_v33 = vadd.f32 %v7357_v23, %v7353_v10  ;;  %v7672_v10 = vld [vmem:[#allocation4 + $0x638] sm:$0xff]  ;;  %v7674_v23 = vld [vmem:[#allocation4 + $0x648] sm:$0xff] }
0x1289   :  { %7360 = vrot.lane.b32.xlu0 %v7358_v33, %s19516_s25  ;;  %v7671_v33 = vld [vmem:[#allocation4 + $0x630] sm:$0xff] }
0x12fb   :  { %v20941_v53 = vpop.permute.xlu0 %7360 }
0x12fc   :  { %17355 = vmatmul.mubr.msk.f32.vlgmr.msra.gmra.mxu1 %vm311_vm2, %v20941_v53  ;;  %18261 = vmatmul.mubr.msk.f32.vlgmr.msra.gmra.mxu0 %vm311_vm2, %v20941_v53 }
0x12fd   :  { %7533 = vmatpush1.msra.mxu1 %v20937_v31  ;;  %18264 = vmatpush3.msra.mxu0 %v20939_v43 }
0x12fe   :  { %7534 = vmatprep.subr.mxu1 %v20943_v3  ;;  %18265 = vmatprep.subr.mxu0 %v23021_v60 }
0x12ff   :  { %7535 = vmatpush1.msra.mxu1 %v20949_v48  ;;  %18266 = vmatpush3.msra.mxu0 %v20951_v6 }
0x1300   :  { %7536 = vmatprep.subr.mxu1 %v20955_v9  ;;  %18267 = vmatprep.subr.mxu0 %v23021_v60 }
0x1301   :  { %7537 = vmatpush1.msra.mxu1 %v20959_v11  ;;  %18268 = vmatpush3.msra.mxu0 %v20961_v1 }
0x1302   :  { %7538 = vmatprep.subr.mxu1 %v20965_v13  ;;  %18269 = vmatprep.subr.mxu0 %v23021_v60 }
0x1303   :  { %7539 = vmatpush1.msra.mxu1 %v20969_v14  ;;  %7572 = vmatprep.mubr.f32.mxu1 %v23021_v60 }
0x1304   :  { %18270 = vmatpush3.msra.mxu0 %v20973_v57  ;;  %18271 = vmatprep.mubr.msk.f32.mxu0 %vm19513_vm0, %v23021_v60 }
0x1305   :  { %17357 = vmatmul.mubr.msk.f32.vlgmr.msra.gmra.mxu1 %vm311_vm2, %v20812_v51  ;;  %18272 = vmatmul.mubr.msk.f32.vlgmr.msra.gmra.mxu0 %vm311_vm2, %v20812_v51 }
0x1306   :  { %7763 = vmatprep.mubr.f32.mxu1 %v23021_v60  ;;  %7834 = vmatprep.mubr.f32.mxu0 %v23021_v60 }
0x1307   :  { %7723 = vmatprep.subr.mxu1 %v7690_v59  ;;  %7794 = vmatprep.subr.mxu0 %v7692_v49  ;;  %v7673_v59 = vld [vmem:[#allocation4 + $0x640] sm:$0xff]  ;;  %v7694_v49 = vld [vmem:[#allocation4 + $0x6e8] sm:$0xff] }
0x1308   :  { %7724 = vmatpush1.msra.mxu1 %v7689_v7  ;;  %7795 = vmatpush1.msra.mxu0 %v7691_v16  ;;  %v7129_v16 = vld [vmem:[#allocation2 + $0x2e8] ss:$8 sm:$0x7] }
0x1309   :  { %7725 = vmatprep.subr.mxu1 %v7684_v29  ;;  %7796 = vmatprep.subr.mxu0 %v7686_v24 }
0x130a   :  { %7726 = vmatpush1.msra.mxu1 %v7683_v41  ;;  %7797 = vmatpush1.msra.mxu0 %v7685_v40  ;;  %v23116_v41 = vld [vmem:[#allocation12_spill] sm:$0xff] }
0x130b   :  { %7727 = vmatprep.subr.mxu1 %v7678_v22  ;;  %7798 = vmatprep.subr.mxu0 %v7680_v17  ;;  %v20990_v40 = vrot.slane %v7129_v16, %v23116_v41  ;;  %v23119_v41 = vld [vmem:[#allocation15_spill] sm:$0xff] }
0x130c   :  { %7728 = vmatpush1.msra.mxu1 %v7677_v0  ;;  %7799 = vmatpush1.msra.mxu0 %v7679_v30 }
0x130d   :  { %7729 = vmatprep.subr.mxu1 %v7672_v10  ;;  %7800 = vmatprep.subr.mxu0 %v7674_v23  ;;  %23117 = vst [vmem:[#allocation38_spill] sm:$0xff] %v20990_v40  ;;  %v20994_v10 = vrot.slane %v7129_v16, %v23118_v4 }
0x130e   :  { %7730 = vmatpush1.msra.mxu1 %v7671_v33  ;;  %7801 = vmatpush1.msra.mxu0 %v7673_v59 }
0x130f   :  { %7865 = vmatprep.subr.mxu1 %v7694_v49  ;;  %7942 = vmatprep.subr.mxu0 %v20804_v54 }
0x13bc   :  { %v7501_v7 = vpop.f32.mrf.mxu0  ;;  %v7430_v24 = vpop.f32.mrf.mxu1 }
0x13bd   :  { %v7431_v17 = vadd.f32 %v7430_v24, %v20990_v40  ;;  %v20997_v24 = vld [vmem:[#allocation2 + $0x300] ss:$0 sm:$0xff]  ;;  %v21000_v40 = vrot.slane %v7129_v16, %v23119_v41 }
0x13be   :  { %v18262_v29 = vpop.f32.mrf.mxu0  ;;  %v7432_v22 = vpop.f32.mrf.mxu1 }
0x13bf   :  { %v7433_v62 = vadd.f32 %v7432_v22, %v20994_v10 }
0x13c5   :  { %v7574_v0 = vpop.f32.mrf.mxu1  ;;  %v7645_v30 = vpop.f32.mrf.mxu0 }
0x13c6   :  { %v7649_v23 = vadd.f32 %v7574_v0, %v7431_v17  ;;  %v7663_v17 = vadd.f32 %v7645_v30, %v20997_v24  ;;  %v7676_v30 = vld [vmem:[#allocation4 + $0x658] sm:$0xff] }
0x13c7   :  { %v18273_v33 = vpop.f32.mrf.mxu0  ;;  %v7576_v49 = vpop.f32.mrf.mxu1 }
0x13c8   :  { %v17359_v59 = vmul.f32 -1.442695, %v7649_v23  ;;  %v7656_v29 = vadd.f32 %v7576_v49, %v7433_v62  ;;  %v7502_v23 = vadd.f32 %v7501_v7, %v21000_v40  ;;  %v7687_v7 = vld [vmem:[#allocation4 + $0x6b0] sm:$0xff] }
0x13ca   :  { %18950 = vpow2.f32 %v17359_v59  ;;  %v17360_v38 = vmul.f32 -1.442695, %v7656_v29  ;;  %v7688_v29 = vld [vmem:[#allocation4 + $0x6b8] sm:$0xff] }
0x13cc   :  { %18952 = vpow2.f32 %v17360_v38 }
0x13d7   :  { %v18951_v47 = vpop.eup %18950 }
0x13d8   :  { %v7653_v19 = vadd.f32 1.0, %v18951_v47 }
0x13d9   :  { %v18953_v63 = vpop.eup %18952 }
0x13da   :  { %18954 = vrcp.f32 %v7653_v19  ;;  %v7660_v54 = vadd.f32 1.0, %v18953_v63  ;;  %v7693_v63 = vld [vmem:[#allocation4 + $0x6e0] sm:$0xff] }
0x13dc   :  { %18956 = vrcp.f32 %v7660_v54  ;;  %v7682_v54 = vld [vmem:[#allocation4 + $0x688] sm:$0xff] }
0x13e7   :  { %v18955_v0 = vpop.eup %18954 }
0x13e8   :  { %v7664_v22 = vmul.f32 %v18955_v0, %v7663_v17  ;;  %v7675_v17 = vld [vmem:[#allocation4 + $0x650] sm:$0xff] }
0x13e9   :  { %v18957_v38 = vpop.eup %18956 }
0x13ea   :  { %v7665_v62 = vadd.f32 %v7664_v22, %v7502_v23  ;;  %v7667_v33 = vsub.f32 1.0, %v18957_v38  ;;  %v7669_v19 = vmul.f32 %v18957_v38, %v20812_v51  ;;  %v7681_v51 = vld [vmem:[#allocation4 + $0x680] sm:$0xff] }
0x13ec   :  { %18958 = vtanh.f32 %v7665_v62 }
0x13f9   :  { %v18959_v47 = vpop.eup %18958 }
0x13fa   :  { %v7668_v59 = vmul.f32 %v18959_v47, %v7667_v33 }
0x13fc   :  { %v21005_v49 = vadd.f32 %v7669_v19, %v7668_v59 }
0x13fe   :  { %v7695_v16 = vmax.f32 %v21005_v49, 0.0 }
0x1400   :  { %17361 = vmatmul.mubr.msk.f32.vlgmr.msra.gmra.mxu1 %vm311_vm2, %v7695_v16  ;;  %17362 = vmatmul.mubr.msk.f32.vlgmr.msra.gmra.mxu0 %vm311_vm2, %v7695_v16 }
0x1401   :  { %7866 = vmatpush1.msra.mxu1 %v7693_v63  ;;  %7943 = vmatpush1.msra.mxu0 %v20815_v55 }
0x1402   :  { %7867 = vmatprep.subr.mxu1 %v7688_v29  ;;  %7944 = vmatprep.subr.mxu0 %v20817_v5 }
0x1403   :  { %7868 = vmatpush1.msra.mxu1 %v7687_v7  ;;  %7945 = vmatpush1.msra.mxu0 %v20821_v34 }
0x1404   :  { %7869 = vmatprep.subr.mxu1 %v7682_v54  ;;  %7946 = vmatprep.subr.mxu0 %v20824_v20 }
0x1405   :  { %7870 = vmatpush1.msra.mxu1 %v7681_v51  ;;  %7947 = vmatpush1.msra.mxu0 %v20827_v15 }
0x1406   :  { %7871 = vmatprep.subr.mxu1 %v7676_v30  ;;  %7948 = vmatprep.subr.mxu0 %v20830_v25 }
0x1407   :  { %7872 = vmatpush1.msra.mxu1 %v7675_v17  ;;  %7905 = vmatprep.mubr.f32.mxu1 %v23021_v60 }
0x1408   :  { %7949 = vmatpush1.msra.mxu0 %v20834_v39  ;;  %7982 = vmatprep.mubr.f32.mxu0 %v23021_v60 }
0x1409   :  { %17363 = vmatmul.mubr.msk.f32.vlgmr.msra.gmra.mxu1 %vm311_vm2, %v7695_v16  ;;  %17364 = vmatmul.mubr.msk.f32.vlgmr.msra.gmra.mxu0 %vm311_vm2, %v20941_v53 }
0x140a   :  { %18274 = vmatprep.subr.mxu1 %v23021_v60  ;;  %18282 = vmatprep.mubr.msk.f32.mxu1 %vm19513_vm0, %v23021_v60 }
0x140b   :  { %18275 = vmatpush3.msra.mxu1 %v20840_v2  ;;  %8125 = vmatprep.subr.mxu0 %v20889_v27 }
0x140c   :  { %18276 = vmatprep.subr.mxu1 %v23021_v60  ;;  %8126 = vmatpush1.msra.mxu0 %v20891_v32 }
0x140d   :  { %18277 = vmatpush3.msra.mxu1 %v20846_v50  ;;  %8127 = vmatprep.subr.mxu0 %v20897_v21 }
0x140e   :  { %18278 = vmatprep.subr.mxu1 %v23021_v60  ;;  %8128 = vmatpush1.msra.mxu0 %v20899_v8 }
0x140f   :  { %18279 = vmatpush3.msra.mxu1 %v20853_v37  ;;  %8129 = vmatprep.subr.mxu0 %v20905_v28 }
0x1410   :  { %18280 = vmatprep.subr.mxu1 %v23021_v60  ;;  %8130 = vmatpush1.msra.mxu0 %v20909_v45 }
0x1411   :  { %18281 = vmatpush3.msra.mxu1 %v20857_v26  ;;  %8131 = vmatprep.subr.mxu0 %v20915_v44 }
0x1412   :  { %18283 = vmatmul.mubr.msk.f32.vlgmr.msra.gmra.mxu1 %vm311_vm2, %v20941_v53  ;;  %18285 = vmatprep.subr.mxu1 %v23021_v60 }
0x1413   :  { %18286 = vmatpush3.msra.mxu1 %v20893_v36  ;;  %8132 = vmatpush1.msra.mxu0 %v20919_v58 }
0x1414   :  { %18287 = vmatprep.subr.mxu1 %v23021_v60  ;;  %8165 = vmatprep.mubr.f32.mxu0 %v23021_v60 }
0x1415   :  { %18288 = vmatpush3.msra.mxu1 %v20901_v42  ;;  %18293 = vmatprep.mubr.msk.f32.mxu1 %vm19513_vm0, %v23021_v60 }
0x1416   :  { %18289 = vmatprep.subr.mxu1 %v23021_v60  ;;  %8269 = vmatprep.subr.mxu0 %v20925_v61 }
0x1417   :  { %18290 = vmatpush3.msra.mxu1 %v20911_v46 }
0x1418   :  { %18291 = vmatprep.subr.mxu1 %v23021_v60 }
0x1419   :  { %18292 = vmatpush3.msra.mxu1 %v20921_v18 }
0x141a   :  { %18296 = vmatprep.subr.mxu1 %v23021_v60 }
0x14c0   :  { %v21055_v0 = vpop.f32.mrf.mxu0  ;;  %v21057_v23 = vpop.f32.mrf.mxu1 }
0x14c1   :  { %23120 = vst [vmem:[#allocation39_spill] sm:$0xff] %v21055_v0 }
0x14c2   :  { %v21059_v22 = vpop.f32.mrf.mxu0  ;;  %v21061_v38 = vpop.f32.mrf.mxu1 }
0x14c3   :  { %23121 = vst [vmem:[#allocation20_spill] sm:$0xff] %v21059_v22  ;;  %23122 = vst [vmem:[#allocation42_spill] sm:$0xff] %v21061_v38  ;;  %v23127_v38 = vld [vmem:[#allocation9_spill] sm:$0xff] }
0x14c9   :  { %v7984_v62 = vpop.f32.mrf.mxu0  ;;  %v21064_v33 = vpop.f32.mrf.mxu1 }
0x14ca   :  { %8060 = vrot.lane.b32.xlu1 %v7984_v62, %s19516_s25  ;;  %23123 = vst [vmem:[#allocation43_spill] sm:$0xff] %v21064_v33 }
0x14cb   :  { %v21066_v47 = vpop.f32.mrf.mxu1 }
0x14cc   :  { %23124 = vst [vmem:[#allocation44_spill] sm:$0xff] %v21066_v47  ;;  %v23125_v47 = vld [vmem:[#allocation17_spill] sm:$0xff] }
0x14cd   :  { %v142_v22 = vrot.slane %v23125_v47, %v23118_v4 }
0x14d2   :  { %v8055_v19 = vpop.f32.mrf.mxu1 }
0x14d3   :  { %v8077_v59 = vadd.f32 %v8055_v19, %v20883_v12  ;;  %v23126_v19 = vld [vmem:[#allocation24_spill] sm:$0xff]  ;;  %v23128_v12 = vld [vmem:[#allocation25_spill] sm:$0xff] }
0x14d4   :  { %v18284_v16 = vpop.f32.mrf.mxu1 }
0x14d5   :  { %8079 = vrot.lane.b32.xlu0 %v8077_v59, %s19516_s25  ;;  %v1030_v16 = vadd.f32 %v23126_v19, %v142_v22 }
0x14d7   :  { %v1895_v59 = vadd.f32 %v23127_v38, %v1030_v16  ;;  %v7986_v38 = vpop.f32.mrf.mxu0 }
0x14d9   :  { %v2760_v33 = vadd.f32 %v23128_v12, %v1895_v59 }
0x153c   :  { %v8061_v63 = vpop.permute.xlu1 %8060 }
0x153d   :  { %v8063_v29 = vadd.f32 %v8061_v63, %v20875_v35  ;;  %v23129_v35 = vld [vmem:[#allocation34_spill] sm:$0xff] }
0x153e   :  { %v3625_v63 = vadd.f32 %v23129_v35, %v2760_v33 }
0x153f   :  { %v17366_v7 = vmul.f32 -1.442695, %v8063_v29  ;;  %v23130_v29 = vld [vmem:[#allocation36_spill] sm:$0xff] }
0x1541   :  { %18960 = vpow2.f32 %v17366_v7  ;;  %v4490_v7 = vadd.f32 %v23130_v29, %v3625_v63  ;;  %v8429_v29 = vld [vmem:[#allocation4 + $0x798] sm:$0xff] }
0x1547   :  { %v8080_v17 = vpop.permute.xlu0 %8079 }
0x154e   :  { %v18961_v54 = vpop.eup %18960 }
0x154f   :  { %v8067_v51 = vadd.f32 1.0, %v18961_v54  ;;  %v23131_v54 = vld [vmem:[#allocation19_spill] sm:$0xff] }
0x1551   :  { %18962 = vrcp.f32 %v8067_v51  ;;  %v5355_v51 = vadd.f32 %v23131_v54, %v4490_v7  ;;  %v8426_v7 = vld [vmem:[#allocation4 + $0x780] sm:$0xff]  ;;  %v8428_v54 = vld [vmem:[#allocation4 + $0x790] sm:$0xff] }
0x1553   :  { %v6220_v0 = vadd.f32 %v20763_v56, %v5355_v51  ;;  %v8421_v51 = vld [vmem:[#allocation4 + $0x758] sm:$0xff] }
0x155e   :  { %v18963_v30 = vpop.eup %18962 }
0x155f   :  { %v8082_v62 = vmul.f32 %v18963_v30, %v8080_v17  ;;  %v21082_v30 = vadd.f32 %v20870_v52, %v6220_v0 }
0x1561   :  { %8084 = vrot.lane.b32.xlu1 %v8082_v62, %s19514_s0  ;;  %v8070_v12 = vadd.f32 %v7986_v38, %v21082_v30  ;;  %v8415_v38 = vld [vmem:[#allocation4 + $0x728] sm:$0xff] }
0x1563   :  { %v17367_v33 = vmul.f32 -1.442695, %v8070_v12  ;;  %v8417_v12 = vld [vmem:[#allocation4 + $0x738] sm:$0xff] }
0x15d3   :  { %v8085_v17 = vpop.permute.xlu1 %8084 }
0x15d4   :  { %v8087_v62 = vadd.f32 %v8085_v17, %v21082_v30  ;;  %v8423_v17 = vld [vmem:[#allocation4 + $0x768] sm:$0xff] }
0x15d6   :  { %18964 = vtanh.f32 %v8087_v62  ;;  %v8420_v62 = vld [vmem:[#allocation4 + $0x750] sm:$0xff] }
0x15d7   :  { %18966 = vpow2.f32 %v17367_v33  ;;  %v8414_v33 = vld [vmem:[#allocation4 + $0x720] sm:$0xff] }
0x15e3   :  { %v18965_v22 = vpop.eup %18964 }
0x15e4   :  { %8091 = vrot.lane.b32.xlu0 %v18965_v22, %s19516_s25  ;;  %v18967_v19 = vpop.eup %18966  ;;  %v8422_v22 = vld [vmem:[#allocation4 + $0x760] sm:$0xff] }
0x15e5   :  { %v8074_v16 = vadd.f32 1.0, %v18967_v19  ;;  %v8416_v19 = vld [vmem:[#allocation4 + $0x730] sm:$0xff] }
0x15e7   :  { %18968 = vrcp.f32 %v8074_v16  ;;  %v8409_v16 = vld [vmem:[#allocation4 + $0x6f8] sm:$0xff] }
0x15f4   :  { %v18969_v59 = vpop.eup %18968 }
0x15f5   :  { %v8089_v56 = vsub.f32 1.0, %v18969_v59  ;;  %v8096_v0 = vmul.f32 %v18969_v59, %v20941_v53  ;;  %v8427_v53 = vld [vmem:[#allocation4 + $0x788] sm:$0xff] }
0x15f6   :  { %v8411_v59 = vld [vmem:[#allocation4 + $0x708] sm:$0xff] }
0x1656   :  { %v8092_v35 = vpop.permute.xlu0 %8091 }
0x1657   :  { %v8094_v52 = vmul.f32 %v8092_v35, %v8089_v56  ;;  %v8408_v56 = vld [vmem:[#allocation4 + $0x6f0] sm:$0xff]  ;;  %v8410_v35 = vld [vmem:[#allocation4 + $0x700] sm:$0xff] }
0x1659   :  { %v21088_v63 = vadd.f32 %v8096_v0, %v8094_v52  ;;  %v8431_v52 = vld [vmem:[#allocation4 + $0x7a8] sm:$0xff]  ;;  %v23132_v0 = vld [vmem:[#allocation28_spill] sm:$0xff] }
0x165b   :  { %17368 = vmatmul.mubr.msk.f32.vlgmr.msra.gmra.mxu0 %vm311_vm2, %v21088_v63  ;;  %18294 = vmatmul.mubr.msk.f32.vlgmr.msra.gmra.mxu1 %vm311_vm2, %v21088_v63 }
0x165c   :  { %8270 = vmatpush1.msra.mxu0 %v20937_v31  ;;  %18297 = vmatpush3.msra.mxu1 %v20939_v43 }
0x165d   :  { %8271 = vmatprep.subr.mxu0 %v20943_v3  ;;  %18298 = vmatprep.subr.mxu1 %v23021_v60 }
0x165e   :  { %8272 = vmatpush1.msra.mxu0 %v20949_v48  ;;  %18299 = vmatpush3.msra.mxu1 %v20951_v6 }
0x165f   :  { %8273 = vmatprep.subr.mxu0 %v20955_v9  ;;  %18300 = vmatprep.subr.mxu1 %v23021_v60 }
0x1660   :  { %8274 = vmatpush1.msra.mxu0 %v20959_v11  ;;  %18301 = vmatpush3.msra.mxu1 %v20961_v1 }
0x1661   :  { %8275 = vmatprep.subr.mxu0 %v20965_v13  ;;  %18302 = vmatprep.subr.mxu1 %v23021_v60 }
0x1662   :  { %8276 = vmatpush1.msra.mxu0 %v20969_v14  ;;  %8309 = vmatprep.mubr.f32.mxu0 %v23021_v60 }
0x1663   :  { %18303 = vmatpush3.msra.mxu1 %v20973_v57  ;;  %18304 = vmatprep.mubr.msk.f32.mxu1 %vm19513_vm0, %v23021_v60 }
0x1664   :  { %17370 = vmatmul.mubr.msk.f32.vlgmr.msra.gmra.mxu0 %vm311_vm2, %v21005_v49  ;;  %18305 = vmatmul.mubr.msk.f32.vlgmr.msra.gmra.mxu1 %vm311_vm2, %v21005_v49 }
0x1665   :  { %8500 = vmatprep.mubr.f32.mxu0 %v23021_v60  ;;  %8571 = vmatprep.mubr.f32.mxu1 %v23021_v60 }
0x1666   :  { %8460 = vmatprep.subr.mxu0 %v8427_v53  ;;  %8531 = vmatprep.subr.mxu1 %v8429_v29 }
0x1667   :  { %8461 = vmatpush1.msra.mxu0 %v8426_v7  ;;  %8532 = vmatpush1.msra.mxu1 %v8428_v54 }
0x1668   :  { %8462 = vmatprep.subr.mxu0 %v8421_v51  ;;  %8533 = vmatprep.subr.mxu1 %v8423_v17  ;;  %v23133_v51 = vld [vmem:[#allocation38_spill] sm:$0xff] }
0x1669   :  { %8463 = vmatpush1.msra.mxu0 %v8420_v62  ;;  %8534 = vmatpush1.msra.mxu1 %v8422_v22 }
0x166a   :  { %8464 = vmatprep.subr.mxu0 %v8415_v38  ;;  %8535 = vmatprep.subr.mxu1 %v8417_v12 }
0x166b   :  { %8465 = vmatpush1.msra.mxu0 %v8414_v33  ;;  %8536 = vmatpush1.msra.mxu1 %v8416_v19 }
0x166c   :  { %8466 = vmatprep.subr.mxu0 %v8409_v16  ;;  %8537 = vmatprep.subr.mxu1 %v8411_v59 }
0x166d   :  { %8467 = vmatpush1.msra.mxu0 %v8408_v56  ;;  %8538 = vmatpush1.msra.mxu1 %v8410_v35 }
0x166e   :  { %8602 = vmatprep.subr.mxu0 %v8431_v52  ;;  %8679 = vmatprep.subr.mxu1 %v23132_v0 }
0x171b   :  { %v8238_v53 = vpop.f32.mrf.mxu1  ;;  %v8167_v7 = vpop.f32.mrf.mxu0 }
0x171c   :  { %v8168_v17 = vadd.f32 %v8167_v7, %v23133_v51  ;;  %v8239_v4 = vadd.f32 %v8238_v53, %v21000_v40  ;;  %v8418_v53 = vld [vmem:[#allocation4 + $0x740] sm:$0xff] }
0x171d   :  { %v18295_v29 = vpop.f32.mrf.mxu1  ;;  %v8169_v54 = vpop.f32.mrf.mxu0 }
0x171e   :  { %v8170_v16 = vadd.f32 %v8169_v54, %v20994_v10 }
0x1724   :  { %v8311_v62 = vpop.f32.mrf.mxu0  ;;  %v8382_v22 = vpop.f32.mrf.mxu1 }
0x1725   :  { %v8386_v38 = vadd.f32 %v8311_v62, %v8168_v17  ;;  %v8400_v47 = vadd.f32 %v8382_v22, %v20997_v24  ;;  %v8412_v22 = vld [vmem:[#allocation4 + $0x710] sm:$0xff] }
0x1726   :  { %v18306_v12 = vpop.f32.mrf.mxu1  ;;  %v8313_v19 = vpop.f32.mrf.mxu0 }
0x1727   :  { %v17372_v33 = vmul.f32 -1.442695, %v8386_v38  ;;  %v8393_v59 = vadd.f32 %v8313_v19, %v8170_v16 }
0x1729   :  { %18970 = vpow2.f32 %v17372_v33  ;;  %v17373_v56 = vmul.f32 -1.442695, %v8393_v59 }
0x172b   :  { %18972 = vpow2.f32 %v17373_v56  ;;  %v8430_v56 = vld [vmem:[#allocation4 + $0x7a0] sm:$0xff] }
0x1736   :  { %v18971_v35 = vpop.eup %18970 }
0x1737   :  { %v8390_v52 = vadd.f32 1.0, %v18971_v35  ;;  %v8425_v35 = vld [vmem:[#allocation4 + $0x778] sm:$0xff] }
0x1738   :  { %v18973_v0 = vpop.eup %18972 }
0x1739   :  { %18974 = vrcp.f32 %v8390_v52  ;;  %v8397_v29 = vadd.f32 1.0, %v18973_v0  ;;  %v23139_v52 = vld [vmem:[#allocation37_spill] sm:$0xff] }
0x173b   :  { %18976 = vrcp.f32 %v8397_v29 }
0x1746   :  { %v18975_v7 = vpop.eup %18974 }
0x1747   :  { %v8401_v17 = vmul.f32 %v18975_v7, %v8400_v47  ;;  %v8424_v47 = vld [vmem:[#allocation4 + $0x770] sm:$0xff] }
0x1748   :  { %v18977_v38 = vpop.eup %18976 }
0x1749   :  { %v8402_v62 = vadd.f32 %v8401_v17, %v8239_v4  ;;  %v8404_v54 = vsub.f32 1.0, %v18977_v38  ;;  %v8406_v19 = vmul.f32 %v18977_v38, %v21005_v49  ;;  %v8419_v4 = vld [vmem:[#allocation4 + $0x748] sm:$0xff]  ;;  %v8413_v49 = vld [vmem:[#allocation4 + $0x718] sm:$0xff] }
0x174b   :  { %18978 = vtanh.f32 %v8402_v62 }
0x1758   :  { %v18979_v12 = vpop.eup %18978 }
0x1759   :  { %v8405_v33 = vmul.f32 %v18979_v12, %v8404_v54 }
0x175b   :  { %v21123_v16 = vadd.f32 %v8406_v19, %v8405_v33 }
0x175d   :  { %v8432_v59 = vmax.f32 %v21123_v16, 0.0 }
0x175f   :  { %17374 = vmatmul.mubr.msk.f32.vlgmr.msra.gmra.mxu0 %vm311_vm2, %v8432_v59  ;;  %17375 = vmatmul.mubr.msk.f32.vlgmr.msra.gmra.mxu1 %vm311_vm2, %v8432_v59 }
0x1760   :  { %8603 = vmatpush1.msra.mxu0 %v8430_v56  ;;  %8680 = vmatpush1.msra.mxu1 %v20815_v55  ;;  %v7147_v55 = vld [vmem:[#allocation4 + $0xc30] ss:$8 sm:$0xf] }
0x1761   :  { %8604 = vmatprep.subr.mxu0 %v8425_v35  ;;  %8681 = vmatprep.subr.mxu1 %v20817_v5  ;;  %v7148_v5 = vld [vmem:[#allocation4 + $0xc30] ss:$8 sm:$0x30]  ;;  %v23140_v35 = vld [vmem:[#allocation29_spill] sm:$0xff] }
0x1762   :  { %8605 = vmatpush1.msra.mxu0 %v8424_v47  ;;  %8682 = vmatpush1.msra.mxu1 %v20821_v34  ;;  %v21173_v34 = vor.u32 %v7148_v5, %v7147_v55 }
0x1763   :  { %8606 = vmatprep.subr.mxu0 %v8419_v4  ;;  %8683 = vmatprep.subr.mxu1 %v20824_v20  ;;  %v23134_v20 = vld [vmem:[#allocation12_spill] sm:$0xff] }
0x1764   :  { %8607 = vmatpush1.msra.mxu0 %v8418_v53  ;;  %8684 = vmatpush1.msra.mxu1 %v20827_v15  ;;  %v7154_v15 = vrot.slane %v21173_v34, %v23134_v20 }
0x1765   :  { %8608 = vmatprep.subr.mxu0 %v8413_v49  ;;  %8685 = vmatprep.subr.mxu1 %v20830_v25  ;;  %v7162_v25 = vrot.slane %v21173_v34, %v23119_v41  ;;  %v9904_v41 = vld [vmem:[#allocation4 + $0x8a0] sm:$0xff] }
0x1766   :  { %8609 = vmatpush1.msra.mxu0 %v8412_v22  ;;  %8642 = vmatprep.mubr.f32.mxu0 %v23021_v60 }
0x1767   :  { %8686 = vmatpush1.msra.mxu1 %v20834_v39  ;;  %8719 = vmatprep.mubr.f32.mxu1 %v23021_v60  ;;  %v7912_v39 = vadd.f32 %v21057_v23, %v7154_v15 }
0x1768   :  { %17376 = vmatmul.mubr.msk.f32.vlgmr.msra.gmra.mxu0 %vm311_vm2, %v8432_v59  ;;  %17377 = vmatmul.mubr.msk.f32.vlgmr.msra.gmra.mxu1 %vm311_vm2, %v21088_v63 }
0x1769   :  { %18307 = vmatprep.subr.mxu0 %v23021_v60  ;;  %18315 = vmatprep.mubr.msk.f32.mxu0 %vm19513_vm0, %v23021_v60 }
0x176a   :  { %18308 = vmatpush3.msra.mxu0 %v20840_v2  ;;  %8870 = vmatprep.subr.mxu1 %v20889_v27  ;;  %v23135_v2 = vld [vmem:[#allocation39_spill] sm:$0xff] }
0x176b   :  { %18309 = vmatprep.subr.mxu0 %v23021_v60  ;;  %8871 = vmatpush1.msra.mxu1 %v20891_v32 }
0x176c   :  { %18310 = vmatpush3.msra.mxu0 %v20846_v50  ;;  %8872 = vmatprep.subr.mxu1 %v20897_v21  ;;  %v7914_v50 = vadd.f32 %v23135_v2, %v7162_v25 }
0x176d   :  { %18311 = vmatprep.subr.mxu0 %v23021_v60  ;;  %8873 = vmatpush1.msra.mxu1 %v20899_v8 }
0x176e   :  { %18312 = vmatpush3.msra.mxu0 %v20853_v37  ;;  %8874 = vmatprep.subr.mxu1 %v20905_v28 }
0x176f   :  { %18313 = vmatprep.subr.mxu0 %v23021_v60  ;;  %8875 = vmatpush1.msra.mxu1 %v20909_v45  ;;  %v23138_v45 = vld [vmem:[#allocation43_spill] sm:$0xff] }
0x1770   :  { %18314 = vmatpush3.msra.mxu0 %v20857_v26  ;;  %8876 = vmatprep.subr.mxu1 %v20915_v44 }
0x1771   :  { %18316 = vmatmul.mubr.msk.f32.vlgmr.msra.gmra.mxu0 %vm311_vm2, %v21088_v63  ;;  %18318 = vmatprep.subr.mxu0 %v23021_v60 }
0x1772   :  { %18319 = vmatpush3.msra.mxu0 %v20893_v36  ;;  %8877 = vmatpush1.msra.mxu1 %v20919_v58  ;;  %v23136_v36 = vld [vmem:[#allocation11_spill] sm:$0xff] }
0x1773   :  { %18320 = vmatprep.subr.mxu0 %v23021_v60  ;;  %8910 = vmatprep.mubr.f32.mxu1 %v23021_v60  ;;  %v23137_v21 = vsub.s32 4, %v23136_v36 }
0x1774   :  { %18321 = vmatpush3.msra.mxu0 %v20901_v42  ;;  %18326 = vmatprep.mubr.msk.f32.mxu0 %vm19513_vm0, %v23021_v60 }
0x1775   :  { %18322 = vmatprep.subr.mxu0 %v23021_v60  ;;  %9014 = vmatprep.subr.mxu1 %v20925_v61  ;;  %v7170_v8 = vrot.slane %v21173_v34, %v23137_v21  ;;  %v9154_v21 = vld [vmem:[#allocation4 + $0x7b8] sm:$0xff] }
0x1776   :  { %18323 = vmatpush3.msra.mxu0 %v20911_v46 }
0x1777   :  { %18324 = vmatprep.subr.mxu0 %v23021_v60  ;;  %v7916_v46 = vadd.f32 %v23138_v45, %v7170_v8  ;;  %v9156_v8 = vld [vmem:[#allocation4 + $0x7c8] sm:$0xff]  ;;  %v9153_v45 = vld [vmem:[#allocation4 + $0x7b0] sm:$0xff] }
0x1778   :  { %18325 = vmatpush3.msra.mxu0 %v20921_v18 }
0x1779   :  { %18329 = vmatprep.subr.mxu0 %v23021_v60 }
0x181f   :  { %v8502_v37 = vpop.f32.mrf.mxu0  ;;  %v8573_v26 = vpop.f32.mrf.mxu1 }
0x1820   :  { %v21181_v27 = vadd.f32 %v8502_v37, %v7912_v39  ;;  %v21183_v32 = vadd.f32 %v8573_v26, %v7914_v50 }
0x1821   :  { %v21188_v42 = vpop.f32.mrf.mxu0  ;;  %v21190_v28 = vpop.f32.mrf.mxu1 }
0x1828   :  { %v8644_v44 = vpop.f32.mrf.mxu0  ;;  %v8721_v58 = vpop.f32.mrf.mxu1 }
0x1829   :  { %v21193_v18 = vadd.f32 %v8644_v44, %v7916_v46  ;;  %8797 = vrot.lane.b32.xlu1 %v8721_v58, %s19514_s0  ;;  %v9155_v46 = vld [vmem:[#allocation4 + $0x7c0] sm:$0xff]  ;;  %v9176_v44 = vld [vmem:[#allocation4 + $0x868] sm:$0xff] }
0x182a   :  { %v21196_v61 = vpop.f32.mrf.mxu0  ;;  %v8723_v7 = vpop.f32.mrf.mxu1  ;;  %v21241_v58 = vld [vmem:[#allocation2 + $0x200] sm:$0xff] }
0x182b   :  { %23141 = vst [vmem:[#allocation24_spill] sm:$0xff] %v21241_v58 }
0x1831   :  { %v8792_v23 = vpop.f32.mrf.mxu0 }
0x1832   :  { %v8818_v0 = vadd.f32 %v8792_v23, %v23139_v52 }
0x1833   :  { %v18317_v29 = vpop.f32.mrf.mxu0 }
0x1834   :  { %8820 = vrot.lane.b32.xlu0 %v8818_v0, %s19514_s0 }
0x1838   :  { %8808 = vrot.lane.b32.xlu0 %v8723_v7, %s19516_s25 }
0x183c   :  { %8836 = vrot.lane.b32.xlu0 %v21088_v63, %s19516_s25 }
0x189b   :  { %v8798_v17 = vpop.permute.xlu1 %8797 }
0x189c   :  { %v8800_v62 = vadd.f32 %v8798_v17, %v21082_v30 }
0x189e   :  { %v17379_v38 = vmul.f32 -1.442695, %v8800_v62 }
0x18a0   :  { %18980 = vpow2.f32 %v17379_v38 }
0x18a6   :  { %v8821_v19 = vpop.permute.xlu0 %8820 }
0x18aa   :  { %v8809_v63 = vpop.permute.xlu0 %8808 }
0x18ab   :  { %v8811_v53 = vadd.f32 %v8809_v63, %v21082_v30  ;;  %v9161_v30 = vld [vmem:[#allocation4 + $0x7f0] sm:$0xff] }
0x18ad   :  { %v18981_v54 = vpop.eup %18980  ;;  %v17380_v49 = vmul.f32 -1.442695, %v8811_v53 }
0x18ae   :  { %v8804_v12 = vadd.f32 1.0, %v18981_v54  ;;  %v8837_v25 = vpop.permute.xlu0 %8836 }
0x18b0   :  { %18982 = vrcp.f32 %v8804_v12 }
0x18bd   :  { %v18983_v33 = vpop.eup %18982 }
0x18be   :  { %v8823_v59 = vmul.f32 %v18983_v33, %v8821_v19 }
0x18c0   :  { %8825 = vrot.lane.b32.xlu1 %v8823_v59, %s19514_s0 }
0x1932   :  { %v8826_v56 = vpop.permute.xlu1 %8825 }
0x1933   :  { %v8828_v47 = vadd.f32 %v8826_v56, %v23140_v35 }
0x1935   :  { %18984 = vtanh.f32 %v8828_v47 }
0x1936   :  { %18986 = vpow2.f32 %v17380_v49 }
0x1942   :  { %v18985_v4 = vpop.eup %18984 }
0x1943   :  { %8832 = vrot.lane.b32.xlu1 %v18985_v4, %s19516_s25  ;;  %v18987_v22 = vpop.eup %18986 }
0x1944   :  { %v8815_v55 = vadd.f32 1.0, %v18987_v22 }
0x1946   :  { %18988 = vrcp.f32 %v8815_v55 }
0x1953   :  { %v18989_v5 = vpop.eup %18988 }
0x1954   :  { %v8830_v15 = vsub.f32 1.0, %v18989_v5  ;;  %v8839_v2 = vmul.f32 %v18989_v5, %v8837_v25 }
0x19b5   :  { %v8833_v39 = vpop.permute.xlu1 %8832 }
0x19b6   :  { %v8835_v50 = vmul.f32 %v8833_v39, %v8830_v15 }
0x19b8   :  { %v21208_v37 = vadd.f32 %v8839_v2, %v8835_v50 }
0x19ba   :  { %8842 = vrot.lane.b32.xlu1 %v21208_v37, %s19515_s24 }
0x1a2c   :  { %v21212_v26 = vpop.permute.xlu1 %8842 }
0x1a2d   :  { %17381 = vmatmul.mubr.msk.f32.vlgmr.msra.gmra.mxu1 %vm311_vm2, %v21212_v26  ;;  %18327 = vmatmul.mubr.msk.f32.vlgmr.msra.gmra.mxu0 %vm311_vm2, %v21212_v26 }
0x1a2e   :  { %9015 = vmatpush1.msra.mxu1 %v20937_v31  ;;  %18330 = vmatpush3.msra.mxu0 %v20939_v43  ;;  %v9172_v31 = vld [vmem:[#allocation4 + $0x848] sm:$0xff]  ;;  %v9174_v43 = vld [vmem:[#allocation4 + $0x858] sm:$0xff] }
0x1a2f   :  { %9016 = vmatprep.subr.mxu1 %v20943_v3  ;;  %18331 = vmatprep.subr.mxu0 %v23021_v60  ;;  %v9171_v3 = vld [vmem:[#allocation4 + $0x840] sm:$0xff] }
0x1a30   :  { %9017 = vmatpush1.msra.mxu1 %v20949_v48  ;;  %18332 = vmatpush3.msra.mxu0 %v20951_v6  ;;  %v9173_v48 = vld [vmem:[#allocation4 + $0x850] sm:$0xff]  ;;  %v9166_v6 = vld [vmem:[#allocation4 + $0x818] sm:$0xff] }
0x1a31   :  { %9018 = vmatprep.subr.mxu1 %v20955_v9  ;;  %18333 = vmatprep.subr.mxu0 %v23021_v60  ;;  %v9168_v9 = vld [vmem:[#allocation4 + $0x828] sm:$0xff] }
0x1a32   :  { %9019 = vmatpush1.msra.mxu1 %v20959_v11  ;;  %18334 = vmatpush3.msra.mxu0 %v20961_v1  ;;  %v9165_v11 = vld [vmem:[#allocation4 + $0x810] sm:$0xff]  ;;  %v9167_v1 = vld [vmem:[#allocation4 + $0x820] sm:$0xff] }
0x1a33   :  { %9020 = vmatprep.subr.mxu1 %v20965_v13  ;;  %18335 = vmatprep.subr.mxu0 %v23021_v60  ;;  %v9160_v13 = vld [vmem:[#allocation4 + $0x7e8] sm:$0xff] }
0x1a34   :  { %9021 = vmatpush1.msra.mxu1 %v20969_v14  ;;  %9054 = vmatprep.mubr.f32.mxu1 %v23021_v60  ;;  %v9162_v14 = vld [vmem:[#allocation4 + $0x7f8] sm:$0xff] }
0x1a35   :  { %18336 = vmatpush3.msra.mxu0 %v20973_v57  ;;  %18337 = vmatprep.mubr.msk.f32.mxu0 %vm19513_vm0, %v23021_v60  ;;  %v9159_v57 = vld [vmem:[#allocation4 + $0x7e0] sm:$0xff] }
0x1a36   :  { %17383 = vmatmul.mubr.msk.f32.vlgmr.msra.gmra.mxu1 %vm311_vm2, %v21123_v16  ;;  %18338 = vmatmul.mubr.msk.f32.vlgmr.msra.gmra.mxu0 %vm311_vm2, %v21123_v16 }
0x1a37   :  { %9245 = vmatprep.mubr.f32.mxu1 %v23021_v60  ;;  %9316 = vmatprep.mubr.f32.mxu0 %v23021_v60 }
0x1a38   :  { %9205 = vmatprep.subr.mxu1 %v9172_v31  ;;  %9276 = vmatprep.subr.mxu0 %v9174_v43 }
0x1a39   :  { %9206 = vmatpush1.msra.mxu1 %v9171_v3  ;;  %9277 = vmatpush1.msra.mxu0 %v9173_v48  ;;  %v9175_v48 = vld [vmem:[#allocation4 + $0x860] sm:$0xff] }
0x1a3a   :  { %9207 = vmatprep.subr.mxu1 %v9166_v6  ;;  %9278 = vmatprep.subr.mxu0 %v9168_v9  ;;  %v9170_v6 = vld [vmem:[#allocation4 + $0x838] sm:$0xff]  ;;  %v21254_v9 = vld [vmem:[#allocation2 + $0x1f8] sm:$0xff] }
0x1a3b   :  { %9208 = vmatpush1.msra.mxu1 %v9165_v11  ;;  %9279 = vmatpush1.msra.mxu0 %v9167_v1  ;;  %v9164_v11 = vld [vmem:[#allocation4 + $0x808] sm:$0xff]  ;;  %v21257_v1 = vld [vmem:[#allocation2 + $0x1e8] sm:$0xff] }
0x1a3c   :  { %9209 = vmatprep.subr.mxu1 %v9160_v13  ;;  %9280 = vmatprep.subr.mxu0 %v9162_v14  ;;  %v21260_v13 = vld [vmem:[#allocation2 + $0x1e0] sm:$0xff]  ;;  %v9158_v14 = vld [vmem:[#allocation4 + $0x7d8] sm:$0xff] }
0x1a3d   :  { %9210 = vmatpush1.msra.mxu1 %v9159_v57  ;;  %9281 = vmatpush1.msra.mxu0 %v9161_v30  ;;  %v21263_v57 = vld [vmem:[#allocation2 + $0x1d0] sm:$0xff]  ;;  %v9157_v30 = vld [vmem:[#allocation4 + $0x7d0] sm:$0xff] }
0x1a3e   :  { %9211 = vmatprep.subr.mxu1 %v9154_v21  ;;  %9282 = vmatprep.subr.mxu0 %v9156_v8  ;;  %v21266_v21 = vld [vmem:[#allocation2 + $0x1c8] sm:$0xff]  ;;  %v21269_v8 = vld [vmem:[#allocation2 + $0x1b8] sm:$0xff] }
0x1a3f   :  { %9212 = vmatpush1.msra.mxu1 %v9153_v45  ;;  %9283 = vmatpush1.msra.mxu0 %v9155_v46  ;;  %v21273_v45 = vld [vmem:[#allocation2 + $0x1b0] sm:$0xff]  ;;  %v21283_v46 = vld [vmem:[#allocation2 + $0x208] sm:$0xff] }
0x1a40   :  { %9347 = vmatprep.subr.mxu1 %v9176_v44  ;;  %9424 = vmatprep.subr.mxu0 %v21241_v58  ;;  %v21286_v44 = vld [vmem:[#allocation2 + $0x278] sm:$0xff] }
0x1aed   :  { %v8983_v23 = vpop.f32.mrf.mxu0  ;;  %v8912_v0 = vpop.f32.mrf.mxu1 }
0x1aee   :  { %v8913_v7 = vadd.f32 %v8912_v0, %v23133_v51  ;;  %v8984_v55 = vadd.f32 %v8983_v23, %v21000_v40  ;;  %v21290_v23 = vld [vmem:[#allocation2 + $0x270] sm:$0xff]  ;;  %v21296_v0 = vld [vmem:[#allocation2 + $0x260] sm:$0xff] }
0x1aef   :  { %v18328_v52 = vpop.f32.mrf.mxu0  ;;  %v8914_v29 = vpop.f32.mrf.mxu1 }
0x1af0   :  { %v8915_v19 = vadd.f32 %v8914_v29, %v20994_v10  ;;  %v21293_v52 = vld [vmem:[#allocation2 + $0x1f0] sm:$0xff]  ;;  %v21300_v29 = vld [vmem:[#allocation2 + $0x258] sm:$0xff] }
0x1af6   :  { %v9056_v17 = vpop.f32.mrf.mxu1  ;;  %v9127_v62 = vpop.f32.mrf.mxu0 }
0x1af7   :  { %v9131_v38 = vadd.f32 %v9056_v17, %v8913_v7  ;;  %v9145_v49 = vadd.f32 %v9127_v62, %v20997_v24  ;;  %v9169_v24 = vld [vmem:[#allocation4 + $0x830] sm:$0xff]  ;;  %v21303_v7 = vld [vmem:[#allocation2 + $0x1d8] sm:$0xff]  ;;  %v21310_v62 = vld [vmem:[#allocation2 + $0x240] sm:$0xff] }
0x1af8   :  { %v18339_v54 = vpop.f32.mrf.mxu0  ;;  %v9058_v33 = vpop.f32.mrf.mxu1  ;;  %v21306_v17 = vld [vmem:[#allocation2 + $0x248] sm:$0xff] }
0x1af9   :  { %v17385_v12 = vmul.f32 -1.442695, %v9131_v38  ;;  %v9138_v59 = vadd.f32 %v9058_v33, %v8915_v19  ;;  %v21313_v38 = vld [vmem:[#allocation2 + $0x1c0] sm:$0xff]  ;;  %v21316_v54 = vld [vmem:[#allocation2 + $0x230] sm:$0xff]  ;;  %v21325_v33 = vld [vmem:[#allocation2 + $0x228] sm:$0xff] }
0x1afa   :  { %v21330_v19 = vld [vmem:[#allocation2 + $0x268] sm:$0xff] }
0x1afb   :  { %18990 = vpow2.f32 %v17385_v12  ;;  %v17386_v56 = vmul.f32 -1.442695, %v9138_v59  ;;  %v21322_v12 = vld [vmem:[#allocation2 + $0x280] sm:$0xff]  ;;  %v21339_v59 = vld [vmem:[#allocation2 + $0x250] sm:$0xff] }
0x1afd   :  { %18992 = vpow2.f32 %v17386_v56  ;;  %v21343_v56 = vld [vmem:[#allocation2 + $0x238] sm:$0xff] }
0x1b08   :  { %v18991_v47 = vpop.eup %18990 }
0x1b09   :  { %v9135_v4 = vadd.f32 1.0, %v18991_v47  ;;  %v22986_v47 = vsub.s32 3, %v23136_v36 }
0x1b0a   :  { %v18993_v63 = vpop.eup %18992 }
0x1b0b   :  { %18994 = vrcp.f32 %v9135_v4  ;;  %v9142_v53 = vadd.f32 1.0, %v18993_v63  ;;  %v23142_v4 = vld [vmem:[#allocation14_spill] sm:$0xff] }
0x1b0c   :  { %v7158_v63 = vrot.slane %v21173_v34, %v23142_v4  ;;  %v9906_v4 = vld [vmem:[#allocation4 + $0x8b0] sm:$0xff] }
0x1b0d   :  { %18996 = vrcp.f32 %v9142_v53  ;;  %v7166_v53 = vrot.slane %v21173_v34, %v22986_v47  ;;  %v9907_v47 = vld [vmem:[#allocation4 + $0x8b8] sm:$0xff] }
0x1b18   :  { %v18995_v22 = vpop.eup %18994 }
0x1b19   :  { %v9146_v5 = vmul.f32 %v18995_v22, %v9145_v49  ;;  %v23143_v49 = vld [vmem:[#allocation42_spill] sm:$0xff] }
0x1b1a   :  { %v18997_v25 = vpop.eup %18996  ;;  %v7913_v22 = vadd.f32 %v23143_v49, %v7158_v63 }
0x1b1b   :  { %v9147_v15 = vadd.f32 %v9146_v5, %v8984_v55  ;;  %v9149_v39 = vsub.f32 1.0, %v18997_v25  ;;  %v9151_v31 = vmul.f32 %v18997_v25, %v21123_v16  ;;  %v9163_v16 = vld [vmem:[#allocation4 + $0x800] sm:$0xff] }
0x1b1c   :  { %v23144_v55 = vld [vmem:[#allocation20_spill] sm:$0xff] }
0x1b1d   :  { %18998 = vtanh.f32 %v9147_v15  ;;  %v7915_v5 = vadd.f32 %v23144_v55, %v7166_v53 }
0x1b2a   :  { %v18999_v2 = vpop.eup %18998 }
0x1b2b   :  { %v9150_v50 = vmul.f32 %v18999_v2, %v9149_v39  ;;  %v8650_v39 = vadd.f32 %v21188_v42, %v7913_v22  ;;  %v8652_v2 = vadd.f32 %v21190_v28, %v7915_v5  ;;  %v21379_v22 = vld [vmem:[#allocation2 + $0x210] ss:$0 sm:$0xff] }
0x1b2d   :  { %v21249_v43 = vadd.f32 %v9151_v31, %v9150_v50 }
0x1b2f   :  { %v9177_v3 = vmax.f32 %v21249_v43, 0.0 }
0x1b31   :  { %17387 = vmatmul.mubr.msk.f32.vlgmr.msra.gmra.mxu1 %vm311_vm2, %v9177_v3  ;;  %17388 = vmatmul.mubr.msk.f32.vlgmr.msra.gmra.mxu0 %vm311_vm2, %v9177_v3 }
0x1b32   :  { %9348 = vmatpush1.msra.mxu1 %v9175_v48  ;;  %9425 = vmatpush1.msra.mxu0 %v21254_v9 }
0x1b33   :  { %9349 = vmatprep.subr.mxu1 %v9170_v6  ;;  %9426 = vmatprep.subr.mxu0 %v21257_v1 }
0x1b34   :  { %9350 = vmatpush1.msra.mxu1 %v9169_v24  ;;  %9427 = vmatpush1.msra.mxu0 %v21260_v13 }
0x1b35   :  { %9351 = vmatprep.subr.mxu1 %v9164_v11  ;;  %9428 = vmatprep.subr.mxu0 %v21263_v57 }
0x1b36   :  { %9352 = vmatpush1.msra.mxu1 %v9163_v16  ;;  %9429 = vmatpush1.msra.mxu0 %v21266_v21  ;;  %v23145_v16 = vld [vmem:[#allocation44_spill] sm:$0xff] }
0x1b37   :  { %9353 = vmatprep.subr.mxu1 %v9158_v14  ;;  %9430 = vmatprep.subr.mxu0 %v21269_v8 }
0x1b38   :  { %9354 = vmatpush1.msra.mxu1 %v9157_v30  ;;  %9387 = vmatprep.mubr.f32.mxu1 %v23021_v60 }
0x1b39   :  { %9431 = vmatpush1.msra.mxu0 %v21273_v45  ;;  %9464 = vmatprep.mubr.f32.mxu0 %v23021_v60 }
0x1b3a   :  { %17389 = vmatmul.mubr.msk.f32.vlgmr.msra.gmra.mxu1 %vm311_vm2, %v9177_v3  ;;  %17390 = vmatmul.mubr.msk.f32.vlgmr.msra.gmra.mxu0 %vm311_vm2, %v21212_v26  ;;  %v22985_v3 = vsub.s32 5, %v23136_v36 }
0x1b3b   :  { %18340 = vmatprep.subr.mxu1 %v23021_v60  ;;  %18348 = vmatprep.mubr.msk.f32.mxu1 %vm19513_vm0, %v23021_v60 }
0x1b3c   :  { %18341 = vmatpush3.msra.mxu1 %v21283_v46  ;;  %9615 = vmatprep.subr.mxu0 %v21286_v44  ;;  %v7174_v42 = vrot.slane %v21173_v34, %v22985_v3  ;;  %v9905_v3 = vld [vmem:[#allocation4 + $0x8a8] sm:$0xff] }
0x1b3d   :  { %18342 = vmatprep.subr.mxu1 %v23021_v60  ;;  %9616 = vmatpush1.msra.mxu0 %v21290_v23 }
0x1b3e   :  { %18343 = vmatpush3.msra.mxu1 %v21293_v52  ;;  %9617 = vmatprep.subr.mxu0 %v21296_v0  ;;  %v7917_v28 = vadd.f32 %v23145_v16, %v7174_v42 }
0x1b3f   :  { %18344 = vmatprep.subr.mxu1 %v23021_v60  ;;  %9618 = vmatpush1.msra.mxu0 %v21300_v29 }
0x1b40   :  { %18345 = vmatpush3.msra.mxu1 %v21303_v7  ;;  %9619 = vmatprep.subr.mxu0 %v21306_v17  ;;  %v8654_v30 = vadd.f32 %v21196_v61, %v7917_v28 }
0x1b41   :  { %18346 = vmatprep.subr.mxu1 %v23021_v60  ;;  %9620 = vmatpush1.msra.mxu0 %v21310_v62 }
0x1b42   :  { %18347 = vmatpush3.msra.mxu1 %v21313_v38  ;;  %9621 = vmatprep.subr.mxu0 %v21316_v54 }
0x1b43   :  { %18349 = vmatmul.mubr.msk.f32.vlgmr.msra.gmra.mxu1 %vm311_vm2, %v21212_v26  ;;  %18351 = vmatprep.subr.mxu1 %v23021_v60  ;;  %v21336_v26 = vld [vmem:[#allocation2 + $0x2d8] sm:$0xff] }
0x1b44   :  { %18352 = vmatpush3.msra.mxu1 %v21322_v12  ;;  %9622 = vmatpush1.msra.mxu0 %v21325_v33 }
0x1b45   :  { %18353 = vmatprep.subr.mxu1 %v23021_v60  ;;  %9655 = vmatprep.mubr.f32.mxu0 %v23021_v60 }
0x1b46   :  { %18354 = vmatpush3.msra.mxu1 %v21330_v19  ;;  %18359 = vmatprep.mubr.msk.f32.mxu1 %vm19513_vm0, %v23021_v60 }
0x1b47   :  { %18355 = vmatprep.subr.mxu1 %v23021_v60  ;;  %9759 = vmatprep.subr.mxu0 %v21336_v26 }
0x1b48   :  { %18356 = vmatpush3.msra.mxu1 %v21339_v59 }
0x1b49   :  { %18357 = vmatprep.subr.mxu1 %v23021_v60 }
0x1b4a   :  { %18358 = vmatpush3.msra.mxu1 %v21343_v56 }
0x1b4b   :  { %18362 = vmatprep.subr.mxu1 %v23021_v60 }
0x1bf1   :  { %v9247_v15 = vpop.f32.mrf.mxu1  ;;  %v9318_v25 = vpop.f32.mrf.mxu0 }
0x1bf2   :  { %v21358_v50 = vadd.f32 %v9247_v15, %v21181_v27  ;;  %v21361_v31 = vadd.f32 %v9318_v25, %v21183_v32 }
0x1bf3   :  { %v9249_v48 = vpop.f32.mrf.mxu1  ;;  %v9320_v6 = vpop.f32.mrf.mxu0 }
0x1bf4   :  { %v21364_v24 = vadd.f32 %v9249_v48, %v8650_v39  ;;  %v21366_v11 = vadd.f32 %v9320_v6, %v8652_v2 }
0x1bfa   :  { %v9389_v14 = vpop.f32.mrf.mxu1  ;;  %v9466_v27 = vpop.f32.mrf.mxu0 }
0x1bfb   :  { %v21374_v32 = vadd.f32 %v9389_v14, %v21193_v18  ;;  %9542 = vrot.lane.b32.xlu0 %v9466_v27, %s19515_s24 }
0x1bfc   :  { %v9391_v63 = vpop.f32.mrf.mxu1  ;;  %v9468_v5 = vpop.f32.mrf.mxu0 }
0x1bfd   :  { %v21377_v53 = vadd.f32 %v9391_v63, %v8654_v30 }
0x1c03   :  { %v9537_v49 = vpop.f32.mrf.mxu1 }
0x1c04   :  { %v9563_v55 = vadd.f32 %v21379_v22, %v9537_v49 }
0x1c05   :  { %v18350_v34 = vpop.f32.mrf.mxu1 }
0x1c06   :  { %9565 = vrot.lane.b32.xlu1 %v9563_v55, %s19515_s24 }
0x1c0a   :  { %9553 = vrot.lane.b32.xlu1 %v9468_v5, %s19514_s0 }
0x1c0e   :  { %9581 = vrot.lane.b32.xlu1 %v21208_v37, %s19516_s25 }
0x1c6d   :  { %v9543_v18 = vpop.permute.xlu0 %9542 }
0x1c6e   :  { %v9545_v61 = vadd.f32 %v9543_v18, %v23140_v35 }
0x1c70   :  { %v17392_v15 = vmul.f32 -1.442695, %v9545_v61 }
0x1c72   :  { %19000 = vpow2.f32 %v17392_v15 }
0x1c78   :  { %v9566_v48 = vpop.permute.xlu1 %9565 }
0x1c7c   :  { %v9554_v37 = vpop.permute.xlu1 %9553 }
0x1c7d   :  { %v9556_v14 = vadd.f32 %v9554_v37, %v23140_v35  ;;  %v21427_v37 = vld [vmem:[#allocation2 + $0x290] sm:$0xff] }
0x1c7e   :  { %23147 = vst [vmem:[#allocation25_spill] sm:$0xff] %v21427_v37 }
0x1c7f   :  { %v19001_v25 = vpop.eup %19000  ;;  %v17393_v27 = vmul.f32 -1.442695, %v9556_v14  ;;  %v21431_v14 = vld [vmem:[#allocation2 + $0x288] sm:$0xff] }
0x1c80   :  { %v9549_v39 = vadd.f32 1.0, %v19001_v25  ;;  %v9582_v34 = vpop.permute.xlu1 %9581  ;;  %23148 = vst [vmem:[#allocation34_spill] sm:$0xff] %v21431_v14 }
0x1c82   :  { %19002 = vrcp.f32 %v9549_v39  ;;  %v21404_v39 = vld [vmem:[#allocation2 + $0x2e0] sm:$0xff] }
0x1c8f   :  { %v19003_v2 = vpop.eup %19002 }
0x1c90   :  { %v9568_v6 = vmul.f32 %v19003_v2, %v9566_v48  ;;  %v21407_v2 = vld [vmem:[#allocation2 + $0x2c0] sm:$0xff]  ;;  %v21411_v48 = vld [vmem:[#allocation2 + $0x2b8] sm:$0xff] }
0x1c92   :  { %9570 = vrot.lane.b32.xlu0 %v9568_v6, %s19514_s0  ;;  %v21414_v6 = vld [vmem:[#allocation2 + $0x2c8] sm:$0xff] }
0x1d04   :  { %v9571_v42 = vpop.permute.xlu0 %9570 }
0x1d05   :  { %v9573_v16 = vadd.f32 %v9571_v42, %v23140_v35  ;;  %v21401_v35 = vld [vmem:[#allocation2 + $0x2d0] sm:$0xff]  ;;  %v21417_v42 = vld [vmem:[#allocation2 + $0x2a8] sm:$0xff] }
0x1d07   :  { %19004 = vtanh.f32 %v9573_v16  ;;  %v21421_v16 = vld [vmem:[#allocation2 + $0x2a0] sm:$0xff] }
0x1d08   :  { %19006 = vpow2.f32 %v17393_v27  ;;  %v21435_v27 = vld [vmem:[#allocation2 + $0x298] sm:$0xff] }
0x1d09   :  { %23149 = vst [vmem:[#allocation36_spill] sm:$0xff] %v21435_v27 }
0x1d14   :  { %v19005_v28 = vpop.eup %19004 }
0x1d15   :  { %9577 = vrot.lane.b32.xlu0 %v19005_v28, %s19516_s25  ;;  %v19007_v30 = vpop.eup %19006  ;;  %v21424_v28 = vld [vmem:[#allocation2 + $0x2b0] sm:$0xff] }
0x1d16   :  { %v9560_v63 = vadd.f32 1.0, %v19007_v30  ;;  %23146 = vst [vmem:[#allocation9_spill] sm:$0xff] %v21424_v28  ;;  %v9917_v30 = vld [vmem:[#allocation4 + $0x908] sm:$0xff] }
0x1d18   :  { %19008 = vrcp.f32 %v9560_v63  ;;  %v9919_v63 = vld [vmem:[#allocation4 + $0x918] sm:$0xff] }
0x1d25   :  { %v19009_v49 = vpop.eup %19008 }
0x1d26   :  { %v9575_v55 = vsub.f32 1.0, %v19009_v49  ;;  %v9584_v18 = vmul.f32 %v19009_v49, %v9582_v34  ;;  %v9916_v49 = vld [vmem:[#allocation4 + $0x900] sm:$0xff]  ;;  %v9911_v34 = vld [vmem:[#allocation4 + $0x8d8] sm:$0xff] }
0x1d87   :  { %v9578_v5 = vpop.permute.xlu0 %9577 }
0x1d88   :  { %v9580_v61 = vmul.f32 %v9578_v5, %v9575_v55  ;;  %v9918_v55 = vld [vmem:[#allocation4 + $0x910] sm:$0xff]  ;;  %v9913_v5 = vld [vmem:[#allocation4 + $0x8e8] sm:$0xff] }
0x1d8a   :  { %v21391_v15 = vadd.f32 %v9584_v18, %v9580_v61  ;;  %v9910_v18 = vld [vmem:[#allocation4 + $0x8d0] sm:$0xff]  ;;  %v9912_v61 = vld [vmem:[#allocation4 + $0x8e0] sm:$0xff] }
0x1d8c   :  { %9587 = vrot.lane.b32.xlu0 %v21391_v15, %s19514_s0 }
0x1dfe   :  { %v21395_v25 = vpop.permute.xlu0 %9587 }
0x1dff   :  { %17394 = vmatmul.mubr.msk.f32.vlgmr.msra.gmra.mxu0 %vm311_vm2, %v21395_v25  ;;  %18360 = vmatmul.mubr.msk.f32.vlgmr.msra.gmra.mxu1 %vm311_vm2, %v21395_v25 }
0x1e00   :  { %9760 = vmatpush1.msra.mxu0 %v21401_v35  ;;  %18363 = vmatpush3.msra.mxu1 %v21404_v39 }
0x1e01   :  { %9761 = vmatprep.subr.mxu0 %v21407_v2  ;;  %18364 = vmatprep.subr.mxu1 %v23021_v60 }
0x1e02   :  { %9762 = vmatpush1.msra.mxu0 %v21411_v48  ;;  %18365 = vmatpush3.msra.mxu1 %v21414_v6 }
0x1e03   :  { %9763 = vmatprep.subr.mxu0 %v21417_v42  ;;  %18366 = vmatprep.subr.mxu1 %v23021_v60 }
0x1e04   :  { %9764 = vmatpush1.msra.mxu0 %v21421_v16  ;;  %18367 = vmatpush3.msra.mxu1 %v21424_v28  ;;  %v21449_v28 = vld [vmem:[#allocation2 + $0x300] ss:$0 sm:$0xff] }
0x1e05   :  { %9765 = vmatprep.subr.mxu0 %v21427_v37  ;;  %18368 = vmatprep.subr.mxu1 %v23021_v60 }
0x1e06   :  { %9766 = vmatpush1.msra.mxu0 %v21431_v14  ;;  %9799 = vmatprep.mubr.f32.mxu0 %v23021_v60 }
0x1e07   :  { %18369 = vmatpush3.msra.mxu1 %v21435_v27  ;;  %18370 = vmatprep.mubr.msk.f32.mxu1 %vm19513_vm0, %v23021_v60 }
0x1e08   :  { %17396 = vmatmul.mubr.msk.f32.vlgmr.msra.gmra.mxu0 %vm311_vm2, %v21249_v43  ;;  %18371 = vmatmul.mubr.msk.f32.vlgmr.msra.gmra.mxu1 %vm311_vm2, %v21249_v43 }
0x1e09   :  { %9990 = vmatprep.mubr.f32.mxu0 %v23021_v60  ;;  %10061 = vmatprep.mubr.f32.mxu1 %v23021_v60 }
0x1e0a   :  { %9950 = vmatprep.subr.mxu0 %v9917_v30  ;;  %10021 = vmatprep.subr.mxu1 %v9919_v63  ;;  %v9899_v30 = vld [vmem:[#allocation4 + $0x878] sm:$0xff]  ;;  %v9901_v63 = vld [vmem:[#allocation4 + $0x888] sm:$0xff] }
0x1e0b   :  { %9951 = vmatpush1.msra.mxu0 %v9916_v49  ;;  %10022 = vmatpush1.msra.mxu1 %v9918_v55  ;;  %v9898_v49 = vld [vmem:[#allocation4 + $0x870] sm:$0xff]  ;;  %v9900_v55 = vld [vmem:[#allocation4 + $0x880] sm:$0xff] }
0x1e0c   :  { %9952 = vmatprep.subr.mxu0 %v9911_v34  ;;  %10023 = vmatprep.subr.mxu1 %v9913_v5  ;;  %v9921_v34 = vld [vmem:[#allocation4 + $0x928] sm:$0xff] }
0x1e0d   :  { %9953 = vmatpush1.msra.mxu0 %v9910_v18  ;;  %10024 = vmatpush1.msra.mxu1 %v9912_v61 }
0x1e0e   :  { %9954 = vmatprep.subr.mxu0 %v9905_v3  ;;  %10025 = vmatprep.subr.mxu1 %v9907_v47 }
0x1e0f   :  { %9955 = vmatpush1.msra.mxu0 %v9904_v41  ;;  %10026 = vmatpush1.msra.mxu1 %v9906_v4 }
0x1e10   :  { %9956 = vmatprep.subr.mxu0 %v9899_v30  ;;  %10027 = vmatprep.subr.mxu1 %v9901_v63 }
0x1e11   :  { %9957 = vmatpush1.msra.mxu0 %v9898_v49  ;;  %10028 = vmatpush1.msra.mxu1 %v9900_v55 }
0x1e12   :  { %10092 = vmatprep.subr.mxu0 %v9921_v34  ;;  %10169 = vmatprep.subr.mxu1 %v21241_v58 }
0x1ebf   :  { %v9728_v5 = vpop.f32.mrf.mxu1  ;;  %v9657_v3 = vpop.f32.mrf.mxu0 }
0x1ec0   :  { %v9658_v61 = vadd.f32 %v9657_v3, %v23133_v51 }
0x1ec1   :  { %v18361_v18 = vpop.f32.mrf.mxu1  ;;  %v9659_v47 = vpop.f32.mrf.mxu0 }
0x1ec2   :  { %v9660_v63 = vadd.f32 %v9659_v47, %v20994_v10 }
0x1ec8   :  { %v9801_v41 = vpop.f32.mrf.mxu0  ;;  %v9872_v4 = vpop.f32.mrf.mxu1 }
0x1ec9   :  { %v9876_v20 = vadd.f32 %v9801_v41, %v9658_v61  ;;  %v9890_v3 = vadd.f32 %v21449_v28, %v9872_v4  ;;  %v9902_v4 = vld [vmem:[#allocation4 + $0x890] sm:$0xff] }
0x1eca   :  { %v18372_v27 = vpop.f32.mrf.mxu1  ;;  %v9803_v30 = vpop.f32.mrf.mxu0 }
0x1ecb   :  { %v17398_v14 = vmul.f32 -1.442695, %v9876_v20  ;;  %v9883_v49 = vadd.f32 %v9803_v30, %v9660_v63  ;;  %v9729_v27 = vadd.f32 %v9728_v5, %v21000_v40  ;;  %v9908_v5 = vld [vmem:[#allocation4 + $0x8c0] sm:$0xff] }
0x1ecd   :  { %19010 = vpow2.f32 %v17398_v14  ;;  %v17399_v55 = vmul.f32 -1.442695, %v9883_v49 }
0x1ecf   :  { %19012 = vpow2.f32 %v17399_v55  ;;  %v9920_v55 = vld [vmem:[#allocation4 + $0x920] sm:$0xff] }
0x1eda   :  { %v19011_v34 = vpop.eup %19010 }
0x1edb   :  { %v9880_v58 = vadd.f32 1.0, %v19011_v34  ;;  %v9915_v34 = vld [vmem:[#allocation4 + $0x8f8] sm:$0xff] }
0x1edc   :  { %v19013_v18 = vpop.eup %19012 }
0x1edd   :  { %19014 = vrcp.f32 %v9880_v58  ;;  %v9887_v37 = vadd.f32 1.0, %v19013_v18  ;;  %v23151_v18 = vld [vmem:[#allocation17_spill] sm:$0xff] }
0x1edf   :  { %19016 = vrcp.f32 %v9887_v37  ;;  %v9909_v37 = vld [vmem:[#allocation4 + $0x8c8] sm:$0xff] }
0x1eea   :  { %v19015_v51 = vpop.eup %19014 }
0x1eeb   :  { %v9891_v20 = vmul.f32 %v19015_v51, %v9890_v3  ;;  %v9914_v51 = vld [vmem:[#allocation4 + $0x8f0] sm:$0xff] }
0x1eec   :  { %v19017_v14 = vpop.eup %19016 }
0x1eed   :  { %v9892_v61 = vadd.f32 %v9891_v20, %v9729_v27  ;;  %v9894_v47 = vsub.f32 1.0, %v19017_v14  ;;  %v9896_v63 = vmul.f32 %v19017_v14, %v21249_v43  ;;  %v9903_v43 = vld [vmem:[#allocation4 + $0x898] sm:$0xff]  ;;  %v23152_v27 = vld [vmem:[#allocation22_spill] sm:$0xff] }
0x1eef   :  { %19018 = vtanh.f32 %v9892_v61  ;;  %v23153_v61 = vld [vmem:[#allocation8_spill] sm:$0xff] }
0x1efc   :  { %v19019_v41 = vpop.eup %19018 }
0x1efd   :  { %v9895_v30 = vmul.f32 %v19019_v41, %v9894_v47  ;;  %v23154_v47 = vld [vmem:[#allocation21_spill] sm:$0xff] }
0x1eff   :  { %v21454_v58 = vadd.f32 %v9896_v63, %v9895_v30  ;;  %v23155_v30 = vld [vmem:[#allocation33_spill] sm:$0xff] }
0x1f01   :  { %v9922_v49 = vmax.f32 %v21454_v58, 0.0 }
0x1f03   :  { %17400 = vmatmul.mubr.msk.f32.vlgmr.msra.gmra.mxu0 %vm311_vm2, %v9922_v49  ;;  %17401 = vmatmul.mubr.msk.f32.vlgmr.msra.gmra.mxu1 %vm311_vm2, %v9922_v49 }
0x1f04   :  { %10093 = vmatpush1.msra.mxu0 %v9920_v55  ;;  %10170 = vmatpush1.msra.mxu1 %v21254_v9 }
0x1f05   :  { %10094 = vmatprep.subr.mxu0 %v9915_v34  ;;  %10171 = vmatprep.subr.mxu1 %v21257_v1 }
0x1f06   :  { %10095 = vmatpush1.msra.mxu0 %v9914_v51  ;;  %10172 = vmatpush1.msra.mxu1 %v21260_v13 }
0x1f07   :  { %10096 = vmatprep.subr.mxu0 %v9909_v37  ;;  %10173 = vmatprep.subr.mxu1 %v21263_v57  ;;  %v23156_v37 = vld [vmem:[#allocation23_spill] sm:$0xff] }
0x1f08   :  { %10097 = vmatpush1.msra.mxu0 %v9908_v5  ;;  %10174 = vmatpush1.msra.mxu1 %v21266_v21 }
0x1f09   :  { %10098 = vmatprep.subr.mxu0 %v9903_v43  ;;  %10175 = vmatprep.subr.mxu1 %v21269_v8 }
0x1f0a   :  { %10099 = vmatpush1.msra.mxu0 %v9902_v4  ;;  %10132 = vmatprep.mubr.f32.mxu0 %v23021_v60 }
0x1f0b   :  { %10176 = vmatpush1.msra.mxu1 %v21273_v45  ;;  %10209 = vmatprep.mubr.f32.mxu1 %v23021_v60 }
0x1f0c   :  { %17402 = vmatmul.mubr.msk.f32.vlgmr.msra.gmra.mxu0 %vm311_vm2, %v9922_v49  ;;  %17403 = vmatmul.mubr.msk.f32.vlgmr.msra.gmra.mxu1 %vm311_vm2, %v21395_v25 }
0x1f0d   :  { %18373 = vmatprep.subr.mxu0 %v23021_v60  ;;  %18381 = vmatprep.mubr.msk.f32.mxu0 %vm19513_vm0, %v23021_v60 }
0x1f0e   :  { %18374 = vmatpush3.msra.mxu0 %v21283_v46  ;;  %10352 = vmatprep.subr.mxu1 %v21286_v44 }
0x1f0f   :  { %18375 = vmatprep.subr.mxu0 %v23021_v60  ;;  %10353 = vmatpush1.msra.mxu1 %v21290_v23 }
0x1f10   :  { %18376 = vmatpush3.msra.mxu0 %v21293_v52  ;;  %10354 = vmatprep.subr.mxu1 %v21296_v0 }
0x1f11   :  { %18377 = vmatprep.subr.mxu0 %v23021_v60  ;;  %10355 = vmatpush1.msra.mxu1 %v21300_v29 }
0x1f12   :  { %18378 = vmatpush3.msra.mxu0 %v21303_v7  ;;  %10356 = vmatprep.subr.mxu1 %v21306_v17 }
0x1f13   :  { %18379 = vmatprep.subr.mxu0 %v23021_v60  ;;  %10357 = vmatpush1.msra.mxu1 %v21310_v62 }
0x1f14   :  { %18380 = vmatpush3.msra.mxu0 %v21313_v38  ;;  %10358 = vmatprep.subr.mxu1 %v21316_v54 }
0x1f15   :  { %18382 = vmatmul.mubr.msk.f32.vlgmr.msra.gmra.mxu0 %vm311_vm2, %v21395_v25  ;;  %18384 = vmatprep.subr.mxu0 %v23021_v60  ;;  %v23150_v25 = vsub.s32 3, %v23136_v36 }
0x1f16   :  { %18385 = vmatpush3.msra.mxu0 %v21322_v12  ;;  %10359 = vmatpush1.msra.mxu1 %v21325_v33 }
0x1f17   :  { %18386 = vmatprep.subr.mxu0 %v23021_v60  ;;  %10392 = vmatprep.mubr.f32.mxu1 %v23021_v60  ;;  %v150_v3 = vrot.slane %v23151_v18, %v23150_v25 }
0x1f18   :  { %18387 = vmatpush3.msra.mxu0 %v21330_v19  ;;  %18392 = vmatprep.mubr.msk.f32.mxu0 %vm19513_vm0, %v23021_v60 }
0x1f19   :  { %18388 = vmatprep.subr.mxu0 %v23021_v60  ;;  %10496 = vmatprep.subr.mxu1 %v21336_v26  ;;  %v1032_v20 = vadd.f32 %v23152_v27, %v150_v3  ;;  %v23157_v27 = vld [vmem:[#allocation18_spill] sm:$0xff] }
0x1f1a   :  { %18389 = vmatpush3.msra.mxu0 %v21339_v59 }
0x1f1b   :  { %18390 = vmatprep.subr.mxu0 %v23021_v60  ;;  %v1897_v14 = vadd.f32 %v23153_v61, %v1032_v20  ;;  %v23158_v61 = vld [vmem:[#allocation40_spill] sm:$0xff] }
0x1f1c   :  { %18391 = vmatpush3.msra.mxu0 %v21343_v56 }
0x1f1d   :  { %18395 = vmatprep.subr.mxu0 %v23021_v60  ;;  %v2762_v41 = vadd.f32 %v23154_v47, %v1897_v14  ;;  %v23159_v47 = vld [vmem:[#allocation30_spill] sm:$0xff] }
0x1f1f   :  { %v3627_v63 = vadd.f32 %v23155_v30, %v2762_v41 }
0x1f21   :  { %v4492_v5 = vadd.f32 %v23156_v37, %v3627_v63 }
0x1f23   :  { %v5357_v20 = vadd.f32 %v23157_v27, %v4492_v5 }
0x1f25   :  { %v6222_v14 = vadd.f32 %v23158_v61, %v5357_v20 }
0x1fc3   :  { %v9992_v49 = vpop.f32.mrf.mxu0  ;;  %v10063_v55 = vpop.f32.mrf.mxu1 }
0x1fc4   :  { %v21512_v34 = vadd.f32 %v9992_v49, %v21358_v50  ;;  %v21515_v51 = vadd.f32 %v10063_v55, %v21361_v31  ;;  %v21527_v50 = vadd.f32 %v23159_v47, %v6222_v14 }
0x1fc5   :  { %v9994_v43 = vpop.f32.mrf.mxu0  ;;  %v10065_v4 = vpop.f32.mrf.mxu1 }
0x1fc6   :  { %v21519_v25 = vadd.f32 %v9994_v43, %v21364_v24  ;;  %v21522_v3 = vadd.f32 %v10065_v4, %v21366_v11 }
0x1fcc   :  { %v10134_v41 = vpop.f32.mrf.mxu0  ;;  %v10211_v31 = vpop.f32.mrf.mxu1 }
0x1fcd   :  { %v21530_v30 = vadd.f32 %v10134_v41, %v21374_v32  ;;  %v10286_v63 = vadd.f32 %v10211_v31, %v21527_v50 }
0x1fce   :  { %v10136_v49 = vpop.f32.mrf.mxu0  ;;  %v10213_v24 = vpop.f32.mrf.mxu1 }
0x1fcf   :  { %v17405_v55 = vmul.f32 -1.442695, %v10286_v63  ;;  %v21534_v11 = vadd.f32 %v10136_v49, %v21377_v53  ;;  %10294 = vrot.lane.b32.xlu0 %v10213_v24, %s19515_s24 }
0x1fd1   :  { %19020 = vpow2.f32 %v17405_v55 }
0x1fd3   :  { %10318 = vrot.lane.b32.xlu0 %v21391_v15, %s19516_s25 }
0x1fd5   :  { %v10282_v37 = vpop.f32.mrf.mxu0 }
0x1fd6   :  { %v10304_v32 = vadd.f32 %v21379_v22, %v10282_v37 }
0x1fd7   :  { %v18383_v5 = vpop.f32.mrf.mxu0 }
0x1fde   :  { %v19021_v43 = vpop.eup %19020 }
0x1fdf   :  { %v10290_v4 = vadd.f32 1.0, %v19021_v43 }
0x1fe1   :  { %19022 = vrcp.f32 %v10290_v4 }
0x1fee   :  { %v19023_v27 = vpop.eup %19022 }
0x1fef   :  { %v10305_v20 = vmul.f32 %v19023_v27, %v10304_v32  ;;  %v23160_v27 = vld [vmem:[#allocation9_spill] sm:$0xff] }
0x1ff1   :  { %10307 = vrot.lane.b32.xlu1 %v10305_v20, %s19514_s0  ;;  %v23161_v20 = vld [vmem:[#allocation25_spill] sm:$0xff] }
0x2041   :  { %v10295_v47 = vpop.permute.xlu0 %10294 }
0x2042   :  { %v10297_v15 = vadd.f32 %v10295_v47, %v21527_v50  ;;  %v10656_v47 = vld [vmem:[#allocation4 + $0x9d8] sm:$0xff] }
0x2044   :  { %v17406_v41 = vmul.f32 -1.442695, %v10297_v15  ;;  %v10653_v15 = vld [vmem:[#allocation4 + $0x9c0] sm:$0xff] }
0x2045   :  { %v10319_v55 = vpop.permute.xlu0 %10318 }
0x2063   :  { %v10308_v61 = vpop.permute.xlu1 %10307 }
0x2064   :  { %v10310_v53 = vadd.f32 %v10308_v61, %v21527_v50  ;;  %v23162_v61 = vld [vmem:[#allocation34_spill] sm:$0xff] }
0x2066   :  { %19024 = vtanh.f32 %v10310_v53  ;;  %v23163_v53 = vld [vmem:[#allocation36_spill] sm:$0xff] }
0x2067   :  { %19026 = vpow2.f32 %v17406_v41  ;;  %v10655_v41 = vld [vmem:[#allocation4 + $0x9d0] sm:$0xff] }
0x2073   :  { %v19025_v14 = vpop.eup %19024 }
0x2074   :  { %10314 = vrot.lane.b32.xlu1 %v19025_v14, %s19516_s25  ;;  %v19027_v31 = vpop.eup %19026  ;;  %v10654_v14 = vld [vmem:[#allocation4 + $0x9c8] sm:$0xff] }
0x2075   :  { %v10301_v63 = vadd.f32 1.0, %v19027_v31  ;;  %v10648_v31 = vld [vmem:[#allocation4 + $0x998] sm:$0xff] }
0x2077   :  { %19028 = vrcp.f32 %v10301_v63  ;;  %v10650_v63 = vld [vmem:[#allocation4 + $0x9a8] sm:$0xff] }
0x2084   :  { %v19029_v49 = vpop.eup %19028 }
0x2085   :  { %v10312_v24 = vsub.f32 1.0, %v19029_v49  ;;  %v10321_v5 = vmul.f32 %v19029_v49, %v10319_v55  ;;  %v10647_v49 = vld [vmem:[#allocation4 + $0x990] sm:$0xff]  ;;  %v10642_v55 = vld [vmem:[#allocation4 + $0x968] sm:$0xff] }
0x20e6   :  { %v10315_v37 = vpop.permute.xlu1 %10314 }
0x20e7   :  { %v10317_v43 = vmul.f32 %v10315_v37, %v10312_v24  ;;  %v10649_v24 = vld [vmem:[#allocation4 + $0x9a0] sm:$0xff]  ;;  %v10644_v37 = vld [vmem:[#allocation4 + $0x978] sm:$0xff] }
0x20e9   :  { %v10322_v4 = vadd.f32 %v10321_v5, %v10317_v43  ;;  %v10641_v5 = vld [vmem:[#allocation4 + $0x960] sm:$0xff]  ;;  %v10643_v43 = vld [vmem:[#allocation4 + $0x970] sm:$0xff] }
0x20eb   :  { %10324 = vrot.lane.b32.xlu1 %v10322_v4, %s19516_s25  ;;  %v10636_v4 = vld [vmem:[#allocation4 + $0x938] sm:$0xff] }
0x215d   :  { %v21545_v32 = vpop.permute.xlu1 %10324 }
0x215e   :  { %17407 = vmatmul.mubr.msk.f32.vlgmr.msra.gmra.mxu1 %vm311_vm2, %v21545_v32  ;;  %18393 = vmatmul.mubr.msk.f32.vlgmr.msra.gmra.mxu0 %vm311_vm2, %v21545_v32 }
0x215f   :  { %10497 = vmatpush1.msra.mxu1 %v21401_v35  ;;  %18396 = vmatpush3.msra.mxu0 %v21404_v39 }
0x2160   :  { %10498 = vmatprep.subr.mxu1 %v21407_v2  ;;  %18397 = vmatprep.subr.mxu0 %v23021_v60 }
0x2161   :  { %10499 = vmatpush1.msra.mxu1 %v21411_v48  ;;  %18398 = vmatpush3.msra.mxu0 %v21414_v6 }
0x2162   :  { %10500 = vmatprep.subr.mxu1 %v21417_v42  ;;  %18399 = vmatprep.subr.mxu0 %v23021_v60 }
0x2163   :  { %10501 = vmatpush1.msra.mxu1 %v21421_v16  ;;  %18400 = vmatpush3.msra.mxu0 %v23160_v27 }
0x2164   :  { %10502 = vmatprep.subr.mxu1 %v23161_v20  ;;  %18401 = vmatprep.subr.mxu0 %v23021_v60 }
0x2165   :  { %10503 = vmatpush1.msra.mxu1 %v23162_v61  ;;  %10536 = vmatprep.mubr.f32.mxu1 %v23021_v60 }
0x2166   :  { %18402 = vmatpush3.msra.mxu0 %v23163_v53  ;;  %18403 = vmatprep.mubr.msk.f32.mxu0 %vm19513_vm0, %v23021_v60 }
0x2167   :  { %17409 = vmatmul.mubr.msk.f32.vlgmr.msra.gmra.mxu1 %vm311_vm2, %v21454_v58  ;;  %18404 = vmatmul.mubr.msk.f32.vlgmr.msra.gmra.mxu0 %vm311_vm2, %v21454_v58 }
0x2168   :  { %10727 = vmatprep.mubr.f32.mxu1 %v23021_v60  ;;  %10798 = vmatprep.mubr.f32.mxu0 %v23021_v60 }
0x2169   :  { %10687 = vmatprep.subr.mxu1 %v10654_v14  ;;  %10758 = vmatprep.subr.mxu0 %v10656_v47  ;;  %v10638_v14 = vld [vmem:[#allocation4 + $0x948] sm:$0xff]  ;;  %v10635_v47 = vld [vmem:[#allocation4 + $0x930] sm:$0xff] }
0x216a   :  { %10688 = vmatpush1.msra.mxu1 %v10653_v15  ;;  %10759 = vmatpush1.msra.mxu0 %v10655_v41  ;;  %v10637_v15 = vld [vmem:[#allocation4 + $0x940] sm:$0xff]  ;;  %v10658_v41 = vld [vmem:[#allocation4 + $0x9e8] sm:$0xff] }
0x216b   :  { %10689 = vmatprep.subr.mxu1 %v10648_v31  ;;  %10760 = vmatprep.subr.mxu0 %v10650_v63  ;;  %v23164_v31 = vld [vmem:[#allocation24_spill] sm:$0xff] }
0x216c   :  { %10690 = vmatpush1.msra.mxu1 %v10647_v49  ;;  %10761 = vmatpush1.msra.mxu0 %v10649_v24 }
0x216d   :  { %10691 = vmatprep.subr.mxu1 %v10642_v55  ;;  %10762 = vmatprep.subr.mxu0 %v10644_v37  ;;  %v23165_v37 = vld [vmem:[#allocation38_spill] sm:$0xff] }
0x216e   :  { %10692 = vmatpush1.msra.mxu1 %v10641_v5  ;;  %10763 = vmatpush1.msra.mxu0 %v10643_v43 }
0x216f   :  { %10693 = vmatprep.subr.mxu1 %v10636_v4  ;;  %10764 = vmatprep.subr.mxu0 %v10638_v14 }
0x2170   :  { %10694 = vmatpush1.msra.mxu1 %v10635_v47  ;;  %10765 = vmatpush1.msra.mxu0 %v10637_v15 }
0x2171   :  { %10829 = vmatprep.subr.mxu1 %v10658_v41  ;;  %10906 = vmatprep.subr.mxu0 %v23164_v31 }
0x221e   :  { %v10465_v63 = vpop.f32.mrf.mxu0  ;;  %v10394_v24 = vpop.f32.mrf.mxu1 }
0x221f   :  { %v10395_v18 = vadd.f32 %v10394_v24, %v23165_v37  ;;  %v10466_v37 = vadd.f32 %v10465_v63, %v21000_v40  ;;  %v10645_v63 = vld [vmem:[#allocation4 + $0x980] sm:$0xff] }
0x2220   :  { %v18394_v49 = vpop.f32.mrf.mxu0  ;;  %v10396_v55 = vpop.f32.mrf.mxu1 }
0x2221   :  { %v10397_v14 = vadd.f32 %v10396_v55, %v20994_v10 }
0x2227   :  { %v10538_v5 = vpop.f32.mrf.mxu1  ;;  %v10609_v43 = vpop.f32.mrf.mxu0 }
0x2228   :  { %v10613_v36 = vadd.f32 %v10538_v5, %v10395_v18  ;;  %v10627_v27 = vadd.f32 %v21449_v28, %v10609_v43 }
0x2229   :  { %v18405_v53 = vpop.f32.mrf.mxu0  ;;  %v10540_v4 = vpop.f32.mrf.mxu1 }
0x222a   :  { %v17411_v61 = vmul.f32 -1.442695, %v10613_v36  ;;  %v10620_v47 = vadd.f32 %v10540_v4, %v10397_v14 }
0x222c   :  { %19030 = vpow2.f32 %v17411_v61  ;;  %v17412_v15 = vmul.f32 -1.442695, %v10620_v47 }
0x222e   :  { %19032 = vpow2.f32 %v17412_v15  ;;  %v10657_v15 = vld [vmem:[#allocation4 + $0x9e0] sm:$0xff] }
0x2239   :  { %v19031_v41 = vpop.eup %19030 }
0x223a   :  { %v10617_v31 = vadd.f32 1.0, %v19031_v41  ;;  %v10652_v41 = vld [vmem:[#allocation4 + $0x9b8] sm:$0xff] }
0x223b   :  { %v19033_v49 = vpop.eup %19032 }
0x223c   :  { %19034 = vrcp.f32 %v10617_v31  ;;  %v10624_v20 = vadd.f32 1.0, %v19033_v49 }
0x223e   :  { %19036 = vrcp.f32 %v10624_v20  ;;  %v10646_v20 = vld [vmem:[#allocation4 + $0x988] sm:$0xff] }
0x2249   :  { %v19035_v24 = vpop.eup %19034 }
0x224a   :  { %v10628_v18 = vmul.f32 %v19035_v24, %v10627_v27  ;;  %v10651_v27 = vld [vmem:[#allocation4 + $0x9b0] sm:$0xff] }
0x224b   :  { %v19037_v53 = vpop.eup %19036 }
0x224c   :  { %v10629_v36 = vadd.f32 %v10628_v18, %v10466_v37  ;;  %v10631_v55 = vsub.f32 1.0, %v19037_v53  ;;  %v10633_v4 = vmul.f32 %v19037_v53, %v21454_v58  ;;  %v10640_v58 = vld [vmem:[#allocation4 + $0x958] sm:$0xff]  ;;  %v10639_v37 = vld [vmem:[#allocation4 + $0x950] sm:$0xff] }
0x224e   :  { %19038 = vtanh.f32 %v10629_v36 }
0x225b   :  { %v19039_v61 = vpop.eup %19038 }
0x225c   :  { %v10632_v5 = vmul.f32 %v19039_v61, %v10631_v55  ;;  %v23168_v55 = vld [vmem:[#allocation25_spill] sm:$0xff] }
0x225d   :  { %v11387_v61 = vld [vmem:[#allocation4 + $0xa68] sm:$0xff] }
0x225e   :  { %v21580_v14 = vadd.f32 %v10633_v4, %v10632_v5  ;;  %v11384_v5 = vld [vmem:[#allocation4 + $0xa50] sm:$0xff]  ;;  %v11386_v4 = vld [vmem:[#allocation4 + $0xa60] sm:$0xff] }
0x2260   :  { %v10659_v47 = vmax.f32 %v21580_v14, 0.0 }
0x2262   :  { %17413 = vmatmul.mubr.msk.f32.vlgmr.msra.gmra.mxu1 %vm311_vm2, %v10659_v47  ;;  %17414 = vmatmul.mubr.msk.f32.vlgmr.msra.gmra.mxu0 %vm311_vm2, %v10659_v47 }
0x2263   :  { %10830 = vmatpush1.msra.mxu1 %v10657_v15  ;;  %10907 = vmatpush1.msra.mxu0 %v21254_v9  ;;  %v11381_v15 = vld [vmem:[#allocation4 + $0xa38] sm:$0xff] }
0x2264   :  { %10831 = vmatprep.subr.mxu1 %v10652_v41  ;;  %10908 = vmatprep.subr.mxu0 %v21257_v1  ;;  %v11378_v41 = vld [vmem:[#allocation4 + $0xa20] sm:$0xff] }
0x2265   :  { %10832 = vmatpush1.msra.mxu1 %v10651_v27  ;;  %10909 = vmatpush1.msra.mxu0 %v21260_v13  ;;  %v11380_v27 = vld [vmem:[#allocation4 + $0xa30] sm:$0xff] }
0x2266   :  { %10833 = vmatprep.subr.mxu1 %v10646_v20  ;;  %10910 = vmatprep.subr.mxu0 %v21263_v57  ;;  %v11373_v20 = vld [vmem:[#allocation4 + $0x9f8] sm:$0xff] }
0x2267   :  { %10834 = vmatpush1.msra.mxu1 %v10645_v63  ;;  %10911 = vmatpush1.msra.mxu0 %v21266_v21  ;;  %v11375_v63 = vld [vmem:[#allocation4 + $0xa08] sm:$0xff] }
0x2268   :  { %10835 = vmatprep.subr.mxu1 %v10640_v58  ;;  %10912 = vmatprep.subr.mxu0 %v21269_v8  ;;  %v11372_v58 = vld [vmem:[#allocation4 + $0x9f0] sm:$0xff] }
0x2269   :  { %10836 = vmatpush1.msra.mxu1 %v10639_v37  ;;  %10869 = vmatprep.mubr.f32.mxu1 %v23021_v60  ;;  %v11374_v37 = vld [vmem:[#allocation4 + $0xa00] sm:$0xff] }
0x226a   :  { %10913 = vmatpush1.msra.mxu0 %v21273_v45  ;;  %10946 = vmatprep.mubr.f32.mxu0 %v23021_v60 }
0x226b   :  { %17415 = vmatmul.mubr.msk.f32.vlgmr.msra.gmra.mxu1 %vm311_vm2, %v10659_v47  ;;  %17416 = vmatmul.mubr.msk.f32.vlgmr.msra.gmra.mxu0 %vm311_vm2, %v21545_v32  ;;  %v11379_v47 = vld [vmem:[#allocation4 + $0xa28] sm:$0xff] }
0x226c   :  { %18406 = vmatprep.subr.mxu1 %v23021_v60  ;;  %18414 = vmatprep.mubr.msk.f32.mxu1 %vm19513_vm0, %v23021_v60 }
0x226d   :  { %18407 = vmatpush3.msra.mxu1 %v21283_v46  ;;  %11089 = vmatprep.subr.mxu0 %v21286_v44 }
0x226e   :  { %18408 = vmatprep.subr.mxu1 %v23021_v60  ;;  %11090 = vmatpush1.msra.mxu0 %v21290_v23 }
0x226f   :  { %18409 = vmatpush3.msra.mxu1 %v21293_v52  ;;  %11091 = vmatprep.subr.mxu0 %v21296_v0 }
0x2270   :  { %18410 = vmatprep.subr.mxu1 %v23021_v60  ;;  %11092 = vmatpush1.msra.mxu0 %v21300_v29 }
0x2271   :  { %18411 = vmatpush3.msra.mxu1 %v21303_v7  ;;  %11093 = vmatprep.subr.mxu0 %v21306_v17 }
0x2272   :  { %18412 = vmatprep.subr.mxu1 %v23021_v60  ;;  %11094 = vmatpush1.msra.mxu0 %v21310_v62 }
0x2273   :  { %18413 = vmatpush3.msra.mxu1 %v21313_v38  ;;  %11095 = vmatprep.subr.mxu0 %v21316_v54 }
0x2274   :  { %18415 = vmatmul.mubr.msk.f32.vlgmr.msra.gmra.mxu1 %vm311_vm2, %v21545_v32  ;;  %18417 = vmatprep.subr.mxu1 %v23021_v60 }
0x2275   :  { %18418 = vmatpush3.msra.mxu1 %v21322_v12  ;;  %11096 = vmatpush1.msra.mxu0 %v21325_v33 }
0x2276   :  { %18419 = vmatprep.subr.mxu1 %v23021_v60  ;;  %11129 = vmatprep.mubr.f32.mxu0 %v23021_v60 }
0x2277   :  { %18420 = vmatpush3.msra.mxu1 %v21330_v19  ;;  %18425 = vmatprep.mubr.msk.f32.mxu1 %vm19513_vm0, %v23021_v60 }
0x2278   :  { %18421 = vmatprep.subr.mxu1 %v23021_v60  ;;  %11233 = vmatprep.subr.mxu0 %v21336_v26 }
0x2279   :  { %18422 = vmatpush3.msra.mxu1 %v21339_v59 }
0x227a   :  { %18423 = vmatprep.subr.mxu1 %v23021_v60 }
0x227b   :  { %18424 = vmatpush3.msra.mxu1 %v21343_v56 }
0x227c   :  { %18428 = vmatprep.subr.mxu1 %v23021_v60 }
0x2322   :  { %v10729_v9 = vpop.f32.mrf.mxu1  ;;  %v10800_v1 = vpop.f32.mrf.mxu0 }
0x2323   :  { %v21631_v13 = vadd.f32 %v10729_v9, %v21512_v34  ;;  %v21634_v57 = vadd.f32 %v10800_v1, %v21515_v51  ;;  %v23166_v51 = vld [vmem:[#allocation31_spill] sm:$0xff]  ;;  %v11395_v9 = vld [vmem:[#allocation4 + $0xaa8] sm:$0xff] }
0x2324   :  { %v10731_v21 = vpop.f32.mrf.mxu1  ;;  %v10802_v8 = vpop.f32.mrf.mxu0  ;;  %v21686_v1 = vld [vmem:[#allocation2 + $0x200] sm:$0xff] }
0x2325   :  { %v21637_v45 = vadd.f32 %v10731_v21, %v21519_v25  ;;  %v21640_v46 = vadd.f32 %v10802_v8, %v21522_v3 }
0x232b   :  { %v10871_v44 = vpop.f32.mrf.mxu1  ;;  %v10948_v23 = vpop.f32.mrf.mxu0 }
0x232c   :  { %v21643_v52 = vadd.f32 %v10871_v44, %v21530_v30  ;;  %11024 = vrot.lane.b32.xlu0 %v10948_v23, %s19516_s25 }
0x232d   :  { %v10873_v0 = vpop.f32.mrf.mxu1  ;;  %v10950_v3 = vpop.f32.mrf.mxu0 }
0x232e   :  { %v21647_v29 = vadd.f32 %v10873_v0, %v21534_v11  ;;  %v23171_v0 = vld [vmem:[#allocation38_spill] sm:$0xff] }
0x2334   :  { %v11019_v7 = vpop.f32.mrf.mxu1 }
0x2335   :  { %v11041_v17 = vadd.f32 %v21379_v22, %v11019_v7 }
0x2336   :  { %v18416_v62 = vpop.f32.mrf.mxu1 }
0x2337   :  { %11043 = vrot.lane.b32.xlu1 %v11041_v17, %s19516_s25 }
0x239e   :  { %v11025_v38 = vpop.permute.xlu0 %11024 }
0x239f   :  { %v11027_v54 = vadd.f32 %v11025_v38, %v21527_v50  ;;  %v11034_v50 = vadd.f32 %v10950_v3, %v23166_v51 }
0x23a1   :  { %v17418_v12 = vmul.f32 -1.442695, %v11027_v54  ;;  %v17419_v30 = vmul.f32 -1.442695, %v11034_v50 }
0x23a3   :  { %19040 = vpow2.f32 %v17418_v12 }
0x23a9   :  { %v11044_v59 = vpop.permute.xlu1 %11043 }
0x23b0   :  { %v19041_v33 = vpop.eup %19040 }
0x23b1   :  { %v11031_v19 = vadd.f32 1.0, %v19041_v33 }
0x23b3   :  { %19042 = vrcp.f32 %v11031_v19 }
0x23c0   :  { %v19043_v26 = vpop.eup %19042 }
0x23c1   :  { %v11046_v56 = vmul.f32 %v19043_v26, %v11044_v59 }
0x23c3   :  { %11048 = vrot.lane.b32.xlu0 %v11046_v56, %s19514_s0 }
0x2435   :  { %v11049_v34 = vpop.permute.xlu0 %11048 }
0x2436   :  { %v11051_v25 = vadd.f32 %v11049_v34, %v23166_v51 }
0x2438   :  { %19044 = vtanh.f32 %v11051_v25 }
0x2439   :  { %19046 = vpow2.f32 %v17419_v30 }
0x2445   :  { %v19045_v22 = vpop.eup %19044 }
0x2446   :  { %11055 = vrot.lane.b32.xlu1 %v19045_v22, %s19516_s25  ;;  %v19047_v11 = vpop.eup %19046 }
0x2447   :  { %v11038_v43 = vadd.f32 1.0, %v19047_v11 }
0x2449   :  { %19048 = vrcp.f32 %v11038_v43 }
0x2456   :  { %v19049_v31 = vpop.eup %19048 }
0x2457   :  { %v11053_v49 = vsub.f32 1.0, %v19049_v31  ;;  %v11060_v36 = vmul.f32 %v19049_v31, %v21545_v32  ;;  %v23167_v32 = vld [vmem:[#allocation9_spill] sm:$0xff] }
0x24b8   :  { %v11056_v24 = vpop.permute.xlu1 %11055 }
0x24b9   :  { %v11058_v18 = vmul.f32 %v11056_v24, %v11053_v49 }
0x24bb   :  { %v21657_v53 = vadd.f32 %v11060_v36, %v11058_v18 }
0x24bd   :  { %17420 = vmatmul.mubr.msk.f32.vlgmr.msra.gmra.mxu0 %vm311_vm2, %v21657_v53  ;;  %18426 = vmatmul.mubr.msk.f32.vlgmr.msra.gmra.mxu1 %vm311_vm2, %v21657_v53 }
0x24be   :  { %11234 = vmatpush1.msra.mxu0 %v21401_v35  ;;  %18429 = vmatpush3.msra.mxu1 %v21404_v39  ;;  %v23169_v35 = vld [vmem:[#allocation34_spill] sm:$0xff]  ;;  %v23170_v39 = vld [vmem:[#allocation36_spill] sm:$0xff] }
0x24bf   :  { %11235 = vmatprep.subr.mxu0 %v21407_v2  ;;  %18430 = vmatprep.subr.mxu1 %v23021_v60  ;;  %v11391_v2 = vld [vmem:[#allocation4 + $0xa88] sm:$0xff] }
0x24c0   :  { %11236 = vmatpush1.msra.mxu0 %v21411_v48  ;;  %18431 = vmatpush3.msra.mxu1 %v21414_v6  ;;  %v11393_v48 = vld [vmem:[#allocation4 + $0xa98] sm:$0xff]  ;;  %v11390_v6 = vld [vmem:[#allocation4 + $0xa80] sm:$0xff] }
0x24c1   :  { %11237 = vmatprep.subr.mxu0 %v21417_v42  ;;  %18432 = vmatprep.subr.mxu1 %v23021_v60  ;;  %v11392_v42 = vld [vmem:[#allocation4 + $0xa90] sm:$0xff] }
0x24c2   :  { %11238 = vmatpush1.msra.mxu0 %v21421_v16  ;;  %18433 = vmatpush3.msra.mxu1 %v23167_v32  ;;  %v11385_v16 = vld [vmem:[#allocation4 + $0xa58] sm:$0xff] }
0x24c3   :  { %11239 = vmatprep.subr.mxu0 %v23168_v55  ;;  %18434 = vmatprep.subr.mxu1 %v23021_v60 }
0x24c4   :  { %11240 = vmatpush1.msra.mxu0 %v23169_v35  ;;  %11273 = vmatprep.mubr.f32.mxu0 %v23021_v60  ;;  %v11394_v35 = vld [vmem:[#allocation4 + $0xaa0] sm:$0xff] }
0x24c5   :  { %18435 = vmatpush3.msra.mxu1 %v23170_v39  ;;  %18436 = vmatprep.mubr.msk.f32.mxu1 %vm19513_vm0, %v23021_v60  ;;  %v11389_v39 = vld [vmem:[#allocation4 + $0xa78] sm:$0xff] }
0x24c6   :  { %17422 = vmatmul.mubr.msk.f32.vlgmr.msra.gmra.mxu0 %vm311_vm2, %v21580_v14  ;;  %18437 = vmatmul.mubr.msk.f32.vlgmr.msra.gmra.mxu1 %vm311_vm2, %v21580_v14 }
0x24c7   :  { %11464 = vmatprep.mubr.f32.mxu0 %v23021_v60  ;;  %11535 = vmatprep.mubr.f32.mxu1 %v23021_v60 }
0x24c8   :  { %11424 = vmatprep.subr.mxu0 %v11391_v2  ;;  %11495 = vmatprep.subr.mxu1 %v11393_v48  ;;  %v21699_v2 = vld [vmem:[#allocation2 + $0x1f8] sm:$0xff]  ;;  %v11383_v48 = vld [vmem:[#allocation4 + $0xa48] sm:$0xff] }
0x24c9   :  { %11425 = vmatpush1.msra.mxu0 %v11390_v6  ;;  %11496 = vmatpush1.msra.mxu1 %v11392_v42  ;;  %v21702_v6 = vld [vmem:[#allocation2 + $0x1e8] sm:$0xff]  ;;  %v21705_v42 = vld [vmem:[#allocation2 + $0x1e0] sm:$0xff] }
0x24ca   :  { %11426 = vmatprep.subr.mxu0 %v11385_v16  ;;  %11497 = vmatprep.subr.mxu1 %v11387_v61  ;;  %v11377_v16 = vld [vmem:[#allocation4 + $0xa18] sm:$0xff] }
0x24cb   :  { %11427 = vmatpush1.msra.mxu0 %v11384_v5  ;;  %11498 = vmatpush1.msra.mxu1 %v11386_v4  ;;  %v21708_v61 = vld [vmem:[#allocation2 + $0x1d0] sm:$0xff]  ;;  %v11376_v5 = vld [vmem:[#allocation4 + $0xa10] sm:$0xff] }
0x24cc   :  { %11428 = vmatprep.subr.mxu0 %v11379_v47  ;;  %11499 = vmatprep.subr.mxu1 %v11381_v15  ;;  %v21711_v4 = vld [vmem:[#allocation2 + $0x1c8] sm:$0xff]  ;;  %v21714_v47 = vld [vmem:[#allocation2 + $0x1b8] sm:$0xff]  ;;  %v21718_v15 = vld [vmem:[#allocation2 + $0x1b0] sm:$0xff] }
0x24cd   :  { %11429 = vmatpush1.msra.mxu0 %v11378_v41  ;;  %11500 = vmatpush1.msra.mxu1 %v11380_v27  ;;  %v21728_v41 = vld [vmem:[#allocation2 + $0x208] sm:$0xff]  ;;  %v21731_v27 = vld [vmem:[#allocation2 + $0x278] sm:$0xff] }
0x24ce   :  { %11430 = vmatprep.subr.mxu0 %v11373_v20  ;;  %11501 = vmatprep.subr.mxu1 %v11375_v63  ;;  %v21735_v20 = vld [vmem:[#allocation2 + $0x270] sm:$0xff] }
0x24cf   :  { %11431 = vmatpush1.msra.mxu0 %v11372_v58  ;;  %11502 = vmatpush1.msra.mxu1 %v11374_v37  ;;  %v21738_v63 = vld [vmem:[#allocation2 + $0x1f0] sm:$0xff]  ;;  %v21741_v58 = vld [vmem:[#allocation2 + $0x260] sm:$0xff]  ;;  %v21745_v37 = vld [vmem:[#allocation2 + $0x258] sm:$0xff] }
0x24d0   :  { %11566 = vmatprep.subr.mxu0 %v11395_v9  ;;  %11643 = vmatprep.subr.mxu1 %v21686_v1  ;;  %v21748_v9 = vld [vmem:[#allocation2 + $0x1d8] sm:$0xff] }
0x257d   :  { %v11202_v21 = vpop.f32.mrf.mxu1  ;;  %v11131_v44 = vpop.f32.mrf.mxu0 }
0x257e   :  { %v11132_v7 = vadd.f32 %v11131_v44, %v23171_v0  ;;  %v11203_v30 = vadd.f32 %v11202_v21, %v21000_v40  ;;  %v21751_v21 = vld [vmem:[#allocation2 + $0x248] sm:$0xff]  ;;  %v21758_v44 = vld [vmem:[#allocation2 + $0x1c0] sm:$0xff] }
0x257f   :  { %v18427_v8 = vpop.f32.mrf.mxu1  ;;  %v11133_v23 = vpop.f32.mrf.mxu0 }
0x2580   :  { %v11134_v19 = vadd.f32 %v11133_v23, %v20994_v10  ;;  %v21755_v8 = vld [vmem:[#allocation2 + $0x240] sm:$0xff]  ;;  %v21761_v23 = vld [vmem:[#allocation2 + $0x230] sm:$0xff] }
0x2586   :  { %v11275_v17 = vpop.f32.mrf.mxu0  ;;  %v11346_v62 = vpop.f32.mrf.mxu1 }
0x2587   :  { %v11350_v38 = vadd.f32 %v11275_v17, %v11132_v7  ;;  %v11364_v3 = vadd.f32 %v21449_v28, %v11346_v62  ;;  %v11388_v28 = vld [vmem:[#allocation4 + $0xa70] sm:$0xff]  ;;  %v21767_v7 = vld [vmem:[#allocation2 + $0x280] sm:$0xff] }
0x2588   :  { %v18438_v54 = vpop.f32.mrf.mxu1  ;;  %v11277_v33 = vpop.f32.mrf.mxu0  ;;  %v21770_v17 = vld [vmem:[#allocation2 + $0x228] sm:$0xff] }
0x2589   :  { %v17424_v12 = vmul.f32 -1.442695, %v11350_v38  ;;  %v11357_v26 = vadd.f32 %v11277_v33, %v11134_v19  ;;  %v21775_v62 = vld [vmem:[#allocation2 + $0x268] sm:$0xff]  ;;  %v21781_v38 = vld [vmem:[#allocation2 + $0x2d8] sm:$0xff]  ;;  %v21784_v54 = vld [vmem:[#allocation2 + $0x250] sm:$0xff] }
0x258b   :  { %19050 = vpow2.f32 %v17424_v12  ;;  %v17425_v59 = vmul.f32 -1.442695, %v11357_v26  ;;  %v21788_v12 = vld [vmem:[#allocation2 + $0x238] sm:$0xff] }
0x258d   :  { %19052 = vpow2.f32 %v17425_v59 }
0x2598   :  { %v19051_v56 = vpop.eup %19050 }
0x2599   :  { %v11354_v34 = vadd.f32 1.0, %v19051_v56 }
0x259a   :  { %v19053_v25 = vpop.eup %19052 }
0x259b   :  { %19054 = vrcp.f32 %v11354_v34  ;;  %v11361_v22 = vadd.f32 1.0, %v19053_v25 }
0x259d   :  { %19056 = vrcp.f32 %v11361_v22 }
0x25a8   :  { %v19055_v50 = vpop.eup %19054 }
0x25a9   :  { %v11365_v11 = vmul.f32 %v19055_v50, %v11364_v3 }
0x25aa   :  { %v19057_v31 = vpop.eup %19056 }
0x25ab   :  { %v11366_v43 = vadd.f32 %v11365_v11, %v11203_v30  ;;  %v11368_v49 = vsub.f32 1.0, %v19057_v31  ;;  %v11370_v36 = vmul.f32 %v19057_v31, %v21580_v14  ;;  %v11382_v14 = vld [vmem:[#allocation4 + $0xa40] sm:$0xff] }
0x25ad   :  { %19058 = vtanh.f32 %v11366_v43  ;;  %v21811_v43 = vld [vmem:[#allocation2 + $0x210] ss:$0 sm:$0xff] }
0x25ba   :  { %v19059_v24 = vpop.eup %19058 }
0x25bb   :  { %v11369_v18 = vmul.f32 %v19059_v24, %v11368_v49 }
0x25bd   :  { %v21694_v32 = vadd.f32 %v11370_v36, %v11369_v18 }
0x25bf   :  { %v11396_v55 = vmax.f32 %v21694_v32, 0.0 }
0x25c1   :  { %17426 = vmatmul.mubr.msk.f32.vlgmr.msra.gmra.mxu0 %vm311_vm2, %v11396_v55  ;;  %17427 = vmatmul.mubr.msk.f32.vlgmr.msra.gmra.mxu1 %vm311_vm2, %v11396_v55 }
0x25c2   :  { %11567 = vmatpush1.msra.mxu0 %v11394_v35  ;;  %11644 = vmatpush1.msra.mxu1 %v21699_v2 }
0x25c3   :  { %11568 = vmatprep.subr.mxu0 %v11389_v39  ;;  %11645 = vmatprep.subr.mxu1 %v21702_v6  ;;  %v23172_v39 = vld [vmem:[#allocation11_spill] sm:$0xff] }
0x25c4   :  { %11569 = vmatpush1.msra.mxu0 %v11388_v28  ;;  %11646 = vmatpush1.msra.mxu1 %v21705_v42  ;;  %v23173_v28 = vsub.s32 5, %v23172_v39 }
0x25c5   :  { %11570 = vmatprep.subr.mxu0 %v11383_v48  ;;  %11647 = vmatprep.subr.mxu1 %v21708_v61  ;;  %v23174_v48 = vld [vmem:[#allocation17_spill] sm:$0xff] }
0x25c6   :  { %11571 = vmatpush1.msra.mxu0 %v11382_v14  ;;  %11648 = vmatpush1.msra.mxu1 %v21711_v4  ;;  %v158_v14 = vrot.slane %v23174_v48, %v23173_v28 }
0x25c7   :  { %11572 = vmatprep.subr.mxu0 %v11377_v16  ;;  %11649 = vmatprep.subr.mxu1 %v21714_v47  ;;  %v23175_v16 = vld [vmem:[#allocation26_spill] sm:$0xff] }
0x25c8   :  { %11573 = vmatpush1.msra.mxu0 %v11376_v5  ;;  %11606 = vmatprep.mubr.f32.mxu0 %v23021_v60  ;;  %v1034_v5 = vadd.f32 %v23175_v16, %v158_v14 }
0x25c9   :  { %11650 = vmatpush1.msra.mxu1 %v21718_v15  ;;  %11683 = vmatprep.mubr.f32.mxu1 %v23021_v60 }
0x25ca   :  { %17428 = vmatmul.mubr.msk.f32.vlgmr.msra.gmra.mxu0 %vm311_vm2, %v11396_v55  ;;  %17429 = vmatmul.mubr.msk.f32.vlgmr.msra.gmra.mxu1 %vm311_vm2, %v21657_v53 }
0x25cb   :  { %18439 = vmatprep.subr.mxu0 %v23021_v60  ;;  %18447 = vmatprep.mubr.msk.f32.mxu0 %vm19513_vm0, %v23021_v60 }
0x25cc   :  { %18440 = vmatpush3.msra.mxu0 %v21728_v41  ;;  %11834 = vmatprep.subr.mxu1 %v21731_v27 }
0x25cd   :  { %18441 = vmatprep.subr.mxu0 %v23021_v60  ;;  %11835 = vmatpush1.msra.mxu1 %v21735_v20 }
0x25ce   :  { %18442 = vmatpush3.msra.mxu0 %v21738_v63  ;;  %11836 = vmatprep.subr.mxu1 %v21741_v58 }
0x25cf   :  { %18443 = vmatprep.subr.mxu0 %v23021_v60  ;;  %11837 = vmatpush1.msra.mxu1 %v21745_v37 }
0x25d0   :  { %18444 = vmatpush3.msra.mxu0 %v21748_v9  ;;  %11838 = vmatprep.subr.mxu1 %v21751_v21 }
0x25d1   :  { %18445 = vmatprep.subr.mxu0 %v23021_v60  ;;  %11839 = vmatpush1.msra.mxu1 %v21755_v8 }
0x25d2   :  { %18446 = vmatpush3.msra.mxu0 %v21758_v44  ;;  %11840 = vmatprep.subr.mxu1 %v21761_v23 }
0x25d3   :  { %18448 = vmatmul.mubr.msk.f32.vlgmr.msra.gmra.mxu0 %vm311_vm2, %v21657_v53  ;;  %18450 = vmatprep.subr.mxu0 %v23021_v60 }
0x25d4   :  { %18451 = vmatpush3.msra.mxu0 %v21767_v7  ;;  %11841 = vmatpush1.msra.mxu1 %v21770_v17 }
0x25d5   :  { %18452 = vmatprep.subr.mxu0 %v23021_v60  ;;  %11874 = vmatprep.mubr.f32.mxu1 %v23021_v60 }
0x25d6   :  { %18453 = vmatpush3.msra.mxu0 %v21775_v62  ;;  %18458 = vmatprep.mubr.msk.f32.mxu0 %vm19513_vm0, %v23021_v60 }
0x25d7   :  { %18454 = vmatprep.subr.mxu0 %v23021_v60  ;;  %11978 = vmatprep.subr.mxu1 %v21781_v38 }
0x25d8   :  { %18455 = vmatpush3.msra.mxu0 %v21784_v54 }
0x25d9   :  { %18456 = vmatprep.subr.mxu0 %v23021_v60 }
0x25da   :  { %18457 = vmatpush3.msra.mxu0 %v21788_v12 }
0x25db   :  { %18461 = vmatprep.subr.mxu0 %v23021_v60 }
0x2681   :  { %v11466_v33 = vpop.f32.mrf.mxu0  ;;  %v11537_v19 = vpop.f32.mrf.mxu1 }
0x2682   :  { %v21793_v26 = vadd.f32 %v11466_v33, %v21631_v13  ;;  %v21796_v59 = vadd.f32 %v11537_v19, %v21634_v57  ;;  %v23177_v19 = vld [vmem:[#allocation16_spill] sm:$0xff] }
0x2683   :  { %v11468_v56 = vpop.f32.mrf.mxu0  ;;  %v11539_v34 = vpop.f32.mrf.mxu1 }
0x2684   :  { %v21799_v25 = vadd.f32 %v11468_v56, %v21637_v45  ;;  %v21802_v22 = vadd.f32 %v11539_v34, %v21640_v46  ;;  %v23178_v34 = vld [vmem:[#allocation35_spill] sm:$0xff] }
0x268a   :  { %v11608_v3 = vpop.f32.mrf.mxu0  ;;  %v11685_v50 = vpop.f32.mrf.mxu1 }
0x268b   :  { %v21805_v30 = vadd.f32 %v11608_v3, %v21643_v52  ;;  %11761 = vrot.lane.b32.xlu0 %v11685_v50, %s19514_s0  ;;  %v23179_v50 = vld [vmem:[#allocation13_spill] sm:$0xff] }
0x268c   :  { %v11610_v13 = vpop.f32.mrf.mxu0  ;;  %v11687_v46 = vpop.f32.mrf.mxu1 }
0x268d   :  { %v21809_v11 = vadd.f32 %v11610_v13, %v21647_v29 }
0x2693   :  { %v11756_v57 = vpop.f32.mrf.mxu0 }
0x2694   :  { %v11782_v45 = vadd.f32 %v21811_v43, %v11756_v57  ;;  %v23180_v57 = vld [vmem:[#allocation27_spill] sm:$0xff] }
0x2695   :  { %v18449_v31 = vpop.f32.mrf.mxu0 }
0x2696   :  { %11784 = vrot.lane.b32.xlu1 %v11782_v45, %s19514_s0  ;;  %v23181_v31 = vld [vmem:[#allocation41_spill] sm:$0xff] }
0x269a   :  { %11772 = vrot.lane.b32.xlu1 %v11687_v46, %s19516_s25 }
0x269e   :  { %11800 = vrot.lane.b32.xlu1 %v21657_v53, %s19516_s25  ;;  %v23176_v53 = vld [vmem:[#allocation10_spill] sm:$0xff] }
0x269f   :  { %v1899_v33 = vadd.f32 %v23176_v53, %v1034_v5 }
0x26a1   :  { %v2764_v56 = vadd.f32 %v23177_v19, %v1899_v33 }
0x26a3   :  { %v3629_v3 = vadd.f32 %v23178_v34, %v2764_v56  ;;  %v21849_v34 = vld [vmem:[#allocation2 + $0x2e0] sm:$0xff] }
0x26a5   :  { %v4494_v13 = vadd.f32 %v23179_v50, %v3629_v3  ;;  %v21852_v3 = vld [vmem:[#allocation2 + $0x2c0] sm:$0xff]  ;;  %v21856_v50 = vld [vmem:[#allocation2 + $0x2b8] sm:$0xff] }
0x26a7   :  { %v5359_v45 = vadd.f32 %v23180_v57, %v4494_v13  ;;  %v21859_v13 = vld [vmem:[#allocation2 + $0x2c8] sm:$0xff] }
0x26a8   :  { %v21862_v57 = vld [vmem:[#allocation2 + $0x2a8] sm:$0xff] }
0x26a9   :  { %v6224_v46 = vadd.f32 %v23181_v31, %v5359_v45  ;;  %v21866_v45 = vld [vmem:[#allocation2 + $0x2a0] sm:$0xff]  ;;  %v21869_v31 = vld [vmem:[#allocation2 + $0x2b0] sm:$0xff] }
0x26aa   :  { %23183 = vst [vmem:[#allocation19_spill] sm:$0xff] %v21869_v31 }
0x26fd   :  { %v11762_v52 = vpop.permute.xlu0 %11761 }
0x26fe   :  { %v11764_v49 = vadd.f32 %v11762_v52, %v23166_v51  ;;  %v23182_v52 = vld [vmem:[#allocation32_spill] sm:$0xff] }
0x2700   :  { %v17431_v24 = vmul.f32 -1.442695, %v11764_v49  ;;  %v21831_v49 = vadd.f32 %v23182_v52, %v6224_v46  ;;  %v21872_v46 = vld [vmem:[#allocation2 + $0x290] sm:$0xff]  ;;  %v21876_v52 = vld [vmem:[#allocation2 + $0x288] sm:$0xff] }
0x2701   :  { %23184 = vst [vmem:[#allocation28_spill] sm:$0xff] %v21872_v46  ;;  %23185 = vst [vmem:[#allocation39_spill] sm:$0xff] %v21876_v52 }
0x2702   :  { %19060 = vpow2.f32 %v17431_v24 }
0x2708   :  { %v11785_v55 = vpop.permute.xlu1 %11784 }
0x270f   :  { %v19061_v29 = vpop.eup %19060 }
0x2710   :  { %v11768_v18 = vadd.f32 1.0, %v19061_v29 }
0x2712   :  { %19062 = vrcp.f32 %v11768_v18 }
0x271f   :  { %v19063_v36 = vpop.eup %19062 }
0x2720   :  { %v11787_v35 = vmul.f32 %v19063_v36, %v11785_v55  ;;  %v11773_v36 = vpop.permute.xlu1 %11772 }
0x2721   :  { %v11775_v55 = vadd.f32 %v11773_v36, %v23166_v51  ;;  %v21846_v51 = vld [vmem:[#allocation2 + $0x2d0] sm:$0xff]  ;;  %v12135_v36 = vld [vmem:[#allocation4 + $0xb40] sm:$0xff] }
0x2722   :  { %11789 = vrot.lane.b32.xlu0 %v11787_v35, %s19514_s0 }
0x2723   :  { %v17432_v35 = vmul.f32 -1.442695, %v11775_v55  ;;  %v12137_v55 = vld [vmem:[#allocation4 + $0xb50] sm:$0xff] }
0x2724   :  { %v11801_v16 = vpop.permute.xlu1 %11800 }
0x2794   :  { %v11790_v24 = vpop.permute.xlu0 %11789 }
0x2795   :  { %v11792_v29 = vadd.f32 %v11790_v24, %v21831_v49  ;;  %v21880_v24 = vld [vmem:[#allocation2 + $0x298] sm:$0xff] }
0x2796   :  { %23186 = vst [vmem:[#allocation43_spill] sm:$0xff] %v21880_v24 }
0x2797   :  { %19064 = vtanh.f32 %v11792_v29  ;;  %v12136_v29 = vld [vmem:[#allocation4 + $0xb48] sm:$0xff] }
0x2798   :  { %19066 = vpow2.f32 %v17432_v35  ;;  %v12130_v35 = vld [vmem:[#allocation4 + $0xb18] sm:$0xff] }
0x27a4   :  { %v19065_v18 = vpop.eup %19064 }
0x27a5   :  { %11796 = vrot.lane.b32.xlu0 %v19065_v18, %s19516_s25  ;;  %v19067_v39 = vpop.eup %19066  ;;  %v12138_v18 = vld [vmem:[#allocation4 + $0xb58] sm:$0xff] }
0x27a6   :  { %v11779_v28 = vadd.f32 1.0, %v19067_v39  ;;  %v12132_v39 = vld [vmem:[#allocation4 + $0xb28] sm:$0xff] }
0x27a8   :  { %19068 = vrcp.f32 %v11779_v28  ;;  %v12129_v28 = vld [vmem:[#allocation4 + $0xb10] sm:$0xff] }
0x27b5   :  { %v19069_v48 = vpop.eup %19068 }
0x27b6   :  { %v11794_v14 = vsub.f32 1.0, %v19069_v48  ;;  %v11803_v53 = vmul.f32 %v19069_v48, %v11801_v16  ;;  %v12131_v48 = vld [vmem:[#allocation4 + $0xb20] sm:$0xff]  ;;  %v12126_v16 = vld [vmem:[#allocation4 + $0xaf8] sm:$0xff] }
0x2817   :  { %v11797_v5 = vpop.permute.xlu0 %11796 }
0x2818   :  { %v11799_v33 = vmul.f32 %v11797_v5, %v11794_v14  ;;  %v12124_v14 = vld [vmem:[#allocation4 + $0xae8] sm:$0xff]  ;;  %v12123_v5 = vld [vmem:[#allocation4 + $0xae0] sm:$0xff] }
0x281a   :  { %v21836_v19 = vadd.f32 %v11803_v53, %v11799_v33  ;;  %v12125_v53 = vld [vmem:[#allocation4 + $0xaf0] sm:$0xff]  ;;  %v12118_v33 = vld [vmem:[#allocation4 + $0xab8] sm:$0xff] }
0x281c   :  { %11806 = vrot.lane.b32.xlu0 %v21836_v19, %s19515_s24 }
0x288e   :  { %v21840_v56 = vpop.permute.xlu0 %11806 }
0x288f   :  { %17433 = vmatmul.mubr.msk.f32.vlgmr.msra.gmra.mxu1 %vm311_vm2, %v21840_v56  ;;  %18459 = vmatmul.mubr.msk.f32.vlgmr.msra.gmra.mxu0 %vm311_vm2, %v21840_v56 }
0x2890   :  { %11979 = vmatpush1.msra.mxu1 %v21846_v51  ;;  %18462 = vmatpush3.msra.mxu0 %v21849_v34 }
0x2891   :  { %11980 = vmatprep.subr.mxu1 %v21852_v3  ;;  %18463 = vmatprep.subr.mxu0 %v23021_v60 }
0x2892   :  { %11981 = vmatpush1.msra.mxu1 %v21856_v50  ;;  %18464 = vmatpush3.msra.mxu0 %v21859_v13 }
0x2893   :  { %11982 = vmatprep.subr.mxu1 %v21862_v57  ;;  %18465 = vmatprep.subr.mxu0 %v23021_v60 }
0x2894   :  { %11983 = vmatpush1.msra.mxu1 %v21866_v45  ;;  %18466 = vmatpush3.msra.mxu0 %v21869_v31  ;;  %v21894_v31 = vld [vmem:[#allocation2 + $0x300] ss:$0 sm:$0xff] }
0x2895   :  { %11984 = vmatprep.subr.mxu1 %v21872_v46  ;;  %18467 = vmatprep.subr.mxu0 %v23021_v60 }
0x2896   :  { %11985 = vmatpush1.msra.mxu1 %v21876_v52  ;;  %12018 = vmatprep.mubr.f32.mxu1 %v23021_v60 }
0x2897   :  { %18468 = vmatpush3.msra.mxu0 %v21880_v24  ;;  %18469 = vmatprep.mubr.msk.f32.mxu0 %vm19513_vm0, %v23021_v60 }
0x2898   :  { %17435 = vmatmul.mubr.msk.f32.vlgmr.msra.gmra.mxu1 %vm311_vm2, %v21694_v32  ;;  %18470 = vmatmul.mubr.msk.f32.vlgmr.msra.gmra.mxu0 %vm311_vm2, %v21694_v32 }
0x2899   :  { %12209 = vmatprep.mubr.f32.mxu1 %v23021_v60  ;;  %12280 = vmatprep.mubr.f32.mxu0 %v23021_v60 }
0x289a   :  { %12169 = vmatprep.subr.mxu1 %v12136_v29  ;;  %12240 = vmatprep.subr.mxu0 %v12138_v18  ;;  %v12120_v29 = vld [vmem:[#allocation4 + $0xac8] sm:$0xff]  ;;  %v12117_v18 = vld [vmem:[#allocation4 + $0xab0] sm:$0xff] }
0x289b   :  { %12170 = vmatpush1.msra.mxu1 %v12135_v36  ;;  %12241 = vmatpush1.msra.mxu0 %v12137_v55  ;;  %v12119_v36 = vld [vmem:[#allocation4 + $0xac0] sm:$0xff]  ;;  %v12140_v55 = vld [vmem:[#allocation4 + $0xb68] sm:$0xff] }
0x289c   :  { %12171 = vmatprep.subr.mxu1 %v12130_v35  ;;  %12242 = vmatprep.subr.mxu0 %v12132_v39 }
0x289d   :  { %12172 = vmatpush1.msra.mxu1 %v12129_v28  ;;  %12243 = vmatpush1.msra.mxu0 %v12131_v48 }
0x289e   :  { %12173 = vmatprep.subr.mxu1 %v12124_v14  ;;  %12244 = vmatprep.subr.mxu0 %v12126_v16 }
0x289f   :  { %12174 = vmatpush1.msra.mxu1 %v12123_v5  ;;  %12245 = vmatpush1.msra.mxu0 %v12125_v53 }
0x28a0   :  { %12175 = vmatprep.subr.mxu1 %v12118_v33  ;;  %12246 = vmatprep.subr.mxu0 %v12120_v29 }
0x28a1   :  { %12176 = vmatpush1.msra.mxu1 %v12117_v18  ;;  %12247 = vmatpush1.msra.mxu0 %v12119_v36 }
0x28a2   :  { %12311 = vmatprep.subr.mxu1 %v12140_v55  ;;  %12388 = vmatprep.subr.mxu0 %v21686_v1 }
0x294f   :  { %v11947_v35 = vpop.f32.mrf.mxu0  ;;  %v11876_v28 = vpop.f32.mrf.mxu1 }
0x2950   :  { %v11877_v14 = vadd.f32 %v11876_v28, %v23171_v0 }
0x2951   :  { %v18460_v39 = vpop.f32.mrf.mxu0  ;;  %v11878_v48 = vpop.f32.mrf.mxu1 }
0x2952   :  { %v11879_v29 = vadd.f32 %v11878_v48, %v20994_v10 }
0x2958   :  { %v12020_v16 = vpop.f32.mrf.mxu1  ;;  %v12091_v5 = vpop.f32.mrf.mxu0 }
0x2959   :  { %v12095_v53 = vadd.f32 %v12020_v16, %v11877_v14  ;;  %v12109_v28 = vadd.f32 %v21894_v31, %v12091_v5  ;;  %v12121_v5 = vld [vmem:[#allocation4 + $0xad0] sm:$0xff] }
0x295a   :  { %v18471_v24 = vpop.f32.mrf.mxu0  ;;  %v12022_v33 = vpop.f32.mrf.mxu1 }
0x295b   :  { %v17437_v52 = vmul.f32 -1.442695, %v12095_v53  ;;  %v12102_v18 = vadd.f32 %v12022_v33, %v11879_v29  ;;  %v11948_v24 = vadd.f32 %v11947_v35, %v21000_v40  ;;  %v12127_v35 = vld [vmem:[#allocation4 + $0xb00] sm:$0xff] }
0x295d   :  { %19070 = vpow2.f32 %v17437_v52  ;;  %v17438_v36 = vmul.f32 -1.442695, %v12102_v18 }
0x295f   :  { %19072 = vpow2.f32 %v17438_v36 }
0x296a   :  { %v19071_v55 = vpop.eup %19070 }
0x296b   :  { %v12099_v1 = vadd.f32 1.0, %v19071_v55  ;;  %v12139_v55 = vld [vmem:[#allocation4 + $0xb60] sm:$0xff] }
0x296c   :  { %v19073_v39 = vpop.eup %19072 }
0x296d   :  { %19074 = vrcp.f32 %v12099_v1  ;;  %v12106_v46 = vadd.f32 1.0, %v19073_v39  ;;  %v12134_v1 = vld [vmem:[#allocation4 + $0xb38] sm:$0xff] }
0x296f   :  { %19076 = vrcp.f32 %v12106_v46  ;;  %v12128_v46 = vld [vmem:[#allocation4 + $0xb08] sm:$0xff] }
0x297a   :  { %v19075_v0 = vpop.eup %19074 }
0x297b   :  { %v12110_v14 = vmul.f32 %v19075_v0, %v12109_v28  ;;  %v12133_v0 = vld [vmem:[#allocation4 + $0xb30] sm:$0xff] }
0x297c   :  { %v19077_v52 = vpop.eup %19076 }
0x297d   :  { %v12111_v16 = vadd.f32 %v12110_v14, %v11948_v24  ;;  %v12113_v48 = vsub.f32 1.0, %v19077_v52  ;;  %v12115_v29 = vmul.f32 %v19077_v52, %v21694_v32  ;;  %v12122_v32 = vld [vmem:[#allocation4 + $0xad8] sm:$0xff] }
0x297f   :  { %19078 = vtanh.f32 %v12111_v16 }
0x298c   :  { %v19079_v53 = vpop.eup %19078 }
0x298d   :  { %v12114_v33 = vmul.f32 %v19079_v53, %v12113_v48 }
0x298f   :  { %v21899_v18 = vadd.f32 %v12115_v29, %v12114_v33  ;;  %v23188_v33 = vld [vmem:[#allocation28_spill] sm:$0xff]  ;;  %v12877_v29 = vld [vmem:[#allocation4 + $0xbe8] sm:$0xff] }
0x2991   :  { %v12141_v36 = vmax.f32 %v21899_v18, 0.0 }
0x2993   :  { %17439 = vmatmul.mubr.msk.f32.vlgmr.msra.gmra.mxu1 %vm311_vm2, %v12141_v36  ;;  %17440 = vmatmul.mubr.msk.f32.vlgmr.msra.gmra.mxu0 %vm311_vm2, %v12141_v36 }
0x2994   :  { %12312 = vmatpush1.msra.mxu1 %v12139_v55  ;;  %12389 = vmatpush1.msra.mxu0 %v21699_v2  ;;  %v12876_v55 = vld [vmem:[#allocation4 + $0xbe0] sm:$0xff] }
0x2995   :  { %12313 = vmatprep.subr.mxu1 %v12134_v1  ;;  %12390 = vmatprep.subr.mxu0 %v21702_v6  ;;  %v12869_v1 = vld [vmem:[#allocation4 + $0xba8] sm:$0xff] }
0x2996   :  { %12314 = vmatpush1.msra.mxu1 %v12133_v0  ;;  %12391 = vmatpush1.msra.mxu0 %v21705_v42  ;;  %v12871_v0 = vld [vmem:[#allocation4 + $0xbb8] sm:$0xff] }
0x2997   :  { %12315 = vmatprep.subr.mxu1 %v12128_v46  ;;  %12392 = vmatprep.subr.mxu0 %v21708_v61  ;;  %v12868_v46 = vld [vmem:[#allocation4 + $0xba0] sm:$0xff] }
0x2998   :  { %12316 = vmatpush1.msra.mxu1 %v12127_v35  ;;  %12393 = vmatpush1.msra.mxu0 %v21711_v4  ;;  %v12870_v35 = vld [vmem:[#allocation4 + $0xbb0] sm:$0xff] }
0x2999   :  { %12317 = vmatprep.subr.mxu1 %v12122_v32  ;;  %12394 = vmatprep.subr.mxu0 %v21714_v47  ;;  %v12863_v32 = vld [vmem:[#allocation4 + $0xb78] sm:$0xff] }
0x299a   :  { %12318 = vmatpush1.msra.mxu1 %v12121_v5  ;;  %12351 = vmatprep.mubr.f32.mxu1 %v23021_v60  ;;  %v12865_v5 = vld [vmem:[#allocation4 + $0xb88] sm:$0xff] }
0x299b   :  { %12395 = vmatpush1.msra.mxu0 %v21718_v15  ;;  %12428 = vmatprep.mubr.f32.mxu0 %v23021_v60 }
0x299c   :  { %17441 = vmatmul.mubr.msk.f32.vlgmr.msra.gmra.mxu1 %vm311_vm2, %v12141_v36  ;;  %17442 = vmatmul.mubr.msk.f32.vlgmr.msra.gmra.mxu0 %vm311_vm2, %v21840_v56  ;;  %v12874_v36 = vld [vmem:[#allocation4 + $0xbd0] sm:$0xff] }
0x299d   :  { %18472 = vmatprep.subr.mxu1 %v23021_v60  ;;  %18480 = vmatprep.mubr.msk.f32.mxu1 %vm19513_vm0, %v23021_v60 }
0x299e   :  { %18473 = vmatpush3.msra.mxu1 %v21728_v41  ;;  %12579 = vmatprep.subr.mxu0 %v21731_v27 }
0x299f   :  { %18474 = vmatprep.subr.mxu1 %v23021_v60  ;;  %12580 = vmatpush1.msra.mxu0 %v21735_v20 }
0x29a0   :  { %18475 = vmatpush3.msra.mxu1 %v21738_v63  ;;  %12581 = vmatprep.subr.mxu0 %v21741_v58 }
0x29a1   :  { %18476 = vmatprep.subr.mxu1 %v23021_v60  ;;  %12582 = vmatpush1.msra.mxu0 %v21745_v37 }
0x29a2   :  { %18477 = vmatpush3.msra.mxu1 %v21748_v9  ;;  %12583 = vmatprep.subr.mxu0 %v21751_v21 }
0x29a3   :  { %18478 = vmatprep.subr.mxu1 %v23021_v60  ;;  %12584 = vmatpush1.msra.mxu0 %v21755_v8 }
0x29a4   :  { %18479 = vmatpush3.msra.mxu1 %v21758_v44  ;;  %12585 = vmatprep.subr.mxu0 %v21761_v23 }
0x29a5   :  { %18481 = vmatmul.mubr.msk.f32.vlgmr.msra.gmra.mxu1 %vm311_vm2, %v21840_v56  ;;  %18483 = vmatprep.subr.mxu1 %v23021_v60 }
0x29a6   :  { %18484 = vmatpush3.msra.mxu1 %v21767_v7  ;;  %12586 = vmatpush1.msra.mxu0 %v21770_v17 }
0x29a7   :  { %18485 = vmatprep.subr.mxu1 %v23021_v60  ;;  %12619 = vmatprep.mubr.f32.mxu0 %v23021_v60 }
0x29a8   :  { %18486 = vmatpush3.msra.mxu1 %v21775_v62  ;;  %18491 = vmatprep.mubr.msk.f32.mxu1 %vm19513_vm0, %v23021_v60 }
0x29a9   :  { %18487 = vmatprep.subr.mxu1 %v23021_v60  ;;  %12723 = vmatprep.subr.mxu0 %v21781_v38 }
0x29aa   :  { %18488 = vmatpush3.msra.mxu1 %v21784_v54 }
0x29ab   :  { %18489 = vmatprep.subr.mxu1 %v23021_v60 }
0x29ac   :  { %18490 = vmatpush3.msra.mxu1 %v21788_v12 }
0x29ad   :  { %18494 = vmatprep.subr.mxu1 %v23021_v60 }
0x2a53   :  { %v12211_v2 = vpop.f32.mrf.mxu1  ;;  %v12282_v6 = vpop.f32.mrf.mxu0 }
0x2a54   :  { %v21950_v42 = vadd.f32 %v12211_v2, %v21793_v26  ;;  %v21953_v61 = vadd.f32 %v12282_v6, %v21796_v59  ;;  %v12862_v2 = vld [vmem:[#allocation4 + $0xb70] sm:$0xff]  ;;  %v12864_v6 = vld [vmem:[#allocation4 + $0xb80] sm:$0xff] }
0x2a55   :  { %v12213_v4 = vpop.f32.mrf.mxu1  ;;  %v12284_v47 = vpop.f32.mrf.mxu0 }
0x2a56   :  { %v21956_v15 = vadd.f32 %v12213_v4, %v21799_v25  ;;  %v21959_v41 = vadd.f32 %v12284_v47, %v21802_v22  ;;  %v12885_v4 = vld [vmem:[#allocation4 + $0xc28] sm:$0xff]  ;;  %v22011_v47 = vld [vmem:[#allocation2 + $0x368] sm:$0xff] }
0x2a5c   :  { %v12353_v27 = vpop.f32.mrf.mxu1  ;;  %v12430_v20 = vpop.f32.mrf.mxu0 }
0x2a5d   :  { %v21962_v63 = vadd.f32 %v12353_v27, %v21805_v30  ;;  %12506 = vrot.lane.b32.xlu1 %v12430_v20, %s19515_s24 }
0x2a5e   :  { %v12355_v58 = vpop.f32.mrf.mxu1  ;;  %v12432_v44 = vpop.f32.mrf.mxu0 }
0x2a5f   :  { %v21966_v37 = vadd.f32 %v12355_v58, %v21809_v11 }
0x2a65   :  { %v12501_v9 = vpop.f32.mrf.mxu1 }
0x2a66   :  { %v12527_v21 = vadd.f32 %v21811_v43, %v12501_v9 }
0x2a67   :  { %v18482_v8 = vpop.f32.mrf.mxu1 }
0x2a68   :  { %12529 = vrot.lane.b32.xlu0 %v12527_v21, %s19515_s24  ;;  %v23191_v21 = vld [vmem:[#allocation38_spill] sm:$0xff] }
0x2a6c   :  { %12517 = vrot.lane.b32.xlu0 %v12432_v44, %s19514_s0 }
0x2a70   :  { %12545 = vrot.lane.b32.xlu0 %v21836_v19, %s19516_s25 }
0x2acf   :  { %v12507_v23 = vpop.permute.xlu1 %12506 }
0x2ad0   :  { %v12509_v7 = vadd.f32 %v12507_v23, %v21831_v49 }
0x2ad2   :  { %v17444_v17 = vmul.f32 -1.442695, %v12509_v7 }
0x2ad4   :  { %19080 = vpow2.f32 %v17444_v17 }
0x2ada   :  { %v12530_v12 = vpop.permute.xlu0 %12529 }
0x2ade   :  { %v12518_v30 = vpop.permute.xlu0 %12517 }
0x2adf   :  { %v12520_v11 = vadd.f32 %v12518_v30, %v21831_v49 }
0x2ae1   :  { %v19081_v62 = vpop.eup %19080  ;;  %v17445_v43 = vmul.f32 -1.442695, %v12520_v11 }
0x2ae2   :  { %v12513_v38 = vadd.f32 1.0, %v19081_v62  ;;  %v12546_v24 = vpop.permute.xlu0 %12545 }
0x2ae4   :  { %19082 = vrcp.f32 %v12513_v38 }
0x2af1   :  { %v19083_v54 = vpop.eup %19082 }
0x2af2   :  { %v12532_v26 = vmul.f32 %v19083_v54, %v12530_v12 }
0x2af4   :  { %12534 = vrot.lane.b32.xlu1 %v12532_v26, %s19514_s0 }
0x2b66   :  { %v12535_v59 = vpop.permute.xlu1 %12534 }
0x2b67   :  { %v12537_v25 = vadd.f32 %v12535_v59, %v21831_v49  ;;  %v23187_v49 = vld [vmem:[#allocation19_spill] sm:$0xff] }
0x2b69   :  { %19084 = vtanh.f32 %v12537_v25 }
0x2b6a   :  { %19086 = vpow2.f32 %v17445_v43 }
0x2b76   :  { %v19085_v22 = vpop.eup %19084 }
0x2b77   :  { %12541 = vrot.lane.b32.xlu1 %v19085_v22, %s19516_s25  ;;  %v19087_v19 = vpop.eup %19086 }
0x2b78   :  { %v12524_v56 = vadd.f32 1.0, %v19087_v19 }
0x2b7a   :  { %19088 = vrcp.f32 %v12524_v56 }
0x2b87   :  { %v19089_v39 = vpop.eup %19088 }
0x2b88   :  { %v12539_v28 = vsub.f32 1.0, %v19089_v39  ;;  %v12548_v16 = vmul.f32 %v19089_v39, %v12546_v24 }
0x2be9   :  { %v12542_v14 = vpop.permute.xlu1 %12541 }
0x2bea   :  { %v12544_v52 = vmul.f32 %v12542_v14, %v12539_v28 }
0x2bec   :  { %v21978_v48 = vadd.f32 %v12548_v16, %v12544_v52 }
0x2bee   :  { %12551 = vrot.lane.b32.xlu1 %v21978_v48, %s19514_s0 }
0x2c60   :  { %v21982_v53 = vpop.permute.xlu1 %12551 }
0x2c61   :  { %17446 = vmatmul.mubr.msk.f32.vlgmr.msra.gmra.mxu0 %vm311_vm2, %v21982_v53  ;;  %18492 = vmatmul.mubr.msk.f32.vlgmr.msra.gmra.mxu1 %vm311_vm2, %v21982_v53 }
0x2c62   :  { %12724 = vmatpush1.msra.mxu0 %v21846_v51  ;;  %18495 = vmatpush3.msra.mxu1 %v21849_v34  ;;  %v23189_v51 = vld [vmem:[#allocation39_spill] sm:$0xff] }
0x2c63   :  { %12725 = vmatprep.subr.mxu0 %v21852_v3  ;;  %18496 = vmatprep.subr.mxu1 %v23021_v60  ;;  %v23190_v34 = vld [vmem:[#allocation43_spill] sm:$0xff]  ;;  %v12881_v3 = vld [vmem:[#allocation4 + $0xc08] sm:$0xff] }
0x2c64   :  { %12726 = vmatpush1.msra.mxu0 %v21856_v50  ;;  %18497 = vmatpush3.msra.mxu1 %v21859_v13  ;;  %v12883_v50 = vld [vmem:[#allocation4 + $0xc18] sm:$0xff]  ;;  %v12880_v13 = vld [vmem:[#allocation4 + $0xc00] sm:$0xff] }
0x2c65   :  { %12727 = vmatprep.subr.mxu0 %v21862_v57  ;;  %18498 = vmatprep.subr.mxu1 %v23021_v60  ;;  %v12882_v57 = vld [vmem:[#allocation4 + $0xc10] sm:$0xff] }
0x2c66   :  { %12728 = vmatpush1.msra.mxu0 %v21866_v45  ;;  %18499 = vmatpush3.msra.mxu1 %v23187_v49  ;;  %v12875_v45 = vld [vmem:[#allocation4 + $0xbd8] sm:$0xff] }
0x2c67   :  { %12729 = vmatprep.subr.mxu0 %v23188_v33  ;;  %18500 = vmatprep.subr.mxu1 %v23021_v60  ;;  %v12884_v33 = vld [vmem:[#allocation4 + $0xc20] sm:$0xff] }
0x2c68   :  { %12730 = vmatpush1.msra.mxu0 %v23189_v51  ;;  %12763 = vmatprep.mubr.f32.mxu0 %v23021_v60  ;;  %v22022_v51 = vld [vmem:[#allocation2 + $0x360] sm:$0xff] }
0x2c69   :  { %18501 = vmatpush3.msra.mxu1 %v23190_v34  ;;  %18502 = vmatprep.mubr.msk.f32.mxu1 %vm19513_vm0, %v23021_v60  ;;  %v22024_v34 = vld [vmem:[#allocation2 + $0x350] sm:$0xff] }
0x2c6a   :  { %17448 = vmatmul.mubr.msk.f32.vlgmr.msra.gmra.mxu0 %vm311_vm2, %v21899_v18  ;;  %18503 = vmatmul.mubr.msk.f32.vlgmr.msra.gmra.mxu1 %vm311_vm2, %v21899_v18 }
0x2c6b   :  { %12954 = vmatprep.mubr.f32.mxu0 %v23021_v60  ;;  %13025 = vmatprep.mubr.f32.mxu1 %v23021_v60 }
0x2c6c   :  { %12914 = vmatprep.subr.mxu0 %v12881_v3  ;;  %12985 = vmatprep.subr.mxu1 %v12883_v50  ;;  %v22028_v3 = vld [vmem:[#allocation2 + $0x348] sm:$0xff]  ;;  %v22031_v50 = vld [vmem:[#allocation2 + $0x338] sm:$0xff] }
0x2c6d   :  { %12915 = vmatpush1.msra.mxu0 %v12880_v13  ;;  %12986 = vmatpush1.msra.mxu1 %v12882_v57  ;;  %v12872_v13 = vld [vmem:[#allocation4 + $0xbc0] sm:$0xff]  ;;  %v22034_v57 = vld [vmem:[#allocation2 + $0x330] sm:$0xff] }
0x2c6e   :  { %12916 = vmatprep.subr.mxu0 %v12875_v45  ;;  %12987 = vmatprep.subr.mxu1 %v12877_v29  ;;  %v12867_v45 = vld [vmem:[#allocation4 + $0xb98] sm:$0xff]  ;;  %v22037_v29 = vld [vmem:[#allocation2 + $0x320] sm:$0xff] }
0x2c6f   :  { %12917 = vmatpush1.msra.mxu0 %v12874_v36  ;;  %12988 = vmatpush1.msra.mxu1 %v12876_v55  ;;  %v12866_v36 = vld [vmem:[#allocation4 + $0xb90] sm:$0xff]  ;;  %v22041_v55 = vld [vmem:[#allocation2 + $0x318] sm:$0xff] }
0x2c70   :  { %12918 = vmatprep.subr.mxu0 %v12869_v1  ;;  %12989 = vmatprep.subr.mxu1 %v12871_v0  ;;  %v22047_v1 = vld [vmem:[#allocation2 + $0x370] sm:$0xff]  ;;  %v22053_v0 = vld [vmem:[#allocation2 + $0x358] sm:$0xff] }
0x2c71   :  { %12919 = vmatpush1.msra.mxu0 %v12868_v46  ;;  %12990 = vmatpush1.msra.mxu1 %v12870_v35  ;;  %v22060_v46 = vld [vmem:[#allocation2 + $0x340] sm:$0xff]  ;;  %v22064_v35 = vld [vmem:[#allocation2 + $0x328] sm:$0xff] }
0x2c72   :  { %12920 = vmatprep.subr.mxu0 %v12863_v32  ;;  %12991 = vmatprep.subr.mxu1 %v12865_v5 }
0x2c73   :  { %12921 = vmatpush1.msra.mxu0 %v12862_v2  ;;  %12992 = vmatpush1.msra.mxu1 %v12864_v6 }
0x2c74   :  { %13056 = vmatprep.subr.mxu0 %v12885_v4  ;;  %13189 = vmatprep.subr.mxu1 %v22011_v47 }
0x2d21   :  { %v12692_v27 = vpop.f32.mrf.mxu1  ;;  %v12621_v58 = vpop.f32.mrf.mxu0 }
0x2d22   :  { %v12622_v8 = vadd.f32 %v12621_v58, %v23191_v21  ;;  %v12693_v19 = vadd.f32 %v12692_v27, %v21000_v40  ;;  %v12878_v40 = vld [vmem:[#allocation4 + $0xbf0] sm:$0xff] }
0x2d23   :  { %v18493_v20 = vpop.f32.mrf.mxu1  ;;  %v12623_v9 = vpop.f32.mrf.mxu0 }
0x2d24   :  { %v12624_v54 = vadd.f32 %v12623_v9, %v20994_v10 }
0x2d2a   :  { %v12765_v44 = vpop.f32.mrf.mxu0  ;;  %v12836_v23 = vpop.f32.mrf.mxu1 }
0x2d2b   :  { %v12840_v7 = vadd.f32 %v12765_v44, %v12622_v8  ;;  %v12854_v11 = vadd.f32 %v21894_v31, %v12836_v23  ;;  %v12879_v31 = vld [vmem:[#allocation4 + $0xbf8] sm:$0xff] }
0x2d2c   :  { %v18504_v17 = vpop.f32.mrf.mxu1  ;;  %v12767_v38 = vpop.f32.mrf.mxu0 }
0x2d2d   :  { %v17450_v62 = vmul.f32 -1.442695, %v12840_v7  ;;  %v12847_v12 = vadd.f32 %v12767_v38, %v12624_v54 }
0x2d2f   :  { %19090 = vpow2.f32 %v17450_v62  ;;  %v17451_v26 = vmul.f32 -1.442695, %v12847_v12 }
0x2d31   :  { %19092 = vpow2.f32 %v17451_v26  ;;  %v22101_v26 = vld [vmem:[#allocation2 + $0x3e0] sm:$0xff] }
0x2d3c   :  { %v19091_v59 = vpop.eup %19090 }
0x2d3d   :  { %v12844_v25 = vadd.f32 1.0, %v19091_v59  ;;  %v22105_v59 = vld [vmem:[#allocation2 + $0x3e8] sm:$0xff] }
0x2d3e   :  { %v19093_v22 = vpop.eup %19092 }
0x2d3f   :  { %19094 = vrcp.f32 %v12844_v25  ;;  %v12851_v30 = vadd.f32 1.0, %v19093_v22  ;;  %v22109_v25 = vld [vmem:[#allocation2 + $0x3c8] sm:$0xff]  ;;  %v22111_v22 = vld [vmem:[#allocation2 + $0x3c0] sm:$0xff] }
0x2d41   :  { %19096 = vrcp.f32 %v12851_v30  ;;  %v22113_v30 = vld [vmem:[#allocation2 + $0x3d0] sm:$0xff] }
0x2d4c   :  { %v19095_v43 = vpop.eup %19094 }
0x2d4d   :  { %v12855_v56 = vmul.f32 %v19095_v43, %v12854_v11  ;;  %v22117_v11 = vld [vmem:[#allocation2 + $0x3b0] sm:$0xff]  ;;  %v22119_v43 = vld [vmem:[#allocation2 + $0x3b8] sm:$0xff] }
0x2d4e   :  { %v19097_v28 = vpop.eup %19096 }
0x2d4f   :  { %v12856_v39 = vadd.f32 %v12855_v56, %v12693_v19  ;;  %v12858_v10 = vsub.f32 1.0, %v19097_v28  ;;  %v12860_v16 = vmul.f32 %v19097_v28, %v21899_v18  ;;  %v12873_v18 = vld [vmem:[#allocation4 + $0xbc8] sm:$0xff]  ;;  %v22123_v19 = vld [vmem:[#allocation2 + $0x3a8] sm:$0xff]  ;;  %v22127_v56 = vld [vmem:[#allocation2 + $0x398] sm:$0xff] }
0x2d50   :  { %v22133_v28 = vld [vmem:[#allocation2 + $0x390] sm:$0xff] }
0x2d51   :  { %19098 = vtanh.f32 %v12856_v39  ;;  %v22129_v39 = vld [vmem:[#allocation2 + $0x3a0] sm:$0xff] }
0x2d5e   :  { %v19099_v24 = vpop.eup %19098 }
0x2d5f   :  { %v12859_v14 = vmul.f32 %v19099_v24, %v12858_v10  ;;  %v22137_v10 = vld [vmem:[#allocation2 + $0x440] sm:$0xff] }
0x2d61   :  { %v22019_v52 = vadd.f32 %v12860_v16, %v12859_v14 }
0x2d63   :  { %v12886_v49 = vmax.f32 %v22019_v52, 0.0 }
0x2d65   :  { %17452 = vmatmul.mubr.msk.f32.vlgmr.msra.gmra.mxu0 %vm311_vm2, %v12886_v49  ;;  %17453 = vmatmul.mubr.msk.f32.vlgmr.msra.gmra.mxu1 %vm311_vm2, %v12886_v49 }
0x2d66   :  { %13057 = vmatpush1.msra.mxu0 %v12884_v33  ;;  %13190 = vmatpush1.msra.mxu1 %v22022_v51 }
0x2d67   :  { %13058 = vmatprep.subr.mxu0 %v12879_v31  ;;  %13191 = vmatprep.subr.mxu1 %v22024_v34 }
0x2d68   :  { %13059 = vmatpush1.msra.mxu0 %v12878_v40  ;;  %13192 = vmatpush1.msra.mxu1 %v22028_v3 }
0x2d69   :  { %13060 = vmatprep.subr.mxu0 %v12873_v18  ;;  %13193 = vmatprep.subr.mxu1 %v22031_v50 }
0x2d6a   :  { %13061 = vmatpush1.msra.mxu0 %v12872_v13  ;;  %13194 = vmatpush1.msra.mxu1 %v22034_v57 }
0x2d6b   :  { %13062 = vmatprep.subr.mxu0 %v12867_v45  ;;  %13195 = vmatprep.subr.mxu1 %v22037_v29 }
0x2d6c   :  { %13063 = vmatpush1.msra.mxu0 %v12866_v36  ;;  %13096 = vmatprep.mubr.f32.mxu0 %v23021_v60 }
0x2d6d   :  { %13196 = vmatpush1.msra.mxu1 %v22041_v55  ;;  %13229 = vmatprep.mubr.f32.mxu1 %v23021_v60 }
0x2d6e   :  { %17454 = vmatmul.mubr.msk.f32.vlgmr.msra.gmra.mxu0 %vm311_vm2, %v12886_v49  ;;  %17455 = vmatmul.mubr.msk.f32.vlgmr.msra.gmra.mxu1 %vm311_vm2, %v21982_v53 }
0x2d6f   :  { %18505 = vmatprep.subr.mxu0 %v23021_v60  ;;  %18513 = vmatprep.mubr.msk.f32.mxu0 %vm19513_vm0, %v23021_v60 }
0x2d70   :  { %18506 = vmatpush3.msra.mxu0 %v22047_v1  ;;  %13412 = vmatprep.mubr.f32.mxu1 %v23021_v60 }
0x2d71   :  { %18507 = vmatprep.subr.mxu0 %v23021_v60  ;;  %13372 = vmatprep.subr.mxu1 %v22101_v26 }
0x2d72   :  { %18508 = vmatpush3.msra.mxu0 %v22053_v0 }
0x2d73   :  { %18509 = vmatprep.subr.mxu0 %v23021_v60 }
0x2d74   :  { %18510 = vmatpush3.msra.mxu0 %v22060_v46 }
0x2d75   :  { %18511 = vmatprep.subr.mxu0 %v23021_v60 }
0x2d76   :  { %18512 = vmatpush3.msra.mxu0 %v22064_v35 }
0x2d77   :  { %18514 = vmatmul.mubr.msk.f32.vlgmr.msra.gmra.mxu0 %vm311_vm2, %v21982_v53  ;;  %18516 = vmatprep.subr.mxu0 %v23021_v60 }
0x2d78   :  { %18524 = vmatprep.mubr.msk.f32.mxu0 %vm19513_vm0, %v23021_v60  ;;  %18517 = vmatpush3.msra.mxu0 %v22105_v59 }
0x2d79   :  { %18518 = vmatprep.subr.mxu0 %v23021_v60 }
0x2d7a   :  { %18519 = vmatpush3.msra.mxu0 %v22113_v30 }
0x2d7b   :  { %18520 = vmatprep.subr.mxu0 %v23021_v60 }
0x2d7c   :  { %18521 = vmatpush3.msra.mxu0 %v22119_v43 }
0x2d7d   :  { %18522 = vmatprep.subr.mxu0 %v23021_v60 }
0x2d7e   :  { %18523 = vmatpush3.msra.mxu0 %v22129_v39 }
0x2d7f   :  { %18527 = vmatprep.subr.mxu0 %v23021_v60 }
0x2e25   :  { %v12956_v32 = vpop.f32.mrf.mxu0  ;;  %v13027_v5 = vpop.f32.mrf.mxu1 }
0x2e26   :  { %v22075_v2 = vadd.f32 %v13027_v5, %v21953_v61  ;;  %v22084_v53 = vadd.f32 %v12956_v32, %v21950_v42 }
0x2e27   :  { %v12958_v6 = vpop.f32.mrf.mxu0  ;;  %v13029_v4 = vpop.f32.mrf.mxu1 }
0x2e28   :  { %23192 = vst [vmem:[#allocation37_spill] sm:$0xff] %v22075_v2  ;;  %v22078_v27 = vadd.f32 %v12958_v6, %v21956_v15  ;;  %v22081_v20 = vadd.f32 %v13029_v4, %v21959_v41  ;;  %v22147_v6 = vld [vmem:[#allocation2 + $0x438] sm:$0xff]  ;;  %v22149_v4 = vld [vmem:[#allocation2 + $0x448] sm:$0xff] }
0x2e2a   :  { %23193 = vst [vmem:[#allocation29_spill] sm:$0xff] %v22081_v20 }
0x2e2e   :  { %v13098_v58 = vpop.f32.mrf.mxu0  ;;  %v13231_v9 = vpop.f32.mrf.mxu1 }
0x2e2f   :  { %v22087_v21 = vadd.f32 %v13098_v58, %v21962_v63  ;;  %v13306_v8 = vadd.f32 %v13231_v9, %v22084_v53  ;;  %v22096_v63 = vld [vmem:[#allocation2 + $0x378] ss:$0 sm:$0xff]  ;;  %v22153_v9 = vld [vmem:[#allocation2 + $0x428] sm:$0xff] }
0x2e30   :  { %v13100_v61 = vpop.f32.mrf.mxu0  ;;  %v13233_v44 = vpop.f32.mrf.mxu1 }
0x2e31   :  { %23194 = vst [vmem:[#allocation42_spill] sm:$0xff] %v22087_v21  ;;  %v17457_v23 = vmul.f32 -1.442695, %v13306_v8  ;;  %v22091_v7 = vadd.f32 %v13100_v61, %v21966_v37  ;;  %13314 = vrot.lane.b32.xlu1 %v13233_v44, %s19515_s24  ;;  %v22159_v8 = vld [vmem:[#allocation2 + $0x420] sm:$0xff]  ;;  %v22161_v61 = vld [vmem:[#allocation2 + $0x430] sm:$0xff] }
0x2e32   :  { %v22165_v44 = vld [vmem:[#allocation2 + $0x410] sm:$0xff] }
0x2e33   :  { %23195 = vst [vmem:[#allocation20_spill] sm:$0xff] %v22091_v7  ;;  %19100 = vpow2.f32 %v17457_v23  ;;  %v22169_v23 = vld [vmem:[#allocation2 + $0x408] sm:$0xff] }
0x2e35   :  { %13338 = vrot.lane.b32.xlu1 %v21978_v48, %s19516_s25  ;;  %v22103_v48 = vld [vmem:[#allocation2 + $0x3d8] sm:$0xff] }
0x2e36   :  { %13373 = vmatpush1.msra.mxu1 %v22103_v48 }
0x2e37   :  { %v13302_v42 = vpop.f32.mrf.mxu0  ;;  %13374 = vmatprep.subr.mxu1 %v22109_v25 }
0x2e38   :  { %v13324_v62 = vadd.f32 %v13302_v42, %v22096_v63  ;;  %13375 = vmatpush1.msra.mxu1 %v22111_v22  ;;  %v22171_v42 = vld [vmem:[#allocation2 + $0x418] sm:$0xff] }
0x2e39   :  { %v18515_v15 = vpop.f32.mrf.mxu0  ;;  %13376 = vmatprep.subr.mxu1 %v22117_v11 }
0x2e3a   :  { %13377 = vmatpush1.msra.mxu1 %v22123_v19  ;;  %v22175_v15 = vld [vmem:[#allocation2 + $0x3f8] sm:$0xff] }
0x2e3b   :  { %13378 = vmatprep.subr.mxu1 %v22127_v56 }
0x2e3c   :  { %13379 = vmatpush1.msra.mxu1 %v22133_v28 }
0x2e3d   :  { %13516 = vmatprep.subr.mxu1 %v22137_v10 }
0x2e40   :  { %v19101_v41 = vpop.eup %19100 }
0x2e41   :  { %v13310_v17 = vadd.f32 1.0, %v19101_v41  ;;  %v22179_v41 = vld [vmem:[#allocation2 + $0x3f0] sm:$0xff] }
0x2e43   :  { %19102 = vrcp.f32 %v13310_v17  ;;  %v22183_v17 = vld [vmem:[#allocation2 + $0x400] sm:$0xff] }
0x2e50   :  { %v19103_v38 = vpop.eup %19102 }
0x2e51   :  { %v13325_v54 = vmul.f32 %v19103_v38, %v13324_v62  ;;  %v13148_v38 = vld [vmem:[#allocation2 + $0x450] ss:$8 sm:$0x7] }
0x2e53   :  { %13327 = vrot.lane.b32.xlu0 %v13325_v54, %s19514_s0 }
0x2ea3   :  { %v13315_v14 = vpop.permute.xlu1 %13314 }
0x2ea4   :  { %v13317_v16 = vadd.f32 %v13315_v14, %v22084_v53  ;;  %v23197_v14 = vld [vmem:[#allocation14_spill] sm:$0xff] }
0x2ea6   :  { %v17458_v49 = vmul.f32 -1.442695, %v13317_v16  ;;  %v22244_v16 = vrot.slane %v13148_v38, %v23197_v14 }
0x2ea7   :  { %v13339_v13 = vpop.permute.xlu1 %13338 }
0x2ec5   :  { %v13328_v37 = vpop.permute.xlu0 %13327 }
0x2ec6   :  { %v13330_v12 = vadd.f32 %v13328_v37, %v22084_v53 }
0x2ec8   :  { %19104 = vtanh.f32 %v13330_v12  ;;  %v23196_v12 = vld [vmem:[#allocation12_spill] sm:$0xff] }
0x2ec9   :  { %19106 = vpow2.f32 %v17458_v49 }
0x2ed5   :  { %v19105_v24 = vpop.eup %19104 }
0x2ed6   :  { %13334 = vrot.lane.b32.xlu0 %v19105_v24, %s19516_s25  ;;  %v19107_v33 = vpop.eup %19106  ;;  %v22241_v24 = vrot.slane %v13148_v38, %v23196_v12 }
0x2ed7   :  { %v13321_v31 = vadd.f32 1.0, %v19107_v33 }
0x2ed9   :  { %19108 = vrcp.f32 %v13321_v31 }
0x2ee6   :  { %v19109_v40 = vpop.eup %19108 }
0x2ee7   :  { %v13332_v18 = vsub.f32 1.0, %v19109_v40  ;;  %v13341_v36 = vmul.f32 %v19109_v40, %v13339_v13 }
0x2f48   :  { %v13335_v45 = vpop.permute.xlu0 %13334 }
0x2f49   :  { %v13337_v32 = vmul.f32 %v13335_v45, %v13332_v18 }
0x2f4b   :  { %v13342_v5 = vadd.f32 %v13341_v36, %v13337_v32 }
0x2f4d   :  { %13344 = vrot.lane.b32.xlu0 %v13342_v5, %s19516_s25 }
0x2fbf   :  { %v22151_v58 = vpop.permute.xlu0 %13344 }
0x2fc0   :  { %17459 = vmatmul.mubr.msk.f32.vlgmr.msra.gmra.mxu1 %vm311_vm2, %v22151_v58  ;;  %18525 = vmatmul.mubr.msk.f32.vlgmr.msra.gmra.mxu0 %vm311_vm2, %v22151_v58 }
0x2fc1   :  { %13517 = vmatpush1.msra.mxu1 %v22147_v6  ;;  %18528 = vmatpush3.msra.mxu0 %v22149_v4 }
0x2fc2   :  { %13518 = vmatprep.subr.mxu1 %v22153_v9  ;;  %18529 = vmatprep.subr.mxu0 %v23021_v60 }
0x2fc3   :  { %13519 = vmatpush1.msra.mxu1 %v22159_v8  ;;  %18530 = vmatpush3.msra.mxu0 %v22161_v61 }
0x2fc4   :  { %13520 = vmatprep.subr.mxu1 %v22165_v44  ;;  %18531 = vmatprep.subr.mxu0 %v23021_v60 }
0x2fc5   :  { %13521 = vmatpush1.msra.mxu1 %v22169_v23  ;;  %18532 = vmatpush3.msra.mxu0 %v22171_v42 }
0x2fc6   :  { %13522 = vmatprep.subr.mxu1 %v22175_v15  ;;  %18533 = vmatprep.subr.mxu0 %v23021_v60 }
0x2fc7   :  { %13523 = vmatpush1.msra.mxu1 %v22179_v41  ;;  %13556 = vmatprep.mubr.f32.mxu1 %v23021_v60 }
0x2fc8   :  { %18534 = vmatpush3.msra.mxu0 %v22183_v17  ;;  %18535 = vmatprep.mubr.msk.f32.mxu0 %vm19513_vm0, %v23021_v60 }
0x2fc9   :  { %17461 = vmatmul.mubr.msk.f32.vlgmr.msra.gmra.mxu1 %vm311_vm2, %v22019_v52  ;;  %18536 = vmatmul.mubr.msk.f32.vlgmr.msra.gmra.mxu0 %vm311_vm2, %v22019_v52 }
0x2fca   :  { %13679 = vmatprep.subr.mxu1 %v22011_v47  ;;  %18538 = vmatprep.subr.mxu0 %v23021_v60 }
0x2fcb   :  { %13680 = vmatpush1.msra.mxu1 %v22022_v51  ;;  %18539 = vmatpush3.msra.mxu0 %v22047_v1 }
0x2fcc   :  { %13681 = vmatprep.subr.mxu1 %v22024_v34  ;;  %18540 = vmatprep.subr.mxu0 %v23021_v60 }
0x2fcd   :  { %13682 = vmatpush1.msra.mxu1 %v22028_v3  ;;  %18541 = vmatpush3.msra.mxu0 %v22053_v0 }
0x2fce   :  { %13683 = vmatprep.subr.mxu1 %v22031_v50  ;;  %18542 = vmatprep.subr.mxu0 %v23021_v60 }
0x2fcf   :  { %13684 = vmatpush1.msra.mxu1 %v22034_v57  ;;  %18543 = vmatpush3.msra.mxu0 %v22060_v46 }
0x2fd0   :  { %13685 = vmatprep.subr.mxu1 %v22037_v29  ;;  %18544 = vmatprep.subr.mxu0 %v23021_v60 }
0x2fd1   :  { %13686 = vmatpush1.msra.mxu1 %v22041_v55  ;;  %13719 = vmatprep.mubr.f32.mxu1 %v23021_v60 }
0x2fd2   :  { %18545 = vmatpush3.msra.mxu0 %v22064_v35  ;;  %18546 = vmatprep.mubr.msk.f32.mxu0 %vm19513_vm0, %v23021_v60 }
0x2fd3   :  { %17465 = vmatmul.mubr.msk.f32.vlgmr.msra.gmra.mxu1 %vm311_vm2, %v22151_v58  ;;  %18547 = vmatmul.mubr.msk.f32.vlgmr.msra.gmra.mxu0 %vm311_vm2, %v22151_v58 }
0x2fd4   :  { %13862 = vmatprep.subr.mxu1 %v22101_v26  ;;  %18549 = vmatprep.subr.mxu0 %v23021_v60 }
0x2fd5   :  { %13863 = vmatpush1.msra.mxu1 %v22103_v48  ;;  %18550 = vmatpush3.msra.mxu0 %v22105_v59 }
0x2fd6   :  { %13864 = vmatprep.subr.mxu1 %v22109_v25  ;;  %18551 = vmatprep.subr.mxu0 %v23021_v60 }
0x2fd7   :  { %13865 = vmatpush1.msra.mxu1 %v22111_v22  ;;  %18552 = vmatpush3.msra.mxu0 %v22113_v30 }
0x2fd8   :  { %13866 = vmatprep.subr.mxu1 %v22117_v11  ;;  %18553 = vmatprep.subr.mxu0 %v23021_v60 }
0x2fd9   :  { %13867 = vmatpush1.msra.mxu1 %v22123_v19  ;;  %18554 = vmatpush3.msra.mxu0 %v22119_v43 }
0x2fda   :  { %13868 = vmatprep.subr.mxu1 %v22127_v56  ;;  %18555 = vmatprep.subr.mxu0 %v23021_v60 }
0x2fdb   :  { %13869 = vmatpush1.msra.mxu1 %v22133_v28  ;;  %18556 = vmatpush3.msra.mxu0 %v22129_v39 }
0x2fdc   :  { %13902 = vmatprep.mubr.f32.mxu1 %v23021_v60  ;;  %18557 = vmatprep.mubr.msk.f32.mxu0 %vm19513_vm0, %v23021_v60 }
0x2fdd   :  { %14006 = vmatprep.subr.mxu1 %v22137_v10  ;;  %18560 = vmatprep.subr.mxu0 %v23021_v60 }
0x3080   :  { %v13485_v62 = vpop.f32.mrf.mxu0  ;;  %v13414_v37 = vpop.f32.mrf.mxu1 }
0x3081   :  { %v13415_v33 = vadd.f32 %v13414_v37, %v22241_v24 }
0x3082   :  { %v18526_v54 = vpop.f32.mrf.mxu0  ;;  %v13416_v49 = vpop.f32.mrf.mxu1 }
0x3083   :  { %v13417_v18 = vadd.f32 %v13416_v49, %v22244_v16 }
0x3089   :  { %v13558_v31 = vpop.f32.mrf.mxu1  ;;  %v13629_v40 = vpop.f32.mrf.mxu0 }
0x308a   :  { %v13633_v13 = vadd.f32 %v13558_v31, %v13415_v33  ;;  %v22251_v33 = vld [vmem:[#allocation2 + $0x468] ss:$0 sm:$0xff]  ;;  %v23198_v31 = vld [vmem:[#allocation15_spill] sm:$0xff] }
0x308b   :  { %v13560_v45 = vpop.f32.mrf.mxu1  ;;  %v18537_v36 = vpop.f32.mrf.mxu0 }
0x308c   :  { %v17463_v32 = vmul.f32 -1.442695, %v13633_v13  ;;  %v13640_v5 = vadd.f32 %v13560_v45, %v13417_v18  ;;  %v22254_v18 = vrot.slane %v13148_v38, %v23198_v31  ;;  %v13647_v45 = vadd.f32 %v13629_v40, %v22251_v33 }
0x308e   :  { %19110 = vpow2.f32 %v17463_v32  ;;  %v17464_v12 = vmul.f32 -1.442695, %v13640_v5 }
0x3090   :  { %19112 = vpow2.f32 %v17464_v12 }
0x3093   :  { %v13721_v54 = vpop.f32.mrf.mxu1  ;;  %v13792_v7 = vpop.f32.mrf.mxu0 }
0x3094   :  { %v13814_v21 = vadd.f32 %v13792_v7, %v22096_v63  ;;  %13797 = vrot.lane.b32.xlu1 %v13721_v54, %s19516_s25  ;;  %v13486_v7 = vadd.f32 %v13485_v62, %v22254_v18 }
0x3095   :  { %v18548_v14 = vpop.f32.mrf.mxu0 }
0x3096   :  { %13816 = vrot.lane.b32.xlu0 %v13814_v21, %s19516_s25 }
0x309b   :  { %v19111_v37 = vpop.eup %19110 }
0x309c   :  { %v13637_v20 = vadd.f32 1.0, %v19111_v37 }
0x309d   :  { %v19113_v49 = vpop.eup %19112 }
0x309e   :  { %19114 = vrcp.f32 %v13637_v20  ;;  %v13644_v13 = vadd.f32 1.0, %v19113_v49 }
0x30a0   :  { %19116 = vrcp.f32 %v13644_v13 }
0x30ab   :  { %v19115_v36 = vpop.eup %19114 }
0x30ac   :  { %v13648_v32 = vmul.f32 %v19115_v36, %v13647_v45 }
0x30ad   :  { %v19117_v21 = vpop.eup %19116 }
0x30ae   :  { %v13649_v14 = vadd.f32 %v13648_v32, %v13486_v7  ;;  %v13651_v12 = vsub.f32 1.0, %v19117_v21  ;;  %v13653_v54 = vmul.f32 %v19117_v21, %v22019_v52  ;;  %v13723_v32 = vpop.f32.mrf.mxu1 }
0x30b0   :  { %19118 = vtanh.f32 %v13649_v14 }
0x30bd   :  { %v19119_v5 = vpop.eup %19118 }
0x30be   :  { %v13652_v20 = vmul.f32 %v19119_v5, %v13651_v12 }
0x30c0   :  { %v22259_v37 = vadd.f32 %v13653_v54, %v13652_v20 }
0x3106   :  { %v13798_v38 = vpop.permute.xlu1 %13797 }
0x3107   :  { %v13800_v49 = vadd.f32 %v13798_v38, %v22084_v53  ;;  %v13807_v53 = vadd.f32 %v13723_v32, %v22078_v27 }
0x3108   :  { %v13817_v13 = vpop.permute.xlu0 %13816 }
0x3109   :  { %v17467_v31 = vmul.f32 -1.442695, %v13800_v49  ;;  %v17468_v14 = vmul.f32 -1.442695, %v13807_v53 }
0x310b   :  { %19120 = vpow2.f32 %v17467_v31 }
0x3118   :  { %v19121_v40 = vpop.eup %19120 }
0x3119   :  { %v13804_v2 = vadd.f32 1.0, %v19121_v40 }
0x311b   :  { %19122 = vrcp.f32 %v13804_v2 }
0x3128   :  { %v19123_v62 = vpop.eup %19122 }
0x3129   :  { %v13819_v45 = vmul.f32 %v19123_v62, %v13817_v13 }
0x312b   :  { %13821 = vrot.lane.b32.xlu1 %v13819_v45, %s19514_s0 }
0x319d   :  { %v13822_v36 = vpop.permute.xlu1 %13821 }
0x319e   :  { %v13824_v7 = vadd.f32 %v13822_v36, %v22078_v27 }
0x31a0   :  { %19124 = vtanh.f32 %v13824_v7 }
0x31a1   :  { %19126 = vpow2.f32 %v17468_v14 }
0x31ad   :  { %v19125_v52 = vpop.eup %19124 }
0x31ae   :  { %13828 = vrot.lane.b32.xlu0 %v19125_v52, %s19516_s25  ;;  %v19127_v21 = vpop.eup %19126 }
0x31af   :  { %v13811_v12 = vadd.f32 1.0, %v19127_v21 }
0x31b1   :  { %19128 = vrcp.f32 %v13811_v12 }
0x31be   :  { %v19129_v2 = vpop.eup %19128 }
0x31bf   :  { %v13826_v5 = vsub.f32 1.0, %v19129_v2  ;;  %v13833_v38 = vmul.f32 %v19129_v2, %v22151_v58 }
0x3220   :  { %v13829_v20 = vpop.permute.xlu0 %13828 }
0x3221   :  { %v13831_v54 = vmul.f32 %v13829_v20, %v13826_v5 }
0x3223   :  { %v22267_v49 = vadd.f32 %v13833_v38, %v13831_v54 }
0x3225   :  { %17469 = vmatmul.mubr.msk.f32.vlgmr.msra.gmra.mxu1 %vm311_vm2, %v22267_v49  ;;  %18558 = vmatmul.mubr.msk.f32.vlgmr.msra.gmra.mxu0 %vm311_vm2, %v22267_v49 }
0x3226   :  { %14007 = vmatpush1.msra.mxu1 %v22147_v6  ;;  %18561 = vmatpush3.msra.mxu0 %v22149_v4 }
0x3227   :  { %14008 = vmatprep.subr.mxu1 %v22153_v9  ;;  %18562 = vmatprep.subr.mxu0 %v23021_v60 }
0x3228   :  { %14009 = vmatpush1.msra.mxu1 %v22159_v8  ;;  %18563 = vmatpush3.msra.mxu0 %v22161_v61 }
0x3229   :  { %14010 = vmatprep.subr.mxu1 %v22165_v44  ;;  %18564 = vmatprep.subr.mxu0 %v23021_v60 }
0x322a   :  { %14011 = vmatpush1.msra.mxu1 %v22169_v23  ;;  %18565 = vmatpush3.msra.mxu0 %v22171_v42 }
0x322b   :  { %14012 = vmatprep.subr.mxu1 %v22175_v15  ;;  %18566 = vmatprep.subr.mxu0 %v23021_v60 }
0x322c   :  { %14013 = vmatpush1.msra.mxu1 %v22179_v41  ;;  %14046 = vmatprep.mubr.f32.mxu1 %v23021_v60 }
0x322d   :  { %18567 = vmatpush3.msra.mxu0 %v22183_v17  ;;  %18568 = vmatprep.mubr.msk.f32.mxu0 %vm19513_vm0, %v23021_v60 }
0x322e   :  { %17471 = vmatmul.mubr.msk.f32.vlgmr.msra.gmra.mxu1 %vm311_vm2, %v22259_v37  ;;  %18569 = vmatmul.mubr.msk.f32.vlgmr.msra.gmra.mxu0 %vm311_vm2, %v22259_v37 }
0x322f   :  { %14169 = vmatprep.subr.mxu1 %v22011_v47  ;;  %18571 = vmatprep.subr.mxu0 %v23021_v60 }
0x3230   :  { %14170 = vmatpush1.msra.mxu1 %v22022_v51  ;;  %18572 = vmatpush3.msra.mxu0 %v22047_v1 }
0x3231   :  { %14171 = vmatprep.subr.mxu1 %v22024_v34  ;;  %18573 = vmatprep.subr.mxu0 %v23021_v60 }
0x3232   :  { %14172 = vmatpush1.msra.mxu1 %v22028_v3  ;;  %18574 = vmatpush3.msra.mxu0 %v22053_v0 }
0x3233   :  { %14173 = vmatprep.subr.mxu1 %v22031_v50  ;;  %18575 = vmatprep.subr.mxu0 %v23021_v60 }
0x3234   :  { %14174 = vmatpush1.msra.mxu1 %v22034_v57  ;;  %18576 = vmatpush3.msra.mxu0 %v22060_v46 }
0x3235   :  { %14175 = vmatprep.subr.mxu1 %v22037_v29  ;;  %18577 = vmatprep.subr.mxu0 %v23021_v60 }
0x3236   :  { %14176 = vmatpush1.msra.mxu1 %v22041_v55  ;;  %14209 = vmatprep.mubr.f32.mxu1 %v23021_v60 }
0x3237   :  { %18578 = vmatpush3.msra.mxu0 %v22064_v35  ;;  %18579 = vmatprep.mubr.msk.f32.mxu0 %vm19513_vm0, %v23021_v60 }
0x3238   :  { %17475 = vmatmul.mubr.msk.f32.vlgmr.msra.gmra.mxu1 %vm311_vm2, %v22267_v49  ;;  %18580 = vmatmul.mubr.msk.f32.vlgmr.msra.gmra.mxu0 %vm311_vm2, %v22267_v49 }
0x3239   :  { %14360 = vmatprep.subr.mxu1 %v22101_v26  ;;  %18582 = vmatprep.subr.mxu0 %v23021_v60 }
0x323a   :  { %14361 = vmatpush1.msra.mxu1 %v22103_v48  ;;  %18583 = vmatpush3.msra.mxu0 %v22105_v59 }
0x323b   :  { %14362 = vmatprep.subr.mxu1 %v22109_v25  ;;  %18584 = vmatprep.subr.mxu0 %v23021_v60 }
0x323c   :  { %14363 = vmatpush1.msra.mxu1 %v22111_v22  ;;  %18585 = vmatpush3.msra.mxu0 %v22113_v30 }
0x323d   :  { %14364 = vmatprep.subr.mxu1 %v22117_v11  ;;  %18586 = vmatprep.subr.mxu0 %v23021_v60 }
0x323e   :  { %14365 = vmatpush1.msra.mxu1 %v22123_v19  ;;  %18587 = vmatpush3.msra.mxu0 %v22119_v43 }
0x323f   :  { %14366 = vmatprep.subr.mxu1 %v22127_v56  ;;  %18588 = vmatprep.subr.mxu0 %v23021_v60 }
0x3240   :  { %14367 = vmatpush1.msra.mxu1 %v22133_v28  ;;  %18589 = vmatpush3.msra.mxu0 %v22129_v39 }
0x3241   :  { %14400 = vmatprep.mubr.f32.mxu1 %v23021_v60  ;;  %18590 = vmatprep.mubr.msk.f32.mxu0 %vm19513_vm0, %v23021_v60 }
0x3242   :  { %14504 = vmatprep.subr.mxu1 %v22137_v10  ;;  %18593 = vmatprep.subr.mxu0 %v23021_v60 }
0x32e5   :  { %v13975_v58 = vpop.f32.mrf.mxu0  ;;  %v13904_v40 = vpop.f32.mrf.mxu1 }
0x32e6   :  { %v13905_v13 = vadd.f32 %v13904_v40, %v22241_v24 }
0x32e7   :  { %v18559_v31 = vpop.f32.mrf.mxu0  ;;  %v13906_v62 = vpop.f32.mrf.mxu1 }
0x32e8   :  { %v13907_v7 = vadd.f32 %v13906_v62, %v22244_v16 }
0x32ee   :  { %v14048_v45 = vpop.f32.mrf.mxu1  ;;  %v14119_v36 = vpop.f32.mrf.mxu0 }
0x32ef   :  { %v14123_v52 = vadd.f32 %v14048_v45, %v13905_v13  ;;  %v14137_v45 = vadd.f32 %v14119_v36, %v22251_v33 }
0x32f0   :  { %v14050_v32 = vpop.f32.mrf.mxu1  ;;  %v18570_v53 = vpop.f32.mrf.mxu0 }
0x32f1   :  { %v17473_v14 = vmul.f32 -1.442695, %v14123_v52  ;;  %v14130_v21 = vadd.f32 %v14050_v32, %v13907_v7  ;;  %v13976_v52 = vadd.f32 %v13975_v58, %v22254_v18 }
0x32f3   :  { %19130 = vpow2.f32 %v17473_v14  ;;  %v17474_v5 = vmul.f32 -1.442695, %v14130_v21 }
0x32f5   :  { %19132 = vpow2.f32 %v17474_v5 }
0x32f8   :  { %v14211_v12 = vpop.f32.mrf.mxu1  ;;  %v14282_v2 = vpop.f32.mrf.mxu0 }
0x32f9   :  { %v14308_v20 = vadd.f32 %v14282_v2, %v22096_v63  ;;  %14287 = vrot.lane.b32.xlu1 %v14211_v12, %s19514_s0 }
0x32fa   :  { %v18581_v54 = vpop.f32.mrf.mxu0  ;;  %v14213_v38 = vpop.f32.mrf.mxu1 }
0x32fb   :  { %14310 = vrot.lane.b32.xlu0 %v14308_v20, %s19514_s0 }
0x32ff   :  { %14298 = vrot.lane.b32.xlu0 %v14213_v38, %s19516_s25 }
0x3300   :  { %v19131_v31 = vpop.eup %19130 }
0x3301   :  { %v14127_v40 = vadd.f32 1.0, %v19131_v31 }
0x3302   :  { %v19133_v62 = vpop.eup %19132 }
0x3303   :  { %19134 = vrcp.f32 %v14127_v40  ;;  %14326 = vrot.lane.b32.xlu0 %v22267_v49, %s19516_s25  ;;  %v14134_v13 = vadd.f32 1.0, %v19133_v62 }
0x3305   :  { %19136 = vrcp.f32 %v14134_v13 }
0x3310   :  { %v19135_v7 = vpop.eup %19134 }
0x3311   :  { %v14138_v32 = vmul.f32 %v19135_v7, %v14137_v45  ;;  %v23199_v45 = vld [vmem:[#allocation37_spill] sm:$0xff] }
0x3312   :  { %v19137_v14 = vpop.eup %19136 }
0x3313   :  { %v14139_v53 = vadd.f32 %v14138_v32, %v13976_v52  ;;  %v14141_v21 = vsub.f32 1.0, %v19137_v14  ;;  %v14143_v5 = vmul.f32 %v19137_v14, %v22259_v37 }
0x3315   :  { %19138 = vtanh.f32 %v14139_v53 }
0x3322   :  { %v19139_v12 = vpop.eup %19138 }
0x3323   :  { %v14142_v2 = vmul.f32 %v19139_v12, %v14141_v21 }
0x3325   :  { %v22349_v20 = vadd.f32 %v14143_v5, %v14142_v2 }
0x336b   :  { %v14288_v49 = vpop.permute.xlu1 %14287 }
0x336c   :  { %v14290_v54 = vadd.f32 %v14288_v49, %v22078_v27 }
0x336d   :  { %v14311_v40 = vpop.permute.xlu0 %14310 }
0x336e   :  { %v17477_v38 = vmul.f32 -1.442695, %v14290_v54 }
0x3370   :  { %19140 = vpow2.f32 %v17477_v38 }
0x3371   :  { %v14299_v52 = vpop.permute.xlu0 %14298 }
0x3372   :  { %v14301_v32 = vadd.f32 %v14299_v52, %v22078_v27 }
0x3374   :  { %v17478_v53 = vmul.f32 -1.442695, %v14301_v32 }
0x3375   :  { %v14327_v5 = vpop.permute.xlu0 %14326 }
0x337d   :  { %v19141_v36 = vpop.eup %19140 }
0x337e   :  { %v14294_v31 = vadd.f32 1.0, %v19141_v36 }
0x3380   :  { %19142 = vrcp.f32 %v14294_v31 }
0x338d   :  { %v19143_v58 = vpop.eup %19142 }
0x338e   :  { %v14313_v62 = vmul.f32 %v19143_v58, %v14311_v40 }
0x3390   :  { %14315 = vrot.lane.b32.xlu1 %v14313_v62, %s19514_s0 }
0x3402   :  { %v14316_v13 = vpop.permute.xlu1 %14315 }
0x3403   :  { %v14318_v7 = vadd.f32 %v14316_v13, %v23199_v45 }
0x3405   :  { %19144 = vtanh.f32 %v14318_v7 }
0x3406   :  { %19146 = vpow2.f32 %v17478_v53 }
0x3412   :  { %v19145_v37 = vpop.eup %19144 }
0x3413   :  { %14322 = vrot.lane.b32.xlu1 %v19145_v37, %s19516_s25  ;;  %v19147_v14 = vpop.eup %19146 }
0x3414   :  { %v14305_v21 = vadd.f32 1.0, %v19147_v14 }
0x3416   :  { %19148 = vrcp.f32 %v14305_v21 }
0x3423   :  { %v19149_v12 = vpop.eup %19148 }
0x3424   :  { %v14320_v2 = vsub.f32 1.0, %v19149_v12  ;;  %v14329_v54 = vmul.f32 %v19149_v12, %v14327_v5 }
0x3485   :  { %v14323_v49 = vpop.permute.xlu1 %14322 }
0x3486   :  { %v14325_v38 = vmul.f32 %v14323_v49, %v14320_v2 }
0x3488   :  { %v22356_v36 = vadd.f32 %v14329_v54, %v14325_v38 }
0x348a   :  { %14332 = vrot.lane.b32.xlu1 %v22356_v36, %s19515_s24 }
0x34fc   :  { %v14333_v31 = vpop.permute.xlu1 %14332 }
0x34fd   :  { %17479 = vmatmul.mubr.msk.f32.vlgmr.msra.gmra.mxu1 %vm311_vm2, %v14333_v31  ;;  %18591 = vmatmul.mubr.msk.f32.vlgmr.msra.gmra.mxu0 %vm311_vm2, %v14333_v31 }
0x34fe   :  { %14505 = vmatpush1.msra.mxu1 %v22147_v6  ;;  %18594 = vmatpush3.msra.mxu0 %v22149_v4 }
0x34ff   :  { %14506 = vmatprep.subr.mxu1 %v22153_v9  ;;  %18595 = vmatprep.subr.mxu0 %v23021_v60 }
0x3500   :  { %14507 = vmatpush1.msra.mxu1 %v22159_v8  ;;  %18596 = vmatpush3.msra.mxu0 %v22161_v61 }
0x3501   :  { %14508 = vmatprep.subr.mxu1 %v22165_v44  ;;  %18597 = vmatprep.subr.mxu0 %v23021_v60 }
0x3502   :  { %14509 = vmatpush1.msra.mxu1 %v22169_v23  ;;  %18598 = vmatpush3.msra.mxu0 %v22171_v42 }
0x3503   :  { %14510 = vmatprep.subr.mxu1 %v22175_v15  ;;  %18599 = vmatprep.subr.mxu0 %v23021_v60 }
0x3504   :  { %14511 = vmatpush1.msra.mxu1 %v22179_v41  ;;  %14544 = vmatprep.mubr.f32.mxu1 %v23021_v60 }
0x3505   :  { %18600 = vmatpush3.msra.mxu0 %v22183_v17  ;;  %18601 = vmatprep.mubr.msk.f32.mxu0 %vm19513_vm0, %v23021_v60 }
0x3506   :  { %17481 = vmatmul.mubr.msk.f32.vlgmr.msra.gmra.mxu1 %vm311_vm2, %v22349_v20  ;;  %18602 = vmatmul.mubr.msk.f32.vlgmr.msra.gmra.mxu0 %vm311_vm2, %v22349_v20 }
0x3507   :  { %14667 = vmatprep.subr.mxu1 %v22011_v47  ;;  %18604 = vmatprep.subr.mxu0 %v23021_v60 }
0x3508   :  { %14668 = vmatpush1.msra.mxu1 %v22022_v51  ;;  %18605 = vmatpush3.msra.mxu0 %v22047_v1 }
0x3509   :  { %14669 = vmatprep.subr.mxu1 %v22024_v34  ;;  %18606 = vmatprep.subr.mxu0 %v23021_v60 }
0x350a   :  { %14670 = vmatpush1.msra.mxu1 %v22028_v3  ;;  %18607 = vmatpush3.msra.mxu0 %v22053_v0 }
0x350b   :  { %14671 = vmatprep.subr.mxu1 %v22031_v50  ;;  %18608 = vmatprep.subr.mxu0 %v23021_v60 }
0x350c   :  { %14672 = vmatpush1.msra.mxu1 %v22034_v57  ;;  %18609 = vmatpush3.msra.mxu0 %v22060_v46 }
0x350d   :  { %14673 = vmatprep.subr.mxu1 %v22037_v29  ;;  %18610 = vmatprep.subr.mxu0 %v23021_v60 }
0x350e   :  { %14674 = vmatpush1.msra.mxu1 %v22041_v55  ;;  %14707 = vmatprep.mubr.f32.mxu1 %v23021_v60 }
0x350f   :  { %18611 = vmatpush3.msra.mxu0 %v22064_v35  ;;  %18612 = vmatprep.mubr.msk.f32.mxu0 %vm19513_vm0, %v23021_v60 }
0x3510   :  { %17485 = vmatmul.mubr.msk.f32.vlgmr.msra.gmra.mxu1 %vm311_vm2, %v14333_v31  ;;  %18613 = vmatmul.mubr.msk.f32.vlgmr.msra.gmra.mxu0 %vm311_vm2, %v14333_v31 }
0x3511   :  { %14858 = vmatprep.subr.mxu1 %v22101_v26  ;;  %18615 = vmatprep.subr.mxu0 %v23021_v60 }
0x3512   :  { %14859 = vmatpush1.msra.mxu1 %v22103_v48  ;;  %18616 = vmatpush3.msra.mxu0 %v22105_v59 }
0x3513   :  { %14860 = vmatprep.subr.mxu1 %v22109_v25  ;;  %18617 = vmatprep.subr.mxu0 %v23021_v60 }
0x3514   :  { %14861 = vmatpush1.msra.mxu1 %v22111_v22  ;;  %18618 = vmatpush3.msra.mxu0 %v22113_v30 }
0x3515   :  { %14862 = vmatprep.subr.mxu1 %v22117_v11  ;;  %18619 = vmatprep.subr.mxu0 %v23021_v60 }
0x3516   :  { %14863 = vmatpush1.msra.mxu1 %v22123_v19  ;;  %18620 = vmatpush3.msra.mxu0 %v22119_v43 }
0x3517   :  { %14864 = vmatprep.subr.mxu1 %v22127_v56  ;;  %18621 = vmatprep.subr.mxu0 %v23021_v60 }
0x3518   :  { %14865 = vmatpush1.msra.mxu1 %v22133_v28  ;;  %18622 = vmatpush3.msra.mxu0 %v22129_v39 }
0x3519   :  { %14898 = vmatprep.mubr.f32.mxu1 %v23021_v60  ;;  %18623 = vmatprep.mubr.msk.f32.mxu0 %vm19513_vm0, %v23021_v60 }
0x351a   :  { %15002 = vmatprep.subr.mxu1 %v22137_v10  ;;  %18626 = vmatprep.subr.mxu0 %v23021_v60 }
0x35bd   :  { %v14473_v47 = vpop.f32.mrf.mxu0  ;;  %v14402_v34 = vpop.f32.mrf.mxu1 }
0x35be   :  { %v14403_v50 = vadd.f32 %v14402_v34, %v22241_v24  ;;  %v14474_v12 = vadd.f32 %v14473_v47, %v22254_v18 }
0x35bf   :  { %v18592_v51 = vpop.f32.mrf.mxu0  ;;  %v14404_v3 = vpop.f32.mrf.mxu1 }
0x35c0   :  { %v14405_v55 = vadd.f32 %v14404_v3, %v22244_v16 }
0x35c6   :  { %v14546_v57 = vpop.f32.mrf.mxu1  ;;  %v14617_v29 = vpop.f32.mrf.mxu0 }
0x35c7   :  { %v14621_v1 = vadd.f32 %v14546_v57, %v14403_v50  ;;  %v14635_v21 = vadd.f32 %v14617_v29, %v22251_v33 }
0x35c8   :  { %v14548_v0 = vpop.f32.mrf.mxu1  ;;  %v18603_v46 = vpop.f32.mrf.mxu0 }
0x35c9   :  { %v17483_v35 = vmul.f32 -1.442695, %v14621_v1  ;;  %v14628_v27 = vadd.f32 %v14548_v0, %v14405_v55 }
0x35cb   :  { %19150 = vpow2.f32 %v17483_v35  ;;  %v17484_v62 = vmul.f32 -1.442695, %v14628_v27 }
0x35cd   :  { %19152 = vpow2.f32 %v17484_v62 }
0x35d0   :  { %v14709_v58 = vpop.f32.mrf.mxu1  ;;  %v14780_v40 = vpop.f32.mrf.mxu0 }
0x35d1   :  { %v14806_v13 = vadd.f32 %v14780_v40, %v22096_v63  ;;  %14785 = vrot.lane.b32.xlu0 %v14709_v58, %s19515_s24 }
0x35d2   :  { %v18614_v7 = vpop.f32.mrf.mxu0  ;;  %v14711_v37 = vpop.f32.mrf.mxu1 }
0x35d3   :  { %14808 = vrot.lane.b32.xlu1 %v14806_v13, %s19515_s24 }
0x35d7   :  { %14796 = vrot.lane.b32.xlu1 %v14711_v37, %s19514_s0 }
0x35d8   :  { %v19151_v52 = vpop.eup %19150 }
0x35d9   :  { %v14625_v32 = vadd.f32 1.0, %v19151_v52 }
0x35da   :  { %v19153_v53 = vpop.eup %19152 }
0x35db   :  { %19154 = vrcp.f32 %v14625_v32  ;;  %14824 = vrot.lane.b32.xlu1 %v22356_v36, %s19516_s25  ;;  %v14632_v14 = vadd.f32 1.0, %v19153_v53 }
0x35dd   :  { %19156 = vrcp.f32 %v14632_v14 }
0x35e8   :  { %v19155_v63 = vpop.eup %19154 }
0x35e9   :  { %v14636_v2 = vmul.f32 %v19155_v63, %v14635_v21 }
0x35ea   :  { %v19157_v49 = vpop.eup %19156 }
0x35eb   :  { %v14637_v5 = vadd.f32 %v14636_v2, %v14474_v12  ;;  %v14639_v54 = vsub.f32 1.0, %v19157_v49  ;;  %v14641_v51 = vmul.f32 %v19157_v49, %v22349_v20 }
0x35ed   :  { %19158 = vtanh.f32 %v14637_v5  ;;  %v23200_v5 = vld [vmem:[#allocation29_spill] sm:$0xff] }
0x35fa   :  { %v19159_v38 = vpop.eup %19158 }
0x35fb   :  { %v14640_v31 = vmul.f32 %v19159_v38, %v14639_v54 }
0x35fd   :  { %v22436_v34 = vadd.f32 %v14641_v51, %v14640_v31 }
0x3643   :  { %v14786_v36 = vpop.permute.xlu0 %14785 }
0x3644   :  { %v14788_v3 = vadd.f32 %v14786_v36, %v23199_v45 }
0x3645   :  { %v14809_v55 = vpop.permute.xlu1 %14808 }
0x3646   :  { %v17487_v50 = vmul.f32 -1.442695, %v14788_v3 }
0x3648   :  { %19160 = vpow2.f32 %v17487_v50 }
0x3649   :  { %v14797_v35 = vpop.permute.xlu1 %14796 }
0x364a   :  { %v14799_v27 = vadd.f32 %v14797_v35, %v23199_v45 }
0x364c   :  { %v17488_v58 = vmul.f32 -1.442695, %v14799_v27 }
0x364d   :  { %v14825_v37 = vpop.permute.xlu1 %14824 }
0x3655   :  { %v19161_v57 = vpop.eup %19160 }
0x3656   :  { %v14792_v29 = vadd.f32 1.0, %v19161_v57 }
0x3658   :  { %19162 = vrcp.f32 %v14792_v29 }
0x3665   :  { %v19163_v47 = vpop.eup %19162 }
0x3666   :  { %v14811_v1 = vmul.f32 %v19163_v47, %v14809_v55 }
0x3668   :  { %14813 = vrot.lane.b32.xlu0 %v14811_v1, %s19514_s0 }
0x36da   :  { %v14814_v0 = vpop.permute.xlu0 %14813 }
0x36db   :  { %v14816_v46 = vadd.f32 %v14814_v0, %v23199_v45  ;;  %v22508_v45 = vld [vmem:[#allocation2 + $0x328] sm:$0xff] }
0x36dd   :  { %19164 = vtanh.f32 %v14816_v46 }
0x36de   :  { %19166 = vpow2.f32 %v17488_v58 }
0x36ea   :  { %v19165_v20 = vpop.eup %19164 }
0x36eb   :  { %14820 = vrot.lane.b32.xlu0 %v19165_v20, %s19516_s25  ;;  %v19167_v40 = vpop.eup %19166  ;;  %v22544_v20 = vld [vmem:[#allocation2 + $0x378] ss:$0 sm:$0xff] }
0x36ec   :  { %v14803_v62 = vadd.f32 1.0, %v19167_v40 }
0x36ee   :  { %19168 = vrcp.f32 %v14803_v62 }
0x36fb   :  { %v19169_v13 = vpop.eup %19168 }
0x36fc   :  { %v14818_v7 = vsub.f32 1.0, %v19169_v13  ;;  %v14827_v32 = vmul.f32 %v19169_v13, %v14825_v37 }
0x375d   :  { %v14821_v52 = vpop.permute.xlu0 %14820 }
0x375e   :  { %v14823_v53 = vmul.f32 %v14821_v52, %v14818_v7 }
0x3760   :  { %v22443_v14 = vadd.f32 %v14827_v32, %v14823_v53 }
0x3762   :  { %14830 = vrot.lane.b32.xlu0 %v22443_v14, %s19514_s0 }
0x37d4   :  { %v14831_v21 = vpop.permute.xlu0 %14830 }
0x37d5   :  { %17489 = vmatmul.mubr.msk.f32.vlgmr.msra.gmra.mxu1 %vm311_vm2, %v14831_v21  ;;  %18624 = vmatmul.mubr.msk.f32.vlgmr.msra.gmra.mxu0 %vm311_vm2, %v14831_v21 }
0x37d6   :  { %15003 = vmatpush1.msra.mxu1 %v22147_v6  ;;  %18627 = vmatpush3.msra.mxu0 %v22149_v4  ;;  %v22470_v6 = vld [vmem:[#allocation2 + $0x368] sm:$0xff]  ;;  %v22474_v4 = vld [vmem:[#allocation2 + $0x360] sm:$0xff] }
0x37d7   :  { %15004 = vmatprep.subr.mxu1 %v22153_v9  ;;  %18628 = vmatprep.subr.mxu0 %v23021_v60  ;;  %v22477_v9 = vld [vmem:[#allocation2 + $0x370] sm:$0xff] }
0x37d8   :  { %15005 = vmatpush1.msra.mxu1 %v22159_v8  ;;  %18629 = vmatpush3.msra.mxu0 %v22161_v61  ;;  %v22480_v8 = vld [vmem:[#allocation2 + $0x350] sm:$0xff]  ;;  %v22484_v61 = vld [vmem:[#allocation2 + $0x348] sm:$0xff] }
0x37d9   :  { %15006 = vmatprep.subr.mxu1 %v22165_v44  ;;  %18630 = vmatprep.subr.mxu0 %v23021_v60  ;;  %v22487_v44 = vld [vmem:[#allocation2 + $0x358] sm:$0xff] }
0x37da   :  { %15007 = vmatpush1.msra.mxu1 %v22169_v23  ;;  %18631 = vmatpush3.msra.mxu0 %v22171_v42  ;;  %v22490_v23 = vld [vmem:[#allocation2 + $0x338] sm:$0xff]  ;;  %v22494_v42 = vld [vmem:[#allocation2 + $0x330] sm:$0xff] }
0x37db   :  { %15008 = vmatprep.subr.mxu1 %v22175_v15  ;;  %18632 = vmatprep.subr.mxu0 %v23021_v60  ;;  %v22497_v15 = vld [vmem:[#allocation2 + $0x340] sm:$0xff] }
0x37dc   :  { %15009 = vmatpush1.msra.mxu1 %v22179_v41  ;;  %15042 = vmatprep.mubr.f32.mxu1 %v23021_v60  ;;  %v22500_v41 = vld [vmem:[#allocation2 + $0x320] sm:$0xff] }
0x37dd   :  { %18633 = vmatpush3.msra.mxu0 %v22183_v17  ;;  %18634 = vmatprep.mubr.msk.f32.mxu0 %vm19513_vm0, %v23021_v60  ;;  %v22504_v17 = vld [vmem:[#allocation2 + $0x318] sm:$0xff] }
0x37de   :  { %17491 = vmatmul.mubr.msk.f32.vlgmr.msra.gmra.mxu1 %vm311_vm2, %v22436_v34  ;;  %18635 = vmatmul.mubr.msk.f32.vlgmr.msra.gmra.mxu0 %vm311_vm2, %v22436_v34 }
0x37df   :  { %15165 = vmatprep.subr.mxu1 %v22470_v6  ;;  %18637 = vmatprep.subr.mxu0 %v23021_v60 }
0x37e0   :  { %15166 = vmatpush1.msra.mxu1 %v22474_v4  ;;  %18638 = vmatpush3.msra.mxu0 %v22477_v9 }
0x37e1   :  { %15167 = vmatprep.subr.mxu1 %v22480_v8  ;;  %18639 = vmatprep.subr.mxu0 %v23021_v60 }
0x37e2   :  { %15168 = vmatpush1.msra.mxu1 %v22484_v61  ;;  %18640 = vmatpush3.msra.mxu0 %v22487_v44 }
0x37e3   :  { %15169 = vmatprep.subr.mxu1 %v22490_v23  ;;  %18641 = vmatprep.subr.mxu0 %v23021_v60 }
0x37e4   :  { %15170 = vmatpush1.msra.mxu1 %v22494_v42  ;;  %18642 = vmatpush3.msra.mxu0 %v22497_v15 }
0x37e5   :  { %15171 = vmatprep.subr.mxu1 %v22500_v41  ;;  %18643 = vmatprep.subr.mxu0 %v23021_v60 }
0x37e6   :  { %15172 = vmatpush1.msra.mxu1 %v22504_v17  ;;  %15205 = vmatprep.mubr.f32.mxu1 %v23021_v60 }
0x37e7   :  { %18644 = vmatpush3.msra.mxu0 %v22508_v45  ;;  %18645 = vmatprep.mubr.msk.f32.mxu0 %vm19513_vm0, %v23021_v60 }
0x37e8   :  { %17495 = vmatmul.mubr.msk.f32.vlgmr.msra.gmra.mxu1 %vm311_vm2, %v14831_v21  ;;  %18646 = vmatmul.mubr.msk.f32.vlgmr.msra.gmra.mxu0 %vm311_vm2, %v14831_v21 }
0x37e9   :  { %15348 = vmatprep.subr.mxu1 %v22101_v26  ;;  %18648 = vmatprep.subr.mxu0 %v23021_v60 }
0x37ea   :  { %15349 = vmatpush1.msra.mxu1 %v22103_v48  ;;  %18649 = vmatpush3.msra.mxu0 %v22105_v59 }
0x37eb   :  { %15350 = vmatprep.subr.mxu1 %v22109_v25  ;;  %18650 = vmatprep.subr.mxu0 %v23021_v60 }
0x37ec   :  { %15351 = vmatpush1.msra.mxu1 %v22111_v22  ;;  %18651 = vmatpush3.msra.mxu0 %v22113_v30 }
0x37ed   :  { %15352 = vmatprep.subr.mxu1 %v22117_v11  ;;  %18652 = vmatprep.subr.mxu0 %v23021_v60 }
0x37ee   :  { %15353 = vmatpush1.msra.mxu1 %v22123_v19  ;;  %18653 = vmatpush3.msra.mxu0 %v22119_v43 }
0x37ef   :  { %15354 = vmatprep.subr.mxu1 %v22127_v56  ;;  %18654 = vmatprep.subr.mxu0 %v23021_v60 }
0x37f0   :  { %15355 = vmatpush1.msra.mxu1 %v22133_v28  ;;  %18655 = vmatpush3.msra.mxu0 %v22129_v39 }
0x37f1   :  { %15388 = vmatprep.mubr.f32.mxu1 %v23021_v60  ;;  %18656 = vmatprep.mubr.msk.f32.mxu0 %vm19513_vm0, %v23021_v60 }
0x37f2   :  { %15492 = vmatprep.subr.mxu1 %v22137_v10  ;;  %18659 = vmatprep.subr.mxu0 %v23021_v60 }
0x3895   :  { %v14971_v26 = vpop.f32.mrf.mxu0  ;;  %v14900_v59 = vpop.f32.mrf.mxu1 }
0x3896   :  { %v14901_v22 = vadd.f32 %v14900_v59, %v22241_v24  ;;  %v14972_v1 = vadd.f32 %v14971_v26, %v22254_v18 }
0x3897   :  { %v18625_v48 = vpop.f32.mrf.mxu0  ;;  %v14902_v25 = vpop.f32.mrf.mxu1 }
0x3898   :  { %v14903_v43 = vadd.f32 %v14902_v25, %v22244_v16 }
0x389e   :  { %v15044_v30 = vpop.f32.mrf.mxu1  ;;  %v15115_v11 = vpop.f32.mrf.mxu0 }
0x389f   :  { %v15119_v19 = vadd.f32 %v15044_v30, %v14901_v22  ;;  %v15133_v47 = vadd.f32 %v15115_v11, %v22251_v33 }
0x38a0   :  { %v15046_v56 = vpop.f32.mrf.mxu1  ;;  %v18636_v39 = vpop.f32.mrf.mxu0 }
0x38a1   :  { %v17493_v28 = vmul.f32 -1.442695, %v15119_v19  ;;  %v15126_v63 = vadd.f32 %v15046_v56, %v14903_v43  ;;  %v22561_v39 = vld [vmem:[#allocation2 + $0x438] sm:$0xff] }
0x38a3   :  { %19170 = vpow2.f32 %v17493_v28  ;;  %v17494_v12 = vmul.f32 -1.442695, %v15126_v63  ;;  %v22564_v28 = vld [vmem:[#allocation2 + $0x448] sm:$0xff] }
0x38a4   :  { %v22567_v63 = vld [vmem:[#allocation2 + $0x428] sm:$0xff] }
0x38a5   :  { %19172 = vpow2.f32 %v17494_v12  ;;  %v22571_v12 = vld [vmem:[#allocation2 + $0x420] sm:$0xff] }
0x38a8   :  { %v15207_v10 = vpop.f32.mrf.mxu1  ;;  %v15278_v2 = vpop.f32.mrf.mxu0 }
0x38a9   :  { %v15282_v49 = vadd.f32 %v15207_v10, %v23200_v5  ;;  %v15300_v35 = vadd.f32 %v22544_v20, %v15278_v2  ;;  %v22574_v10 = vld [vmem:[#allocation2 + $0x430] sm:$0xff] }
0x38aa   :  { %v15209_v54 = vpop.f32.mrf.mxu1  ;;  %v18647_v38 = vpop.f32.mrf.mxu0  ;;  %v22577_v2 = vld [vmem:[#allocation2 + $0x410] sm:$0xff] }
0x38ab   :  { %v17497_v31 = vmul.f32 -1.442695, %v15282_v49  ;;  %15290 = vrot.lane.b32.xlu0 %v15209_v54, %s19515_s24  ;;  %v22581_v49 = vld [vmem:[#allocation2 + $0x408] sm:$0xff]  ;;  %v22584_v54 = vld [vmem:[#allocation2 + $0x418] sm:$0xff] }
0x38ac   :  { %v22587_v38 = vld [vmem:[#allocation2 + $0x3f8] sm:$0xff] }
0x38ad   :  { %19174 = vpow2.f32 %v17497_v31  ;;  %v22591_v31 = vld [vmem:[#allocation2 + $0x3f0] sm:$0xff] }
0x38af   :  { %15314 = vrot.lane.b32.xlu0 %v22443_v14, %s19516_s25 }
0x38b0   :  { %v19171_v51 = vpop.eup %19170 }
0x38b1   :  { %v15123_v36 = vadd.f32 1.0, %v19171_v51  ;;  %v22595_v51 = vld [vmem:[#allocation2 + $0x400] sm:$0xff] }
0x38b2   :  { %v19173_v3 = vpop.eup %19172 }
0x38b3   :  { %19176 = vrcp.f32 %v15123_v36  ;;  %v15130_v29 = vadd.f32 1.0, %v19173_v3  ;;  %v22627_v36 = vld [vmem:[#allocation2 + $0x3e0] sm:$0xff]  ;;  %v22631_v3 = vld [vmem:[#allocation2 + $0x3d8] sm:$0xff] }
0x38ba   :  { %v19175_v50 = vpop.eup %19174 }
0x38bb   :  { %v15286_v57 = vadd.f32 1.0, %v19175_v50  ;;  %v22634_v50 = vld [vmem:[#allocation2 + $0x3e8] sm:$0xff] }
0x38bd   :  { %19178 = vrcp.f32 %v15286_v57  ;;  %v22637_v57 = vld [vmem:[#allocation2 + $0x3c8] sm:$0xff] }
0x38be   :  { %19180 = vrcp.f32 %v15130_v29  ;;  %v22641_v29 = vld [vmem:[#allocation2 + $0x3c0] sm:$0xff] }
0x38c0   :  { %v19177_v55 = vpop.eup %19176 }
0x38c1   :  { %v15134_v0 = vmul.f32 %v19177_v55, %v15133_v47  ;;  %v22644_v47 = vld [vmem:[#allocation2 + $0x3d0] sm:$0xff] }
0x38c2   :  { %v22647_v55 = vld [vmem:[#allocation2 + $0x3b0] sm:$0xff] }
0x38c3   :  { %v15135_v46 = vadd.f32 %v15134_v0, %v14972_v1  ;;  %v22651_v1 = vld [vmem:[#allocation2 + $0x3a8] sm:$0xff]  ;;  %v22654_v0 = vld [vmem:[#allocation2 + $0x3b8] sm:$0xff] }
0x38c5   :  { %19182 = vtanh.f32 %v15135_v46  ;;  %v22657_v46 = vld [vmem:[#allocation2 + $0x398] sm:$0xff] }
0x38ca   :  { %v19179_v27 = vpop.eup %19178 }
0x38cb   :  { %v15301_v58 = vmul.f32 %v19179_v27, %v15300_v35  ;;  %v19181_v40 = vpop.eup %19180  ;;  %v22661_v35 = vld [vmem:[#allocation2 + $0x390] sm:$0xff]  ;;  %v22664_v27 = vld [vmem:[#allocation2 + $0x3a0] sm:$0xff] }
0x38cc   :  { %v15137_v62 = vsub.f32 1.0, %v19181_v40  ;;  %v15139_v33 = vmul.f32 %v19181_v40, %v22436_v34 }
0x38cd   :  { %15303 = vrot.lane.b32.xlu1 %v15301_v58, %s19514_s0  ;;  %v22670_v58 = vld [vmem:[#allocation2 + $0x440] sm:$0xff] }
0x38d2   :  { %v19183_v13 = vpop.eup %19182 }
0x38d3   :  { %v15138_v7 = vmul.f32 %v19183_v13, %v15137_v62 }
0x38d5   :  { %v22549_v37 = vadd.f32 %v15139_v33, %v15138_v7 }
0x391d   :  { %v15291_v14 = vpop.permute.xlu0 %15290 }
0x391e   :  { %v15293_v21 = vadd.f32 %v15291_v14, %v23200_v5 }
0x3920   :  { %v17498_v26 = vmul.f32 -1.442695, %v15293_v21 }
0x3921   :  { %v15315_v34 = vpop.permute.xlu0 %15314 }
0x393f   :  { %v15304_v52 = vpop.permute.xlu1 %15303 }
0x3940   :  { %v15306_v32 = vadd.f32 %v15304_v52, %v23200_v5 }
0x3942   :  { %19184 = vtanh.f32 %v15306_v32 }
0x3943   :  { %19186 = vpow2.f32 %v17498_v26 }
0x394f   :  { %v19185_v53 = vpop.eup %19184 }
0x3950   :  { %15310 = vrot.lane.b32.xlu1 %v19185_v53, %s19516_s25  ;;  %v19187_v48 = vpop.eup %19186 }
0x3951   :  { %v15297_v59 = vadd.f32 1.0, %v19187_v48 }
0x3953   :  { %19188 = vrcp.f32 %v15297_v59 }
0x3960   :  { %v19189_v25 = vpop.eup %19188 }
0x3961   :  { %v15308_v22 = vsub.f32 1.0, %v19189_v25  ;;  %v15317_v11 = vmul.f32 %v19189_v25, %v15315_v34 }
0x39c2   :  { %v15311_v30 = vpop.permute.xlu1 %15310 }
0x39c3   :  { %v15313_v43 = vmul.f32 %v15311_v30, %v15308_v22 }
0x39c5   :  { %v15318_v19 = vadd.f32 %v15317_v11, %v15313_v43 }
0x39c7   :  { %15320 = vrot.lane.b32.xlu1 %v15318_v19, %s19516_s25 }
0x3a39   :  { %v22555_v56 = vpop.permute.xlu1 %15320 }
0x3a3a   :  { %17499 = vmatmul.mubr.msk.f32.vlgmr.msra.gmra.mxu1 %vm311_vm2, %v22555_v56  ;;  %18657 = vmatmul.mubr.msk.f32.vlgmr.msra.gmra.mxu0 %vm311_vm2, %v22555_v56 }
0x3a3b   :  { %15493 = vmatpush1.msra.mxu1 %v22561_v39  ;;  %18660 = vmatpush3.msra.mxu0 %v22564_v28 }
0x3a3c   :  { %15494 = vmatprep.subr.mxu1 %v22567_v63  ;;  %18661 = vmatprep.subr.mxu0 %v23021_v60 }
0x3a3d   :  { %15495 = vmatpush1.msra.mxu1 %v22571_v12  ;;  %18662 = vmatpush3.msra.mxu0 %v22574_v10 }
0x3a3e   :  { %15496 = vmatprep.subr.mxu1 %v22577_v2  ;;  %18663 = vmatprep.subr.mxu0 %v23021_v60 }
0x3a3f   :  { %15497 = vmatpush1.msra.mxu1 %v22581_v49  ;;  %18664 = vmatpush3.msra.mxu0 %v22584_v54 }
0x3a40   :  { %15498 = vmatprep.subr.mxu1 %v22587_v38  ;;  %18665 = vmatprep.subr.mxu0 %v23021_v60 }
0x3a41   :  { %15499 = vmatpush1.msra.mxu1 %v22591_v31  ;;  %15532 = vmatprep.mubr.f32.mxu1 %v23021_v60 }
0x3a42   :  { %18666 = vmatpush3.msra.mxu0 %v22595_v51  ;;  %18667 = vmatprep.mubr.msk.f32.mxu0 %vm19513_vm0, %v23021_v60 }
0x3a43   :  { %17501 = vmatmul.mubr.msk.f32.vlgmr.msra.gmra.mxu1 %vm311_vm2, %v22549_v37  ;;  %18668 = vmatmul.mubr.msk.f32.vlgmr.msra.gmra.mxu0 %vm311_vm2, %v22549_v37 }
0x3a44   :  { %15655 = vmatprep.subr.mxu1 %v22470_v6  ;;  %18670 = vmatprep.subr.mxu0 %v23021_v60 }
0x3a45   :  { %15656 = vmatpush1.msra.mxu1 %v22474_v4  ;;  %18671 = vmatpush3.msra.mxu0 %v22477_v9 }
0x3a46   :  { %15657 = vmatprep.subr.mxu1 %v22480_v8  ;;  %18672 = vmatprep.subr.mxu0 %v23021_v60 }
0x3a47   :  { %15658 = vmatpush1.msra.mxu1 %v22484_v61  ;;  %18673 = vmatpush3.msra.mxu0 %v22487_v44 }
0x3a48   :  { %15659 = vmatprep.subr.mxu1 %v22490_v23  ;;  %18674 = vmatprep.subr.mxu0 %v23021_v60 }
0x3a49   :  { %15660 = vmatpush1.msra.mxu1 %v22494_v42  ;;  %18675 = vmatpush3.msra.mxu0 %v22497_v15 }
0x3a4a   :  { %15661 = vmatprep.subr.mxu1 %v22500_v41  ;;  %18676 = vmatprep.subr.mxu0 %v23021_v60 }
0x3a4b   :  { %15662 = vmatpush1.msra.mxu1 %v22504_v17  ;;  %15695 = vmatprep.mubr.f32.mxu1 %v23021_v60 }
0x3a4c   :  { %18677 = vmatpush3.msra.mxu0 %v22508_v45  ;;  %18678 = vmatprep.mubr.msk.f32.mxu0 %vm19513_vm0, %v23021_v60 }
0x3a4d   :  { %17505 = vmatmul.mubr.msk.f32.vlgmr.msra.gmra.mxu1 %vm311_vm2, %v22555_v56  ;;  %18679 = vmatmul.mubr.msk.f32.vlgmr.msra.gmra.mxu0 %vm311_vm2, %v22555_v56 }
0x3a4e   :  { %15838 = vmatprep.subr.mxu1 %v22627_v36  ;;  %18681 = vmatprep.subr.mxu0 %v23021_v60 }
0x3a4f   :  { %15839 = vmatpush1.msra.mxu1 %v22631_v3  ;;  %18682 = vmatpush3.msra.mxu0 %v22634_v50 }
0x3a50   :  { %15840 = vmatprep.subr.mxu1 %v22637_v57  ;;  %18683 = vmatprep.subr.mxu0 %v23021_v60 }
0x3a51   :  { %15841 = vmatpush1.msra.mxu1 %v22641_v29  ;;  %18684 = vmatpush3.msra.mxu0 %v22644_v47 }
0x3a52   :  { %15842 = vmatprep.subr.mxu1 %v22647_v55  ;;  %18685 = vmatprep.subr.mxu0 %v23021_v60 }
0x3a53   :  { %15843 = vmatpush1.msra.mxu1 %v22651_v1  ;;  %18686 = vmatpush3.msra.mxu0 %v22654_v0 }
0x3a54   :  { %15844 = vmatprep.subr.mxu1 %v22657_v46  ;;  %18687 = vmatprep.subr.mxu0 %v23021_v60 }
0x3a55   :  { %15845 = vmatpush1.msra.mxu1 %v22661_v35  ;;  %18688 = vmatpush3.msra.mxu0 %v22664_v27 }
0x3a56   :  { %15878 = vmatprep.mubr.f32.mxu1 %v23021_v60  ;;  %18689 = vmatprep.mubr.msk.f32.mxu0 %vm19513_vm0, %v23021_v60 }
0x3a57   :  { %15982 = vmatprep.subr.mxu1 %v22670_v58  ;;  %18692 = vmatprep.subr.mxu0 %v23021_v60 }
0x3afa   :  { %v15461_v40 = vpop.f32.mrf.mxu0  ;;  %v15390_v13 = vpop.f32.mrf.mxu1 }
0x3afb   :  { %v15391_v33 = vadd.f32 %v15390_v13, %v22241_v24 }
0x3afc   :  { %v18658_v62 = vpop.f32.mrf.mxu0  ;;  %v15392_v7 = vpop.f32.mrf.mxu1 }
0x3afd   :  { %v15393_v53 = vadd.f32 %v15392_v7, %v22244_v16  ;;  %v22679_v7 = vld [vmem:[#allocation2 + $0x468] ss:$0 sm:$0xff] }
0x3b03   :  { %v15534_v52 = vpop.f32.mrf.mxu1  ;;  %v15605_v32 = vpop.f32.mrf.mxu0 }
0x3b04   :  { %v15609_v14 = vadd.f32 %v15534_v52, %v15391_v33  ;;  %v15623_v33 = vadd.f32 %v22679_v7, %v15605_v32 }
0x3b05   :  { %v15536_v21 = vpop.f32.mrf.mxu1  ;;  %v18669_v26 = vpop.f32.mrf.mxu0 }
0x3b06   :  { %v17503_v48 = vmul.f32 -1.442695, %v15609_v14  ;;  %v15616_v59 = vadd.f32 %v15536_v21, %v15393_v53  ;;  %v15462_v53 = vadd.f32 %v15461_v40, %v22254_v18 }
0x3b08   :  { %19190 = vpow2.f32 %v17503_v48  ;;  %v17504_v34 = vmul.f32 -1.442695, %v15616_v59 }
0x3b0a   :  { %19192 = vpow2.f32 %v17504_v34 }
0x3b0d   :  { %v15697_v25 = vpop.f32.mrf.mxu1  ;;  %v15768_v22 = vpop.f32.mrf.mxu0 }
0x3b0e   :  { %v15790_v30 = vadd.f32 %v22544_v20, %v15768_v22  ;;  %15773 = vrot.lane.b32.xlu0 %v15697_v25, %s19516_s25 }
0x3b0f   :  { %v18680_v11 = vpop.f32.mrf.mxu0 }
0x3b10   :  { %15792 = vrot.lane.b32.xlu1 %v15790_v30, %s19516_s25 }
0x3b15   :  { %v19191_v43 = vpop.eup %19190 }
0x3b16   :  { %v15613_v19 = vadd.f32 1.0, %v19191_v43 }
0x3b17   :  { %v19193_v62 = vpop.eup %19192 }
0x3b18   :  { %19194 = vrcp.f32 %v15613_v19  ;;  %v15620_v13 = vadd.f32 1.0, %v19193_v62 }
0x3b1a   :  { %19196 = vrcp.f32 %v15620_v13 }
0x3b25   :  { %v19195_v52 = vpop.eup %19194 }
0x3b26   :  { %v15624_v14 = vmul.f32 %v19195_v52, %v15623_v33  ;;  %v23201_v52 = vld [vmem:[#allocation42_spill] sm:$0xff] }
0x3b27   :  { %v19197_v26 = vpop.eup %19196 }
0x3b28   :  { %v15625_v21 = vadd.f32 %v15624_v14, %v15462_v53  ;;  %v15627_v48 = vsub.f32 1.0, %v19197_v26  ;;  %v15629_v22 = vmul.f32 %v19197_v26, %v22549_v37  ;;  %v15699_v14 = vpop.f32.mrf.mxu1 }
0x3b2a   :  { %19198 = vtanh.f32 %v15625_v21 }
0x3b37   :  { %v19199_v59 = vpop.eup %19198 }
0x3b38   :  { %v15628_v25 = vmul.f32 %v19199_v59, %v15627_v48 }
0x3b3a   :  { %v22684_v34 = vadd.f32 %v15629_v22, %v15628_v25 }
0x3b80   :  { %v15774_v30 = vpop.permute.xlu0 %15773 }
0x3b81   :  { %v15776_v11 = vadd.f32 %v15774_v30, %v23200_v5  ;;  %v15783_v5 = vadd.f32 %v15699_v14, %v23201_v52 }
0x3b82   :  { %v15793_v62 = vpop.permute.xlu1 %15792 }
0x3b83   :  { %v17507_v43 = vmul.f32 -1.442695, %v15776_v11  ;;  %v17508_v21 = vmul.f32 -1.442695, %v15783_v5 }
0x3b85   :  { %19200 = vpow2.f32 %v17507_v43 }
0x3b92   :  { %v19201_v32 = vpop.eup %19200 }
0x3b93   :  { %v15780_v19 = vadd.f32 1.0, %v19201_v32 }
0x3b95   :  { %19202 = vrcp.f32 %v15780_v19 }
0x3ba2   :  { %v19203_v40 = vpop.eup %19202 }
0x3ba3   :  { %v15795_v13 = vmul.f32 %v19203_v40, %v15793_v62 }
0x3ba5   :  { %15797 = vrot.lane.b32.xlu0 %v15795_v13, %s19514_s0 }
0x3c17   :  { %v15798_v33 = vpop.permute.xlu0 %15797 }
0x3c18   :  { %v15800_v53 = vadd.f32 %v15798_v33, %v23201_v52 }
0x3c1a   :  { %19204 = vtanh.f32 %v15800_v53 }
0x3c1b   :  { %19206 = vpow2.f32 %v17508_v21 }
0x3c27   :  { %v19205_v37 = vpop.eup %19204 }
0x3c28   :  { %15804 = vrot.lane.b32.xlu1 %v19205_v37, %s19516_s25  ;;  %v19207_v26 = vpop.eup %19206 }
0x3c29   :  { %v15787_v48 = vadd.f32 1.0, %v19207_v26 }
0x3c2b   :  { %19208 = vrcp.f32 %v15787_v48 }
0x3c38   :  { %v19209_v59 = vpop.eup %19208 }
0x3c39   :  { %v15802_v25 = vsub.f32 1.0, %v19209_v59  ;;  %v15809_v11 = vmul.f32 %v19209_v59, %v22555_v56 }
0x3c9a   :  { %v15805_v22 = vpop.permute.xlu1 %15804 }
0x3c9b   :  { %v15807_v30 = vmul.f32 %v15805_v22, %v15802_v25 }
0x3c9d   :  { %v22692_v43 = vadd.f32 %v15809_v11, %v15807_v30 }
0x3c9f   :  { %17509 = vmatmul.mubr.msk.f32.vlgmr.msra.gmra.mxu1 %vm311_vm2, %v22692_v43  ;;  %18690 = vmatmul.mubr.msk.f32.vlgmr.msra.gmra.mxu0 %vm311_vm2, %v22692_v43 }
0x3ca0   :  { %15983 = vmatpush1.msra.mxu1 %v22561_v39  ;;  %18693 = vmatpush3.msra.mxu0 %v22564_v28 }
0x3ca1   :  { %15984 = vmatprep.subr.mxu1 %v22567_v63  ;;  %18694 = vmatprep.subr.mxu0 %v23021_v60 }
0x3ca2   :  { %15985 = vmatpush1.msra.mxu1 %v22571_v12  ;;  %18695 = vmatpush3.msra.mxu0 %v22574_v10 }
0x3ca3   :  { %15986 = vmatprep.subr.mxu1 %v22577_v2  ;;  %18696 = vmatprep.subr.mxu0 %v23021_v60 }
0x3ca4   :  { %15987 = vmatpush1.msra.mxu1 %v22581_v49  ;;  %18697 = vmatpush3.msra.mxu0 %v22584_v54 }
0x3ca5   :  { %15988 = vmatprep.subr.mxu1 %v22587_v38  ;;  %18698 = vmatprep.subr.mxu0 %v23021_v60 }
0x3ca6   :  { %15989 = vmatpush1.msra.mxu1 %v22591_v31  ;;  %16022 = vmatprep.mubr.f32.mxu1 %v23021_v60 }
0x3ca7   :  { %18699 = vmatpush3.msra.mxu0 %v22595_v51  ;;  %18700 = vmatprep.mubr.msk.f32.mxu0 %vm19513_vm0, %v23021_v60 }
0x3ca8   :  { %17511 = vmatmul.mubr.msk.f32.vlgmr.msra.gmra.mxu1 %vm311_vm2, %v22684_v34  ;;  %18701 = vmatmul.mubr.msk.f32.vlgmr.msra.gmra.mxu0 %vm311_vm2, %v22684_v34 }
0x3ca9   :  { %16145 = vmatprep.subr.mxu1 %v22470_v6  ;;  %18703 = vmatprep.subr.mxu0 %v23021_v60 }
0x3caa   :  { %16146 = vmatpush1.msra.mxu1 %v22474_v4  ;;  %18704 = vmatpush3.msra.mxu0 %v22477_v9 }
0x3cab   :  { %16147 = vmatprep.subr.mxu1 %v22480_v8  ;;  %18705 = vmatprep.subr.mxu0 %v23021_v60 }
0x3cac   :  { %16148 = vmatpush1.msra.mxu1 %v22484_v61  ;;  %18706 = vmatpush3.msra.mxu0 %v22487_v44 }
0x3cad   :  { %16149 = vmatprep.subr.mxu1 %v22490_v23  ;;  %18707 = vmatprep.subr.mxu0 %v23021_v60 }
0x3cae   :  { %16150 = vmatpush1.msra.mxu1 %v22494_v42  ;;  %18708 = vmatpush3.msra.mxu0 %v22497_v15 }
0x3caf   :  { %16151 = vmatprep.subr.mxu1 %v22500_v41  ;;  %18709 = vmatprep.subr.mxu0 %v23021_v60 }
0x3cb0   :  { %16152 = vmatpush1.msra.mxu1 %v22504_v17  ;;  %16185 = vmatprep.mubr.f32.mxu1 %v23021_v60 }
0x3cb1   :  { %18710 = vmatpush3.msra.mxu0 %v22508_v45  ;;  %18711 = vmatprep.mubr.msk.f32.mxu0 %vm19513_vm0, %v23021_v60 }
0x3cb2   :  { %17515 = vmatmul.mubr.msk.f32.vlgmr.msra.gmra.mxu1 %vm311_vm2, %v22692_v43  ;;  %18712 = vmatmul.mubr.msk.f32.vlgmr.msra.gmra.mxu0 %vm311_vm2, %v22692_v43 }
0x3cb3   :  { %16336 = vmatprep.subr.mxu1 %v22627_v36  ;;  %18714 = vmatprep.subr.mxu0 %v23021_v60 }
0x3cb4   :  { %16337 = vmatpush1.msra.mxu1 %v22631_v3  ;;  %18715 = vmatpush3.msra.mxu0 %v22634_v50 }
0x3cb5   :  { %16338 = vmatprep.subr.mxu1 %v22637_v57  ;;  %18716 = vmatprep.subr.mxu0 %v23021_v60 }
0x3cb6   :  { %16339 = vmatpush1.msra.mxu1 %v22641_v29  ;;  %18717 = vmatpush3.msra.mxu0 %v22644_v47 }
0x3cb7   :  { %16340 = vmatprep.subr.mxu1 %v22647_v55  ;;  %18718 = vmatprep.subr.mxu0 %v23021_v60 }
0x3cb8   :  { %16341 = vmatpush1.msra.mxu1 %v22651_v1  ;;  %18719 = vmatpush3.msra.mxu0 %v22654_v0 }
0x3cb9   :  { %16342 = vmatprep.subr.mxu1 %v22657_v46  ;;  %18720 = vmatprep.subr.mxu0 %v23021_v60 }
0x3cba   :  { %16343 = vmatpush1.msra.mxu1 %v22661_v35  ;;  %18721 = vmatpush3.msra.mxu0 %v22664_v27 }
0x3cbb   :  { %16376 = vmatprep.mubr.f32.mxu1 %v23021_v60  ;;  %18722 = vmatprep.mubr.msk.f32.mxu0 %vm19513_vm0, %v23021_v60 }
0x3cbc   :  { %16480 = vmatprep.subr.mxu1 %v22670_v58  ;;  %18725 = vmatprep.subr.mxu0 %v23021_v60 }
0x3d5f   :  { %v15951_v56 = vpop.f32.mrf.mxu0  ;;  %v15880_v19 = vpop.f32.mrf.mxu1 }
0x3d60   :  { %v15881_v62 = vadd.f32 %v15880_v19, %v22241_v24 }
0x3d61   :  { %v18691_v32 = vpop.f32.mrf.mxu0  ;;  %v15882_v40 = vpop.f32.mrf.mxu1 }
0x3d62   :  { %v15883_v53 = vadd.f32 %v15882_v40, %v22244_v16 }
0x3d68   :  { %v16024_v13 = vpop.f32.mrf.mxu1  ;;  %v16095_v33 = vpop.f32.mrf.mxu0 }
0x3d69   :  { %v16099_v37 = vadd.f32 %v16024_v13, %v15881_v62  ;;  %v16113_v13 = vadd.f32 %v22679_v7, %v16095_v33 }
0x3d6a   :  { %v16026_v14 = vpop.f32.mrf.mxu1  ;;  %v18702_v5 = vpop.f32.mrf.mxu0 }
0x3d6b   :  { %v17513_v21 = vmul.f32 -1.442695, %v16099_v37  ;;  %v16106_v26 = vadd.f32 %v16026_v14, %v15883_v53  ;;  %v15952_v37 = vadd.f32 %v15951_v56, %v22254_v18 }
0x3d6d   :  { %19210 = vpow2.f32 %v17513_v21  ;;  %v17514_v25 = vmul.f32 -1.442695, %v16106_v26 }
0x3d6f   :  { %19212 = vpow2.f32 %v17514_v25 }
0x3d72   :  { %v16187_v48 = vpop.f32.mrf.mxu1  ;;  %v16258_v59 = vpop.f32.mrf.mxu0 }
0x3d73   :  { %v16284_v22 = vadd.f32 %v22544_v20, %v16258_v59  ;;  %16263 = vrot.lane.b32.xlu0 %v16187_v48, %s19514_s0 }
0x3d74   :  { %v18713_v30 = vpop.f32.mrf.mxu0  ;;  %v16189_v11 = vpop.f32.mrf.mxu1 }
0x3d75   :  { %16286 = vrot.lane.b32.xlu1 %v16284_v22, %s19514_s0 }
0x3d79   :  { %16274 = vrot.lane.b32.xlu1 %v16189_v11, %s19516_s25 }
0x3d7a   :  { %v19211_v32 = vpop.eup %19210 }
0x3d7b   :  { %v16103_v19 = vadd.f32 1.0, %v19211_v32 }
0x3d7c   :  { %v19213_v40 = vpop.eup %19212 }
0x3d7d   :  { %19214 = vrcp.f32 %v16103_v19  ;;  %16302 = vrot.lane.b32.xlu1 %v22692_v43, %s19516_s25  ;;  %v16110_v62 = vadd.f32 1.0, %v19213_v40 }
0x3d7f   :  { %19216 = vrcp.f32 %v16110_v62 }
0x3d8a   :  { %v19215_v53 = vpop.eup %19214 }
0x3d8b   :  { %v16114_v14 = vmul.f32 %v19215_v53, %v16113_v13  ;;  %v23202_v13 = vld [vmem:[#allocation20_spill] sm:$0xff] }
0x3d8c   :  { %v19217_v21 = vpop.eup %19216 }
0x3d8d   :  { %v16115_v5 = vadd.f32 %v16114_v14, %v15952_v37  ;;  %v16117_v26 = vsub.f32 1.0, %v19217_v21  ;;  %v16119_v25 = vmul.f32 %v19217_v21, %v22684_v34 }
0x3d8f   :  { %19218 = vtanh.f32 %v16115_v5 }
0x3d9c   :  { %v19219_v48 = vpop.eup %19218 }
0x3d9d   :  { %v16118_v59 = vmul.f32 %v19219_v48, %v16117_v26 }
0x3d9f   :  { %v22774_v22 = vadd.f32 %v16119_v25, %v16118_v59 }
0x3de5   :  { %v16264_v43 = vpop.permute.xlu0 %16263 }
0x3de6   :  { %v16266_v30 = vadd.f32 %v16264_v43, %v23201_v52 }
0x3de7   :  { %v16287_v19 = vpop.permute.xlu1 %16286 }
0x3de8   :  { %v17517_v11 = vmul.f32 -1.442695, %v16266_v30 }
0x3dea   :  { %19220 = vpow2.f32 %v17517_v11 }
0x3deb   :  { %v16275_v37 = vpop.permute.xlu1 %16274 }
0x3dec   :  { %v16277_v14 = vadd.f32 %v16275_v37, %v23201_v52 }
0x3dee   :  { %v17518_v5 = vmul.f32 -1.442695, %v16277_v14 }
0x3def   :  { %v16303_v25 = vpop.permute.xlu1 %16302 }
0x3df7   :  { %v19221_v33 = vpop.eup %19220 }
0x3df8   :  { %v16270_v32 = vadd.f32 1.0, %v19221_v33 }
0x3dfa   :  { %19222 = vrcp.f32 %v16270_v32 }
0x3e07   :  { %v19223_v56 = vpop.eup %19222 }
0x3e08   :  { %v16289_v40 = vmul.f32 %v19223_v56, %v16287_v19 }
0x3e0a   :  { %16291 = vrot.lane.b32.xlu0 %v16289_v40, %s19514_s0 }
0x3e7c   :  { %v16292_v62 = vpop.permute.xlu0 %16291 }
0x3e7d   :  { %v16294_v53 = vadd.f32 %v16292_v62, %v23202_v13 }
0x3e7f   :  { %19224 = vtanh.f32 %v16294_v53 }
0x3e80   :  { %19226 = vpow2.f32 %v17518_v5 }
0x3e8c   :  { %v19225_v34 = vpop.eup %19224 }
0x3e8d   :  { %16298 = vrot.lane.b32.xlu0 %v19225_v34, %s19516_s25  ;;  %v19227_v21 = vpop.eup %19226 }
0x3e8e   :  { %v16281_v26 = vadd.f32 1.0, %v19227_v21 }
0x3e90   :  { %19228 = vrcp.f32 %v16281_v26 }
0x3e9d   :  { %v19229_v48 = vpop.eup %19228 }
0x3e9e   :  { %v16296_v59 = vsub.f32 1.0, %v19229_v48  ;;  %v16305_v30 = vmul.f32 %v19229_v48, %v16303_v25 }
0x3eff   :  { %v16299_v43 = vpop.permute.xlu0 %16298 }
0x3f00   :  { %v16301_v11 = vmul.f32 %v16299_v43, %v16296_v59 }
0x3f02   :  { %v22781_v33 = vadd.f32 %v16305_v30, %v16301_v11 }
0x3f04   :  { %16308 = vrot.lane.b32.xlu0 %v22781_v33, %s19515_s24 }
0x3f76   :  { %v16309_v32 = vpop.permute.xlu0 %16308 }
0x3f77   :  { %17519 = vmatmul.mubr.msk.f32.vlgmr.msra.gmra.mxu1 %vm311_vm2, %v16309_v32  ;;  %18723 = vmatmul.mubr.msk.f32.vlgmr.msra.gmra.mxu0 %vm311_vm2, %v16309_v32 }
0x3f78   :  { %16481 = vmatpush1.msra.mxu1 %v22561_v39  ;;  %18726 = vmatpush3.msra.mxu0 %v22564_v28 }
0x3f79   :  { %16482 = vmatprep.subr.mxu1 %v22567_v63  ;;  %18727 = vmatprep.subr.mxu0 %v23021_v60 }
0x3f7a   :  { %16483 = vmatpush1.msra.mxu1 %v22571_v12  ;;  %18728 = vmatpush3.msra.mxu0 %v22574_v10 }
0x3f7b   :  { %16484 = vmatprep.subr.mxu1 %v22577_v2  ;;  %18729 = vmatprep.subr.mxu0 %v23021_v60 }
0x3f7c   :  { %16485 = vmatpush1.msra.mxu1 %v22581_v49  ;;  %18730 = vmatpush3.msra.mxu0 %v22584_v54 }
0x3f7d   :  { %16486 = vmatprep.subr.mxu1 %v22587_v38  ;;  %18731 = vmatprep.subr.mxu0 %v23021_v60 }
0x3f7e   :  { %16487 = vmatpush1.msra.mxu1 %v22591_v31  ;;  %16520 = vmatprep.mubr.f32.mxu1 %v23021_v60 }
0x3f7f   :  { %18732 = vmatpush3.msra.mxu0 %v22595_v51  ;;  %18733 = vmatprep.mubr.msk.f32.mxu0 %vm19513_vm0, %v23021_v60 }
0x3f80   :  { %17521 = vmatmul.mubr.msk.f32.vlgmr.msra.gmra.mxu1 %vm311_vm2, %v22774_v22  ;;  %18734 = vmatmul.mubr.msk.f32.vlgmr.msra.gmra.mxu0 %vm311_vm2, %v22774_v22 }
0x3f81   :  { %16643 = vmatprep.subr.mxu1 %v22470_v6  ;;  %18736 = vmatprep.subr.mxu0 %v23021_v60 }
0x3f82   :  { %16644 = vmatpush1.msra.mxu1 %v22474_v4  ;;  %18737 = vmatpush3.msra.mxu0 %v22477_v9 }
0x3f83   :  { %16645 = vmatprep.subr.mxu1 %v22480_v8  ;;  %18738 = vmatprep.subr.mxu0 %v23021_v60 }
0x3f84   :  { %16646 = vmatpush1.msra.mxu1 %v22484_v61  ;;  %18739 = vmatpush3.msra.mxu0 %v22487_v44 }
0x3f85   :  { %16647 = vmatprep.subr.mxu1 %v22490_v23  ;;  %18740 = vmatprep.subr.mxu0 %v23021_v60 }
0x3f86   :  { %16648 = vmatpush1.msra.mxu1 %v22494_v42  ;;  %18741 = vmatpush3.msra.mxu0 %v22497_v15 }
0x3f87   :  { %16649 = vmatprep.subr.mxu1 %v22500_v41  ;;  %18742 = vmatprep.subr.mxu0 %v23021_v60 }
0x3f88   :  { %16650 = vmatpush1.msra.mxu1 %v22504_v17  ;;  %16683 = vmatprep.mubr.f32.mxu1 %v23021_v60 }
0x3f89   :  { %18743 = vmatpush3.msra.mxu0 %v22508_v45  ;;  %18744 = vmatprep.mubr.msk.f32.mxu0 %vm19513_vm0, %v23021_v60 }
0x3f8a   :  { %17525 = vmatmul.mubr.msk.f32.vlgmr.msra.gmra.mxu1 %vm311_vm2, %v16309_v32  ;;  %18745 = vmatmul.mubr.msk.f32.vlgmr.msra.gmra.mxu0 %vm311_vm2, %v16309_v32 }
0x3f8b   :  { %16834 = vmatprep.subr.mxu1 %v22627_v36  ;;  %18747 = vmatprep.subr.mxu0 %v23021_v60 }
0x3f8c   :  { %16835 = vmatpush1.msra.mxu1 %v22631_v3  ;;  %18748 = vmatpush3.msra.mxu0 %v22634_v50 }
0x3f8d   :  { %16836 = vmatprep.subr.mxu1 %v22637_v57  ;;  %18749 = vmatprep.subr.mxu0 %v23021_v60 }
0x3f8e   :  { %16837 = vmatpush1.msra.mxu1 %v22641_v29  ;;  %18750 = vmatpush3.msra.mxu0 %v22644_v47 }
0x3f8f   :  { %16838 = vmatprep.subr.mxu1 %v22647_v55  ;;  %18751 = vmatprep.subr.mxu0 %v23021_v60 }
0x3f90   :  { %16839 = vmatpush1.msra.mxu1 %v22651_v1  ;;  %18752 = vmatpush3.msra.mxu0 %v22654_v0 }
0x3f91   :  { %16840 = vmatprep.subr.mxu1 %v22657_v46  ;;  %18753 = vmatprep.subr.mxu0 %v23021_v60 }
0x3f92   :  { %16841 = vmatpush1.msra.mxu1 %v22661_v35  ;;  %18754 = vmatpush3.msra.mxu0 %v22664_v27 }
0x3f93   :  { %16874 = vmatprep.mubr.f32.mxu1 %v23021_v60  ;;  %18755 = vmatprep.mubr.msk.f32.mxu0 %vm19513_vm0, %v23021_v60 }
0x3f94   :  { %16978 = vmatprep.subr.mxu1 %v22670_v58  ;;  %18758 = vmatprep.subr.mxu0 %v23021_v60 }
0x4037   :  { %v16449_v6 = vpop.f32.mrf.mxu0  ;;  %v16378_v9 = vpop.f32.mrf.mxu1 }
0x4038   :  { %v16379_v61 = vadd.f32 %v16378_v9, %v22241_v24  ;;  %v16450_v58 = vadd.f32 %v16449_v6, %v22254_v18 }
0x4039   :  { %v18724_v4 = vpop.f32.mrf.mxu0  ;;  %v16380_v8 = vpop.f32.mrf.mxu1 }
0x403a   :  { %v16381_v42 = vadd.f32 %v16380_v8, %v22244_v16 }
0x4040   :  { %v16522_v44 = vpop.f32.mrf.mxu1  ;;  %v16593_v23 = vpop.f32.mrf.mxu0 }
0x4041   :  { %v16597_v15 = vadd.f32 %v16522_v44, %v16379_v61  ;;  %v16611_v27 = vadd.f32 %v22679_v7, %v16593_v23 }
0x4042   :  { %v16524_v41 = vpop.f32.mrf.mxu1  ;;  %v18735_v17 = vpop.f32.mrf.mxu0 }
0x4043   :  { %v17523_v45 = vmul.f32 -1.442695, %v16597_v15  ;;  %v16604_v36 = vadd.f32 %v16524_v41, %v16381_v42 }
0x4045   :  { %19230 = vpow2.f32 %v17523_v45  ;;  %v17524_v57 = vmul.f32 -1.442695, %v16604_v36 }
0x4047   :  { %19232 = vpow2.f32 %v17524_v57 }
0x404a   :  { %v16685_v3 = vpop.f32.mrf.mxu1  ;;  %v16756_v50 = vpop.f32.mrf.mxu0 }
0x404b   :  { %v16782_v29 = vadd.f32 %v22544_v20, %v16756_v50  ;;  %16761 = vrot.lane.b32.xlu1 %v16685_v3, %s19515_s24 }
0x404c   :  { %v18746_v47 = vpop.f32.mrf.mxu0  ;;  %v16687_v55 = vpop.f32.mrf.mxu1 }
0x404d   :  { %16784 = vrot.lane.b32.xlu0 %v16782_v29, %s19515_s24 }
0x4051   :  { %16772 = vrot.lane.b32.xlu0 %v16687_v55, %s19514_s0 }
0x4052   :  { %v19231_v1 = vpop.eup %19230 }
0x4053   :  { %v16601_v0 = vadd.f32 1.0, %v19231_v1 }
0x4054   :  { %v19233_v46 = vpop.eup %19232 }
0x4055   :  { %19234 = vrcp.f32 %v16601_v0  ;;  %16800 = vrot.lane.b32.xlu0 %v22781_v33, %s19516_s25  ;;  %v16608_v35 = vadd.f32 1.0, %v19233_v46 }
0x4057   :  { %19236 = vrcp.f32 %v16608_v35 }
0x4062   :  { %v19235_v20 = vpop.eup %19234 }
0x4063   :  { %v16612_v52 = vmul.f32 %v19235_v20, %v16611_v27 }
0x4064   :  { %v19237_v19 = vpop.eup %19236 }
0x4065   :  { %v16613_v56 = vadd.f32 %v16612_v52, %v16450_v58  ;;  %v16615_v40 = vsub.f32 1.0, %v19237_v19  ;;  %v16617_v34 = vmul.f32 %v19237_v19, %v22774_v22 }
0x4067   :  { %19238 = vtanh.f32 %v16613_v56 }
0x4074   :  { %v19239_v62 = vpop.eup %19238 }
0x4075   :  { %v16616_v53 = vmul.f32 %v19239_v62, %v16615_v40 }
0x4077   :  { %v22861_v37 = vadd.f32 %v16617_v34, %v16616_v53 }
0x40bd   :  { %v16762_v14 = vpop.permute.xlu1 %16761 }
0x40be   :  { %v16764_v5 = vadd.f32 %v16762_v14, %v23202_v13 }
0x40bf   :  { %v16785_v25 = vpop.permute.xlu0 %16784 }
0x40c0   :  { %v17527_v21 = vmul.f32 -1.442695, %v16764_v5 }
0x40c2   :  { %19240 = vpow2.f32 %v17527_v21  ;;  %v23204_v21 = vld [vmem:[#allocation14_spill] sm:$0xff] }
0x40c3   :  { %v16773_v33 = vpop.permute.xlu0 %16772 }
0x40c4   :  { %v16775_v32 = vadd.f32 %v16773_v33, %v23202_v13 }
0x40c6   :  { %v17528_v6 = vmul.f32 -1.442695, %v16775_v32 }
0x40c7   :  { %v16801_v44 = vpop.permute.xlu0 %16800 }
0x40cf   :  { %v19241_v26 = vpop.eup %19240 }
0x40d0   :  { %v16768_v48 = vadd.f32 1.0, %v19241_v26 }
0x40d2   :  { %19242 = vrcp.f32 %v16768_v48 }
0x40df   :  { %v19243_v59 = vpop.eup %19242 }
0x40e0   :  { %v16787_v43 = vmul.f32 %v19243_v59, %v16785_v25 }
0x40e2   :  { %16789 = vrot.lane.b32.xlu1 %v16787_v43, %s19514_s0 }
0x4154   :  { %v16790_v30 = vpop.permute.xlu1 %16789 }
0x4155   :  { %v16792_v11 = vadd.f32 %v16790_v30, %v23202_v13 }
0x4157   :  { %19244 = vtanh.f32 %v16792_v11 }
0x4158   :  { %19246 = vpow2.f32 %v17528_v6 }
0x4164   :  { %v19245_v22 = vpop.eup %19244 }
0x4165   :  { %16796 = vrot.lane.b32.xlu1 %v19245_v22, %s19516_s25  ;;  %v19247_v4 = vpop.eup %19246 }
0x4166   :  { %v16779_v9 = vadd.f32 1.0, %v19247_v4 }
0x4168   :  { %19248 = vrcp.f32 %v16779_v9 }
0x4175   :  { %v19249_v8 = vpop.eup %19248 }
0x4176   :  { %v16794_v61 = vsub.f32 1.0, %v19249_v8  ;;  %v16803_v42 = vmul.f32 %v19249_v8, %v16801_v44 }
0x41d7   :  { %v16797_v23 = vpop.permute.xlu1 %16796 }
0x41d8   :  { %v16799_v15 = vmul.f32 %v16797_v23, %v16794_v61 }
0x41da   :  { %v16804_v41 = vadd.f32 %v16803_v42, %v16799_v15 }
0x41dc   :  { %16806 = vrot.lane.b32.xlu1 %v16804_v41, %s19514_s0 }
0x424e   :  { %v16807_v17 = vpop.permute.xlu1 %16806 }
0x424f   :  { %17217 = vst.msk [vmem:[%s22920_s5] sm:$0xff] %vm311_vm2, %v16807_v17  ;;  %17529 = vmatmul.mubr.msk.f32.vlgmr.msra.gmra.mxu1 %vm311_vm2, %v16807_v17  ;;  %18756 = vmatmul.mubr.msk.f32.vlgmr.msra.gmra.mxu0 %vm311_vm2, %v16807_v17 }
0x4250   :  { %16979 = vmatpush1.msra.mxu1 %v22561_v39  ;;  %18759 = vmatpush3.msra.mxu0 %v22564_v28  ;;  %v17125_v39 = vld [vmem:[#allocation2 + $0x4d0] sm:$0xff]  ;;  %v17124_v28 = vld [vmem:[#allocation2 + $0x4c8] sm:$0xff] }
0x4251   :  { %16980 = vmatprep.subr.mxu1 %v22567_v63  ;;  %18760 = vmatprep.subr.mxu0 %v23021_v60  ;;  %v17123_v63 = vld [vmem:[#allocation2 + $0x4b8] sm:$0xff] }
0x4252   :  { %16981 = vmatpush1.msra.mxu1 %v22571_v12  ;;  %18761 = vmatpush3.msra.mxu0 %v22574_v10  ;;  %v17122_v12 = vld [vmem:[#allocation2 + $0x4b0] sm:$0xff]  ;;  %v17121_v10 = vld [vmem:[#allocation2 + $0x4a0] sm:$0xff] }
0x4253   :  { %16982 = vmatprep.subr.mxu1 %v22577_v2  ;;  %18762 = vmatprep.subr.mxu0 %v23021_v60  ;;  %v17120_v2 = vld [vmem:[#allocation2 + $0x498] sm:$0xff] }
0x4254   :  { %16983 = vmatpush1.msra.mxu1 %v22581_v49  ;;  %18763 = vmatpush3.msra.mxu0 %v22584_v54  ;;  %v17119_v49 = vld [vmem:[#allocation2 + $0x488] sm:$0xff]  ;;  %v17118_v54 = vld [vmem:[#allocation2 + $0x480] sm:$0xff] }
0x4255   :  { %16984 = vmatprep.subr.mxu1 %v22587_v38  ;;  %18764 = vmatprep.subr.mxu0 %v23021_v60 }
0x4256   :  { %16985 = vmatpush1.msra.mxu1 %v22591_v31  ;;  %17018 = vmatprep.mubr.f32.mxu1 %v23021_v60 }
0x4257   :  { %18765 = vmatpush3.msra.mxu0 %v22595_v51  ;;  %18766 = vmatprep.mubr.msk.f32.mxu0 %vm19513_vm0, %v23021_v60 }
0x4258   :  { %17531 = vmatmul.mubr.msk.f32.vlgmr.msra.gmra.mxu1 %vm311_vm2, %v22861_v37  ;;  %18767 = vmatmul.mubr.msk.f32.vlgmr.msra.gmra.mxu0 %vm311_vm2, %v22861_v37 }
0x4259   :  { %17206 = vmatprep.mubr.f32.mxu1 %v23021_v60  ;;  %17166 = vmatprep.subr.mxu1 %v17125_v39 }
0x425a   :  { %17167 = vmatpush1.msra.mxu1 %v17124_v28 }
0x425b   :  { %17168 = vmatprep.subr.mxu1 %v17123_v63 }
0x425c   :  { %17169 = vmatpush1.msra.mxu1 %v17122_v12 }
0x425d   :  { %17170 = vmatprep.subr.mxu1 %v17121_v10 }
0x425e   :  { %17171 = vmatpush1.msra.mxu1 %v17120_v2 }
0x425f   :  { %17172 = vmatprep.subr.mxu1 %v17119_v49 }
0x4260   :  { %17173 = vmatpush1.msra.mxu1 %v17118_v54 }
0x430f   :  { %v16947_v38 = vpop.f32.mrf.mxu0  ;;  %v16876_v51 = vpop.f32.mrf.mxu1 }
0x4310   :  { %v16877_v13 = vadd.f32 %v16876_v51, %v22241_v24  ;;  %v16948_v58 = vadd.f32 %v16947_v38, %v22254_v18  ;;  %v17127_v18 = vld [vmem:[#allocation2 + $0x4e0] ss:$8 sm:$0x7] }
0x4311   :  { %v18757_v31 = vpop.f32.mrf.mxu0  ;;  %v16878_v60 = vpop.f32.mrf.mxu1  ;;  %v17136_v26 = vrot.slane %v17127_v18, %v23204_v21 }
0x4312   :  { %v16879_v47 = vadd.f32 %v16878_v60, %v22244_v16 }
0x4318   :  { %v17020_v45 = vpop.f32.mrf.mxu1  ;;  %v17091_v36 = vpop.f32.mrf.mxu0 }
0x4319   :  { %v17095_v3 = vadd.f32 %v17020_v45, %v16877_v13  ;;  %v17109_v20 = vadd.f32 %v22679_v7, %v17091_v36  ;;  %v23203_v7 = vld [vmem:[#allocation12_spill] sm:$0xff] }
0x431a   :  { %v18768_v50 = vpop.f32.mrf.mxu0  ;;  %v17022_v29 = vpop.f32.mrf.mxu1  ;;  %v17132_v5 = vrot.slane %v17127_v18, %v23203_v7 }
0x431b   :  { %v17533_v57 = vmul.f32 -1.442695, %v17095_v3  ;;  %v17102_v55 = vadd.f32 %v17022_v29, %v16879_v47 }
0x431d   :  { %19250 = vpow2.f32 %v17533_v57  ;;  %v17534_v1 = vmul.f32 -1.442695, %v17102_v55 }
0x431f   :  { %19252 = vpow2.f32 %v17534_v1 }
0x432a   :  { %v19251_v0 = vpop.eup %19250 }
0x432b   :  { %v17099_v46 = vadd.f32 1.0, %v19251_v0 }
0x432c   :  { %v19253_v35 = vpop.eup %19252 }
0x432d   :  { %19254 = vrcp.f32 %v17099_v46  ;;  %v17106_v27 = vadd.f32 1.0, %v19253_v35 }
0x432f   :  { %19256 = vrcp.f32 %v17106_v27 }
0x433a   :  { %v19255_v24 = vpop.eup %19254 }
0x433b   :  { %v17110_v52 = vmul.f32 %v19255_v24, %v17109_v20 }
0x433c   :  { %v19257_v19 = vpop.eup %19256 }
0x433d   :  { %v17111_v56 = vadd.f32 %v17110_v52, %v16948_v58  ;;  %v17113_v16 = vsub.f32 1.0, %v19257_v19  ;;  %v17115_v62 = vmul.f32 %v19257_v19, %v22861_v37 }
0x433f   :  { %19258 = vtanh.f32 %v17111_v56 }
0x434c   :  { %v19259_v40 = vpop.eup %19258 }
0x434d   :  { %v17114_v53 = vmul.f32 %v19259_v40, %v17113_v16 }
0x434f   :  { %v17116_v34 = vadd.f32 %v17115_v62, %v17114_v53 }
0x4351   :  { %v17117_v14 = vmax.f32 %v17116_v34, 0.0  ;;  %17536 = vst.msk [vmem:[%s22920_s5 + $0x8] sm:$0xff] %vm311_vm2, %v17116_v34 }
0x4353   :  { %17535 = vmatmul.mubr.msk.f32.vlgmr.msra.gmra.mxu1 %vm311_vm2, %v17117_v14 }
0x4413   :  { %v17208_v48 = vpop.f32.mrf.mxu1 }
0x4414   :  { %v17209_v59 = vadd.f32 %v17208_v48, %v17132_v5 }
0x4415   :  { %v17210_v25 = vpop.f32.mrf.mxu1 }
0x4416   :  { %17213 = vst [vmem:[%s22919_s4] sm:$0xff] %v17209_v59  ;;  %v17211_v37 = vadd.f32 %v17210_v25, %v17136_v26 }
0x4418   :  { %17215 = vst.msk [vmem:[%s22919_s4 + $0x8] sm:$0xff] %vm17214_vm3, %v17211_v37 }
0x4419   :  { %17228 = vsyncpa [#allocation3], 1 }
0x441a   :  { %17229 = vsyncpa [#allocation5], 1 }

</bundles_post_ra>
